<compile_context>
chip_gen: v6e
topology: v6e:2x2x1
jax: 0.10.0
libtpu: 0.0.40
codegen_flags: <defaults>
</compile_context>

<pallas_src>
import functools

import jax
import jax.numpy as jnp
from jax.experimental import pallas as pl
from jax.experimental.pallas import tpu as pltpu


# ----------------------------------------------------------------------------
# Single fused kernel: [conv3x3 -> BN -> ReLU] -> [conv3x3 -> BN -> Tanh]
# ----------------------------------------------------------------------------
def _cnn_fused_kernel(x_ref, w1_ref, g1_ref, b1_ref, w2_ref, g2_ref, b2_ref,
                      o_ref, xp1_ref, xp2_ref, *, N, H, W, eps):
    C_in = x_ref.shape[-1]
    C1 = w1_ref.shape[-1]
    C2 = w2_ref.shape[-1]
    P = N * H * W

    def conv3x3(xp_ref, w_ref, cin):
        # 3x3 "same" conv as 9 shifted matmuls on the MXU, fp32 accumulation.
        acc = jnp.zeros((P, w_ref.shape[-1]), jnp.float32)
        for di in range(3):
            for dj in range(3):
                patch = xp_ref[:, di:di + H, dj:dj + W, :].reshape(P, cin)
                acc = acc + jnp.dot(patch, w_ref[di, dj, :, :],
                                    preferred_element_type=jnp.float32)
        return acc  # (P, Cout)

    def bn_channel_major(t, g_ref, b_ref):
        # t: (Cout, P) channel-major (lane-dense).  Training-mode BatchNorm2d:
        # biased batch statistics over all pixels, per channel.
        mean = jnp.mean(t, axis=1, keepdims=True)
        cent = t - mean
        var = jnp.mean(cent * cent, axis=1, keepdims=True)
        return cent * jax.lax.rsqrt(var + eps) * g_ref[...] + b_ref[...]

    # ---------------- layer 1: pad input in-kernel ----------------
    xp1_ref[...] = jnp.zeros_like(xp1_ref)
    xp1_ref[:, 1:H + 1, 1:W + 1, :] = x_ref[...]

    acc1 = conv3x3(xp1_ref, w1_ref, C_in)                  # (P, C1)
    t1 = jnp.transpose(acc1)                               # (C1, P) lane-dense
    y1 = jnp.maximum(bn_channel_major(t1, g1_ref, b1_ref), 0.0)   # ReLU

    # Back to padded NHWC VMEM scratch for layer 2's conv (stays on-chip).
    y1_nhwc = jnp.transpose(y1).reshape(N, H, W, C1)
    xp2_ref[...] = jnp.zeros_like(xp2_ref)
    xp2_ref[:, 1:H + 1, 1:W + 1, :] = y1_nhwc

    # ---------------- layer 2 ----------------
    acc2 = conv3x3(xp2_ref, w2_ref, C1)                    # (P, C2)
    t2 = jnp.transpose(acc2)                               # (C2, P) lane-dense
    y2 = jnp.tanh(bn_channel_major(t2, g2_ref, b2_ref))
    o_ref[...] = y2.astype(o_ref.dtype)                    # (C2, P) full-width store


# ----------------------------------------------------------------------------
# Model wrapper
# ----------------------------------------------------------------------------
H_CONV_SIZE = [
    dict(in_channels=4, out_channels=8, kernel_size=3, padding=1),
    dict(in_channels=8, out_channels=8, kernel_size=3, padding=1),
]
# h_mlp_size = []  (the MLP branch of _build_layers is unused in this config)


def init_params(key, h_conv_size, init_gain=0.02):
    params = []
    for cfg in h_conv_size:
        k = cfg["kernel_size"]
        cin, cout = cfg["in_channels"], cfg["out_channels"]
        key, kw, kg = jax.random.split(key, 3)
        w = init_gain * jax.random.normal(kw, (k, k, cin, cout), jnp.float32)
        b = jnp.zeros((cout,), jnp.float32)        # kept for the reference; a
        gamma = 1.0 + init_gain * jax.random.normal(kg, (cout,), jnp.float32)
        beta = jnp.zeros((cout,), jnp.float32)     # pre-BN bias cancels anyway
        params.append((w, b, gamma, beta))
    return params


def cnn_forward(x_nchw, params):
    """Forward pass of CNN (Conv->BN->ReLU -> Conv->BN->Tanh), NCHW in/out."""
    N, C_in, H, W = x_nchw.shape
    (w1, _b1, g1, be1), (w2, _b2, g2, be2) = params
    C1 = w1.shape[-1]
    C2 = w2.shape[-1]
    P = N * H * W

    x_nhwc = jnp.transpose(x_nchw, (0, 2, 3, 1))           # single boundary op

    kernel = functools.partial(_cnn_fused_kernel, N=N, H=H, W=W, eps=1e-5)
    out_cm = pl.pallas_call(
        kernel,
        out_shape=jax.ShapeDtypeStruct((C2, P), jnp.float32),
        grid=(1,),
        in_specs=[
            pl.BlockSpec(x_nhwc.shape, lambda i: (0, 0, 0, 0)),
            pl.BlockSpec(w1.shape, lambda i: (0, 0, 0, 0)),
            pl.BlockSpec((C1, 1), lambda i: (0, 0)),
            pl.BlockSpec((C1, 1), lambda i: (0, 0)),
            pl.BlockSpec(w2.shape, lambda i: (0, 0, 0, 0)),
            pl.BlockSpec((C2, 1), lambda i: (0, 0)),
            pl.BlockSpec((C2, 1), lambda i: (0, 0)),
        ],
        out_specs=pl.BlockSpec((C2, P), lambda i: (0, 0)),
        scratch_shapes=[
            pltpu.VMEM((N, H + 2, W + 2, C_in), jnp.float32),  # padded input
            pltpu.VMEM((N, H + 2, W + 2, C1), jnp.float32),    # padded layer-1 act
        ],
        compiler_params=pltpu.CompilerParams(
            dimension_semantics=("arbitrary",)),
    )(x_nhwc, w1, g1.reshape(C1, 1), be1.reshape(C1, 1),
      w2, g2.reshape(C2, 1), be2.reshape(C2, 1))

    # (C2, N*H*W) channel-major -> NCHW
    return jnp.transpose(out_cm.reshape(C2, N, H, W), (1, 0, 2, 3))


# Pure-JAX reference for a correctness check (includes the conv bias, which is
# a no-op before BatchNorm — demonstrating the kernel's bias elision is safe).
def cnn_forward_ref(x_nchw, params):
    y = jnp.transpose(x_nchw, (0, 2, 3, 1))
    for li, ((w, b, gamma, beta), cfg) in enumerate(zip(params, H_CONV_SIZE)):
        p = cfg["padding"]
        y = jax.lax.conv_general_dilated(
            y, w, window_strides=(1, 1), padding=((p, p), (p, p)),
            dimension_numbers=("NHWC", "HWIO", "NHWC")) + b
        mean = jnp.mean(y, axis=(0, 1, 2), keepdims=True)
        var = jnp.mean((y - mean) ** 2, axis=(0, 1, 2), keepdims=True)
        y = (y - mean) * jax.lax.rsqrt(var + 1e-5) * gamma + beta
        y = jnp.tanh(y) if li == len(params) - 1 else jnp.maximum(y, 0.0)
    return jnp.transpose(y, (0, 3, 1, 2))


if __name__ == "__main__":
    key = jax.random.PRNGKey(0)
    kx, kp = jax.random.split(key)

    # NCHW image batch, matching the module's doc convention.
    x = jax.random.normal(kx, (2, 4, 16, 16), jnp.float32)
    params = init_params(kp, H_CONV_SIZE)

    out = jax.block_until_ready(cnn_forward(x, params))
    ref = jax.block_until_ready(cnn_forward_ref(x, params))

    assert out.shape == (2, 8, 16, 16), out.shape
    assert jnp.allclose(out, ref, atol=1e-3, rtol=1e-3), \
        float(jnp.max(jnp.abs(out - ref)))

    # TODO(synk): BatchNorm running_mean/running_var buffer updates are a
    # training-time side effect and do not affect this forward output.
    print("KERNEL_OK")
</pallas_src>

<mosaic_0001>
module attributes {stable_mosaic.version = 11 : i64} {
  func.func @_cnn_fused_kernel(%arg0: i32, %arg1: memref<2x16x16x4xf32, #tpu.memory_space<vmem>>, %arg2: memref<3x3x4x8xf32, #tpu.memory_space<vmem>>, %arg3: memref<8x1xf32, #tpu.memory_space<vmem>>, %arg4: memref<8x1xf32, #tpu.memory_space<vmem>>, %arg5: memref<3x3x8x8xf32, #tpu.memory_space<vmem>>, %arg6: memref<8x1xf32, #tpu.memory_space<vmem>>, %arg7: memref<8x1xf32, #tpu.memory_space<vmem>>, %arg8: memref<8x512xf32, #tpu.memory_space<vmem>>, %arg9: memref<2x18x18x4xf32, #tpu.memory_space<vmem>>, %arg10: memref<2x18x18x8xf32, #tpu.memory_space<vmem>>) attributes {dimension_semantics = [#tpu.dimension_semantics<arbitrary>], iteration_bounds = array<i64: 1>, scalar_prefetch = 0 : i64, scratch_operands = 2 : i64, tpu.core_type = #tpu.core_type<tc>, window_params = [{pipeline_mode = #tpu.pipeline_mode<synchronous>, transform_indices = @transform_0, window_bounds = array<i64: 2, 16, 16, 4>}, {pipeline_mode = #tpu.pipeline_mode<synchronous>, transform_indices = @transform_1, window_bounds = array<i64: 3, 3, 4, 8>}, {pipeline_mode = #tpu.pipeline_mode<synchronous>, transform_indices = @transform_2, window_bounds = array<i64: 8, 1>}, {pipeline_mode = #tpu.pipeline_mode<synchronous>, transform_indices = @transform_3, window_bounds = array<i64: 8, 1>}, {pipeline_mode = #tpu.pipeline_mode<synchronous>, transform_indices = @transform_4, window_bounds = array<i64: 3, 3, 8, 8>}, {pipeline_mode = #tpu.pipeline_mode<synchronous>, transform_indices = @transform_5, window_bounds = array<i64: 8, 1>}, {pipeline_mode = #tpu.pipeline_mode<synchronous>, transform_indices = @transform_6, window_bounds = array<i64: 8, 1>}, {pipeline_mode = #tpu.pipeline_mode<synchronous>, transform_indices = @transform_7, window_bounds = array<i64: 8, 512>}]} {
    %cst = arith.constant 0.000000e+00 : f32
    %0 = vector.broadcast %cst : f32 to vector<2x18x18x4xf32>
    %c0 = arith.constant 0 : index
    %c0_0 = arith.constant 0 : index
    %c0_1 = arith.constant 0 : index
    %c0_2 = arith.constant 0 : index
    %1 = vector.load %arg9[%c0, %c0_0, %c0_1, %c0_2] : memref<2x18x18x4xf32, #tpu.memory_space<vmem>>, vector<2x18x18x4xf32>
    tpu.vector_store %arg9[%c0, %c0_0, %c0_1, %c0_2], %0 {strides = array<i32>} : memref<2x18x18x4xf32, #tpu.memory_space<vmem>>, vector<2x18x18x4xf32>,
    %c0_3 = arith.constant 0 : index
    %c0_4 = arith.constant 0 : index
    %c0_5 = arith.constant 0 : index
    %c0_6 = arith.constant 0 : index
    %2 = vector.load %arg1[%c0_3, %c0_4, %c0_5, %c0_6] : memref<2x16x16x4xf32, #tpu.memory_space<vmem>>, vector<2x16x16x4xf32>
    %c0_7 = arith.constant 0 : index
    %c1 = arith.constant 1 : index
    %c1_8 = arith.constant 1 : index
    %c0_9 = arith.constant 0 : index
    %3 = vector.load %arg9[%c0_7, %c1, %c1_8, %c0_9] : memref<2x18x18x4xf32, #tpu.memory_space<vmem>>, vector<2x16x16x4xf32>
    tpu.vector_store %arg9[%c0_7, %c1, %c1_8, %c0_9], %2 {strides = array<i32>} : memref<2x18x18x4xf32, #tpu.memory_space<vmem>>, vector<2x16x16x4xf32>,
    %cst_10 = arith.constant 0.000000e+00 : f32
    %4 = vector.broadcast %cst_10 : f32 to vector<512x8xf32>
    %c0_11 = arith.constant 0 : index
    %c0_12 = arith.constant 0 : index
    %c0_13 = arith.constant 0 : index
    %c0_14 = arith.constant 0 : index
    %5 = vector.load %arg9[%c0_11, %c0_12, %c0_13, %c0_14] : memref<2x18x18x4xf32, #tpu.memory_space<vmem>>, vector<2x16x16x4xf32>
    %6 = vector.shape_cast %5 : vector<2x16x16x4xf32> to vector<512x4xf32>
    %c0_15 = arith.constant 0 : index
    %c0_16 = arith.constant 0 : index
    %c0_17 = arith.constant 0 : index
    %c0_18 = arith.constant 0 : index
    %7 = vector.load %arg2[%c0_15, %c0_16, %c0_17, %c0_18] : memref<3x3x4x8xf32, #tpu.memory_space<vmem>>, vector<1x1x4x8xf32>
    %8 = vector.shape_cast %7 : vector<1x1x4x8xf32> to vector<4x8xf32>
    %cst_19 = arith.constant dense<0.000000e+00> : vector<512x8xf32>
    %9 = tpu.matmul %6, %8, %cst_19 {dimension_numbers = #tpu.dot_dimension_numbers<[1], [0], [0], [1], [0, 0, 1, 1], [], []>} : vector<512x4xf32>, vector<4x8xf32>, vector<512x8xf32> -> vector<512x8xf32>
    %10 = arith.addf %4, %9 : vector<512x8xf32>
    %c0_20 = arith.constant 0 : index
    %c0_21 = arith.constant 0 : index
    %c1_22 = arith.constant 1 : index
    %c0_23 = arith.constant 0 : index
    %11 = vector.load %arg9[%c0_20, %c0_21, %c1_22, %c0_23] : memref<2x18x18x4xf32, #tpu.memory_space<vmem>>, vector<2x16x16x4xf32>
    %12 = vector.shape_cast %11 : vector<2x16x16x4xf32> to vector<512x4xf32>
    %c0_24 = arith.constant 0 : index
    %c1_25 = arith.constant 1 : index
    %c0_26 = arith.constant 0 : index
    %c0_27 = arith.constant 0 : index
    %13 = vector.load %arg2[%c0_24, %c1_25, %c0_26, %c0_27] : memref<3x3x4x8xf32, #tpu.memory_space<vmem>>, vector<1x1x4x8xf32>
    %14 = vector.shape_cast %13 : vector<1x1x4x8xf32> to vector<4x8xf32>
    %cst_28 = arith.constant dense<0.000000e+00> : vector<512x8xf32>
    %15 = tpu.matmul %12, %14, %cst_28 {dimension_numbers = #tpu.dot_dimension_numbers<[1], [0], [0], [1], [0, 0, 1, 1], [], []>} : vector<512x4xf32>, vector<4x8xf32>, vector<512x8xf32> -> vector<512x8xf32>
    %16 = arith.addf %10, %15 : vector<512x8xf32>
    %c0_29 = arith.constant 0 : index
    %c0_30 = arith.constant 0 : index
    %c2 = arith.constant 2 : index
    %c0_31 = arith.constant 0 : index
    %17 = vector.load %arg9[%c0_29, %c0_30, %c2, %c0_31] : memref<2x18x18x4xf32, #tpu.memory_space<vmem>>, vector<2x16x16x4xf32>
    %18 = vector.shape_cast %17 : vector<2x16x16x4xf32> to vector<512x4xf32>
    %c0_32 = arith.constant 0 : index
    %c2_33 = arith.constant 2 : index
    %c0_34 = arith.constant 0 : index
    %c0_35 = arith.constant 0 : index
    %19 = vector.load %arg2[%c0_32, %c2_33, %c0_34, %c0_35] : memref<3x3x4x8xf32, #tpu.memory_space<vmem>>, vector<1x1x4x8xf32>
    %20 = vector.shape_cast %19 : vector<1x1x4x8xf32> to vector<4x8xf32>
    %cst_36 = arith.constant dense<0.000000e+00> : vector<512x8xf32>
    %21 = tpu.matmul %18, %20, %cst_36 {dimension_numbers = #tpu.dot_dimension_numbers<[1], [0], [0], [1], [0, 0, 1, 1], [], []>} : vector<512x4xf32>, vector<4x8xf32>, vector<512x8xf32> -> vector<512x8xf32>
    %22 = arith.addf %16, %21 : vector<512x8xf32>
    %c0_37 = arith.constant 0 : index
    %c1_38 = arith.constant 1 : index
    %c0_39 = arith.constant 0 : index
    %c0_40 = arith.constant 0 : index
    %23 = vector.load %arg9[%c0_37, %c1_38, %c0_39, %c0_40] : memref<2x18x18x4xf32, #tpu.memory_space<vmem>>, vector<2x16x16x4xf32>
    %24 = vector.shape_cast %23 : vector<2x16x16x4xf32> to vector<512x4xf32>
    %c1_41 = arith.constant 1 : index
    %c0_42 = arith.constant 0 : index
    %c0_43 = arith.constant 0 : index
    %c0_44 = arith.constant 0 : index
    %25 = vector.load %arg2[%c1_41, %c0_42, %c0_43, %c0_44] : memref<3x3x4x8xf32, #tpu.memory_space<vmem>>, vector<1x1x4x8xf32>
    %26 = vector.shape_cast %25 : vector<1x1x4x8xf32> to vector<4x8xf32>
    %cst_45 = arith.constant dense<0.000000e+00> : vector<512x8xf32>
    %27 = tpu.matmul %24, %26, %cst_45 {dimension_numbers = #tpu.dot_dimension_numbers<[1], [0], [0], [1], [0, 0, 1, 1], [], []>} : vector<512x4xf32>, vector<4x8xf32>, vector<512x8xf32> -> vector<512x8xf32>
    %28 = arith.addf %22, %27 : vector<512x8xf32>
    %c0_46 = arith.constant 0 : index
    %c1_47 = arith.constant 1 : index
    %c1_48 = arith.constant 1 : index
    %c0_49 = arith.constant 0 : index
    %29 = vector.load %arg9[%c0_46, %c1_47, %c1_48, %c0_49] : memref<2x18x18x4xf32, #tpu.memory_space<vmem>>, vector<2x16x16x4xf32>
    %30 = vector.shape_cast %29 : vector<2x16x16x4xf32> to vector<512x4xf32>
    %c1_50 = arith.constant 1 : index
    %c1_51 = arith.constant 1 : index
    %c0_52 = arith.constant 0 : index
    %c0_53 = arith.constant 0 : index
    %31 = vector.load %arg2[%c1_50, %c1_51, %c0_52, %c0_53] : memref<3x3x4x8xf32, #tpu.memory_space<vmem>>, vector<1x1x4x8xf32>
    %32 = vector.shape_cast %31 : vector<1x1x4x8xf32> to vector<4x8xf32>
    %cst_54 = arith.constant dense<0.000000e+00> : vector<512x8xf32>
    %33 = tpu.matmul %30, %32, %cst_54 {dimension_numbers = #tpu.dot_dimension_numbers<[1], [0], [0], [1], [0, 0, 1, 1], [], []>} : vector<512x4xf32>, vector<4x8xf32>, vector<512x8xf32> -> vector<512x8xf32>
    %34 = arith.addf %28, %33 : vector<512x8xf32>
    %c0_55 = arith.constant 0 : index
    %c1_56 = arith.constant 1 : index
    %c2_57 = arith.constant 2 : index
    %c0_58 = arith.constant 0 : index
    %35 = vector.load %arg9[%c0_55, %c1_56, %c2_57, %c0_58] : memref<2x18x18x4xf32, #tpu.memory_space<vmem>>, vector<2x16x16x4xf32>
    %36 = vector.shape_cast %35 : vector<2x16x16x4xf32> to vector<512x4xf32>
    %c1_59 = arith.constant 1 : index
    %c2_60 = arith.constant 2 : index
    %c0_61 = arith.constant 0 : index
    %c0_62 = arith.constant 0 : index
    %37 = vector.load %arg2[%c1_59, %c2_60, %c0_61, %c0_62] : memref<3x3x4x8xf32, #tpu.memory_space<vmem>>, vector<1x1x4x8xf32>
    %38 = vector.shape_cast %37 : vector<1x1x4x8xf32> to vector<4x8xf32>
    %cst_63 = arith.constant dense<0.000000e+00> : vector<512x8xf32>
    %39 = tpu.matmul %36, %38, %cst_63 {dimension_numbers = #tpu.dot_dimension_numbers<[1], [0], [0], [1], [0, 0, 1, 1], [], []>} : vector<512x4xf32>, vector<4x8xf32>, vector<512x8xf32> -> vector<512x8xf32>
    %40 = arith.addf %34, %39 : vector<512x8xf32>
    %c0_64 = arith.constant 0 : index
    %c2_65 = arith.constant 2 : index
    %c0_66 = arith.constant 0 : index
    %c0_67 = arith.constant 0 : index
    %41 = vector.load %arg9[%c0_64, %c2_65, %c0_66, %c0_67] : memref<2x18x18x4xf32, #tpu.memory_space<vmem>>, vector<2x16x16x4xf32>
    %42 = vector.shape_cast %41 : vector<2x16x16x4xf32> to vector<512x4xf32>
    %c2_68 = arith.constant 2 : index
    %c0_69 = arith.constant 0 : index
    %c0_70 = arith.constant 0 : index
    %c0_71 = arith.constant 0 : index
    %43 = vector.load %arg2[%c2_68, %c0_69, %c0_70, %c0_71] : memref<3x3x4x8xf32, #tpu.memory_space<vmem>>, vector<1x1x4x8xf32>
    %44 = vector.shape_cast %43 : vector<1x1x4x8xf32> to vector<4x8xf32>
    %cst_72 = arith.constant dense<0.000000e+00> : vector<512x8xf32>
    %45 = tpu.matmul %42, %44, %cst_72 {dimension_numbers = #tpu.dot_dimension_numbers<[1], [0], [0], [1], [0, 0, 1, 1], [], []>} : vector<512x4xf32>, vector<4x8xf32>, vector<512x8xf32> -> vector<512x8xf32>
    %46 = arith.addf %40, %45 : vector<512x8xf32>
    %c0_73 = arith.constant 0 : index
    %c2_74 = arith.constant 2 : index
    %c1_75 = arith.constant 1 : index
    %c0_76 = arith.constant 0 : index
    %47 = vector.load %arg9[%c0_73, %c2_74, %c1_75, %c0_76] : memref<2x18x18x4xf32, #tpu.memory_space<vmem>>, vector<2x16x16x4xf32>
    %48 = vector.shape_cast %47 : vector<2x16x16x4xf32> to vector<512x4xf32>
    %c2_77 = arith.constant 2 : index
    %c1_78 = arith.constant 1 : index
    %c0_79 = arith.constant 0 : index
    %c0_80 = arith.constant 0 : index
    %49 = vector.load %arg2[%c2_77, %c1_78, %c0_79, %c0_80] : memref<3x3x4x8xf32, #tpu.memory_space<vmem>>, vector<1x1x4x8xf32>
    %50 = vector.shape_cast %49 : vector<1x1x4x8xf32> to vector<4x8xf32>
    %cst_81 = arith.constant dense<0.000000e+00> : vector<512x8xf32>
    %51 = tpu.matmul %48, %50, %cst_81 {dimension_numbers = #tpu.dot_dimension_numbers<[1], [0], [0], [1], [0, 0, 1, 1], [], []>} : vector<512x4xf32>, vector<4x8xf32>, vector<512x8xf32> -> vector<512x8xf32>
    %52 = arith.addf %46, %51 : vector<512x8xf32>
    %c0_82 = arith.constant 0 : index
    %c2_83 = arith.constant 2 : index
    %c2_84 = arith.constant 2 : index
    %c0_85 = arith.constant 0 : index
    %53 = vector.load %arg9[%c0_82, %c2_83, %c2_84, %c0_85] : memref<2x18x18x4xf32, #tpu.memory_space<vmem>>, vector<2x16x16x4xf32>
    %54 = vector.shape_cast %53 : vector<2x16x16x4xf32> to vector<512x4xf32>
    %c2_86 = arith.constant 2 : index
    %c2_87 = arith.constant 2 : index
    %c0_88 = arith.constant 0 : index
    %c0_89 = arith.constant 0 : index
    %55 = vector.load %arg2[%c2_86, %c2_87, %c0_88, %c0_89] : memref<3x3x4x8xf32, #tpu.memory_space<vmem>>, vector<1x1x4x8xf32>
    %56 = vector.shape_cast %55 : vector<1x1x4x8xf32> to vector<4x8xf32>
    %cst_90 = arith.constant dense<0.000000e+00> : vector<512x8xf32>
    %57 = tpu.matmul %54, %56, %cst_90 {dimension_numbers = #tpu.dot_dimension_numbers<[1], [0], [0], [1], [0, 0, 1, 1], [], []>} : vector<512x4xf32>, vector<4x8xf32>, vector<512x8xf32> -> vector<512x8xf32>
    %58 = arith.addf %52, %57 : vector<512x8xf32>
    %59 = tpu.transpose %58, [1, 0] : vector<512x8xf32> -> vector<8x512xf32>
    %cst_91 = arith.constant dense<0.000000e+00> : vector<8xf32>
    %60 = vector.multi_reduction <add>, %59, %cst_91 [1] : vector<8x512xf32> to vector<8xf32>
    %61 = vector.shape_cast %60 : vector<8xf32> to vector<8x1xf32>
    %cst_92 = arith.constant 5.120000e+02 : f32
    %62 = vector.broadcast %cst_92 : f32 to vector<8x1xf32>
    %63 = arith.divf %61, %62 : vector<8x1xf32>
    %64 = vector.broadcast %63 : vector<8x1xf32> to vector<8x512xf32>
    %65 = arith.subf %59, %64 : vector<8x512xf32>
    %66 = arith.mulf %65, %65 : vector<8x512xf32>
    %cst_93 = arith.constant dense<0.000000e+00> : vector<8xf32>
    %67 = vector.multi_reduction <add>, %66, %cst_93 [1] : vector<8x512xf32> to vector<8xf32>
    %68 = vector.shape_cast %67 : vector<8xf32> to vector<8x1xf32>
    %cst_94 = arith.constant 5.120000e+02 : f32
    %69 = vector.broadcast %cst_94 : f32 to vector<8x1xf32>
    %70 = arith.divf %68, %69 : vector<8x1xf32>
    %cst_95 = arith.constant 9.99999974E-6 : f32
    %71 = vector.broadcast %cst_95 : f32 to vector<8x1xf32>
    %72 = arith.addf %70, %71 : vector<8x1xf32>
    %73 = math.rsqrt %72 : vector<8x1xf32>
    %74 = vector.broadcast %73 : vector<8x1xf32> to vector<8x512xf32>
    %75 = arith.mulf %65, %74 : vector<8x512xf32>
    %c0_96 = arith.constant 0 : index
    %c0_97 = arith.constant 0 : index
    %76 = vector.load %arg3[%c0_96, %c0_97] : memref<8x1xf32, #tpu.memory_space<vmem>>, vector<8x1xf32>
    %77 = vector.broadcast %76 : vector<8x1xf32> to vector<8x512xf32>
    %78 = arith.mulf %75, %77 : vector<8x512xf32>
    %c0_98 = arith.constant 0 : index
    %c0_99 = arith.constant 0 : index
    %79 = vector.load %arg4[%c0_98, %c0_99] : memref<8x1xf32, #tpu.memory_space<vmem>>, vector<8x1xf32>
    %80 = vector.broadcast %79 : vector<8x1xf32> to vector<8x512xf32>
    %81 = arith.addf %78, %80 : vector<8x512xf32>
    %cst_100 = arith.constant 0.000000e+00 : f32
    %82 = vector.broadcast %cst_100 : f32 to vector<8x512xf32>
    %83 = arith.maximumf %81, %82 : vector<8x512xf32>
    %84 = tpu.transpose %83, [1, 0] : vector<8x512xf32> -> vector<512x8xf32>
    %85 = vector.shape_cast %84 : vector<512x8xf32> to vector<2x16x16x8xf32>
    %cst_101 = arith.constant 0.000000e+00 : f32
    %86 = vector.broadcast %cst_101 : f32 to vector<2x18x18x8xf32>
    %c0_102 = arith.constant 0 : index
    %c0_103 = arith.constant 0 : index
    %c0_104 = arith.constant 0 : index
    %c0_105 = arith.constant 0 : index
    %87 = vector.load %arg10[%c0_102, %c0_103, %c0_104, %c0_105] : memref<2x18x18x8xf32, #tpu.memory_space<vmem>>, vector<2x18x18x8xf32>
    tpu.vector_store %arg10[%c0_102, %c0_103, %c0_104, %c0_105], %86 {strides = array<i32>} : memref<2x18x18x8xf32, #tpu.memory_space<vmem>>, vector<2x18x18x8xf32>,
    %c0_106 = arith.constant 0 : index
    %c1_107 = arith.constant 1 : index
    %c1_108 = arith.constant 1 : index
    %c0_109 = arith.constant 0 : index
    %88 = vector.load %arg10[%c0_106, %c1_107, %c1_108, %c0_109] : memref<2x18x18x8xf32, #tpu.memory_space<vmem>>, vector<2x16x16x8xf32>
    tpu.vector_store %arg10[%c0_106, %c1_107, %c1_108, %c0_109], %85 {strides = array<i32>} : memref<2x18x18x8xf32, #tpu.memory_space<vmem>>, vector<2x16x16x8xf32>,
    %cst_110 = arith.constant 0.000000e+00 : f32
    %89 = vector.broadcast %cst_110 : f32 to vector<512x8xf32>
    %c0_111 = arith.constant 0 : index
    %c0_112 = arith.constant 0 : index
    %c0_113 = arith.constant 0 : index
    %c0_114 = arith.constant 0 : index
    %90 = vector.load %arg10[%c0_111, %c0_112, %c0_113, %c0_114] : memref<2x18x18x8xf32, #tpu.memory_space<vmem>>, vector<2x16x16x8xf32>
    %91 = vector.shape_cast %90 : vector<2x16x16x8xf32> to vector<512x8xf32>
    %c0_115 = arith.constant 0 : index
    %c0_116 = arith.constant 0 : index
    %c0_117 = arith.constant 0 : index
    %c0_118 = arith.constant 0 : index
    %92 = vector.load %arg5[%c0_115, %c0_116, %c0_117, %c0_118] : memref<3x3x8x8xf32, #tpu.memory_space<vmem>>, vector<1x1x8x8xf32>
    %93 = vector.shape_cast %92 : vector<1x1x8x8xf32> to vector<8x8xf32>
    %cst_119 = arith.constant dense<0.000000e+00> : vector<512x8xf32>
    %94 = tpu.matmul %91, %93, %cst_119 {dimension_numbers = #tpu.dot_dimension_numbers<[1], [0], [0], [1], [0, 0, 1, 1], [], []>} : vector<512x8xf32>, vector<8x8xf32>, vector<512x8xf32> -> vector<512x8xf32>
    %95 = arith.addf %89, %94 : vector<512x8xf32>
    %c0_120 = arith.constant 0 : index
    %c0_121 = arith.constant 0 : index
    %c1_122 = arith.constant 1 : index
    %c0_123 = arith.constant 0 : index
    %96 = vector.load %arg10[%c0_120, %c0_121, %c1_122, %c0_123] : memref<2x18x18x8xf32, #tpu.memory_space<vmem>>, vector<2x16x16x8xf32>
    %97 = vector.shape_cast %96 : vector<2x16x16x8xf32> to vector<512x8xf32>
    %c0_124 = arith.constant 0 : index
    %c1_125 = arith.constant 1 : index
    %c0_126 = arith.constant 0 : index
    %c0_127 = arith.constant 0 : index
    %98 = vector.load %arg5[%c0_124, %c1_125, %c0_126, %c0_127] : memref<3x3x8x8xf32, #tpu.memory_space<vmem>>, vector<1x1x8x8xf32>
    %99 = vector.shape_cast %98 : vector<1x1x8x8xf32> to vector<8x8xf32>
    %cst_128 = arith.constant dense<0.000000e+00> : vector<512x8xf32>
    %100 = tpu.matmul %97, %99, %cst_128 {dimension_numbers = #tpu.dot_dimension_numbers<[1], [0], [0], [1], [0, 0, 1, 1], [], []>} : vector<512x8xf32>, vector<8x8xf32>, vector<512x8xf32> -> vector<512x8xf32>
    %101 = arith.addf %95, %100 : vector<512x8xf32>
    %c0_129 = arith.constant 0 : index
    %c0_130 = arith.constant 0 : index
    %c2_131 = arith.constant 2 : index
    %c0_132 = arith.constant 0 : index
    %102 = vector.load %arg10[%c0_129, %c0_130, %c2_131, %c0_132] : memref<2x18x18x8xf32, #tpu.memory_space<vmem>>, vector<2x16x16x8xf32>
    %103 = vector.shape_cast %102 : vector<2x16x16x8xf32> to vector<512x8xf32>
    %c0_133 = arith.constant 0 : index
    %c2_134 = arith.constant 2 : index
    %c0_135 = arith.constant 0 : index
    %c0_136 = arith.constant 0 : index
    %104 = vector.load %arg5[%c0_133, %c2_134, %c0_135, %c0_136] : memref<3x3x8x8xf32, #tpu.memory_space<vmem>>, vector<1x1x8x8xf32>
    %105 = vector.shape_cast %104 : vector<1x1x8x8xf32> to vector<8x8xf32>
    %cst_137 = arith.constant dense<0.000000e+00> : vector<512x8xf32>
    %106 = tpu.matmul %103, %105, %cst_137 {dimension_numbers = #tpu.dot_dimension_numbers<[1], [0], [0], [1], [0, 0, 1, 1], [], []>} : vector<512x8xf32>, vector<8x8xf32>, vector<512x8xf32> -> vector<512x8xf32>
    %107 = arith.addf %101, %106 : vector<512x8xf32>
    %c0_138 = arith.constant 0 : index
    %c1_139 = arith.constant 1 : index
    %c0_140 = arith.constant 0 : index
    %c0_141 = arith.constant 0 : index
    %108 = vector.load %arg10[%c0_138, %c1_139, %c0_140, %c0_141] : memref<2x18x18x8xf32, #tpu.memory_space<vmem>>, vector<2x16x16x8xf32>
    %109 = vector.shape_cast %108 : vector<2x16x16x8xf32> to vector<512x8xf32>
    %c1_142 = arith.constant 1 : index
    %c0_143 = arith.constant 0 : index
    %c0_144 = arith.constant 0 : index
    %c0_145 = arith.constant 0 : index
    %110 = vector.load %arg5[%c1_142, %c0_143, %c0_144, %c0_145] : memref<3x3x8x8xf32, #tpu.memory_space<vmem>>, vector<1x1x8x8xf32>
    %111 = vector.shape_cast %110 : vector<1x1x8x8xf32> to vector<8x8xf32>
    %cst_146 = arith.constant dense<0.000000e+00> : vector<512x8xf32>
    %112 = tpu.matmul %109, %111, %cst_146 {dimension_numbers = #tpu.dot_dimension_numbers<[1], [0], [0], [1], [0, 0, 1, 1], [], []>} : vector<512x8xf32>, vector<8x8xf32>, vector<512x8xf32> -> vector<512x8xf32>
    %113 = arith.addf %107, %112 : vector<512x8xf32>
    %c0_147 = arith.constant 0 : index
    %c1_148 = arith.constant 1 : index
    %c1_149 = arith.constant 1 : index
    %c0_150 = arith.constant 0 : index
    %114 = vector.load %arg10[%c0_147, %c1_148, %c1_149, %c0_150] : memref<2x18x18x8xf32, #tpu.memory_space<vmem>>, vector<2x16x16x8xf32>
    %115 = vector.shape_cast %114 : vector<2x16x16x8xf32> to vector<512x8xf32>
    %c1_151 = arith.constant 1 : index
    %c1_152 = arith.constant 1 : index
    %c0_153 = arith.constant 0 : index
    %c0_154 = arith.constant 0 : index
    %116 = vector.load %arg5[%c1_151, %c1_152, %c0_153, %c0_154] : memref<3x3x8x8xf32, #tpu.memory_space<vmem>>, vector<1x1x8x8xf32>
    %117 = vector.shape_cast %116 : vector<1x1x8x8xf32> to vector<8x8xf32>
    %cst_155 = arith.constant dense<0.000000e+00> : vector<512x8xf32>
    %118 = tpu.matmul %115, %117, %cst_155 {dimension_numbers = #tpu.dot_dimension_numbers<[1], [0], [0], [1], [0, 0, 1, 1], [], []>} : vector<512x8xf32>, vector<8x8xf32>, vector<512x8xf32> -> vector<512x8xf32>
    %119 = arith.addf %113, %118 : vector<512x8xf32>
    %c0_156 = arith.constant 0 : index
    %c1_157 = arith.constant 1 : index
    %c2_158 = arith.constant 2 : index
    %c0_159 = arith.constant 0 : index
    %120 = vector.load %arg10[%c0_156, %c1_157, %c2_158, %c0_159] : memref<2x18x18x8xf32, #tpu.memory_space<vmem>>, vector<2x16x16x8xf32>
    %121 = vector.shape_cast %120 : vector<2x16x16x8xf32> to vector<512x8xf32>
    %c1_160 = arith.constant 1 : index
    %c2_161 = arith.constant 2 : index
    %c0_162 = arith.constant 0 : index
    %c0_163 = arith.constant 0 : index
    %122 = vector.load %arg5[%c1_160, %c2_161, %c0_162, %c0_163] : memref<3x3x8x8xf32, #tpu.memory_space<vmem>>, vector<1x1x8x8xf32>
    %123 = vector.shape_cast %122 : vector<1x1x8x8xf32> to vector<8x8xf32>
    %cst_164 = arith.constant dense<0.000000e+00> : vector<512x8xf32>
    %124 = tpu.matmul %121, %123, %cst_164 {dimension_numbers = #tpu.dot_dimension_numbers<[1], [0], [0], [1], [0, 0, 1, 1], [], []>} : vector<512x8xf32>, vector<8x8xf32>, vector<512x8xf32> -> vector<512x8xf32>
    %125 = arith.addf %119, %124 : vector<512x8xf32>
    %c0_165 = arith.constant 0 : index
    %c2_166 = arith.constant 2 : index
    %c0_167 = arith.constant 0 : index
    %c0_168 = arith.constant 0 : index
    %126 = vector.load %arg10[%c0_165, %c2_166, %c0_167, %c0_168] : memref<2x18x18x8xf32, #tpu.memory_space<vmem>>, vector<2x16x16x8xf32>
    %127 = vector.shape_cast %126 : vector<2x16x16x8xf32> to vector<512x8xf32>
    %c2_169 = arith.constant 2 : index
    %c0_170 = arith.constant 0 : index
    %c0_171 = arith.constant 0 : index
    %c0_172 = arith.constant 0 : index
    %128 = vector.load %arg5[%c2_169, %c0_170, %c0_171, %c0_172] : memref<3x3x8x8xf32, #tpu.memory_space<vmem>>, vector<1x1x8x8xf32>
    %129 = vector.shape_cast %128 : vector<1x1x8x8xf32> to vector<8x8xf32>
    %cst_173 = arith.constant dense<0.000000e+00> : vector<512x8xf32>
    %130 = tpu.matmul %127, %129, %cst_173 {dimension_numbers = #tpu.dot_dimension_numbers<[1], [0], [0], [1], [0, 0, 1, 1], [], []>} : vector<512x8xf32>, vector<8x8xf32>, vector<512x8xf32> -> vector<512x8xf32>
    %131 = arith.addf %125, %130 : vector<512x8xf32>
    %c0_174 = arith.constant 0 : index
    %c2_175 = arith.constant 2 : index
    %c1_176 = arith.constant 1 : index
    %c0_177 = arith.constant 0 : index
    %132 = vector.load %arg10[%c0_174, %c2_175, %c1_176, %c0_177] : memref<2x18x18x8xf32, #tpu.memory_space<vmem>>, vector<2x16x16x8xf32>
    %133 = vector.shape_cast %132 : vector<2x16x16x8xf32> to vector<512x8xf32>
    %c2_178 = arith.constant 2 : index
    %c1_179 = arith.constant 1 : index
    %c0_180 = arith.constant 0 : index
    %c0_181 = arith.constant 0 : index
    %134 = vector.load %arg5[%c2_178, %c1_179, %c0_180, %c0_181] : memref<3x3x8x8xf32, #tpu.memory_space<vmem>>, vector<1x1x8x8xf32>
    %135 = vector.shape_cast %134 : vector<1x1x8x8xf32> to vector<8x8xf32>
    %cst_182 = arith.constant dense<0.000000e+00> : vector<512x8xf32>
    %136 = tpu.matmul %133, %135, %cst_182 {dimension_numbers = #tpu.dot_dimension_numbers<[1], [0], [0], [1], [0, 0, 1, 1], [], []>} : vector<512x8xf32>, vector<8x8xf32>, vector<512x8xf32> -> vector<512x8xf32>
    %137 = arith.addf %131, %136 : vector<512x8xf32>
    %c0_183 = arith.constant 0 : index
    %c2_184 = arith.constant 2 : index
    %c2_185 = arith.constant 2 : index
    %c0_186 = arith.constant 0 : index
    %138 = vector.load %arg10[%c0_183, %c2_184, %c2_185, %c0_186] : memref<2x18x18x8xf32, #tpu.memory_space<vmem>>, vector<2x16x16x8xf32>
    %139 = vector.shape_cast %138 : vector<2x16x16x8xf32> to vector<512x8xf32>
    %c2_187 = arith.constant 2 : index
    %c2_188 = arith.constant 2 : index
    %c0_189 = arith.constant 0 : index
    %c0_190 = arith.constant 0 : index
    %140 = vector.load %arg5[%c2_187, %c2_188, %c0_189, %c0_190] : memref<3x3x8x8xf32, #tpu.memory_space<vmem>>, vector<1x1x8x8xf32>
    %141 = vector.shape_cast %140 : vector<1x1x8x8xf32> to vector<8x8xf32>
    %cst_191 = arith.constant dense<0.000000e+00> : vector<512x8xf32>
    %142 = tpu.matmul %139, %141, %cst_191 {dimension_numbers = #tpu.dot_dimension_numbers<[1], [0], [0], [1], [0, 0, 1, 1], [], []>} : vector<512x8xf32>, vector<8x8xf32>, vector<512x8xf32> -> vector<512x8xf32>
    %143 = arith.addf %137, %142 : vector<512x8xf32>
    %144 = tpu.transpose %143, [1, 0] : vector<512x8xf32> -> vector<8x512xf32>
    %cst_192 = arith.constant dense<0.000000e+00> : vector<8xf32>
    %145 = vector.multi_reduction <add>, %144, %cst_192 [1] : vector<8x512xf32> to vector<8xf32>
    %146 = vector.shape_cast %145 : vector<8xf32> to vector<8x1xf32>
    %cst_193 = arith.constant 5.120000e+02 : f32
    %147 = vector.broadcast %cst_193 : f32 to vector<8x1xf32>
    %148 = arith.divf %146, %147 : vector<8x1xf32>
    %149 = vector.broadcast %148 : vector<8x1xf32> to vector<8x512xf32>
    %150 = arith.subf %144, %149 : vector<8x512xf32>
    %151 = arith.mulf %150, %150 : vector<8x512xf32>
    %cst_194 = arith.constant dense<0.000000e+00> : vector<8xf32>
    %152 = vector.multi_reduction <add>, %151, %cst_194 [1] : vector<8x512xf32> to vector<8xf32>
    %153 = vector.shape_cast %152 : vector<8xf32> to vector<8x1xf32>
    %cst_195 = arith.constant 5.120000e+02 : f32
    %154 = vector.broadcast %cst_195 : f32 to vector<8x1xf32>
    %155 = arith.divf %153, %154 : vector<8x1xf32>
    %cst_196 = arith.constant 9.99999974E-6 : f32
    %156 = vector.broadcast %cst_196 : f32 to vector<8x1xf32>
    %157 = arith.addf %155, %156 : vector<8x1xf32>
    %158 = math.rsqrt %157 : vector<8x1xf32>
    %159 = vector.broadcast %158 : vector<8x1xf32> to vector<8x512xf32>
    %160 = arith.mulf %150, %159 : vector<8x512xf32>
    %c0_197 = arith.constant 0 : index
    %c0_198 = arith.constant 0 : index
    %161 = vector.load %arg6[%c0_197, %c0_198] : memref<8x1xf32, #tpu.memory_space<vmem>>, vector<8x1xf32>
    %162 = vector.broadcast %161 : vector<8x1xf32> to vector<8x512xf32>
    %163 = arith.mulf %160, %162 : vector<8x512xf32>
    %c0_199 = arith.constant 0 : index
    %c0_200 = arith.constant 0 : index
    %164 = vector.load %arg7[%c0_199, %c0_200] : memref<8x1xf32, #tpu.memory_space<vmem>>, vector<8x1xf32>
    %165 = vector.broadcast %164 : vector<8x1xf32> to vector<8x512xf32>
    %166 = arith.addf %163, %165 : vector<8x512xf32>
    %167 = math.tanh %166 : vector<8x512xf32>
    %c0_201 = arith.constant 0 : index
    %c0_202 = arith.constant 0 : index
    %168 = vector.load %arg8[%c0_201, %c0_202] : memref<8x512xf32, #tpu.memory_space<vmem>>, vector<8x512xf32>
    tpu.vector_store %arg8[%c0_201, %c0_202], %167 {strides = array<i32>} : memref<8x512xf32, #tpu.memory_space<vmem>>, vector<8x512xf32>,
    return
  }
  func.func @transform_0(%arg0: i32) -> (i32, i32, i32, i32) {
    %c0_i32 = arith.constant 0 : i32
    %c0_i32_0 = arith.constant 0 : i32
    %c0_i32_1 = arith.constant 0 : i32
    %c0_i32_2 = arith.constant 0 : i32
    %c0_i32_3 = arith.constant 0 : i32
    return %c0_i32, %c0_i32_0, %c0_i32_1, %c0_i32_2 : i32, i32, i32, i32
  }
  func.func @transform_1(%arg0: i32) -> (i32, i32, i32, i32) {
    %c0_i32 = arith.constant 0 : i32
    %c0_i32_0 = arith.constant 0 : i32
    %c0_i32_1 = arith.constant 0 : i32
    %c0_i32_2 = arith.constant 0 : i32
    %c0_i32_3 = arith.constant 0 : i32
    return %c0_i32, %c0_i32_0, %c0_i32_1, %c0_i32_2 : i32, i32, i32, i32
  }
  func.func @transform_2(%arg0: i32) -> (i32, i32) {
    %c0_i32 = arith.constant 0 : i32
    %c0_i32_0 = arith.constant 0 : i32
    %c0_i32_1 = arith.constant 0 : i32
    return %c0_i32, %c0_i32_0 : i32, i32
  }
  func.func @transform_3(%arg0: i32) -> (i32, i32) {
    %c0_i32 = arith.constant 0 : i32
    %c0_i32_0 = arith.constant 0 : i32
    %c0_i32_1 = arith.constant 0 : i32
    return %c0_i32, %c0_i32_0 : i32, i32
  }
  func.func @transform_4(%arg0: i32) -> (i32, i32, i32, i32) {
    %c0_i32 = arith.constant 0 : i32
    %c0_i32_0 = arith.constant 0 : i32
    %c0_i32_1 = arith.constant 0 : i32
    %c0_i32_2 = arith.constant 0 : i32
    %c0_i32_3 = arith.constant 0 : i32
    return %c0_i32, %c0_i32_0, %c0_i32_1, %c0_i32_2 : i32, i32, i32, i32
  }
  func.func @transform_5(%arg0: i32) -> (i32, i32) {
    %c0_i32 = arith.constant 0 : i32
    %c0_i32_0 = arith.constant 0 : i32
    %c0_i32_1 = arith.constant 0 : i32
    return %c0_i32, %c0_i32_0 : i32, i32
  }
  func.func @transform_6(%arg0: i32) -> (i32, i32) {
    %c0_i32 = arith.constant 0 : i32
    %c0_i32_0 = arith.constant 0 : i32
    %c0_i32_1 = arith.constant 0 : i32
    return %c0_i32, %c0_i32_0 : i32, i32
  }
  func.func @transform_7(%arg0: i32) -> (i32, i32) {
    %c0_i32 = arith.constant 0 : i32
    %c0_i32_0 = arith.constant 0 : i32
    %c0_i32_1 = arith.constant 0 : i32
    return %c0_i32, %c0_i32_0 : i32, i32
  }
}

</mosaic_0001>

<bundles_post_ra>
// kernel: tpu_custom_call.1
= control target key start
LH: loop header
LB: loop body
LE: loop exit
PB: predicated region body
PF: predicated region fallthrough
CT: control target
= control target key end

     0   :  { %vm589_vm0 = vcmask 1043456   ;;  %vm27_vm1 = vcmask 31744   ;;  %vm30_vm2 = vcmask 25600   ;;  %v23109_v5 = vmov 0.0   ;;  %s23101_s0 = inlined_call_operand.vmem [shape: f32[2,16,16,4], index: 0, kind: input, shape index: {}]   ;;  %s23102_s1 = inlined_call_operand.vmem [shape: f32[3,3,4,8], index: 1, kind: input, shape index: {}]   ;;  %s23103_s2 = inlined_call_operand.vmem [shape: f32[8,1], index: 2, kind: input, shape index: {}]   ;;  %s23104_s3 = inlined_call_operand.vmem [shape: f32[8,1], index: 3, kind: input, shape index: {}]   ;;  %s23105_s4 = inlined_call_operand.vmem [shape: f32[3,3,8,8], index: 4, kind: input, shape index: {}]   ;;  %s23106_s5 = inlined_call_operand.vmem [shape: f32[8,1], index: 5, kind: input, shape index: {}]   ;;  %s23107_s6 = inlined_call_operand.vmem [shape: f32[8,1], index: 6, kind: input, shape index: {}]   ;;  %s23108_s7 = inlined_call_operand.hbm [shape: f32[8,512], index: 7, kind: output, shape index: {}]  }
   0x1   :  { %v13442_v0 = vld [vmem:[%s23102_s1 + $0x4] sm:$0xf]  ;;  %v17641_v1 = vld [vmem:[%s23102_s1] sm:$0xf]  ;;  %v17649_v2 = vld [vmem:[%s23102_s1 + $0x8] sm:$0xf] }
   0x2   :  { %15789 = vmatprep.subr.msk.mxu0 %vm589_vm0, %v13442_v0  ;;  %15887 = vmatprep.subr.msk.mxu1 %vm589_vm0, %v17641_v1  ;;  %v17654_v3 = vld [vmem:[%s23101_s0] sm:$0xff]  ;;  %v17659_v4 = vld [vmem:[%s23101_s0 + $0x8] sm:$0xff]  ;;  %28 = vst.msk [vmem:[#allocation2] sm:$0xff] %vm27_vm1, %v23109_v5  ;;  %29 = vst.msk [vmem:[#allocation2 + $0x8] sm:$0xff] %vm27_vm1, %v23109_v5 }
   0x3   :  { %15790 = vmatpush3.msk.msra.mxu0 %vm589_vm0, %v13442_v0  ;;  %32 = vst.msk [vmem:[#allocation2 + $0x18] sm:$0xff] %vm27_vm1, %v23109_v5  ;;  %33 = vst.msk [vmem:[#allocation2 + $0x20] sm:$0xff] %vm27_vm1, %v23109_v5  ;;  %15888 = vmatpush3.msk.msra.mxu1 %vm589_vm0, %v17641_v1  ;;  %v139_v6 = vld [vmem:[%s23101_s0 + $0x10] sm:$0xff]  ;;  %v140_v7 = vld [vmem:[%s23101_s0 + $0x18] sm:$0xff] }
   0x4   :  { %35 = vst.msk [vmem:[#allocation2 + $0x30] sm:$0xff] %vm27_vm1, %v23109_v5  ;;  %36 = vst.msk [vmem:[#allocation2 + $0x38] sm:$0xff] %vm27_vm1, %v23109_v5  ;;  %v141_v8 = vld [vmem:[%s23101_s0 + $0x20] sm:$0xff]  ;;  %15985 = vmatprep.subr.msk.mxu0 %vm589_vm0, %v17649_v2  ;;  %v142_v9 = vld [vmem:[%s23101_s0 + $0x28] sm:$0xff] }
   0x5   :  { %38 = vst.msk [vmem:[#allocation2 + $0x48] sm:$0xff] %vm27_vm1, %v23109_v5  ;;  %39 = vst.msk [vmem:[#allocation2 + $0x50] sm:$0xff] %vm27_vm1, %v23109_v5  ;;  %v143_v10 = vld [vmem:[%s23101_s0 + $0x30] sm:$0xff]  ;;  %v144_v11 = vld [vmem:[%s23101_s0 + $0x38] sm:$0xff] }
   0x6   :  { %41 = vst.msk [vmem:[#allocation2 + $0x60] sm:$0xff] %vm27_vm1, %v23109_v5  ;;  %42 = vst.msk [vmem:[#allocation2 + $0x68] sm:$0xff] %vm27_vm1, %v23109_v5  ;;  %v145_v12 = vld [vmem:[%s23101_s0 + $0x40] sm:$0xff]  ;;  %v146_v13 = vld [vmem:[%s23101_s0 + $0x48] sm:$0xff] }
   0x7   :  { %44 = vst.msk [vmem:[#allocation2 + $0x78] sm:$0xff] %vm27_vm1, %v23109_v5  ;;  %45 = vst.msk [vmem:[#allocation2 + $0x80] sm:$0xff] %vm27_vm1, %v23109_v5  ;;  %v147_v14 = vld [vmem:[%s23101_s0 + $0x50] sm:$0xff]  ;;  %v148_v15 = vld [vmem:[%s23101_s0 + $0x58] sm:$0xff] }
   0x8   :  { %47 = vst.msk [vmem:[#allocation2 + $0x90] sm:$0xff] %vm27_vm1, %v23109_v5  ;;  %48 = vst.msk [vmem:[#allocation2 + $0x98] sm:$0xff] %vm27_vm1, %v23109_v5  ;;  %v149_v16 = vld [vmem:[%s23101_s0 + $0x60] sm:$0xff]  ;;  %v150_v17 = vld [vmem:[%s23101_s0 + $0x68] sm:$0xff] }
   0x9   :  { %50 = vst.msk [vmem:[#allocation2 + $0xa8] sm:$0xff] %vm27_vm1, %v23109_v5  ;;  %51 = vst.msk [vmem:[#allocation2 + $0xb0] sm:$0xff] %vm27_vm1, %v23109_v5  ;;  %v151_v18 = vld [vmem:[%s23101_s0 + $0x70] sm:$0xff]  ;;  %v152_v19 = vld [vmem:[%s23101_s0 + $0x78] sm:$0xff] }
   0xa   :  { %53 = vst.msk [vmem:[#allocation2 + $0xc0] sm:$0xff] %vm27_vm1, %v23109_v5  ;;  %54 = vst.msk [vmem:[#allocation2 + $0xc8] sm:$0xff] %vm27_vm1, %v23109_v5  ;;  %v153_v20 = vld [vmem:[%s23101_s0 + $0x80] sm:$0xff]  ;;  %v154_v21 = vld [vmem:[%s23101_s0 + $0x88] sm:$0xff] }
   0xb   :  { %56 = vst.msk [vmem:[#allocation2 + $0xd8] sm:$0xff] %vm27_vm1, %v23109_v5  ;;  %57 = vst.msk [vmem:[#allocation2 + $0xe0] sm:$0xff] %vm27_vm1, %v23109_v5  ;;  %v155_v22 = vld [vmem:[%s23101_s0 + $0x90] sm:$0xff]  ;;  %v156_v23 = vld [vmem:[%s23101_s0 + $0x98] sm:$0xff] }
   0xc   :  { %59 = vst.msk [vmem:[#allocation2 + $0xf0] sm:$0xff] %vm27_vm1, %v23109_v5  ;;  %60 = vst.msk [vmem:[#allocation2 + $0xf8] sm:$0xff] %vm27_vm1, %v23109_v5  ;;  %v157_v24 = vld [vmem:[%s23101_s0 + $0xa0] sm:$0xff]  ;;  %v158_v25 = vld [vmem:[%s23101_s0 + $0xa8] sm:$0xff] }
   0xd   :  { %62 = vst.msk [vmem:[#allocation2 + $0x108] sm:$0xff] %vm27_vm1, %v23109_v5  ;;  %63 = vst.msk [vmem:[#allocation2 + $0x110] sm:$0xff] %vm27_vm1, %v23109_v5  ;;  %v159_v26 = vld [vmem:[%s23101_s0 + $0xb0] sm:$0xff]  ;;  %v331_v27 = vld [vmem:[#allocation2 + $0x1] sm:$0xff] }
   0xe   :  { %65 = vst.msk [vmem:[#allocation2 + $0x120] sm:$0xff] %vm27_vm1, %v23109_v5  ;;  %66 = vst.msk [vmem:[#allocation2 + $0x128] sm:$0xff] %vm27_vm1, %v23109_v5  ;;  %v266_v28 = vld [vmem:[#allocation2] sm:$0xff]  ;;  %15791 = vmatprep.mubr.msk.f32.mxu0 %vm27_vm1, %v331_v27  ;;  %v267_v30 = vld [vmem:[#allocation2 + $0x8] sm:$0xff] }
   0xf   :  { %68 = vst.msk [vmem:[#allocation2 + $0x138] sm:$0xff] %vm27_vm1, %v23109_v5  ;;  %69 = vst.msk [vmem:[#allocation2 + $0x140] sm:$0xff] %vm27_vm1, %v23109_v5  ;;  %15889 = vmatprep.mubr.msk.f32.mxu1 %vm27_vm1, %v266_v28  ;;  %v160_v49 = vld [vmem:[%s23101_s0 + $0xb8] sm:$0xff]  ;;  %v161_v50 = vld [vmem:[%s23101_s0 + $0xc0] sm:$0xff] }
  0x10   :  { %71 = vst.msk [vmem:[#allocation2 + $0x150] sm:$0xff] %vm27_vm1, %v23109_v5  ;;  %72 = vst.msk [vmem:[#allocation2 + $0x158] sm:$0xff] %vm27_vm1, %v23109_v5  ;;  %15890 = vmatmul.mubr.msk.f32.vlgmr.msra.gmra.mxu1 %vm27_vm1, %v267_v30  ;;  %v162_v51 = vld [vmem:[%s23101_s0 + $0xc8] sm:$0xff]  ;;  %v163_v52 = vld [vmem:[%s23101_s0 + $0xd0] sm:$0xff] }
  0x11   :  { %74 = vst.msk [vmem:[#allocation2 + $0x168] sm:$0xff] %vm27_vm1, %v23109_v5  ;;  %75 = vst.msk [vmem:[#allocation2 + $0x170] sm:$0xff] %vm27_vm1, %v23109_v5  ;;  %v164_v53 = vld [vmem:[%s23101_s0 + $0xd8] sm:$0xff]  ;;  %v165_v54 = vld [vmem:[%s23101_s0 + $0xe0] sm:$0xff] }
  0x12   :  { %77 = vst.msk [vmem:[#allocation2 + $0x180] sm:$0xff] %vm27_vm1, %v23109_v5  ;;  %78 = vst.msk [vmem:[#allocation2 + $0x188] sm:$0xff] %vm27_vm1, %v23109_v5  ;;  %v166_v55 = vld [vmem:[%s23101_s0 + $0xe8] sm:$0xff]  ;;  %v169_v60 = vld [vmem:[%s23101_s0 + $0x100] sm:$0xff] }
  0x13   :  { %80 = vst.msk [vmem:[#allocation2 + $0x198] sm:$0xff] %vm27_vm1, %v23109_v5  ;;  %81 = vst.msk [vmem:[#allocation2 + $0x1a0] sm:$0xff] %vm27_vm1, %v23109_v5  ;;  %v170_v61 = vld [vmem:[%s23101_s0 + $0x108] sm:$0xff]  ;;  %v171_v0 = vld [vmem:[%s23101_s0 + $0x110] sm:$0xff] }
  0x14   :  { %83 = vst.msk [vmem:[#allocation2 + $0x1b0] sm:$0xff] %vm27_vm1, %v23109_v5  ;;  %84 = vst.msk [vmem:[#allocation2 + $0x1b8] sm:$0xff] %vm27_vm1, %v23109_v5  ;;  %v172_v1 = vld [vmem:[%s23101_s0 + $0x118] sm:$0xff]  ;;  %v181_v27 = vld [vmem:[%s23101_s0 + $0x160] sm:$0xff] }
  0x15   :  { %86 = vst.msk [vmem:[#allocation2 + $0x1c8] sm:$0xff] %vm27_vm1, %v23109_v5  ;;  %87 = vst.msk [vmem:[#allocation2 + $0x1d0] sm:$0xff] %vm27_vm1, %v23109_v5  ;;  %v182_v28 = vld [vmem:[%s23101_s0 + $0x168] sm:$0xff] }
  0x16   :  { %89 = vst.msk [vmem:[#allocation2 + $0x1e0] sm:$0xff] %vm27_vm1, %v23109_v5  ;;  %90 = vst.msk [vmem:[#allocation2 + $0x1e8] sm:$0xff] %vm27_vm1, %v23109_v5 }
  0x17   :  { %92 = vst.msk [vmem:[#allocation2 + $0x1f8] sm:$0xff] %vm27_vm1, %v23109_v5  ;;  %93 = vst.msk [vmem:[#allocation2 + $0x200] sm:$0xff] %vm27_vm1, %v23109_v5 }
  0x18   :  { %95 = vst.msk [vmem:[#allocation2 + $0x210] sm:$0xff] %vm27_vm1, %v23109_v5  ;;  %96 = vst.msk [vmem:[#allocation2 + $0x218] sm:$0xff] %vm27_vm1, %v23109_v5 }
  0x19   :  { %98 = vst.msk [vmem:[#allocation2 + $0x228] sm:$0xff] %vm27_vm1, %v23109_v5  ;;  %99 = vst.msk [vmem:[#allocation2 + $0x230] sm:$0xff] %vm27_vm1, %v23109_v5 }
  0x1a   :  { %101 = vst.msk [vmem:[#allocation2 + $0x240] sm:$0xff] %vm27_vm1, %v23109_v5  ;;  %102 = vst.msk [vmem:[#allocation2 + $0x248] sm:$0xff] %vm27_vm1, %v23109_v5 }
  0x1b   :  { %104 = vst.msk [vmem:[#allocation2 + $0x258] sm:$0xff] %vm27_vm1, %v23109_v5  ;;  %105 = vst.msk [vmem:[#allocation2 + $0x260] sm:$0xff] %vm27_vm1, %v23109_v5 }
  0x1c   :  { %107 = vst.msk [vmem:[#allocation2 + $0x270] sm:$0xff] %vm27_vm1, %v23109_v5  ;;  %108 = vst.msk [vmem:[#allocation2 + $0x278] sm:$0xff] %vm27_vm1, %v23109_v5 }
  0x1d   :  { %110 = vst.msk [vmem:[#allocation2 + $0x288] sm:$0xff] %vm27_vm1, %v23109_v5  ;;  %111 = vst.msk [vmem:[#allocation2 + $0x290] sm:$0xff] %vm27_vm1, %v23109_v5 }
  0x1e   :  { %113 = vst.msk [vmem:[#allocation2 + $0x2a0] sm:$0xff] %vm27_vm1, %v23109_v5  ;;  %114 = vst.msk [vmem:[#allocation2 + $0x2a8] sm:$0xff] %vm27_vm1, %v23109_v5 }
  0x1f   :  { %116 = vst.msk [vmem:[#allocation2 + $0x2b8] sm:$0xff] %vm27_vm1, %v23109_v5  ;;  %117 = vst.msk [vmem:[#allocation2 + $0x2c0] sm:$0xff] %vm27_vm1, %v23109_v5 }
  0x20   :  { %119 = vst.msk [vmem:[#allocation2 + $0x2d0] sm:$0xff] %vm27_vm1, %v23109_v5  ;;  %120 = vst.msk [vmem:[#allocation2 + $0x2d8] sm:$0xff] %vm27_vm1, %v23109_v5 }
  0x21   :  { %122 = vst.msk [vmem:[#allocation2 + $0x2e8] sm:$0xff] %vm27_vm1, %v23109_v5  ;;  %123 = vst.msk [vmem:[#allocation2 + $0x2f0] sm:$0xff] %vm27_vm1, %v23109_v5 }
  0x22   :  { %125 = vst.msk [vmem:[#allocation2 + $0x300] sm:$0xff] %vm27_vm1, %v23109_v5  ;;  %126 = vst.msk [vmem:[#allocation2 + $0x308] sm:$0xff] %vm27_vm1, %v23109_v5 }
  0x23   :  { %128 = vst.msk [vmem:[#allocation2 + $0x318] sm:$0xff] %vm27_vm1, %v23109_v5  ;;  %129 = vst.msk [vmem:[#allocation2 + $0x320] sm:$0xff] %vm27_vm1, %v23109_v5 }
  0x24   :  { %131 = vst.msk [vmem:[#allocation2 + $0x330] sm:$0xff] %vm27_vm1, %v23109_v5  ;;  %132 = vst.msk [vmem:[#allocation2 + $0x338] sm:$0xff] %vm27_vm1, %v23109_v5 }
  0x25   :  { %134 = vst.msk [vmem:[#allocation2 + $0x348] sm:$0xff] %vm27_vm1, %v23109_v5  ;;  %135 = vst.msk [vmem:[#allocation2 + $0x350] sm:$0xff] %vm27_vm1, %v23109_v5 }
  0x26   :  { %31 = vst.msk [vmem:[#allocation2 + $0x10] sm:$0x3] %vm30_vm2, %v23109_v5  ;;  %34 = vst.msk [vmem:[#allocation2 + $0x28] sm:$0x3] %vm30_vm2, %v23109_v5 }
  0x27   :  { %37 = vst.msk [vmem:[#allocation2 + $0x40] sm:$0x3] %vm30_vm2, %v23109_v5  ;;  %40 = vst.msk [vmem:[#allocation2 + $0x58] sm:$0x3] %vm30_vm2, %v23109_v5 }
  0x28   :  { %43 = vst.msk [vmem:[#allocation2 + $0x70] sm:$0x3] %vm30_vm2, %v23109_v5  ;;  %46 = vst.msk [vmem:[#allocation2 + $0x88] sm:$0x3] %vm30_vm2, %v23109_v5 }
  0x29   :  { %49 = vst.msk [vmem:[#allocation2 + $0xa0] sm:$0x3] %vm30_vm2, %v23109_v5  ;;  %52 = vst.msk [vmem:[#allocation2 + $0xb8] sm:$0x3] %vm30_vm2, %v23109_v5 }
  0x2a   :  { %55 = vst.msk [vmem:[#allocation2 + $0xd0] sm:$0x3] %vm30_vm2, %v23109_v5  ;;  %58 = vst.msk [vmem:[#allocation2 + $0xe8] sm:$0x3] %vm30_vm2, %v23109_v5 }
  0x2b   :  { %61 = vst.msk [vmem:[#allocation2 + $0x100] sm:$0x3] %vm30_vm2, %v23109_v5  ;;  %64 = vst.msk [vmem:[#allocation2 + $0x118] sm:$0x3] %vm30_vm2, %v23109_v5 }
  0x2c   :  { %67 = vst.msk [vmem:[#allocation2 + $0x130] sm:$0x3] %vm30_vm2, %v23109_v5  ;;  %70 = vst.msk [vmem:[#allocation2 + $0x148] sm:$0x3] %vm30_vm2, %v23109_v5 }
  0x2d   :  { %73 = vst.msk [vmem:[#allocation2 + $0x160] sm:$0x3] %vm30_vm2, %v23109_v5  ;;  %76 = vst.msk [vmem:[#allocation2 + $0x178] sm:$0x3] %vm30_vm2, %v23109_v5  ;;  %v332_v29 = vld [vmem:[#allocation2 + $0x9] sm:$0xff] }
  0x2e   :  { %79 = vst.msk [vmem:[#allocation2 + $0x190] sm:$0x3] %vm30_vm2, %v23109_v5  ;;  %82 = vst.msk [vmem:[#allocation2 + $0x1a8] sm:$0x3] %vm30_vm2, %v23109_v5  ;;  %15792 = vmatmul.mubr.msk.f32.vlgmr.msra.gmra.mxu0 %vm27_vm1, %v332_v29  ;;  %v183_v29 = vld [vmem:[%s23101_s0 + $0x170] sm:$0xff] }
  0x2f   :  { %85 = vst.msk [vmem:[#allocation2 + $0x1c0] sm:$0x3] %vm30_vm2, %v23109_v5  ;;  %88 = vst.msk [vmem:[#allocation2 + $0x1d8] sm:$0x3] %vm30_vm2, %v23109_v5  ;;  %15986 = vmatpush3.msk.msra.mxu0 %vm589_vm0, %v17649_v2  ;;  %v173_v2 = vld [vmem:[%s23101_s0 + $0x120] sm:$0xff] }
  0x30   :  { %91 = vst.msk [vmem:[#allocation2 + $0x1f0] sm:$0x3] %vm30_vm2, %v23109_v5  ;;  %94 = vst.msk [vmem:[#allocation2 + $0x208] sm:$0x3] %vm30_vm2, %v23109_v5 }
  0x31   :  { %97 = vst.msk [vmem:[#allocation2 + $0x220] sm:$0x3] %vm30_vm2, %v23109_v5  ;;  %100 = vst.msk [vmem:[#allocation2 + $0x238] sm:$0x3] %vm30_vm2, %v23109_v5 }
  0x32   :  { %103 = vst.msk [vmem:[#allocation2 + $0x250] sm:$0x3] %vm30_vm2, %v23109_v5  ;;  %106 = vst.msk [vmem:[#allocation2 + $0x268] sm:$0x3] %vm30_vm2, %v23109_v5 }
  0x33   :  { %109 = vst.msk [vmem:[#allocation2 + $0x280] sm:$0x3] %vm30_vm2, %v23109_v5  ;;  %112 = vst.msk [vmem:[#allocation2 + $0x298] sm:$0x3] %vm30_vm2, %v23109_v5 }
  0x34   :  { %115 = vst.msk [vmem:[#allocation2 + $0x2b0] sm:$0x3] %vm30_vm2, %v23109_v5  ;;  %118 = vst.msk [vmem:[#allocation2 + $0x2c8] sm:$0x3] %vm30_vm2, %v23109_v5 }
  0x35   :  { %121 = vst.msk [vmem:[#allocation2 + $0x2e0] sm:$0x3] %vm30_vm2, %v23109_v5  ;;  %124 = vst.msk [vmem:[#allocation2 + $0x2f8] sm:$0x3] %vm30_vm2, %v23109_v5 }
  0x36   :  { %127 = vst.msk [vmem:[#allocation2 + $0x310] sm:$0x3] %vm30_vm2, %v23109_v5  ;;  %130 = vst.msk [vmem:[#allocation2 + $0x328] sm:$0x3] %vm30_vm2, %v23109_v5 }
  0x37   :  { %133 = vst.msk [vmem:[#allocation2 + $0x340] sm:$0x3] %vm30_vm2, %v23109_v5  ;;  %136 = vst.msk [vmem:[#allocation2 + $0x358] sm:$0x3] %vm30_vm2, %v23109_v5 }
  0x38   :  { %202 = vst.msk [vmem:[#allocation2 + $0x19] sm:$0xff] %vm27_vm1, %v17654_v3  ;;  %203 = vst.msk [vmem:[#allocation2 + $0x21] sm:$0xff] %vm27_vm1, %v17659_v4  ;;  %v174_v3 = vld [vmem:[%s23101_s0 + $0x128] sm:$0xff]  ;;  %v175_v4 = vld [vmem:[%s23101_s0 + $0x130] sm:$0xff] }
  0x39   :  { %204 = vst.msk [vmem:[#allocation2 + $0x31] sm:$0xff] %vm27_vm1, %v139_v6  ;;  %205 = vst.msk [vmem:[#allocation2 + $0x39] sm:$0xff] %vm27_vm1, %v140_v7  ;;  %v176_v6 = vld [vmem:[%s23101_s0 + $0x138] sm:$0xff]  ;;  %v177_v7 = vld [vmem:[%s23101_s0 + $0x140] sm:$0xff] }
  0x3a   :  { %206 = vst.msk [vmem:[#allocation2 + $0x49] sm:$0xff] %vm27_vm1, %v141_v8  ;;  %207 = vst.msk [vmem:[#allocation2 + $0x51] sm:$0xff] %vm27_vm1, %v142_v9  ;;  %v178_v8 = vld [vmem:[%s23101_s0 + $0x148] sm:$0xff]  ;;  %v179_v9 = vld [vmem:[%s23101_s0 + $0x150] sm:$0xff] }
  0x3b   :  { %208 = vst.msk [vmem:[#allocation2 + $0x61] sm:$0xff] %vm27_vm1, %v143_v10  ;;  %209 = vst.msk [vmem:[#allocation2 + $0x69] sm:$0xff] %vm27_vm1, %v144_v11 }
  0x3c   :  { %210 = vst.msk [vmem:[#allocation2 + $0x79] sm:$0xff] %vm27_vm1, %v145_v12  ;;  %211 = vst.msk [vmem:[#allocation2 + $0x81] sm:$0xff] %vm27_vm1, %v146_v13  ;;  %v180_v12 = vld [vmem:[%s23101_s0 + $0x158] sm:$0xff] }
  0x3d   :  { %212 = vst.msk [vmem:[#allocation2 + $0x91] sm:$0xff] %vm27_vm1, %v147_v14  ;;  %213 = vst.msk [vmem:[#allocation2 + $0x99] sm:$0xff] %vm27_vm1, %v148_v15 }
  0x3e   :  { %214 = vst.msk [vmem:[#allocation2 + $0xa9] sm:$0xff] %vm27_vm1, %v149_v16  ;;  %215 = vst.msk [vmem:[#allocation2 + $0xb1] sm:$0xff] %vm27_vm1, %v150_v17 }
  0x3f   :  { %216 = vst.msk [vmem:[#allocation2 + $0xc1] sm:$0xff] %vm27_vm1, %v151_v18  ;;  %217 = vst.msk [vmem:[#allocation2 + $0xc9] sm:$0xff] %vm27_vm1, %v152_v19  ;;  %v333_v31 = vld [vmem:[#allocation2 + $0x19] sm:$0xff]  ;;  %v334_v33 = vld [vmem:[#allocation2 + $0x21] sm:$0xff] }
  0x40   :  { %218 = vst.msk [vmem:[#allocation2 + $0xd9] sm:$0xff] %vm27_vm1, %v153_v20  ;;  %219 = vst.msk [vmem:[#allocation2 + $0xe1] sm:$0xff] %vm27_vm1, %v154_v21  ;;  %v17972_v32 = vld [vmem:[#allocation2 + $0x18] sm:$0xff]  ;;  %15794 = vmatprep.mubr.msk.f32.mxu0 %vm27_vm1, %v333_v31  ;;  %v17979_v34 = vld [vmem:[#allocation2 + $0x20] sm:$0xff] }
  0x41   :  { %220 = vst.msk [vmem:[#allocation2 + $0xf1] sm:$0xff] %vm27_vm1, %v155_v22  ;;  %221 = vst.msk [vmem:[#allocation2 + $0xf9] sm:$0xff] %vm27_vm1, %v156_v23  ;;  %15892 = vmatprep.mubr.msk.f32.mxu1 %vm27_vm1, %v17972_v32  ;;  %v335_v35 = vld [vmem:[#allocation2 + $0x31] sm:$0xff]  ;;  %15795 = vmatmul.mubr.msk.f32.gmra.mxu0 %vm27_vm1, %v334_v33  ;;  %v336_v37 = vld [vmem:[#allocation2 + $0x39] sm:$0xff] }
  0x42   :  { %222 = vst.msk [vmem:[#allocation2 + $0x109] sm:$0xff] %vm27_vm1, %v157_v24  ;;  %223 = vst.msk [vmem:[#allocation2 + $0x111] sm:$0xff] %vm27_vm1, %v158_v25  ;;  %v17983_v36 = vld [vmem:[#allocation2 + $0x30] sm:$0xff]  ;;  %15893 = vmatmul.mubr.msk.f32.gmra.mxu1 %vm27_vm1, %v17979_v34  ;;  %15797 = vmatprep.mubr.msk.f32.mxu0 %vm27_vm1, %v335_v35  ;;  %v17991_v38 = vld [vmem:[#allocation2 + $0x38] sm:$0xff] }
  0x43   :  { %224 = vst.msk [vmem:[#allocation2 + $0x121] sm:$0xff] %vm27_vm1, %v159_v26  ;;  %15895 = vmatprep.mubr.msk.f32.mxu1 %vm27_vm1, %v17983_v36  ;;  %v337_v39 = vld [vmem:[#allocation2 + $0x49] sm:$0xff]  ;;  %v338_v41 = vld [vmem:[#allocation2 + $0x51] sm:$0xff]  ;;  %v339_v43 = vld [vmem:[#allocation2 + $0x61] sm:$0xff] }
  0x44   :  { %v17993_v40 = vld [vmem:[#allocation2 + $0x48] sm:$0xff]  ;;  %v18001_v42 = vld [vmem:[#allocation2 + $0x50] sm:$0xff]  ;;  %v18003_v44 = vld [vmem:[#allocation2 + $0x60] sm:$0xff]  ;;  %225 = vst.msk [vmem:[#allocation2 + $0x129] sm:$0xff] %vm27_vm1, %v160_v49 }
  0x45   :  { %15798 = vmatmul.mubr.msk.f32.gmra.mxu0 %vm27_vm1, %v336_v37  ;;  %v340_v45 = vld [vmem:[#allocation2 + $0x69] sm:$0xff]  ;;  %v341_v47 = vld [vmem:[#allocation2 + $0x79] sm:$0xff]  ;;  %226 = vst.msk [vmem:[#allocation2 + $0x139] sm:$0xff] %vm27_vm1, %v161_v50  ;;  %227 = vst.msk [vmem:[#allocation2 + $0x141] sm:$0xff] %vm27_vm1, %v162_v51 }
  0x46   :  { %15896 = vmatmul.mubr.msk.f32.gmra.mxu1 %vm27_vm1, %v17991_v38  ;;  %15800 = vmatprep.mubr.msk.f32.mxu0 %vm27_vm1, %v337_v39  ;;  %v18011_v46 = vld [vmem:[#allocation2 + $0x68] sm:$0xff]  ;;  %v18013_v48 = vld [vmem:[#allocation2 + $0x78] sm:$0xff]  ;;  %228 = vst.msk [vmem:[#allocation2 + $0x151] sm:$0xff] %vm27_vm1, %v163_v52  ;;  %v18046_v57 = vld [vmem:[#allocation2 + $0x80] sm:$0xff] }
  0x47   :  { %15898 = vmatprep.mubr.msk.f32.mxu1 %vm27_vm1, %v17993_v40  ;;  %v342_v56 = vld [vmem:[#allocation2 + $0x81] sm:$0xff]  ;;  %v343_v58 = vld [vmem:[#allocation2 + $0x91] sm:$0xff]  ;;  %229 = vst.msk [vmem:[#allocation2 + $0x159] sm:$0xff] %vm27_vm1, %v164_v53  ;;  %230 = vst.msk [vmem:[#allocation2 + $0x169] sm:$0xff] %vm27_vm1, %v165_v54 }
  0x48   :  { %231 = vst.msk [vmem:[#allocation2 + $0x171] sm:$0xff] %vm27_vm1, %v166_v55  ;;  %v18051_v59 = vld [vmem:[#allocation2 + $0x90] sm:$0xff]  ;;  %v344_v62 = vld [vmem:[#allocation2 + $0x99] sm:$0xff]  ;;  %234 = vst.msk [vmem:[#allocation2 + $0x1c9] sm:$0xff] %vm27_vm1, %v169_v60 }
  0x49   :  { %15801 = vmatmul.mubr.msk.f32.gmra.mxu0 %vm27_vm1, %v338_v41  ;;  %v18059_v63 = vld [vmem:[#allocation2 + $0x98] sm:$0xff]  ;;  %235 = vst.msk [vmem:[#allocation2 + $0x1d1] sm:$0xff] %vm27_vm1, %v170_v61  ;;  %236 = vst.msk [vmem:[#allocation2 + $0x1e1] sm:$0xff] %vm27_vm1, %v171_v0  ;;  %v345_v10 = vld [vmem:[#allocation2 + $0xa9] sm:$0xff] }
  0x4a   :  { %15899 = vmatmul.mubr.msk.f32.gmra.mxu1 %vm27_vm1, %v18001_v42  ;;  %15803 = vmatprep.mubr.msk.f32.mxu0 %vm27_vm1, %v339_v43  ;;  %237 = vst.msk [vmem:[#allocation2 + $0x1e9] sm:$0xff] %vm27_vm1, %v172_v1  ;;  %238 = vst.msk [vmem:[#allocation2 + $0x1f9] sm:$0xff] %vm27_vm1, %v173_v2  ;;  %v18102_v11 = vld [vmem:[#allocation2 + $0xa8] sm:$0xff]  ;;  %v346_v13 = vld [vmem:[#allocation2 + $0xb1] sm:$0xff] }
  0x4b   :  { %15901 = vmatprep.mubr.msk.f32.mxu1 %vm27_vm1, %v18003_v44  ;;  %239 = vst.msk [vmem:[#allocation2 + $0x201] sm:$0xff] %vm27_vm1, %v174_v3  ;;  %240 = vst.msk [vmem:[#allocation2 + $0x211] sm:$0xff] %vm27_vm1, %v175_v4  ;;  %v18117_v14 = vld [vmem:[#allocation2 + $0xb0] sm:$0xff]  ;;  %v347_v15 = vld [vmem:[#allocation2 + $0xc1] sm:$0xff] }
  0x4c   :  { %241 = vst.msk [vmem:[#allocation2 + $0x219] sm:$0xff] %vm27_vm1, %v176_v6  ;;  %242 = vst.msk [vmem:[#allocation2 + $0x229] sm:$0xff] %vm27_vm1, %v177_v7  ;;  %v18119_v16 = vld [vmem:[#allocation2 + $0xc0] sm:$0xff]  ;;  %v348_v17 = vld [vmem:[#allocation2 + $0xc9] sm:$0xff] }
  0x4d   :  { %15804 = vmatmul.mubr.msk.f32.gmra.mxu0 %vm27_vm1, %v340_v45  ;;  %243 = vst.msk [vmem:[#allocation2 + $0x231] sm:$0xff] %vm27_vm1, %v178_v8  ;;  %244 = vst.msk [vmem:[#allocation2 + $0x241] sm:$0xff] %vm27_vm1, %v179_v9  ;;  %v18127_v18 = vld [vmem:[#allocation2 + $0xc8] sm:$0xff]  ;;  %v349_v19 = vld [vmem:[#allocation2 + $0xd9] sm:$0xff] }
  0x4e   :  { %15902 = vmatmul.mubr.msk.f32.gmra.mxu1 %vm27_vm1, %v18011_v46  ;;  %15806 = vmatprep.mubr.msk.f32.mxu0 %vm27_vm1, %v341_v47  ;;  %245 = vst.msk [vmem:[#allocation2 + $0x249] sm:$0xff] %vm27_vm1, %v180_v12  ;;  %v18129_v20 = vld [vmem:[#allocation2 + $0xd8] sm:$0xff]  ;;  %v350_v21 = vld [vmem:[#allocation2 + $0xe1] sm:$0xff]  ;;  %v18139_v24 = vld [vmem:[#allocation2 + $0xf0] sm:$0xff] }
  0x4f   :  { %15904 = vmatprep.mubr.msk.f32.mxu1 %vm27_vm1, %v18013_v48  ;;  %v18137_v22 = vld [vmem:[#allocation2 + $0xe0] sm:$0xff]  ;;  %v351_v23 = vld [vmem:[#allocation2 + $0xf1] sm:$0xff]  ;;  %v353_v30 = vld [vmem:[#allocation2 + $0x109] sm:$0xff]  ;;  %246 = vst.msk [vmem:[#allocation2 + $0x259] sm:$0xff] %vm27_vm1, %v181_v27 }
  0x50   :  { %v352_v25 = vld [vmem:[#allocation2 + $0xf9] sm:$0xff]  ;;  %v18155_v31 = vld [vmem:[#allocation2 + $0x108] sm:$0xff]  ;;  %247 = vst.msk [vmem:[#allocation2 + $0x261] sm:$0xff] %vm27_vm1, %v182_v28  ;;  %248 = vst.msk [vmem:[#allocation2 + $0x271] sm:$0xff] %vm27_vm1, %v183_v29 }
  0x51   :  { %15807 = vmatmul.mubr.msk.f32.gmra.mxu0 %vm27_vm1, %v342_v56  ;;  %v18141_v26 = vld [vmem:[#allocation2 + $0xf8] sm:$0xff]  ;;  %v185_v35 = vld [vmem:[%s23101_s0 + $0x180] sm:$0xff]  ;;  %v186_v37 = vld [vmem:[%s23101_s0 + $0x188] sm:$0xff] }
  0x52   :  { %15905 = vmatmul.mubr.msk.f32.gmra.mxu1 %vm27_vm1, %v18046_v57  ;;  %15809 = vmatprep.mubr.msk.f32.mxu0 %vm27_vm1, %v343_v58  ;;  %v184_v33 = vld [vmem:[%s23101_s0 + $0x178] sm:$0xff]  ;;  %250 = vst.msk [vmem:[#allocation2 + $0x289] sm:$0xff] %vm27_vm1, %v185_v35  ;;  %251 = vst.msk [vmem:[#allocation2 + $0x291] sm:$0xff] %vm27_vm1, %v186_v37  ;;  %v187_v39 = vld [vmem:[%s23101_s0 + $0x190] sm:$0xff] }
  0x53   :  { %15907 = vmatprep.mubr.msk.f32.mxu1 %vm27_vm1, %v18051_v59  ;;  %249 = vst.msk [vmem:[#allocation2 + $0x279] sm:$0xff] %vm27_vm1, %v184_v33  ;;  %v188_v41 = vld [vmem:[%s23101_s0 + $0x198] sm:$0xff]  ;;  %v189_v43 = vld [vmem:[%s23101_s0 + $0x1a0] sm:$0xff]  ;;  %252 = vst.msk [vmem:[#allocation2 + $0x2a1] sm:$0xff] %vm27_vm1, %v187_v39 }
  0x54   :  { %253 = vst.msk [vmem:[#allocation2 + $0x2a9] sm:$0xff] %vm27_vm1, %v188_v41  ;;  %254 = vst.msk [vmem:[#allocation2 + $0x2b9] sm:$0xff] %vm27_vm1, %v189_v43  ;;  %v190_v45 = vld [vmem:[%s23101_s0 + $0x1a8] sm:$0xff]  ;;  %v191_v47 = vld [vmem:[%s23101_s0 + $0x1b0] sm:$0xff] }
  0x55   :  { %15810 = vmatmul.mubr.msk.f32.gmra.mxu0 %vm27_vm1, %v344_v62  ;;  %v192_v49 = vld [vmem:[%s23101_s0 + $0x1b8] sm:$0xff]  ;;  %255 = vst.msk [vmem:[#allocation2 + $0x2c1] sm:$0xff] %vm27_vm1, %v190_v45  ;;  %256 = vst.msk [vmem:[#allocation2 + $0x2d1] sm:$0xff] %vm27_vm1, %v191_v47  ;;  %v193_v51 = vld [vmem:[%s23101_s0 + $0x1c0] sm:$0xff] }
  0x56   :  { %15908 = vmatmul.mubr.msk.f32.gmra.mxu1 %vm27_vm1, %v18059_v63  ;;  %15812 = vmatprep.mubr.msk.f32.mxu0 %vm27_vm1, %v345_v10  ;;  %v354_v50 = vld [vmem:[#allocation2 + $0x111] sm:$0xff]  ;;  %257 = vst.msk [vmem:[#allocation2 + $0x2d9] sm:$0xff] %vm27_vm1, %v192_v49  ;;  %v194_v52 = vld [vmem:[%s23101_s0 + $0x1c8] sm:$0xff]  ;;  %258 = vst.msk [vmem:[#allocation2 + $0x2e9] sm:$0xff] %vm27_vm1, %v193_v51 }
  0x57   :  { %15910 = vmatprep.mubr.msk.f32.mxu1 %vm27_vm1, %v18102_v11  ;;  %v195_v53 = vld [vmem:[%s23101_s0 + $0x1d0] sm:$0xff]  ;;  %259 = vst.msk [vmem:[#allocation2 + $0x2f1] sm:$0xff] %vm27_vm1, %v194_v52  ;;  %v196_v54 = vld [vmem:[%s23101_s0 + $0x1d8] sm:$0xff]  ;;  %v197_v55 = vld [vmem:[%s23101_s0 + $0x1e0] sm:$0xff] }
  0x58   :  { %260 = vst.msk [vmem:[#allocation2 + $0x301] sm:$0xff] %vm27_vm1, %v195_v53  ;;  %v198_v56 = vld [vmem:[%s23101_s0 + $0x1e8] sm:$0xff]  ;;  %v18226_v58 = vld [vmem:[#allocation2 + $0x110] sm:$0xff]  ;;  %261 = vst.msk [vmem:[#allocation2 + $0x309] sm:$0xff] %vm27_vm1, %v196_v54 }
  0x59   :  { %15813 = vmatmul.mubr.msk.f32.gmra.mxu0 %vm27_vm1, %v346_v13  ;;  %262 = vst.msk [vmem:[#allocation2 + $0x319] sm:$0xff] %vm27_vm1, %v197_v55  ;;  %263 = vst.msk [vmem:[#allocation2 + $0x321] sm:$0xff] %vm27_vm1, %v198_v56  ;;  %v13639_v60 = vld [vmem:[%s23102_s1 + $0xc] sm:$0xf]  ;;  %v18237_v61 = vld [vmem:[%s23102_s1 + $0x10] sm:$0xf] }
  0x5a   :  { %15911 = vmatmul.mubr.msk.f32.gmra.mxu1 %vm27_vm1, %v18117_v14  ;;  %15815 = vmatprep.mubr.msk.f32.mxu0 %vm27_vm1, %v347_v15  ;;  %v355_v62 = vld [vmem:[#allocation2 + $0x121] sm:$0xff]  ;;  %v356_v1 = vld [vmem:[#allocation2 + $0x129] sm:$0xff]  ;;  %v357_v3 = vld [vmem:[#allocation2 + $0x139] sm:$0xff] }
  0x5b   :  { %15913 = vmatprep.mubr.msk.f32.mxu1 %vm27_vm1, %v18119_v16  ;;  %v18239_v0 = vld [vmem:[#allocation2 + $0x120] sm:$0xff]  ;;  %16083 = vmatprep.subr.msk.mxu1 %vm589_vm0, %v13639_v60  ;;  %v18251_v2 = vld [vmem:[#allocation2 + $0x128] sm:$0xff]  ;;  %v18253_v4 = vld [vmem:[#allocation2 + $0x138] sm:$0xff] }
  0x5c   :  { %16181 = vmatprep.subr.msk.mxu0 %vm589_vm0, %v18237_v61  ;;  %16084 = vmatpush3.msk.msra.mxu1 %vm589_vm0, %v13639_v60  ;;  %v358_v6 = vld [vmem:[#allocation2 + $0x141] sm:$0xff]  ;;  %v359_v8 = vld [vmem:[#allocation2 + $0x151] sm:$0xff]  ;;  %v360_v10 = vld [vmem:[#allocation2 + $0x159] sm:$0xff] }
  0x5d   :  { %15816 = vmatmul.mubr.msk.f32.gmra.mxu0 %vm27_vm1, %v348_v17  ;;  %v18261_v7 = vld [vmem:[#allocation2 + $0x140] sm:$0xff]  ;;  %v18263_v9 = vld [vmem:[#allocation2 + $0x150] sm:$0xff]  ;;  %v18271_v12 = vld [vmem:[#allocation2 + $0x158] sm:$0xff] }
  0x5e   :  { %15914 = vmatmul.mubr.msk.f32.gmra.mxu1 %vm27_vm1, %v18127_v18  ;;  %15818 = vmatprep.mubr.msk.f32.mxu0 %vm27_vm1, %v349_v19  ;;  %v361_v13 = vld [vmem:[#allocation2 + $0x169] sm:$0xff]  ;;  %v362_v17 = vld [vmem:[#allocation2 + $0x171] sm:$0xff] }
  0x5f   :  { %15916 = vmatprep.mubr.msk.f32.mxu1 %vm27_vm1, %v18129_v20  ;;  %v18273_v15 = vld [vmem:[#allocation2 + $0x168] sm:$0xff]  ;;  %v18281_v19 = vld [vmem:[#allocation2 + $0x170] sm:$0xff]  ;;  %v299_v27 = vld [vmem:[#allocation2 + $0x1b8] sm:$0xff] }
  0x60   :  { %v365_v28 = vld [vmem:[#allocation2 + $0x1c9] sm:$0xff]  ;;  %v168_v33 = vld [vmem:[%s23101_s0 + $0xf8] sm:$0xff] }
  0x61   :  { %15819 = vmatmul.mubr.msk.f32.gmra.mxu0 %vm27_vm1, %v350_v21  ;;  %v363_v21 = vld [vmem:[#allocation2 + $0x1b1] sm:$0xff]  ;;  %v18288_v29 = vld [vmem:[#allocation2 + $0x1c8] sm:$0xff]  ;;  %233 = vst.msk [vmem:[#allocation2 + $0x189] sm:$0xff] %vm27_vm1, %v168_v33 }
  0x62   :  { %15917 = vmatmul.mubr.msk.f32.gmra.mxu1 %vm27_vm1, %v18137_v22  ;;  %15821 = vmatprep.mubr.msk.f32.mxu0 %vm27_vm1, %v351_v23  ;;  %v298_v23 = vld [vmem:[#allocation2 + $0x1b0] sm:$0xff] }
  0x63   :  { %15919 = vmatprep.mubr.msk.f32.mxu1 %vm27_vm1, %v18139_v24  ;;  %v366_v35 = vld [vmem:[#allocation2 + $0x1d1] sm:$0xff] }
  0x64   :  { %v18301_v37 = vld [vmem:[#allocation2 + $0x1d0] sm:$0xff] }
  0x65   :  { %15822 = vmatmul.mubr.msk.f32.gmra.mxu0 %vm27_vm1, %v352_v25  ;;  %v364_v25 = vld [vmem:[#allocation2 + $0x1b9] sm:$0xff] }
  0x66   :  { %15920 = vmatmul.mubr.msk.f32.gmra.mxu1 %vm27_vm1, %v18141_v26  ;;  %15824 = vmatprep.mubr.msk.f32.mxu0 %vm27_vm1, %v353_v30  ;;  %v167_v30 = vld [vmem:[%s23101_s0 + $0xf0] sm:$0xff] }
  0x67   :  { %15922 = vmatprep.mubr.msk.f32.mxu1 %vm27_vm1, %v18155_v31  ;;  %232 = vst.msk [vmem:[#allocation2 + $0x181] sm:$0xff] %vm27_vm1, %v167_v30 }
  0x69   :  { %15825 = vmatmul.mubr.msk.f32.gmra.mxu0 %vm27_vm1, %v354_v50 }
  0x6a   :  { %15923 = vmatmul.mubr.msk.f32.gmra.mxu1 %vm27_vm1, %v18226_v58  ;;  %15827 = vmatprep.mubr.msk.f32.mxu0 %vm27_vm1, %v355_v62 }
  0x6b   :  { %15925 = vmatprep.mubr.msk.f32.mxu1 %vm27_vm1, %v18239_v0 }
  0x6d   :  { %15828 = vmatmul.mubr.msk.f32.gmra.mxu0 %vm27_vm1, %v356_v1 }
  0x6e   :  { %15926 = vmatmul.mubr.msk.f32.gmra.mxu1 %vm27_vm1, %v18251_v2  ;;  %15830 = vmatprep.mubr.msk.f32.mxu0 %vm27_vm1, %v357_v3 }
  0x6f   :  { %15928 = vmatprep.mubr.msk.f32.mxu1 %vm27_vm1, %v18253_v4 }
  0x71   :  { %15831 = vmatmul.mubr.msk.f32.gmra.mxu0 %vm27_vm1, %v358_v6 }
  0x72   :  { %15929 = vmatmul.mubr.msk.f32.gmra.mxu1 %vm27_vm1, %v18261_v7  ;;  %15833 = vmatprep.mubr.msk.f32.mxu0 %vm27_vm1, %v359_v8 }
  0x73   :  { %15931 = vmatprep.mubr.msk.f32.mxu1 %vm27_vm1, %v18263_v9 }
  0x75   :  { %15834 = vmatmul.mubr.msk.f32.gmra.mxu0 %vm27_vm1, %v360_v10 }
  0x76   :  { %15932 = vmatmul.mubr.msk.f32.gmra.mxu1 %vm27_vm1, %v18271_v12  ;;  %15836 = vmatprep.mubr.msk.f32.mxu0 %vm27_vm1, %v361_v13 }
  0x77   :  { %15934 = vmatprep.mubr.msk.f32.mxu1 %vm27_vm1, %v18273_v15 }
  0x79   :  { %15837 = vmatmul.mubr.msk.f32.gmra.mxu0 %vm27_vm1, %v362_v17 }
  0x7a   :  { %15935 = vmatmul.mubr.msk.f32.gmra.mxu1 %vm27_vm1, %v18281_v19  ;;  %15839 = vmatprep.mubr.msk.f32.mxu0 %vm27_vm1, %v363_v21 }
  0x7b   :  { %15937 = vmatprep.mubr.msk.f32.mxu1 %vm27_vm1, %v298_v23 }
  0x7d   :  { %15840 = vmatmul.mubr.msk.f32.gmra.mxu0 %vm27_vm1, %v364_v25 }
  0x7e   :  { %15938 = vmatmul.mubr.msk.f32.gmra.mxu1 %vm27_vm1, %v299_v27  ;;  %15842 = vmatprep.mubr.msk.f32.mxu0 %vm27_vm1, %v365_v28 }
  0x7f   :  { %15940 = vmatprep.mubr.msk.f32.mxu1 %vm27_vm1, %v18288_v29 }
  0x80   :  { %12 = vsyncpa [#allocation5], 0  ;;  %v367_v39 = vld [vmem:[#allocation2 + $0x1e1] sm:$0xff]  ;;  %v368_v43 = vld [vmem:[#allocation2 + $0x1e9] sm:$0xff]  ;;  %vm6836_vm3 = vcmask 64512   ;;  %vm6839_vm4 = vcmask 58368  }
  0x81   :  { %v18305_v41 = vld [vmem:[#allocation2 + $0x1e0] sm:$0xff]  ;;  %15843 = vmatmul.mubr.msk.f32.gmra.mxu0 %vm27_vm1, %v366_v35  ;;  %v18313_v45 = vld [vmem:[#allocation2 + $0x1e8] sm:$0xff]  ;;  %v18315_v49 = vld [vmem:[#allocation2 + $0x1f8] sm:$0xff] }
  0x82   :  { %15941 = vmatmul.mubr.msk.f32.gmra.mxu1 %vm27_vm1, %v18301_v37  ;;  %15845 = vmatprep.mubr.msk.f32.mxu0 %vm27_vm1, %v367_v39  ;;  %v369_v47 = vld [vmem:[#allocation2 + $0x1f9] sm:$0xff]  ;;  %v370_v50 = vld [vmem:[#allocation2 + $0x201] sm:$0xff]  ;;  %v371_v52 = vld [vmem:[#allocation2 + $0x211] sm:$0xff] }
  0x83   :  { %15943 = vmatprep.mubr.msk.f32.mxu1 %vm27_vm1, %v18305_v41  ;;  %v18323_v51 = vld [vmem:[#allocation2 + $0x200] sm:$0xff]  ;;  %v18325_v53 = vld [vmem:[#allocation2 + $0x210] sm:$0xff]  ;;  %v18333_v55 = vld [vmem:[#allocation2 + $0x218] sm:$0xff] }
  0x84   :  { %v372_v54 = vld [vmem:[#allocation2 + $0x219] sm:$0xff]  ;;  %v373_v56 = vld [vmem:[#allocation2 + $0x229] sm:$0xff]  ;;  %v374_v62 = vld [vmem:[#allocation2 + $0x231] sm:$0xff] }
  0x85   :  { %15846 = vmatmul.mubr.msk.f32.gmra.mxu0 %vm27_vm1, %v368_v43  ;;  %v18335_v60 = vld [vmem:[#allocation2 + $0x228] sm:$0xff]  ;;  %v18343_v1 = vld [vmem:[#allocation2 + $0x230] sm:$0xff]  ;;  %v18345_v6 = vld [vmem:[#allocation2 + $0x240] sm:$0xff] }
  0x86   :  { %15944 = vmatmul.mubr.msk.f32.gmra.mxu1 %vm27_vm1, %v18313_v45  ;;  %15848 = vmatprep.mubr.msk.f32.mxu0 %vm27_vm1, %v369_v47  ;;  %v375_v3 = vld [vmem:[#allocation2 + $0x241] sm:$0xff]  ;;  %v376_v8 = vld [vmem:[#allocation2 + $0x249] sm:$0xff]  ;;  %v377_v13 = vld [vmem:[#allocation2 + $0x259] sm:$0xff] }
  0x87   :  { %15946 = vmatprep.mubr.msk.f32.mxu1 %vm27_vm1, %v18315_v49  ;;  %v18353_v10 = vld [vmem:[#allocation2 + $0x248] sm:$0xff]  ;;  %v18355_v17 = vld [vmem:[#allocation2 + $0x258] sm:$0xff]  ;;  %v18363_v23 = vld [vmem:[#allocation2 + $0x260] sm:$0xff] }
  0x88   :  { %v378_v21 = vld [vmem:[#allocation2 + $0x261] sm:$0xff]  ;;  %v379_v25 = vld [vmem:[#allocation2 + $0x271] sm:$0xff]  ;;  %v380_v28 = vld [vmem:[#allocation2 + $0x279] sm:$0xff] }
  0x89   :  { %15849 = vmatmul.mubr.msk.f32.gmra.mxu0 %vm27_vm1, %v370_v50  ;;  %v18365_v27 = vld [vmem:[#allocation2 + $0x270] sm:$0xff]  ;;  %v18373_v30 = vld [vmem:[#allocation2 + $0x278] sm:$0xff]  ;;  %v18375_v35 = vld [vmem:[#allocation2 + $0x288] sm:$0xff] }
  0x8a   :  { %15947 = vmatmul.mubr.msk.f32.gmra.mxu1 %vm27_vm1, %v18323_v51  ;;  %15851 = vmatprep.mubr.msk.f32.mxu0 %vm27_vm1, %v371_v52  ;;  %v381_v33 = vld [vmem:[#allocation2 + $0x289] sm:$0xff]  ;;  %v382_v39 = vld [vmem:[#allocation2 + $0x291] sm:$0xff]  ;;  %v383_v47 = vld [vmem:[#allocation2 + $0x2a1] sm:$0xff] }
  0x8b   :  { %15949 = vmatprep.mubr.msk.f32.mxu1 %vm27_vm1, %v18325_v53  ;;  %v18383_v43 = vld [vmem:[#allocation2 + $0x290] sm:$0xff]  ;;  %v18385_v50 = vld [vmem:[#allocation2 + $0x2a0] sm:$0xff] }
  0x8c   :  { %v384_v52 = vld [vmem:[#allocation2 + $0x2a9] sm:$0xff]  ;;  %v393_v5 = vld [vmem:[#allocation2 + $0x319] sm:$0xff] }
  0x8d   :  { %15852 = vmatmul.mubr.msk.f32.gmra.mxu0 %vm27_vm1, %v372_v54  ;;  %v18393_v54 = vld [vmem:[#allocation2 + $0x2a8] sm:$0xff] }
  0x8e   :  { %15950 = vmatmul.mubr.msk.f32.gmra.mxu1 %vm27_vm1, %v18333_v55  ;;  %15854 = vmatprep.mubr.msk.f32.mxu0 %vm27_vm1, %v373_v56  ;;  %v385_v56 = vld [vmem:[#allocation2 + $0x2b9] sm:$0xff] }
  0x8f   :  { %15952 = vmatprep.mubr.msk.f32.mxu1 %vm27_vm1, %v18335_v60 }
  0x91   :  { %15855 = vmatmul.mubr.msk.f32.gmra.mxu0 %vm27_vm1, %v374_v62  ;;  %v18395_v62 = vld [vmem:[#allocation2 + $0x2b8] sm:$0xff] }
  0x92   :  { %15953 = vmatmul.mubr.msk.f32.gmra.mxu1 %vm27_vm1, %v18343_v1  ;;  %15857 = vmatprep.mubr.msk.f32.mxu0 %vm27_vm1, %v375_v3  ;;  %v386_v3 = vld [vmem:[#allocation2 + $0x2c1] sm:$0xff] }
  0x93   :  { %15955 = vmatprep.mubr.msk.f32.mxu1 %vm27_vm1, %v18345_v6 }
  0x95   :  { %15858 = vmatmul.mubr.msk.f32.gmra.mxu0 %vm27_vm1, %v376_v8  ;;  %v18403_v8 = vld [vmem:[#allocation2 + $0x2c0] sm:$0xff] }
  0x96   :  { %15956 = vmatmul.mubr.msk.f32.gmra.mxu1 %vm27_vm1, %v18353_v10  ;;  %15860 = vmatprep.mubr.msk.f32.mxu0 %vm27_vm1, %v377_v13  ;;  %v387_v13 = vld [vmem:[#allocation2 + $0x2d1] sm:$0xff] }
  0x97   :  { %15958 = vmatprep.mubr.msk.f32.mxu1 %vm27_vm1, %v18355_v17 }
  0x99   :  { %15861 = vmatmul.mubr.msk.f32.gmra.mxu0 %vm27_vm1, %v378_v21  ;;  %v18405_v21 = vld [vmem:[#allocation2 + $0x2d0] sm:$0xff] }
  0x9a   :  { %15959 = vmatmul.mubr.msk.f32.gmra.mxu1 %vm27_vm1, %v18363_v23  ;;  %15863 = vmatprep.mubr.msk.f32.mxu0 %vm27_vm1, %v379_v25  ;;  %v388_v25 = vld [vmem:[#allocation2 + $0x2d9] sm:$0xff] }
  0x9b   :  { %15961 = vmatprep.mubr.msk.f32.mxu1 %vm27_vm1, %v18365_v27 }
  0x9d   :  { %15864 = vmatmul.mubr.msk.f32.gmra.mxu0 %vm27_vm1, %v380_v28  ;;  %v18413_v28 = vld [vmem:[#allocation2 + $0x2d8] sm:$0xff] }
  0x9e   :  { %15962 = vmatmul.mubr.msk.f32.gmra.mxu1 %vm27_vm1, %v18373_v30  ;;  %15866 = vmatprep.mubr.msk.f32.mxu0 %vm27_vm1, %v381_v33  ;;  %v389_v33 = vld [vmem:[#allocation2 + $0x2e9] sm:$0xff] }
  0x9f   :  { %15964 = vmatprep.mubr.msk.f32.mxu1 %vm27_vm1, %v18375_v35 }
  0xa1   :  { %15867 = vmatmul.mubr.msk.f32.gmra.mxu0 %vm27_vm1, %v382_v39  ;;  %v18415_v39 = vld [vmem:[#allocation2 + $0x2e8] sm:$0xff] }
  0xa2   :  { %15965 = vmatmul.mubr.msk.f32.gmra.mxu1 %vm27_vm1, %v18383_v43  ;;  %15869 = vmatprep.mubr.msk.f32.mxu0 %vm27_vm1, %v383_v47  ;;  %v390_v47 = vld [vmem:[#allocation2 + $0x2f1] sm:$0xff] }
  0xa3   :  { %15967 = vmatprep.mubr.msk.f32.mxu1 %vm27_vm1, %v18385_v50 }
  0xa5   :  { %15870 = vmatmul.mubr.msk.f32.gmra.mxu0 %vm27_vm1, %v384_v52  ;;  %v18423_v52 = vld [vmem:[#allocation2 + $0x2f0] sm:$0xff] }
  0xa6   :  { %15968 = vmatmul.mubr.msk.f32.gmra.mxu1 %vm27_vm1, %v18393_v54  ;;  %15872 = vmatprep.mubr.msk.f32.mxu0 %vm27_vm1, %v385_v56  ;;  %23183 = vst [vmem:[#allocation7_spill] sm:$0xff] %v18423_v52  ;;  %v391_v56 = vld [vmem:[#allocation2 + $0x301] sm:$0xff] }
  0xa7   :  { %15970 = vmatprep.mubr.msk.f32.mxu1 %vm27_vm1, %v18395_v62 }
  0xa9   :  { %15873 = vmatmul.mubr.msk.f32.gmra.mxu0 %vm27_vm1, %v386_v3  ;;  %v18425_v3 = vld [vmem:[#allocation2 + $0x300] sm:$0xff] }
  0xaa   :  { %15971 = vmatmul.mubr.msk.f32.gmra.mxu1 %vm27_vm1, %v18403_v8  ;;  %15875 = vmatprep.mubr.msk.f32.mxu0 %vm27_vm1, %v387_v13  ;;  %23184 = vst [vmem:[#allocation8_spill] sm:$0xff] %v18425_v3  ;;  %v199_v13 = vld [vmem:[%s23101_s0 + $0x1f0] sm:$0xff] }
  0xab   :  { %15973 = vmatprep.mubr.msk.f32.mxu1 %vm27_vm1, %v18405_v21  ;;  %264 = vst.msk [vmem:[#allocation2 + $0x331] sm:$0xff] %vm27_vm1, %v199_v13  ;;  %v18451_v13 = vld [vmem:[#allocation2 + $0x320] sm:$0xff] }
  0xad   :  { %15876 = vmatmul.mubr.msk.f32.gmra.mxu0 %vm27_vm1, %v388_v25  ;;  %v392_v25 = vld [vmem:[#allocation2 + $0x309] sm:$0xff] }
  0xae   :  { %15974 = vmatmul.mubr.msk.f32.gmra.mxu1 %vm27_vm1, %v18413_v28  ;;  %15878 = vmatprep.mubr.msk.f32.mxu0 %vm27_vm1, %v389_v33  ;;  %v18436_v33 = vld [vmem:[#allocation2 + $0x308] sm:$0xff] }
  0xaf   :  { %15976 = vmatprep.mubr.msk.f32.mxu1 %vm27_vm1, %v18415_v39 }
  0xb1   :  { %15879 = vmatmul.mubr.msk.f32.gmra.mxu0 %vm27_vm1, %v390_v47  ;;  %v200_v47 = vld [vmem:[%s23101_s0 + $0x1f8] sm:$0xff] }
  0xb2   :  { %15977 = vmatmul.mubr.msk.f32.gmra.mxu1 %vm27_vm1, %v18423_v52  ;;  %15881 = vmatprep.mubr.msk.f32.mxu0 %vm27_vm1, %v391_v56  ;;  %v18442_v52 = vld [vmem:[#allocation2 + $0x318] sm:$0xff]  ;;  %265 = vst.msk [vmem:[#allocation2 + $0x339] sm:$0xff] %vm27_vm1, %v200_v47  ;;  %v394_v56 = vld [vmem:[#allocation2 + $0x321] sm:$0xff] }
  0xb3   :  { %15979 = vmatprep.mubr.msk.f32.mxu1 %vm27_vm1, %v18425_v3  ;;  %v1558_v3 = vld [vmem:[#allocation2 + $0x2] sm:$0xff]  ;;  %v18462_v47 = vld [vmem:[#allocation2 + $0x1a] sm:$0xff] }
  0xb5   :  { %15882 = vmatmul.mubr.msk.f32.gmra.mxu0 %vm27_vm1, %v392_v25  ;;  %v1559_v25 = vld [vmem:[#allocation2 + $0xa] sm:$0xff] }
  0xb6   :  { %15980 = vmatmul.mubr.msk.f32.gmra.mxu1 %vm27_vm1, %v18436_v33  ;;  %15884 = vmatprep.mubr.msk.f32.mxu0 %vm27_vm1, %v393_v5  ;;  %v13771_v5 = vld [vmem:[%s23102_s1 + $0x14] sm:$0xf] }
  0xb7   :  { %15982 = vmatprep.mubr.msk.f32.mxu1 %vm27_vm1, %v18442_v52  ;;  %16279 = vmatprep.subr.msk.mxu1 %vm589_vm0, %v13771_v5 }
  0xb9   :  { %15885 = vmatmul.mubr.msk.f32.gmra.mxu0 %vm27_vm1, %v394_v56  ;;  %v18481_v56 = vld [vmem:[#allocation2 + $0x32] sm:$0xff] }
  0xba   :  { %15983 = vmatmul.mubr.msk.f32.gmra.mxu1 %vm27_vm1, %v18451_v13  ;;  %15987 = vmatprep.mubr.msk.f32.mxu0 %vm27_vm1, %v1558_v3  ;;  %v18471_v3 = vld [vmem:[%s23102_s1 + $0x18] sm:$0xf] }
  0xbb   :  { %16085 = vmatprep.mubr.msk.f32.mxu1 %vm27_vm1, %v17972_v32  ;;  %v18477_v32 = vld [vmem:[#allocation2 + $0x22] sm:$0xff] }
  0xbd   :  { %15988 = vmatmul.mubr.msk.f32.vlgmr.msra.gmra.mxu0 %vm27_vm1, %v1559_v25  ;;  %v2298_v25 = vld [vmem:[#allocation2 + $0x180] sm:$0xff] }
  0xbe   :  { %16086 = vmatmul.mubr.msk.f32.vlgmr.msra.gmra.mxu1 %vm27_vm1, %v17979_v34  ;;  %16182 = vmatpush3.msk.msra.mxu0 %vm589_vm0, %v18237_v61  ;;  %v18492_v34 = vld [vmem:[#allocation2 + $0x3a] sm:$0xff]  ;;  %v18508_v61 = vld [vmem:[#allocation2 + $0x62] sm:$0xff] }
  0xbf   :  { %15990 = vmatprep.mubr.msk.f32.mxu0 %vm27_vm1, %v18462_v47  ;;  %16088 = vmatprep.mubr.msk.f32.mxu1 %vm27_vm1, %v17983_v36  ;;  %v18496_v36 = vld [vmem:[#allocation2 + $0x4a] sm:$0xff] }
  0xc0   :  { %16280 = vmatpush3.msk.msra.mxu1 %vm589_vm0, %v13771_v5  ;;  %16377 = vmatprep.subr.msk.mxu0 %vm589_vm0, %v18471_v3  ;;  %v1590_v5 = vld [vmem:[#allocation2 + $0x1b2] sm:$0xff] }
  0xc1   :  { %15991 = vmatmul.mubr.msk.f32.gmra.mxu0 %vm27_vm1, %v18477_v32 }
  0xc2   :  { %16089 = vmatmul.mubr.msk.f32.gmra.mxu1 %vm27_vm1, %v17991_v38  ;;  %15993 = vmatprep.mubr.msk.f32.mxu0 %vm27_vm1, %v18481_v56  ;;  %v18504_v38 = vld [vmem:[#allocation2 + $0x52] sm:$0xff] }
  0xc3   :  { %16091 = vmatprep.mubr.msk.f32.mxu1 %vm27_vm1, %v17993_v40  ;;  %v18516_v40 = vld [vmem:[#allocation2 + $0x6a] sm:$0xff] }
  0xc5   :  { %15994 = vmatmul.mubr.msk.f32.gmra.mxu0 %vm27_vm1, %v18492_v34 }
  0xc6   :  { %16092 = vmatmul.mubr.msk.f32.gmra.mxu1 %vm27_vm1, %v18001_v42  ;;  %15996 = vmatprep.mubr.msk.f32.mxu0 %vm27_vm1, %v18496_v36  ;;  %v18520_v42 = vld [vmem:[#allocation2 + $0x7a] sm:$0xff] }
  0xc7   :  { %16094 = vmatprep.mubr.msk.f32.mxu1 %vm27_vm1, %v18003_v44  ;;  %v18528_v44 = vld [vmem:[#allocation2 + $0x82] sm:$0xff] }
  0xc9   :  { %15997 = vmatmul.mubr.msk.f32.gmra.mxu0 %vm27_vm1, %v18504_v38 }
  0xca   :  { %16095 = vmatmul.mubr.msk.f32.gmra.mxu1 %vm27_vm1, %v18011_v46  ;;  %15999 = vmatprep.mubr.msk.f32.mxu0 %vm27_vm1, %v18508_v61  ;;  %v18532_v46 = vld [vmem:[#allocation2 + $0x92] sm:$0xff] }
  0xcb   :  { %16097 = vmatprep.mubr.msk.f32.mxu1 %vm27_vm1, %v18013_v48  ;;  %v18540_v48 = vld [vmem:[#allocation2 + $0x9a] sm:$0xff] }
  0xcd   :  { %16000 = vmatmul.mubr.msk.f32.gmra.mxu0 %vm27_vm1, %v18516_v40 }
  0xce   :  { %16098 = vmatmul.mubr.msk.f32.gmra.mxu1 %vm27_vm1, %v18046_v57  ;;  %16002 = vmatprep.mubr.msk.f32.mxu0 %vm27_vm1, %v18520_v42  ;;  %v18544_v57 = vld [vmem:[#allocation2 + $0xaa] sm:$0xff] }
  0xcf   :  { %16100 = vmatprep.mubr.msk.f32.mxu1 %vm27_vm1, %v18051_v59  ;;  %v18552_v59 = vld [vmem:[#allocation2 + $0xb2] sm:$0xff] }
  0xd1   :  { %16003 = vmatmul.mubr.msk.f32.gmra.mxu0 %vm27_vm1, %v18528_v44 }
  0xd2   :  { %16101 = vmatmul.mubr.msk.f32.gmra.mxu1 %vm27_vm1, %v18059_v63  ;;  %16005 = vmatprep.mubr.msk.f32.mxu0 %vm27_vm1, %v18532_v46  ;;  %v18556_v63 = vld [vmem:[#allocation2 + $0xc2] sm:$0xff] }
  0xd3   :  { %16103 = vmatprep.mubr.msk.f32.mxu1 %vm27_vm1, %v18102_v11  ;;  %v18564_v11 = vld [vmem:[#allocation2 + $0xca] sm:$0xff] }
  0xd5   :  { %16006 = vmatmul.mubr.msk.f32.gmra.mxu0 %vm27_vm1, %v18540_v48 }
  0xd6   :  { %16104 = vmatmul.mubr.msk.f32.gmra.mxu1 %vm27_vm1, %v18117_v14  ;;  %16008 = vmatprep.mubr.msk.f32.mxu0 %vm27_vm1, %v18544_v57  ;;  %v18568_v14 = vld [vmem:[#allocation2 + $0xda] sm:$0xff] }
  0xd7   :  { %16106 = vmatprep.mubr.msk.f32.mxu1 %vm27_vm1, %v18119_v16  ;;  %v18576_v16 = vld [vmem:[#allocation2 + $0xe2] sm:$0xff] }
  0xd9   :  { %16009 = vmatmul.mubr.msk.f32.gmra.mxu0 %vm27_vm1, %v18552_v59 }
  0xda   :  { %16107 = vmatmul.mubr.msk.f32.gmra.mxu1 %vm27_vm1, %v18127_v18  ;;  %16011 = vmatprep.mubr.msk.f32.mxu0 %vm27_vm1, %v18556_v63  ;;  %v18580_v18 = vld [vmem:[#allocation2 + $0xf2] sm:$0xff] }
  0xdb   :  { %16109 = vmatprep.mubr.msk.f32.mxu1 %vm27_vm1, %v18129_v20  ;;  %v18588_v20 = vld [vmem:[#allocation2 + $0xfa] sm:$0xff] }
  0xdd   :  { %16012 = vmatmul.mubr.msk.f32.gmra.mxu0 %vm27_vm1, %v18564_v11 }
  0xde   :  { %16110 = vmatmul.mubr.msk.f32.gmra.mxu1 %vm27_vm1, %v18137_v22  ;;  %16014 = vmatprep.mubr.msk.f32.mxu0 %vm27_vm1, %v18568_v14  ;;  %v18592_v22 = vld [vmem:[#allocation2 + $0x10a] sm:$0xff] }
  0xdf   :  { %16112 = vmatprep.mubr.msk.f32.mxu1 %vm27_vm1, %v18139_v24  ;;  %v18600_v24 = vld [vmem:[#allocation2 + $0x112] sm:$0xff] }
  0xe1   :  { %16015 = vmatmul.mubr.msk.f32.gmra.mxu0 %vm27_vm1, %v18576_v16 }
  0xe2   :  { %16113 = vmatmul.mubr.msk.f32.gmra.mxu1 %vm27_vm1, %v18141_v26  ;;  %16017 = vmatprep.mubr.msk.f32.mxu0 %vm27_vm1, %v18580_v18  ;;  %v18604_v26 = vld [vmem:[#allocation2 + $0x122] sm:$0xff] }
  0xe3   :  { %16115 = vmatprep.mubr.msk.f32.mxu1 %vm27_vm1, %v18155_v31  ;;  %v18612_v31 = vld [vmem:[#allocation2 + $0x12a] sm:$0xff] }
  0xe5   :  { %16018 = vmatmul.mubr.msk.f32.gmra.mxu0 %vm27_vm1, %v18588_v20 }
  0xe6   :  { %16116 = vmatmul.mubr.msk.f32.gmra.mxu1 %vm27_vm1, %v18226_v58  ;;  %16020 = vmatprep.mubr.msk.f32.mxu0 %vm27_vm1, %v18592_v22  ;;  %v18616_v58 = vld [vmem:[#allocation2 + $0x13a] sm:$0xff] }
  0xe7   :  { %16118 = vmatprep.mubr.msk.f32.mxu1 %vm27_vm1, %v18239_v0  ;;  %v18624_v0 = vld [vmem:[#allocation2 + $0x142] sm:$0xff] }
  0xe8   :  { %23185 = vst [vmem:[#allocation9_spill] sm:$0xff] %v18624_v0 }
  0xe9   :  { %16021 = vmatmul.mubr.msk.f32.gmra.mxu0 %vm27_vm1, %v18600_v24 }
  0xea   :  { %16119 = vmatmul.mubr.msk.f32.gmra.mxu1 %vm27_vm1, %v18251_v2  ;;  %16023 = vmatprep.mubr.msk.f32.mxu0 %vm27_vm1, %v18604_v26  ;;  %v18628_v2 = vld [vmem:[#allocation2 + $0x152] sm:$0xff] }
  0xeb   :  { %16121 = vmatprep.mubr.msk.f32.mxu1 %vm27_vm1, %v18253_v4  ;;  %23186 = vst [vmem:[#allocation10_spill] sm:$0xff] %v18628_v2  ;;  %v18636_v4 = vld [vmem:[#allocation2 + $0x15a] sm:$0xff] }
  0xec   :  { %23187 = vst [vmem:[#allocation11_spill] sm:$0xff] %v18636_v4 }
  0xed   :  { %16024 = vmatmul.mubr.msk.f32.gmra.mxu0 %vm27_vm1, %v18612_v31 }
  0xee   :  { %16122 = vmatmul.mubr.msk.f32.gmra.mxu1 %vm27_vm1, %v18261_v7  ;;  %16026 = vmatprep.mubr.msk.f32.mxu0 %vm27_vm1, %v18616_v58  ;;  %v18640_v7 = vld [vmem:[#allocation2 + $0x16a] sm:$0xff] }
  0xef   :  { %16124 = vmatprep.mubr.msk.f32.mxu1 %vm27_vm1, %v18263_v9  ;;  %23188 = vst [vmem:[#allocation12_spill] sm:$0xff] %v18640_v7  ;;  %v18648_v9 = vld [vmem:[#allocation2 + $0x172] sm:$0xff] }
  0xf0   :  { %23189 = vst [vmem:[#allocation13_spill] sm:$0xff] %v18648_v9 }
  0xf1   :  { %16027 = vmatmul.mubr.msk.f32.gmra.mxu0 %vm27_vm1, %v18624_v0 }
  0xf2   :  { %16125 = vmatmul.mubr.msk.f32.gmra.mxu1 %vm27_vm1, %v18271_v12  ;;  %16029 = vmatprep.mubr.msk.f32.mxu0 %vm27_vm1, %v18628_v2  ;;  %v2299_v12 = vld [vmem:[#allocation2 + $0x188] sm:$0xff] }
  0xf3   :  { %16127 = vmatprep.mubr.msk.f32.mxu1 %vm27_vm1, %v18273_v15  ;;  %v1591_v15 = vld [vmem:[#allocation2 + $0x1ba] sm:$0xff] }
  0xf5   :  { %16030 = vmatmul.mubr.msk.f32.gmra.mxu0 %vm27_vm1, %v18636_v4  ;;  %v15891_v4 = vpop.f32.mrf.mxu1 }
  0xf6   :  { %16128 = vmatmul.mubr.msk.f32.gmra.mxu1 %vm27_vm1, %v18281_v19  ;;  %16032 = vmatprep.mubr.msk.f32.mxu0 %vm27_vm1, %v18640_v7  ;;  %v18657_v19 = vld [vmem:[#allocation2 + $0x1ca] sm:$0xff]  ;;  %v15793_v7 = vpop.f32.mrf.mxu0 }
  0xf7   :  { %16130 = vmatprep.mubr.msk.f32.mxu1 %vm27_vm1, %v2298_v25  ;;  %v18662_v25 = vadd.f32 %v15891_v4, %v15793_v7 }
  0xf9   :  { %16033 = vmatmul.mubr.msk.f32.gmra.mxu0 %vm27_vm1, %v18648_v9  ;;  %23190 = vst [vmem:[#allocation14_spill] sm:$0xff] %v18662_v25  ;;  %v18670_v9 = vld [vmem:[#allocation2 + $0x1e2] sm:$0xff] }
  0xfa   :  { %16131 = vmatmul.mubr.msk.f32.gmra.mxu1 %vm27_vm1, %v2299_v12  ;;  %16035 = vmatprep.mubr.msk.f32.mxu0 %vm27_vm1, %v1590_v5  ;;  %v18666_v12 = vld [vmem:[#allocation2 + $0x1d2] sm:$0xff]  ;;  %v1239_v5 = vpop.f32.mrf.mxu1 }
  0xfb   :  { %16133 = vmatprep.mubr.msk.f32.mxu1 %vm27_vm1, %v18288_v29  ;;  %v659_v29 = vpop.f32.mrf.mxu0 }
  0xfc   :  { %v18672_v2 = vadd.f32 %v1239_v5, %v659_v29  ;;  %v18686_v29 = vld [vmem:[#allocation2 + $0x1fa] sm:$0xff] }
  0xfd   :  { %16036 = vmatmul.mubr.msk.f32.gmra.mxu0 %vm27_vm1, %v1591_v15 }
  0xfe   :  { %16134 = vmatmul.mubr.msk.f32.gmra.mxu1 %vm27_vm1, %v18301_v37  ;;  %16038 = vmatprep.mubr.msk.f32.mxu0 %vm27_vm1, %v18657_v19  ;;  %23191 = vst [vmem:[#allocation15_spill] sm:$0xff] %v18672_v2 }
  0xff   :  { %16136 = vmatprep.mubr.msk.f32.mxu1 %vm27_vm1, %v18305_v41  ;;  %v18682_v41 = vld [vmem:[#allocation2 + $0x1ea] sm:$0xff] }
 0x101   :  { %v15796_v15 = vpop.f32.mrf.mxu0  ;;  %16039 = vmatmul.mubr.msk.f32.gmra.mxu0 %vm27_vm1, %v18666_v12 }
 0x102   :  { %v15894_v0 = vpop.f32.mrf.mxu1  ;;  %16137 = vmatmul.mubr.msk.f32.gmra.mxu1 %vm27_vm1, %v18313_v45  ;;  %16041 = vmatprep.mubr.msk.f32.mxu0 %vm27_vm1, %v18670_v9 }
 0x103   :  { %v18678_v37 = vadd.f32 %v15894_v0, %v15796_v15  ;;  %16139 = vmatprep.mubr.msk.f32.mxu1 %vm27_vm1, %v18315_v49  ;;  %v669_v4 = vpop.f32.mrf.mxu0  ;;  %v18698_v49 = vld [vmem:[#allocation2 + $0x202] sm:$0xff] }
 0x104   :  { %v1249_v7 = vpop.f32.mrf.mxu1 }
 0x105   :  { %23192 = vst [vmem:[#allocation16_spill] sm:$0xff] %v18678_v37  ;;  %v18688_v5 = vadd.f32 %v1249_v7, %v669_v4  ;;  %v15799_v2 = vpop.f32.mrf.mxu0  ;;  %16042 = vmatmul.mubr.msk.f32.gmra.mxu0 %vm27_vm1, %v18682_v41  ;;  %v18702_v4 = vld [vmem:[#allocation2 + $0x212] sm:$0xff] }
 0x106   :  { %v15897_v25 = vpop.f32.mrf.mxu1  ;;  %16140 = vmatmul.mubr.msk.f32.gmra.mxu1 %vm27_vm1, %v18323_v51  ;;  %16044 = vmatprep.mubr.msk.f32.mxu0 %vm27_vm1, %v18686_v29 }
 0x107   :  { %23193 = vst [vmem:[#allocation17_spill] sm:$0xff] %v18688_v5  ;;  %v18694_v45 = vadd.f32 %v15897_v25, %v15799_v2  ;;  %16142 = vmatprep.mubr.msk.f32.mxu1 %vm27_vm1, %v18325_v53  ;;  %v679_v0 = vpop.f32.mrf.mxu0  ;;  %v18714_v53 = vld [vmem:[#allocation2 + $0x21a] sm:$0xff] }
 0x108   :  { %v1259_v15 = vpop.f32.mrf.mxu1 }
 0x109   :  { %23194 = vst [vmem:[#allocation18_spill] sm:$0xff] %v18694_v45  ;;  %v18704_v7 = vadd.f32 %v1259_v15, %v679_v0  ;;  %v15802_v5 = vpop.f32.mrf.mxu0  ;;  %16045 = vmatmul.mubr.msk.f32.gmra.mxu0 %vm27_vm1, %v18698_v49  ;;  %v18718_v0 = vld [vmem:[#allocation2 + $0x22a] sm:$0xff] }
 0x10a   :  { %v15900_v37 = vpop.f32.mrf.mxu1  ;;  %16143 = vmatmul.mubr.msk.f32.gmra.mxu1 %vm27_vm1, %v18333_v55  ;;  %16047 = vmatprep.mubr.msk.f32.mxu0 %vm27_vm1, %v18702_v4 }
 0x10b   :  { %23195 = vst [vmem:[#allocation19_spill] sm:$0xff] %v18704_v7  ;;  %v18710_v51 = vadd.f32 %v15900_v37, %v15802_v5  ;;  %16145 = vmatprep.mubr.msk.f32.mxu1 %vm27_vm1, %v18335_v60  ;;  %v689_v2 = vpop.f32.mrf.mxu0  ;;  %v18730_v60 = vld [vmem:[#allocation2 + $0x232] sm:$0xff] }
 0x10c   :  { %v1269_v25 = vpop.f32.mrf.mxu1 }
 0x10d   :  { %23196 = vst [vmem:[#allocation20_spill] sm:$0xff] %v18710_v51  ;;  %v18720_v15 = vadd.f32 %v1269_v25, %v689_v2  ;;  %v15805_v7 = vpop.f32.mrf.mxu0  ;;  %16048 = vmatmul.mubr.msk.f32.gmra.mxu0 %vm27_vm1, %v18714_v53  ;;  %v18734_v2 = vld [vmem:[#allocation2 + $0x242] sm:$0xff] }
 0x10e   :  { %v15903_v45 = vpop.f32.mrf.mxu1  ;;  %16146 = vmatmul.mubr.msk.f32.gmra.mxu1 %vm27_vm1, %v18343_v1  ;;  %16050 = vmatprep.mubr.msk.f32.mxu0 %vm27_vm1, %v18718_v0 }
 0x10f   :  { %23197 = vst [vmem:[#allocation21_spill] sm:$0xff] %v18720_v15  ;;  %v18726_v55 = vadd.f32 %v15903_v45, %v15805_v7  ;;  %16148 = vmatprep.mubr.msk.f32.mxu1 %vm27_vm1, %v18345_v6  ;;  %v699_v37 = vpop.f32.mrf.mxu0  ;;  %v18746_v6 = vld [vmem:[#allocation2 + $0x24a] sm:$0xff] }
 0x110   :  { %v1279_v5 = vpop.f32.mrf.mxu1 }
 0x111   :  { %23198 = vst [vmem:[#allocation22_spill] sm:$0xff] %v18726_v55  ;;  %v18736_v25 = vadd.f32 %v1279_v5, %v699_v37  ;;  %v15808_v15 = vpop.f32.mrf.mxu0  ;;  %16051 = vmatmul.mubr.msk.f32.gmra.mxu0 %vm27_vm1, %v18730_v60  ;;  %v18750_v37 = vld [vmem:[#allocation2 + $0x25a] sm:$0xff] }
 0x112   :  { %v15906_v51 = vpop.f32.mrf.mxu1  ;;  %16149 = vmatmul.mubr.msk.f32.gmra.mxu1 %vm27_vm1, %v18353_v10  ;;  %16053 = vmatprep.mubr.msk.f32.mxu0 %vm27_vm1, %v18734_v2 }
 0x113   :  { %23199 = vst [vmem:[#allocation23_spill] sm:$0xff] %v18736_v25  ;;  %v18742_v1 = vadd.f32 %v15906_v51, %v15808_v15  ;;  %16151 = vmatprep.mubr.msk.f32.mxu1 %vm27_vm1, %v18355_v17  ;;  %v709_v45 = vpop.f32.mrf.mxu0  ;;  %v18762_v17 = vld [vmem:[#allocation2 + $0x262] sm:$0xff] }
 0x114   :  { %v1289_v7 = vpop.f32.mrf.mxu1 }
 0x115   :  { %23200 = vst [vmem:[#allocation24_spill] sm:$0xff] %v18742_v1  ;;  %v18752_v5 = vadd.f32 %v1289_v7, %v709_v45  ;;  %v15811_v25 = vpop.f32.mrf.mxu0  ;;  %16054 = vmatmul.mubr.msk.f32.gmra.mxu0 %vm27_vm1, %v18746_v6  ;;  %v18766_v45 = vld [vmem:[#allocation2 + $0x272] sm:$0xff] }
 0x116   :  { %v15909_v55 = vpop.f32.mrf.mxu1  ;;  %16152 = vmatmul.mubr.msk.f32.gmra.mxu1 %vm27_vm1, %v18363_v23  ;;  %16056 = vmatprep.mubr.msk.f32.mxu0 %vm27_vm1, %v18750_v37 }
 0x117   :  { %23201 = vst [vmem:[#allocation25_spill] sm:$0xff] %v18752_v5  ;;  %v18758_v10 = vadd.f32 %v15909_v55, %v15811_v25  ;;  %16154 = vmatprep.mubr.msk.f32.mxu1 %vm27_vm1, %v18365_v27  ;;  %v719_v51 = vpop.f32.mrf.mxu0  ;;  %v18778_v27 = vld [vmem:[#allocation2 + $0x27a] sm:$0xff] }
 0x118   :  { %v1299_v15 = vpop.f32.mrf.mxu1 }
 0x119   :  { %23202 = vst [vmem:[#allocation26_spill] sm:$0xff] %v18758_v10  ;;  %v18768_v7 = vadd.f32 %v1299_v15, %v719_v51  ;;  %v15814_v5 = vpop.f32.mrf.mxu0  ;;  %16057 = vmatmul.mubr.msk.f32.gmra.mxu0 %vm27_vm1, %v18762_v17  ;;  %v18782_v51 = vld [vmem:[#allocation2 + $0x28a] sm:$0xff] }
 0x11a   :  { %v15912_v1 = vpop.f32.mrf.mxu1  ;;  %16155 = vmatmul.mubr.msk.f32.gmra.mxu1 %vm27_vm1, %v18373_v30  ;;  %16059 = vmatprep.mubr.msk.f32.mxu0 %vm27_vm1, %v18766_v45 }
 0x11b   :  { %23203 = vst [vmem:[#allocation27_spill] sm:$0xff] %v18768_v7  ;;  %v18774_v23 = vadd.f32 %v15912_v1, %v15814_v5  ;;  %16157 = vmatprep.mubr.msk.f32.mxu1 %vm27_vm1, %v18375_v35  ;;  %v729_v55 = vpop.f32.mrf.mxu0  ;;  %v18794_v35 = vld [vmem:[#allocation2 + $0x292] sm:$0xff] }
 0x11c   :  { %v1309_v25 = vpop.f32.mrf.mxu1 }
 0x11d   :  { %23204 = vst [vmem:[#allocation28_spill] sm:$0xff] %v18774_v23  ;;  %v18784_v15 = vadd.f32 %v1309_v25, %v729_v55  ;;  %v15817_v7 = vpop.f32.mrf.mxu0  ;;  %16060 = vmatmul.mubr.msk.f32.gmra.mxu0 %vm27_vm1, %v18778_v27  ;;  %v18798_v55 = vld [vmem:[#allocation2 + $0x2a2] sm:$0xff] }
 0x11e   :  { %v15915_v10 = vpop.f32.mrf.mxu1  ;;  %16158 = vmatmul.mubr.msk.f32.gmra.mxu1 %vm27_vm1, %v18383_v43  ;;  %16062 = vmatprep.mubr.msk.f32.mxu0 %vm27_vm1, %v18782_v51 }
 0x11f   :  { %23205 = vst [vmem:[#allocation29_spill] sm:$0xff] %v18784_v15  ;;  %v18790_v30 = vadd.f32 %v15915_v10, %v15817_v7  ;;  %16160 = vmatprep.mubr.msk.f32.mxu1 %vm27_vm1, %v18385_v50  ;;  %v739_v1 = vpop.f32.mrf.mxu0  ;;  %v18810_v50 = vld [vmem:[#allocation2 + $0x2aa] sm:$0xff] }
 0x120   :  { %v1319_v5 = vpop.f32.mrf.mxu1 }
 0x121   :  { %23206 = vst [vmem:[#allocation30_spill] sm:$0xff] %v18790_v30  ;;  %v18800_v25 = vadd.f32 %v1319_v5, %v739_v1  ;;  %v15820_v15 = vpop.f32.mrf.mxu0  ;;  %16063 = vmatmul.mubr.msk.f32.gmra.mxu0 %vm27_vm1, %v18794_v35  ;;  %v18814_v1 = vld [vmem:[#allocation2 + $0x2ba] sm:$0xff] }
 0x122   :  { %v15918_v23 = vpop.f32.mrf.mxu1  ;;  %16161 = vmatmul.mubr.msk.f32.gmra.mxu1 %vm27_vm1, %v18393_v54  ;;  %16065 = vmatprep.mubr.msk.f32.mxu0 %vm27_vm1, %v18798_v55 }
 0x123   :  { %23207 = vst [vmem:[#allocation31_spill] sm:$0xff] %v18800_v25  ;;  %v18806_v43 = vadd.f32 %v15918_v23, %v15820_v15  ;;  %16163 = vmatprep.mubr.msk.f32.mxu1 %vm27_vm1, %v18395_v62  ;;  %v749_v10 = vpop.f32.mrf.mxu0  ;;  %v18826_v62 = vld [vmem:[#allocation2 + $0x2c2] sm:$0xff] }
 0x124   :  { %v1329_v7 = vpop.f32.mrf.mxu1 }
 0x125   :  { %23208 = vst [vmem:[#allocation32_spill] sm:$0xff] %v18806_v43  ;;  %v18816_v5 = vadd.f32 %v1329_v7, %v749_v10  ;;  %v15823_v25 = vpop.f32.mrf.mxu0  ;;  %16066 = vmatmul.mubr.msk.f32.gmra.mxu0 %vm27_vm1, %v18810_v50  ;;  %v18830_v10 = vld [vmem:[#allocation2 + $0x2d2] sm:$0xff] }
 0x126   :  { %v15921_v30 = vpop.f32.mrf.mxu1  ;;  %16164 = vmatmul.mubr.msk.f32.gmra.mxu1 %vm27_vm1, %v18403_v8  ;;  %16068 = vmatprep.mubr.msk.f32.mxu0 %vm27_vm1, %v18814_v1  ;;  %23211 = vst [vmem:[#allocation35_spill] sm:$0xff] %v18830_v10 }
 0x127   :  { %23209 = vst [vmem:[#allocation33_spill] sm:$0xff] %v18816_v5  ;;  %v18822_v54 = vadd.f32 %v15921_v30, %v15823_v25  ;;  %16166 = vmatprep.mubr.msk.f32.mxu1 %vm27_vm1, %v18405_v21  ;;  %v759_v23 = vpop.f32.mrf.mxu0  ;;  %v18842_v21 = vld [vmem:[#allocation2 + $0x2da] sm:$0xff] }
 0x128   :  { %v1339_v15 = vpop.f32.mrf.mxu1  ;;  %23214 = vst [vmem:[#allocation38_spill] sm:$0xff] %v18842_v21 }
 0x129   :  { %23210 = vst [vmem:[#allocation34_spill] sm:$0xff] %v18822_v54  ;;  %v18832_v7 = vadd.f32 %v1339_v15, %v759_v23  ;;  %v15826_v5 = vpop.f32.mrf.mxu0  ;;  %16069 = vmatmul.mubr.msk.f32.gmra.mxu0 %vm27_vm1, %v18826_v62  ;;  %v18846_v23 = vld [vmem:[#allocation2 + $0x2ea] sm:$0xff] }
 0x12a   :  { %v15924_v43 = vpop.f32.mrf.mxu1  ;;  %16167 = vmatmul.mubr.msk.f32.gmra.mxu1 %vm27_vm1, %v18413_v28  ;;  %16071 = vmatprep.mubr.msk.f32.mxu0 %vm27_vm1, %v18830_v10  ;;  %v23216_v28 = vld [vmem:[#allocation7_spill] sm:$0xff] }
 0x12b   :  { %23212 = vst [vmem:[#allocation36_spill] sm:$0xff] %v18832_v7  ;;  %v18838_v8 = vadd.f32 %v15924_v43, %v15826_v5  ;;  %16169 = vmatprep.mubr.msk.f32.mxu1 %vm27_vm1, %v18415_v39  ;;  %v769_v30 = vpop.f32.mrf.mxu0  ;;  %v18858_v39 = vld [vmem:[#allocation2 + $0x2f2] sm:$0xff]  ;;  %v23219_v5 = vld [vmem:[#allocation8_spill] sm:$0xff] }
 0x12c   :  { %v1349_v25 = vpop.f32.mrf.mxu1  ;;  %23218 = vst [vmem:[#allocation40_spill] sm:$0xff] %v18858_v39 }
 0x12d   :  { %23213 = vst [vmem:[#allocation37_spill] sm:$0xff] %v18838_v8  ;;  %v18848_v15 = vadd.f32 %v1349_v25, %v769_v30  ;;  %v15829_v7 = vpop.f32.mrf.mxu0  ;;  %16072 = vmatmul.mubr.msk.f32.gmra.mxu0 %vm27_vm1, %v18842_v21 }
 0x12e   :  { %v15927_v54 = vpop.f32.mrf.mxu1  ;;  %16170 = vmatmul.mubr.msk.f32.gmra.mxu1 %vm27_vm1, %v23216_v28  ;;  %16074 = vmatprep.mubr.msk.f32.mxu0 %vm27_vm1, %v18846_v23 }
 0x12f   :  { %23215 = vst [vmem:[#allocation39_spill] sm:$0xff] %v18848_v15  ;;  %v18854_v43 = vadd.f32 %v15927_v54, %v15829_v7  ;;  %16172 = vmatprep.mubr.msk.f32.mxu1 %vm27_vm1, %v23219_v5  ;;  %v779_v30 = vpop.f32.mrf.mxu0  ;;  %v18862_v15 = vld [vmem:[#allocation2 + $0x302] sm:$0xff]  ;;  %v18874_v7 = vld [vmem:[#allocation2 + $0x30a] sm:$0xff] }
 0x130   :  { %v1359_v25 = vpop.f32.mrf.mxu1  ;;  %23222 = vst [vmem:[#allocation42_spill] sm:$0xff] %v18874_v7 }
 0x131   :  { %23217 = vst [vmem:[#allocation7_spill] sm:$0xff] %v18854_v43  ;;  %v18864_v8 = vadd.f32 %v1359_v25, %v779_v30  ;;  %v15832_v21 = vpop.f32.mrf.mxu0  ;;  %16075 = vmatmul.mubr.msk.f32.gmra.mxu0 %vm27_vm1, %v18858_v39  ;;  %v18878_v30 = vld [vmem:[#allocation2 + $0x31a] sm:$0xff]  ;;  %v2330_v25 = vld [vmem:[#allocation2 + $0x330] sm:$0xff] }
 0x132   :  { %v15930_v10 = vpop.f32.mrf.mxu1  ;;  %16173 = vmatmul.mubr.msk.f32.gmra.mxu1 %vm27_vm1, %v18436_v33  ;;  %16077 = vmatprep.mubr.msk.f32.mxu0 %vm27_vm1, %v18862_v15 }
 0x133   :  { %23220 = vst [vmem:[#allocation8_spill] sm:$0xff] %v18864_v8  ;;  %v18870_v54 = vadd.f32 %v15930_v10, %v15832_v21  ;;  %16175 = vmatprep.mubr.msk.f32.mxu1 %vm27_vm1, %v18442_v52  ;;  %v789_v28 = vpop.f32.mrf.mxu0  ;;  %v18890_v52 = vld [vmem:[#allocation2 + $0x322] sm:$0xff]  ;;  %v2331_v10 = vld [vmem:[#allocation2 + $0x338] sm:$0xff] }
 0x134   :  { %v1369_v5 = vpop.f32.mrf.mxu1 }
 0x135   :  { %23221 = vst [vmem:[#allocation41_spill] sm:$0xff] %v18870_v54  ;;  %v18880_v8 = vadd.f32 %v1369_v5, %v789_v28  ;;  %v15835_v43 = vpop.f32.mrf.mxu0  ;;  %16078 = vmatmul.mubr.msk.f32.gmra.mxu0 %vm27_vm1, %v18874_v7  ;;  %v2978_v5 = vld [vmem:[#allocation2 + $0x19] sm:$0xff] }
 0x136   :  { %v15933_v39 = vpop.f32.mrf.mxu1  ;;  %16176 = vmatmul.mubr.msk.f32.gmra.mxu1 %vm27_vm1, %v18451_v13  ;;  %16080 = vmatprep.mubr.msk.f32.mxu0 %vm27_vm1, %v18878_v30 }
 0x137   :  { %23223 = vst [vmem:[#allocation43_spill] sm:$0xff] %v18880_v8  ;;  %v18886_v33 = vadd.f32 %v15933_v39, %v15835_v43  ;;  %16178 = vmatprep.mubr.msk.f32.mxu1 %vm27_vm1, %v2330_v25  ;;  %v799_v21 = vpop.f32.mrf.mxu0  ;;  %v2979_v43 = vld [vmem:[#allocation2 + $0x21] sm:$0xff]  ;;  %v13903_v39 = vld [vmem:[%s23102_s1 + $0x1c] sm:$0xf] }
 0x138   :  { %v1379_v28 = vpop.f32.mrf.mxu1  ;;  %16475 = vmatprep.subr.msk.mxu1 %vm589_vm0, %v13903_v39 }
 0x139   :  { %v18893_v8 = vadd.f32 %v1379_v28, %v799_v21  ;;  %v15838_v54 = vpop.f32.mrf.mxu0  ;;  %16081 = vmatmul.mubr.msk.f32.gmra.mxu0 %vm27_vm1, %v18890_v52  ;;  %v18906_v28 = vld [vmem:[#allocation2 + $0x31] sm:$0xff] }
 0x13a   :  { %v15936_v7 = vpop.f32.mrf.mxu1  ;;  %16179 = vmatmul.mubr.msk.f32.gmra.mxu1 %vm27_vm1, %v2331_v10  ;;  %16183 = vmatprep.mubr.msk.f32.mxu0 %vm27_vm1, %v2978_v5  ;;  %v18925_v5 = vld [vmem:[#allocation2 + $0x39] sm:$0xff] }
 0x13b   :  { %23224 = vst [vmem:[#allocation44_spill] sm:$0xff] %v18893_v8  ;;  %v18898_v13 = vadd.f32 %v15936_v7, %v15838_v54  ;;  %16281 = vmatprep.mubr.msk.f32.mxu1 %vm27_vm1, %v18462_v47  ;;  %v809_v25 = vpop.f32.mrf.mxu0  ;;  %v18917_v47 = vld [vmem:[%s23102_s1 + $0x20] sm:$0xf] }
 0x13c   :  { %v1389_v21 = vpop.f32.mrf.mxu1  ;;  %23225 = vst [vmem:[#allocation45_spill] sm:$0xff] %v18917_v47 }
 0x13d   :  { %v18909_v8 = vadd.f32 %v1389_v21, %v809_v25  ;;  %v15841_v54 = vpop.f32.mrf.mxu0  ;;  %16184 = vmatmul.mubr.msk.f32.vlgmr.msra.gmra.mxu0 %vm27_vm1, %v2979_v43 }
 0x13e   :  { %v15939_v7 = vpop.f32.mrf.mxu1  ;;  %16282 = vmatmul.mubr.msk.f32.vlgmr.msra.gmra.mxu1 %vm27_vm1, %v18477_v32  ;;  %16378 = vmatpush3.msk.msra.mxu0 %vm589_vm0, %v18471_v3  ;;  %v18929_v32 = vld [vmem:[#allocation2 + $0x49] sm:$0xff] }
 0x13f   :  { %v18919_v10 = vadd.f32 %v15939_v7, %v15841_v54  ;;  %16186 = vmatprep.mubr.msk.f32.mxu0 %vm27_vm1, %v18906_v28  ;;  %v819_v25 = vpop.f32.mrf.mxu0  ;;  %16284 = vmatprep.mubr.msk.f32.mxu1 %vm27_vm1, %v18481_v56  ;;  %v18944_v56 = vld [vmem:[#allocation2 + $0x51] sm:$0xff] }
 0x140   :  { %v1399_v43 = vpop.f32.mrf.mxu1  ;;  %16476 = vmatpush3.msk.msra.mxu1 %vm589_vm0, %v13903_v39  ;;  %16573 = vmatprep.subr.msk.mxu0 %vm589_vm0, %v18917_v47 }
 0x141   :  { %23226 = vst [vmem:[#allocation46_spill] sm:$0xff] %v18919_v10  ;;  %v18932_v21 = vadd.f32 %v1399_v43, %v819_v25  ;;  %v15844_v3 = vpop.f32.mrf.mxu0  ;;  %16187 = vmatmul.mubr.msk.f32.gmra.mxu0 %vm27_vm1, %v18925_v5  ;;  %v18948_v43 = vld [vmem:[#allocation2 + $0x61] sm:$0xff] }
 0x142   :  { %v15942_v54 = vpop.f32.mrf.mxu1  ;;  %16285 = vmatmul.mubr.msk.f32.gmra.mxu1 %vm27_vm1, %v18492_v34  ;;  %16189 = vmatprep.mubr.msk.f32.mxu0 %vm27_vm1, %v18929_v32 }
 0x143   :  { %23227 = vst [vmem:[#allocation47_spill] sm:$0xff] %v18932_v21  ;;  %v18940_v7 = vadd.f32 %v15942_v54, %v15844_v3  ;;  %16287 = vmatprep.mubr.msk.f32.mxu1 %vm27_vm1, %v18496_v36  ;;  %v829_v39 = vpop.f32.mrf.mxu0  ;;  %v18960_v36 = vld [vmem:[#allocation2 + $0x69] sm:$0xff] }
 0x144   :  { %v1409_v25 = vpop.f32.mrf.mxu1 }
 0x145   :  { %23228 = vst [vmem:[#allocation48_spill] sm:$0xff] %v18940_v7  ;;  %v18950_v21 = vadd.f32 %v1409_v25, %v829_v39  ;;  %v15847_v47 = vpop.f32.mrf.mxu0  ;;  %16190 = vmatmul.mubr.msk.f32.gmra.mxu0 %vm27_vm1, %v18944_v56  ;;  %v18964_v39 = vld [vmem:[#allocation2 + $0x79] sm:$0xff] }
 0x146   :  { %v15945_v10 = vpop.f32.mrf.mxu1  ;;  %16288 = vmatmul.mubr.msk.f32.gmra.mxu1 %vm27_vm1, %v18504_v38  ;;  %16192 = vmatprep.mubr.msk.f32.mxu0 %vm27_vm1, %v18948_v43 }
 0x147   :  { %23229 = vst [vmem:[#allocation49_spill] sm:$0xff] %v18950_v21  ;;  %v18956_v34 = vadd.f32 %v15945_v10, %v15847_v47  ;;  %16290 = vmatprep.mubr.msk.f32.mxu1 %vm27_vm1, %v18508_v61  ;;  %v839_v3 = vpop.f32.mrf.mxu0  ;;  %v18976_v61 = vld [vmem:[#allocation2 + $0x81] sm:$0xff] }
 0x148   :  { %v1419_v54 = vpop.f32.mrf.mxu1 }
 0x149   :  { %23230 = vst [vmem:[#allocation50_spill] sm:$0xff] %v18956_v34  ;;  %v18966_v25 = vadd.f32 %v1419_v54, %v839_v3  ;;  %v15850_v21 = vpop.f32.mrf.mxu0  ;;  %16193 = vmatmul.mubr.msk.f32.gmra.mxu0 %vm27_vm1, %v18960_v36  ;;  %v18980_v3 = vld [vmem:[#allocation2 + $0x91] sm:$0xff] }
 0x14a   :  { %v15948_v7 = vpop.f32.mrf.mxu1  ;;  %16291 = vmatmul.mubr.msk.f32.gmra.mxu1 %vm27_vm1, %v18516_v40  ;;  %16195 = vmatprep.mubr.msk.f32.mxu0 %vm27_vm1, %v18964_v39 }
 0x14b   :  { %23231 = vst [vmem:[#allocation51_spill] sm:$0xff] %v18966_v25  ;;  %v18972_v38 = vadd.f32 %v15948_v7, %v15850_v21  ;;  %16293 = vmatprep.mubr.msk.f32.mxu1 %vm27_vm1, %v18520_v42  ;;  %v849_v47 = vpop.f32.mrf.mxu0  ;;  %v18992_v42 = vld [vmem:[#allocation2 + $0x99] sm:$0xff] }
 0x14c   :  { %v1429_v10 = vpop.f32.mrf.mxu1 }
 0x14d   :  { %23232 = vst [vmem:[#allocation52_spill] sm:$0xff] %v18972_v38  ;;  %v18982_v54 = vadd.f32 %v1429_v10, %v849_v47  ;;  %v15853_v25 = vpop.f32.mrf.mxu0  ;;  %16196 = vmatmul.mubr.msk.f32.gmra.mxu0 %vm27_vm1, %v18976_v61  ;;  %v18996_v47 = vld [vmem:[#allocation2 + $0xa9] sm:$0xff] }
 0x14e   :  { %v15951_v34 = vpop.f32.mrf.mxu1  ;;  %16294 = vmatmul.mubr.msk.f32.gmra.mxu1 %vm27_vm1, %v18528_v44  ;;  %16198 = vmatprep.mubr.msk.f32.mxu0 %vm27_vm1, %v18980_v3 }
 0x14f   :  { %23233 = vst [vmem:[#allocation53_spill] sm:$0xff] %v18982_v54  ;;  %v18988_v40 = vadd.f32 %v15951_v34, %v15853_v25  ;;  %16296 = vmatprep.mubr.msk.f32.mxu1 %vm27_vm1, %v18532_v46  ;;  %v859_v21 = vpop.f32.mrf.mxu0  ;;  %v19008_v46 = vld [vmem:[#allocation2 + $0xb1] sm:$0xff] }
 0x150   :  { %v1439_v7 = vpop.f32.mrf.mxu1 }
 0x151   :  { %23234 = vst [vmem:[#allocation54_spill] sm:$0xff] %v18988_v40  ;;  %v18998_v10 = vadd.f32 %v1439_v7, %v859_v21  ;;  %v15856_v54 = vpop.f32.mrf.mxu0  ;;  %16199 = vmatmul.mubr.msk.f32.gmra.mxu0 %vm27_vm1, %v18992_v42  ;;  %v19012_v21 = vld [vmem:[#allocation2 + $0xc1] sm:$0xff] }
 0x152   :  { %v15954_v38 = vpop.f32.mrf.mxu1  ;;  %16297 = vmatmul.mubr.msk.f32.gmra.mxu1 %vm27_vm1, %v18540_v48  ;;  %16201 = vmatprep.mubr.msk.f32.mxu0 %vm27_vm1, %v18996_v47 }
 0x153   :  { %23235 = vst [vmem:[#allocation55_spill] sm:$0xff] %v18998_v10  ;;  %v19004_v44 = vadd.f32 %v15954_v38, %v15856_v54  ;;  %16299 = vmatprep.mubr.msk.f32.mxu1 %vm27_vm1, %v18544_v57  ;;  %v869_v34 = vpop.f32.mrf.mxu0  ;;  %v19024_v57 = vld [vmem:[#allocation2 + $0xc9] sm:$0xff] }
 0x154   :  { %v1449_v25 = vpop.f32.mrf.mxu1 }
 0x155   :  { %23236 = vst [vmem:[#allocation56_spill] sm:$0xff] %v19004_v44  ;;  %v19014_v7 = vadd.f32 %v1449_v25, %v869_v34  ;;  %v15859_v10 = vpop.f32.mrf.mxu0  ;;  %16202 = vmatmul.mubr.msk.f32.gmra.mxu0 %vm27_vm1, %v19008_v46  ;;  %v19028_v34 = vld [vmem:[#allocation2 + $0xd9] sm:$0xff] }
 0x156   :  { %v15957_v40 = vpop.f32.mrf.mxu1  ;;  %16300 = vmatmul.mubr.msk.f32.gmra.mxu1 %vm27_vm1, %v18552_v59  ;;  %16204 = vmatprep.mubr.msk.f32.mxu0 %vm27_vm1, %v19012_v21 }
 0x157   :  { %23237 = vst [vmem:[#allocation57_spill] sm:$0xff] %v19014_v7  ;;  %v19020_v48 = vadd.f32 %v15957_v40, %v15859_v10  ;;  %16302 = vmatprep.mubr.msk.f32.mxu1 %vm27_vm1, %v18556_v63  ;;  %v879_v38 = vpop.f32.mrf.mxu0  ;;  %v19040_v63 = vld [vmem:[#allocation2 + $0xe1] sm:$0xff] }
 0x158   :  { %v1459_v54 = vpop.f32.mrf.mxu1 }
 0x159   :  { %23238 = vst [vmem:[#allocation58_spill] sm:$0xff] %v19020_v48  ;;  %v19030_v25 = vadd.f32 %v1459_v54, %v879_v38  ;;  %v15862_v7 = vpop.f32.mrf.mxu0  ;;  %16205 = vmatmul.mubr.msk.f32.gmra.mxu0 %vm27_vm1, %v19024_v57  ;;  %v19044_v38 = vld [vmem:[#allocation2 + $0xf1] sm:$0xff] }
 0x15a   :  { %v15960_v44 = vpop.f32.mrf.mxu1  ;;  %16303 = vmatmul.mubr.msk.f32.gmra.mxu1 %vm27_vm1, %v18564_v11  ;;  %16207 = vmatprep.mubr.msk.f32.mxu0 %vm27_vm1, %v19028_v34 }
 0x15b   :  { %23239 = vst [vmem:[#allocation59_spill] sm:$0xff] %v19030_v25  ;;  %v19036_v59 = vadd.f32 %v15960_v44, %v15862_v7  ;;  %16305 = vmatprep.mubr.msk.f32.mxu1 %vm27_vm1, %v18568_v14  ;;  %v889_v40 = vpop.f32.mrf.mxu0  ;;  %v19056_v14 = vld [vmem:[#allocation2 + $0xf9] sm:$0xff] }
 0x15c   :  { %v1469_v10 = vpop.f32.mrf.mxu1 }
 0x15d   :  { %23240 = vst [vmem:[#allocation60_spill] sm:$0xff] %v19036_v59  ;;  %v19046_v54 = vadd.f32 %v1469_v10, %v889_v40  ;;  %v15865_v25 = vpop.f32.mrf.mxu0  ;;  %16208 = vmatmul.mubr.msk.f32.gmra.mxu0 %vm27_vm1, %v19040_v63  ;;  %v19060_v40 = vld [vmem:[#allocation2 + $0x109] sm:$0xff] }
 0x15e   :  { %v15963_v48 = vpop.f32.mrf.mxu1  ;;  %16306 = vmatmul.mubr.msk.f32.gmra.mxu1 %vm27_vm1, %v18576_v16  ;;  %16210 = vmatprep.mubr.msk.f32.mxu0 %vm27_vm1, %v19044_v38 }
 0x15f   :  { %23241 = vst [vmem:[#allocation61_spill] sm:$0xff] %v19046_v54  ;;  %v19052_v11 = vadd.f32 %v15963_v48, %v15865_v25  ;;  %16308 = vmatprep.mubr.msk.f32.mxu1 %vm27_vm1, %v18580_v18  ;;  %v899_v44 = vpop.f32.mrf.mxu0  ;;  %v19072_v18 = vld [vmem:[#allocation2 + $0x111] sm:$0xff] }
 0x160   :  { %v1479_v7 = vpop.f32.mrf.mxu1 }
 0x161   :  { %23242 = vst [vmem:[#allocation62_spill] sm:$0xff] %v19052_v11  ;;  %v19062_v10 = vadd.f32 %v1479_v7, %v899_v44  ;;  %v15868_v54 = vpop.f32.mrf.mxu0  ;;  %16211 = vmatmul.mubr.msk.f32.gmra.mxu0 %vm27_vm1, %v19056_v14  ;;  %v19076_v44 = vld [vmem:[#allocation2 + $0x121] sm:$0xff] }
 0x162   :  { %v15966_v59 = vpop.f32.mrf.mxu1  ;;  %16309 = vmatmul.mubr.msk.f32.gmra.mxu1 %vm27_vm1, %v18588_v20  ;;  %16213 = vmatprep.mubr.msk.f32.mxu0 %vm27_vm1, %v19060_v40 }
 0x163   :  { %23243 = vst [vmem:[#allocation63_spill] sm:$0xff] %v19062_v10  ;;  %v19068_v16 = vadd.f32 %v15966_v59, %v15868_v54  ;;  %16311 = vmatprep.mubr.msk.f32.mxu1 %vm27_vm1, %v18592_v22  ;;  %v909_v48 = vpop.f32.mrf.mxu0  ;;  %v19088_v22 = vld [vmem:[#allocation2 + $0x129] sm:$0xff] }
 0x164   :  { %v1489_v25 = vpop.f32.mrf.mxu1  ;;  %23247 = vst [vmem:[#allocation67_spill] sm:$0xff] %v19088_v22 }
 0x165   :  { %23244 = vst [vmem:[#allocation64_spill] sm:$0xff] %v19068_v16  ;;  %v19078_v7 = vadd.f32 %v1489_v25, %v909_v48  ;;  %v15871_v10 = vpop.f32.mrf.mxu0  ;;  %16214 = vmatmul.mubr.msk.f32.gmra.mxu0 %vm27_vm1, %v19072_v18  ;;  %v19092_v48 = vld [vmem:[#allocation2 + $0x139] sm:$0xff] }
 0x166   :  { %v15969_v11 = vpop.f32.mrf.mxu1  ;;  %16312 = vmatmul.mubr.msk.f32.gmra.mxu1 %vm27_vm1, %v18600_v24  ;;  %16216 = vmatprep.mubr.msk.f32.mxu0 %vm27_vm1, %v19076_v44  ;;  %23248 = vst [vmem:[#allocation68_spill] sm:$0xff] %v19092_v48 }
 0x167   :  { %23245 = vst [vmem:[#allocation65_spill] sm:$0xff] %v19078_v7  ;;  %v19084_v20 = vadd.f32 %v15969_v11, %v15871_v10  ;;  %16314 = vmatprep.mubr.msk.f32.mxu1 %vm27_vm1, %v18604_v26  ;;  %v919_v59 = vpop.f32.mrf.mxu0  ;;  %v19104_v26 = vld [vmem:[#allocation2 + $0x141] sm:$0xff] }
 0x168   :  { %v1499_v54 = vpop.f32.mrf.mxu1  ;;  %23251 = vst [vmem:[#allocation71_spill] sm:$0xff] %v19104_v26 }
 0x169   :  { %23246 = vst [vmem:[#allocation66_spill] sm:$0xff] %v19084_v20  ;;  %v19094_v25 = vadd.f32 %v1499_v54, %v919_v59  ;;  %v15874_v7 = vpop.f32.mrf.mxu0  ;;  %16217 = vmatmul.mubr.msk.f32.gmra.mxu0 %vm27_vm1, %v19088_v22  ;;  %v19108_v59 = vld [vmem:[#allocation2 + $0x151] sm:$0xff] }
 0x16a   :  { %v15972_v16 = vpop.f32.mrf.mxu1  ;;  %16315 = vmatmul.mubr.msk.f32.gmra.mxu1 %vm27_vm1, %v18612_v31  ;;  %16219 = vmatprep.mubr.msk.f32.mxu0 %vm27_vm1, %v19092_v48  ;;  %23252 = vst [vmem:[#allocation72_spill] sm:$0xff] %v19108_v59  ;;  %v23254_v31 = vld [vmem:[#allocation9_spill] sm:$0xff] }
 0x16b   :  { %23249 = vst [vmem:[#allocation69_spill] sm:$0xff] %v19094_v25  ;;  %v19100_v24 = vadd.f32 %v15972_v16, %v15874_v7  ;;  %16317 = vmatprep.mubr.msk.f32.mxu1 %vm27_vm1, %v18616_v58  ;;  %v929_v11 = vpop.f32.mrf.mxu0  ;;  %v19120_v58 = vld [vmem:[#allocation2 + $0x159] sm:$0xff] }
 0x16c   :  { %v1509_v10 = vpop.f32.mrf.mxu1  ;;  %23256 = vst [vmem:[#allocation74_spill] sm:$0xff] %v19120_v58  ;;  %v23257_v7 = vld [vmem:[#allocation10_spill] sm:$0xff] }
 0x16d   :  { %23250 = vst [vmem:[#allocation70_spill] sm:$0xff] %v19100_v24  ;;  %v19110_v54 = vadd.f32 %v1509_v10, %v929_v11  ;;  %v15877_v25 = vpop.f32.mrf.mxu0  ;;  %16220 = vmatmul.mubr.msk.f32.gmra.mxu0 %vm27_vm1, %v19104_v26 }
 0x16e   :  { %v15975_v20 = vpop.f32.mrf.mxu1  ;;  %16318 = vmatmul.mubr.msk.f32.gmra.mxu1 %vm27_vm1, %v23254_v31  ;;  %16222 = vmatprep.mubr.msk.f32.mxu0 %vm27_vm1, %v19108_v59  ;;  %v19136_v31 = vld [vmem:[#allocation2 + $0x171] sm:$0xff] }
 0x16f   :  { %23253 = vst [vmem:[#allocation73_spill] sm:$0xff] %v19110_v54  ;;  %v19116_v16 = vadd.f32 %v15975_v20, %v15877_v25  ;;  %16320 = vmatprep.mubr.msk.f32.mxu1 %vm27_vm1, %v23257_v7  ;;  %v939_v11 = vpop.f32.mrf.mxu0  ;;  %v19124_v54 = vld [vmem:[#allocation2 + $0x169] sm:$0xff]  ;;  %v23260_v20 = vld [vmem:[#allocation11_spill] sm:$0xff]  ;;  %23262 = vst [vmem:[#allocation76_spill] sm:$0xff] %v19136_v31 }
 0x170   :  { %v1519_v10 = vpop.f32.mrf.mxu1  ;;  %23258 = vst [vmem:[#allocation10_spill] sm:$0xff] %v19124_v54  ;;  %v23263_v7 = vld [vmem:[#allocation12_spill] sm:$0xff] }
 0x171   :  { %23255 = vst [vmem:[#allocation9_spill] sm:$0xff] %v19116_v16  ;;  %v19126_v24 = vadd.f32 %v1519_v10, %v939_v11  ;;  %v15880_v26 = vpop.f32.mrf.mxu0  ;;  %16223 = vmatmul.mubr.msk.f32.gmra.mxu0 %vm27_vm1, %v19120_v58  ;;  %v3718_v16 = vld [vmem:[#allocation2 + $0x182] sm:$0xff] }
 0x172   :  { %v15978_v48 = vpop.f32.mrf.mxu1  ;;  %16321 = vmatmul.mubr.msk.f32.gmra.mxu1 %vm27_vm1, %v23260_v20  ;;  %16225 = vmatprep.mubr.msk.f32.mxu0 %vm27_vm1, %v19124_v54  ;;  %v19152_v20 = vld [vmem:[#allocation2 + $0x189] sm:$0xff] }
 0x173   :  { %23259 = vst [vmem:[#allocation75_spill] sm:$0xff] %v19126_v24  ;;  %v19132_v25 = vadd.f32 %v15978_v48, %v15880_v26  ;;  %16323 = vmatprep.mubr.msk.f32.mxu1 %vm27_vm1, %v23263_v7  ;;  %v949_v11 = vpop.f32.mrf.mxu0  ;;  %v19140_v24 = vld [vmem:[#allocation2 + $0x181] sm:$0xff]  ;;  %v23265_v48 = vld [vmem:[#allocation13_spill] sm:$0xff] }
 0x174   :  { %v1529_v10 = vpop.f32.mrf.mxu1  ;;  %v3719_v7 = vld [vmem:[#allocation2 + $0x18a] sm:$0xff] }
 0x175   :  { %23261 = vst [vmem:[#allocation11_spill] sm:$0xff] %v19132_v25  ;;  %v19142_v59 = vadd.f32 %v1529_v10, %v949_v11  ;;  %v15883_v58 = vpop.f32.mrf.mxu0  ;;  %16226 = vmatmul.mubr.msk.f32.gmra.mxu0 %vm27_vm1, %v19136_v31 }
 0x176   :  { %v15981_v22 = vpop.f32.mrf.mxu1  ;;  %16324 = vmatmul.mubr.msk.f32.gmra.mxu1 %vm27_vm1, %v23265_v48  ;;  %16228 = vmatprep.mubr.msk.f32.mxu0 %vm27_vm1, %v19140_v24 }
 0x177   :  { %23264 = vst [vmem:[#allocation12_spill] sm:$0xff] %v19142_v59  ;;  %v19148_v26 = vadd.f32 %v15981_v22, %v15883_v58  ;;  %16326 = vmatprep.mubr.msk.f32.mxu1 %vm27_vm1, %v3718_v16  ;;  %v959_v11 = vpop.f32.mrf.mxu0  ;;  %v3010_v59 = vld [vmem:[#allocation2 + $0x1c9] sm:$0xff]  ;;  %v3011_v58 = vld [vmem:[#allocation2 + $0x1d1] sm:$0xff] }
 0x178   :  { %v1539_v10 = vpop.f32.mrf.mxu1 }
 0x179   :  { %23266 = vst [vmem:[#allocation13_spill] sm:$0xff] %v19148_v26  ;;  %v19155_v25 = vadd.f32 %v1539_v10, %v959_v11  ;;  %v15886_v54 = vpop.f32.mrf.mxu0  ;;  %16229 = vmatmul.mubr.msk.f32.gmra.mxu0 %vm27_vm1, %v19152_v20  ;;  %v19165_v26 = vld [vmem:[#allocation2 + $0x1e1] sm:$0xff] }
 0x17a   :  { %v15984_v31 = vpop.f32.mrf.mxu1  ;;  %16327 = vmatmul.mubr.msk.f32.gmra.mxu1 %vm27_vm1, %v3719_v7  ;;  %16231 = vmatprep.mubr.msk.f32.mxu0 %vm27_vm1, %v3010_v59  ;;  %23269 = vst [vmem:[#allocation79_spill] sm:$0xff] %v19165_v26  ;;  %v19175_v59 = vld [vmem:[#allocation2 + $0x1e9] sm:$0xff] }
 0x17b   :  { %23267 = vst [vmem:[#allocation77_spill] sm:$0xff] %v19155_v25  ;;  %v19160_v22 = vadd.f32 %v15984_v31, %v15886_v54  ;;  %16329 = vmatprep.mubr.msk.f32.mxu1 %vm27_vm1, %v18657_v19  ;;  %v969_v16 = vpop.f32.mrf.mxu0  ;;  %v23271_v54 = vld [vmem:[#allocation14_spill] sm:$0xff] }
 0x17c   :  { %v1549_v48 = vpop.f32.mrf.mxu1  ;;  %23272 = vst [vmem:[#allocation14_spill] sm:$0xff] %v19175_v59 }
 0x17d   :  { %23268 = vst [vmem:[#allocation78_spill] sm:$0xff] %v19160_v22  ;;  %v19167_v11 = vadd.f32 %v1549_v48, %v969_v16  ;;  %v15989_v10 = vpop.f32.mrf.mxu0  ;;  %16232 = vmatmul.mubr.msk.f32.gmra.mxu0 %vm27_vm1, %v3011_v58  ;;  %v19179_v16 = vld [vmem:[#allocation2 + $0x1f9] sm:$0xff] }
 0x17e   :  { %v16087_v25 = vpop.f32.mrf.mxu1  ;;  %16330 = vmatmul.mubr.msk.f32.gmra.mxu1 %vm27_vm1, %v18666_v12  ;;  %v2205_v31 = vadd.f32 %v15989_v10, %v23271_v54  ;;  %16234 = vmatprep.mubr.msk.f32.mxu0 %vm27_vm1, %v19165_v26  ;;  %v23273_v48 = vld [vmem:[#allocation15_spill] sm:$0xff]  ;;  %v23275_v10 = vld [vmem:[#allocation16_spill] sm:$0xff] }
 0x17f   :  { %23270 = vst [vmem:[#allocation80_spill] sm:$0xff] %v19167_v11  ;;  %16332 = vmatprep.mubr.msk.f32.mxu1 %vm27_vm1, %v18670_v9  ;;  %v1885_v19 = vpop.f32.mrf.mxu0  ;;  %v19193_v9 = vld [vmem:[#allocation2 + $0x201] sm:$0xff] }
 0x180   :  { %v2595_v7 = vpop.f32.mrf.mxu1  ;;  %v2204_v58 = vadd.f32 %v1885_v19, %v23273_v48  ;;  %v19182_v11 = vadd.f32 %v16087_v25, %v2205_v31  ;;  %23276 = vst [vmem:[#allocation16_spill] sm:$0xff] %v19193_v9  ;;  %v19197_v19 = vld [vmem:[#allocation2 + $0x211] sm:$0xff] }
 0x181   :  { %v15992_v22 = vpop.f32.mrf.mxu0  ;;  %16235 = vmatmul.mubr.msk.f32.gmra.mxu0 %vm27_vm1, %v19175_v59  ;;  %v23277_v48 = vld [vmem:[#allocation17_spill] sm:$0xff] }
 0x182   :  { %23274 = vst [vmem:[#allocation15_spill] sm:$0xff] %v19182_v11  ;;  %v16090_v12 = vpop.f32.mrf.mxu1  ;;  %16333 = vmatmul.mubr.msk.f32.gmra.mxu1 %vm27_vm1, %v18682_v41  ;;  %v2207_v54 = vadd.f32 %v15992_v22, %v23275_v10  ;;  %v19189_v26 = vadd.f32 %v2595_v7, %v2204_v58  ;;  %16237 = vmatprep.mubr.msk.f32.mxu0 %vm27_vm1, %v19179_v16  ;;  %v23279_v7 = vld [vmem:[#allocation18_spill] sm:$0xff] }
 0x183   :  { %16335 = vmatprep.mubr.msk.f32.mxu1 %vm27_vm1, %v18686_v29  ;;  %v1895_v25 = vpop.f32.mrf.mxu0  ;;  %v19211_v29 = vld [vmem:[#allocation2 + $0x219] sm:$0xff] }
 0x184   :  { %v2605_v31 = vpop.f32.mrf.mxu1  ;;  %v2206_v11 = vadd.f32 %v1895_v25, %v23277_v48  ;;  %v19200_v59 = vadd.f32 %v16090_v12, %v2207_v54  ;;  %23280 = vst [vmem:[#allocation18_spill] sm:$0xff] %v19211_v29  ;;  %v19215_v25 = vld [vmem:[#allocation2 + $0x229] sm:$0xff]  ;;  %v23281_v48 = vld [vmem:[#allocation19_spill] sm:$0xff] }
 0x185   :  { %v15995_v41 = vpop.f32.mrf.mxu0  ;;  %16238 = vmatmul.mubr.msk.f32.gmra.mxu0 %vm27_vm1, %v19193_v9 }
 0x186   :  { %23278 = vst [vmem:[#allocation17_spill] sm:$0xff] %v19200_v59  ;;  %v16093_v22 = vpop.f32.mrf.mxu1  ;;  %16336 = vmatmul.mubr.msk.f32.gmra.mxu1 %vm27_vm1, %v18698_v49  ;;  %v2209_v58 = vadd.f32 %v15995_v41, %v23279_v7  ;;  %v19207_v10 = vadd.f32 %v2605_v31, %v2206_v11  ;;  %16240 = vmatprep.mubr.msk.f32.mxu0 %vm27_vm1, %v19197_v19  ;;  %v23283_v31 = vld [vmem:[#allocation20_spill] sm:$0xff] }
 0x187   :  { %16338 = vmatprep.mubr.msk.f32.mxu1 %vm27_vm1, %v18702_v4  ;;  %v1905_v12 = vpop.f32.mrf.mxu0  ;;  %v19229_v4 = vld [vmem:[#allocation2 + $0x231] sm:$0xff] }
 0x188   :  { %v2615_v54 = vpop.f32.mrf.mxu1  ;;  %v2208_v59 = vadd.f32 %v1905_v12, %v23281_v48  ;;  %v19218_v9 = vadd.f32 %v16093_v22, %v2209_v58  ;;  %23284 = vst [vmem:[#allocation20_spill] sm:$0xff] %v19229_v4  ;;  %v19233_v12 = vld [vmem:[#allocation2 + $0x241] sm:$0xff]  ;;  %v23285_v48 = vld [vmem:[#allocation21_spill] sm:$0xff] }
 0x189   :  { %v15998_v49 = vpop.f32.mrf.mxu0  ;;  %16241 = vmatmul.mubr.msk.f32.gmra.mxu0 %vm27_vm1, %v19211_v29 }
 0x18a   :  { %23282 = vst [vmem:[#allocation19_spill] sm:$0xff] %v19218_v9  ;;  %v16096_v11 = vpop.f32.mrf.mxu1  ;;  %16339 = vmatmul.mubr.msk.f32.gmra.mxu1 %vm27_vm1, %v18714_v53  ;;  %v2211_v41 = vadd.f32 %v15998_v49, %v23283_v31  ;;  %v19225_v7 = vadd.f32 %v2615_v54, %v2208_v59  ;;  %16243 = vmatprep.mubr.msk.f32.mxu0 %vm27_vm1, %v19215_v25  ;;  %v23287_v54 = vld [vmem:[#allocation22_spill] sm:$0xff] }
 0x18b   :  { %16341 = vmatprep.mubr.msk.f32.mxu1 %vm27_vm1, %v18718_v0  ;;  %v1915_v22 = vpop.f32.mrf.mxu0  ;;  %v19247_v0 = vld [vmem:[#allocation2 + $0x249] sm:$0xff] }
 0x18c   :  { %v2625_v58 = vpop.f32.mrf.mxu1  ;;  %v2210_v9 = vadd.f32 %v1915_v22, %v23285_v48  ;;  %v19236_v29 = vadd.f32 %v16096_v11, %v2211_v41  ;;  %23288 = vst [vmem:[#allocation22_spill] sm:$0xff] %v19247_v0  ;;  %v19251_v22 = vld [vmem:[#allocation2 + $0x259] sm:$0xff] }
 0x18d   :  { %v16001_v53 = vpop.f32.mrf.mxu0  ;;  %16244 = vmatmul.mubr.msk.f32.gmra.mxu0 %vm27_vm1, %v19229_v4  ;;  %v23289_v48 = vld [vmem:[#allocation23_spill] sm:$0xff] }
 0x18e   :  { %23286 = vst [vmem:[#allocation21_spill] sm:$0xff] %v19236_v29  ;;  %v16099_v59 = vpop.f32.mrf.mxu1  ;;  %16342 = vmatmul.mubr.msk.f32.gmra.mxu1 %vm27_vm1, %v18730_v60  ;;  %v2213_v49 = vadd.f32 %v16001_v53, %v23287_v54  ;;  %v19243_v31 = vadd.f32 %v2625_v58, %v2210_v9  ;;  %16246 = vmatprep.mubr.msk.f32.mxu0 %vm27_vm1, %v19233_v12  ;;  %v23291_v58 = vld [vmem:[#allocation24_spill] sm:$0xff] }
 0x18f   :  { %16344 = vmatprep.mubr.msk.f32.mxu1 %vm27_vm1, %v18734_v2  ;;  %v1925_v11 = vpop.f32.mrf.mxu0  ;;  %v19265_v2 = vld [vmem:[#allocation2 + $0x261] sm:$0xff] }
 0x190   :  { %v2635_v41 = vpop.f32.mrf.mxu1  ;;  %v2212_v29 = vadd.f32 %v1925_v11, %v23289_v48  ;;  %v19254_v4 = vadd.f32 %v16099_v59, %v2213_v49  ;;  %23292 = vst [vmem:[#allocation24_spill] sm:$0xff] %v19265_v2  ;;  %v19269_v11 = vld [vmem:[#allocation2 + $0x271] sm:$0xff] }
 0x191   :  { %v16004_v60 = vpop.f32.mrf.mxu0  ;;  %16247 = vmatmul.mubr.msk.f32.gmra.mxu0 %vm27_vm1, %v19247_v0  ;;  %v23293_v48 = vld [vmem:[#allocation25_spill] sm:$0xff] }
 0x192   :  { %23290 = vst [vmem:[#allocation23_spill] sm:$0xff] %v19254_v4  ;;  %v16102_v9 = vpop.f32.mrf.mxu1  ;;  %16345 = vmatmul.mubr.msk.f32.gmra.mxu1 %vm27_vm1, %v18746_v6  ;;  %v2215_v53 = vadd.f32 %v16004_v60, %v23291_v58  ;;  %v19261_v54 = vadd.f32 %v2635_v41, %v2212_v29  ;;  %16249 = vmatprep.mubr.msk.f32.mxu0 %vm27_vm1, %v19251_v22  ;;  %v23295_v41 = vld [vmem:[#allocation26_spill] sm:$0xff] }
 0x193   :  { %16347 = vmatprep.mubr.msk.f32.mxu1 %vm27_vm1, %v18750_v37  ;;  %v1935_v59 = vpop.f32.mrf.mxu0  ;;  %v19283_v37 = vld [vmem:[#allocation2 + $0x279] sm:$0xff] }
 0x194   :  { %v2645_v49 = vpop.f32.mrf.mxu1  ;;  %v2214_v4 = vadd.f32 %v1935_v59, %v23293_v48  ;;  %v19272_v0 = vadd.f32 %v16102_v9, %v2215_v53  ;;  %23296 = vst [vmem:[#allocation26_spill] sm:$0xff] %v19283_v37  ;;  %v19287_v59 = vld [vmem:[#allocation2 + $0x289] sm:$0xff]  ;;  %v23297_v48 = vld [vmem:[#allocation27_spill] sm:$0xff] }
 0x195   :  { %v16007_v6 = vpop.f32.mrf.mxu0  ;;  %16250 = vmatmul.mubr.msk.f32.gmra.mxu0 %vm27_vm1, %v19265_v2 }
 0x196   :  { %23294 = vst [vmem:[#allocation25_spill] sm:$0xff] %v19272_v0  ;;  %v16105_v29 = vpop.f32.mrf.mxu1  ;;  %16348 = vmatmul.mubr.msk.f32.gmra.mxu1 %vm27_vm1, %v18762_v17  ;;  %v2217_v60 = vadd.f32 %v16007_v6, %v23295_v41  ;;  %v19279_v58 = vadd.f32 %v2645_v49, %v2214_v4  ;;  %16252 = vmatprep.mubr.msk.f32.mxu0 %vm27_vm1, %v19269_v11  ;;  %v23299_v49 = vld [vmem:[#allocation28_spill] sm:$0xff] }
 0x197   :  { %16350 = vmatprep.mubr.msk.f32.mxu1 %vm27_vm1, %v18766_v45  ;;  %v1945_v9 = vpop.f32.mrf.mxu0  ;;  %v19301_v45 = vld [vmem:[#allocation2 + $0x291] sm:$0xff] }
 0x198   :  { %v2655_v53 = vpop.f32.mrf.mxu1  ;;  %v2216_v0 = vadd.f32 %v1945_v9, %v23297_v48  ;;  %v19290_v2 = vadd.f32 %v16105_v29, %v2217_v60  ;;  %23300 = vst [vmem:[#allocation28_spill] sm:$0xff] %v19301_v45  ;;  %v19305_v9 = vld [vmem:[#allocation2 + $0x2a1] sm:$0xff]  ;;  %v23301_v48 = vld [vmem:[#allocation29_spill] sm:$0xff] }
 0x199   :  { %v16010_v17 = vpop.f32.mrf.mxu0  ;;  %16253 = vmatmul.mubr.msk.f32.gmra.mxu0 %vm27_vm1, %v19283_v37 }
 0x19a   :  { %23298 = vst [vmem:[#allocation27_spill] sm:$0xff] %v19290_v2  ;;  %v16108_v4 = vpop.f32.mrf.mxu1  ;;  %16351 = vmatmul.mubr.msk.f32.gmra.mxu1 %vm27_vm1, %v18778_v27  ;;  %v2219_v6 = vadd.f32 %v16010_v17, %v23299_v49  ;;  %v19297_v41 = vadd.f32 %v2655_v53, %v2216_v0  ;;  %16255 = vmatprep.mubr.msk.f32.mxu0 %vm27_vm1, %v19287_v59  ;;  %v23303_v53 = vld [vmem:[#allocation30_spill] sm:$0xff] }
 0x19b   :  { %16353 = vmatprep.mubr.msk.f32.mxu1 %vm27_vm1, %v18782_v51  ;;  %v1955_v29 = vpop.f32.mrf.mxu0  ;;  %v19319_v51 = vld [vmem:[#allocation2 + $0x2a9] sm:$0xff] }
 0x19c   :  { %v2665_v60 = vpop.f32.mrf.mxu1  ;;  %v2218_v2 = vadd.f32 %v1955_v29, %v23301_v48  ;;  %v19308_v37 = vadd.f32 %v16108_v4, %v2219_v6  ;;  %23304 = vst [vmem:[#allocation30_spill] sm:$0xff] %v19319_v51  ;;  %v19323_v29 = vld [vmem:[#allocation2 + $0x2b9] sm:$0xff] }
 0x19d   :  { %v16013_v27 = vpop.f32.mrf.mxu0  ;;  %16256 = vmatmul.mubr.msk.f32.gmra.mxu0 %vm27_vm1, %v19301_v45  ;;  %v23305_v48 = vld [vmem:[#allocation31_spill] sm:$0xff] }
 0x19e   :  { %23302 = vst [vmem:[#allocation29_spill] sm:$0xff] %v19308_v37  ;;  %v16111_v0 = vpop.f32.mrf.mxu1  ;;  %16354 = vmatmul.mubr.msk.f32.gmra.mxu1 %vm27_vm1, %v18794_v35  ;;  %v2221_v17 = vadd.f32 %v16013_v27, %v23303_v53  ;;  %v19315_v49 = vadd.f32 %v2665_v60, %v2218_v2  ;;  %16258 = vmatprep.mubr.msk.f32.mxu0 %vm27_vm1, %v19305_v9  ;;  %v23307_v60 = vld [vmem:[#allocation32_spill] sm:$0xff] }
 0x19f   :  { %16356 = vmatprep.mubr.msk.f32.mxu1 %vm27_vm1, %v18798_v55  ;;  %v1965_v4 = vpop.f32.mrf.mxu0  ;;  %v19337_v55 = vld [vmem:[#allocation2 + $0x2c1] sm:$0xff] }
 0x1a0   :  { %v2675_v6 = vpop.f32.mrf.mxu1  ;;  %v2220_v37 = vadd.f32 %v1965_v4, %v23305_v48  ;;  %v19326_v45 = vadd.f32 %v16111_v0, %v2221_v17  ;;  %23309 = vst [vmem:[#allocation81_spill] sm:$0xff] %v19337_v55  ;;  %v19341_v4 = vld [vmem:[#allocation2 + $0x2d1] sm:$0xff] }
 0x1a1   :  { %v16016_v35 = vpop.f32.mrf.mxu0  ;;  %16259 = vmatmul.mubr.msk.f32.gmra.mxu0 %vm27_vm1, %v19319_v51  ;;  %v23310_v48 = vld [vmem:[#allocation33_spill] sm:$0xff] }
 0x1a2   :  { %23306 = vst [vmem:[#allocation31_spill] sm:$0xff] %v19326_v45  ;;  %v16114_v2 = vpop.f32.mrf.mxu1  ;;  %16357 = vmatmul.mubr.msk.f32.gmra.mxu1 %vm27_vm1, %v18810_v50  ;;  %v2223_v27 = vadd.f32 %v16016_v35, %v23307_v60  ;;  %v19333_v53 = vadd.f32 %v2675_v6, %v2220_v37  ;;  %16261 = vmatprep.mubr.msk.f32.mxu0 %vm27_vm1, %v19323_v29  ;;  %v23312_v6 = vld [vmem:[#allocation34_spill] sm:$0xff] }
 0x1a3   :  { %16359 = vmatprep.mubr.msk.f32.mxu1 %vm27_vm1, %v18814_v1  ;;  %v1975_v0 = vpop.f32.mrf.mxu0  ;;  %v19355_v1 = vld [vmem:[#allocation2 + $0x2d9] sm:$0xff] }
 0x1a4   :  { %23308 = vst [vmem:[#allocation32_spill] sm:$0xff] %v19333_v53  ;;  %v2685_v17 = vpop.f32.mrf.mxu1  ;;  %v2222_v45 = vadd.f32 %v1975_v0, %v23310_v48  ;;  %v19344_v51 = vadd.f32 %v16114_v2, %v2223_v27  ;;  %23314 = vst [vmem:[#allocation82_spill] sm:$0xff] %v19355_v1  ;;  %v23315_v0 = vld [vmem:[#allocation35_spill] sm:$0xff]  ;;  %v19359_v48 = vld [vmem:[#allocation2 + $0x2e9] sm:$0xff] }
 0x1a5   :  { %v16019_v50 = vpop.f32.mrf.mxu0  ;;  %16262 = vmatmul.mubr.msk.f32.gmra.mxu0 %vm27_vm1, %v19337_v55 }
 0x1a6   :  { %23311 = vst [vmem:[#allocation33_spill] sm:$0xff] %v19344_v51  ;;  %v16117_v37 = vpop.f32.mrf.mxu1  ;;  %16360 = vmatmul.mubr.msk.f32.gmra.mxu1 %vm27_vm1, %v18826_v62  ;;  %v2225_v35 = vadd.f32 %v16019_v50, %v23312_v6  ;;  %v19351_v60 = vadd.f32 %v2685_v17, %v2222_v45  ;;  %16264 = vmatprep.mubr.msk.f32.mxu0 %vm27_vm1, %v19341_v4  ;;  %v23316_v51 = vld [vmem:[#allocation36_spill] sm:$0xff]  ;;  %v23318_v17 = vld [vmem:[#allocation38_spill] sm:$0xff]  ;;  %v23319_v50 = vld [vmem:[#allocation37_spill] sm:$0xff] }
 0x1a7   :  { %16362 = vmatprep.mubr.msk.f32.mxu1 %vm27_vm1, %v23315_v0  ;;  %v1985_v2 = vpop.f32.mrf.mxu0  ;;  %v19373_v0 = vld [vmem:[#allocation2 + $0x2f1] sm:$0xff] }
 0x1a8   :  { %23313 = vst [vmem:[#allocation34_spill] sm:$0xff] %v19351_v60  ;;  %v2695_v27 = vpop.f32.mrf.mxu1  ;;  %v2224_v55 = vadd.f32 %v1985_v2, %v23316_v51  ;;  %v19362_v53 = vadd.f32 %v16117_v37, %v2225_v35  ;;  %23321 = vst [vmem:[#allocation38_spill] sm:$0xff] %v19373_v0  ;;  %v19377_v35 = vld [vmem:[#allocation2 + $0x301] sm:$0xff] }
 0x1a9   :  { %v16022_v62 = vpop.f32.mrf.mxu0  ;;  %16265 = vmatmul.mubr.msk.f32.gmra.mxu0 %vm27_vm1, %v19355_v1  ;;  %v23322_v2 = vld [vmem:[#allocation39_spill] sm:$0xff] }
 0x1aa   :  { %23317 = vst [vmem:[#allocation35_spill] sm:$0xff] %v19362_v53  ;;  %v16120_v45 = vpop.f32.mrf.mxu1  ;;  %16363 = vmatmul.mubr.msk.f32.gmra.mxu1 %vm27_vm1, %v23318_v17  ;;  %v2227_v6 = vadd.f32 %v16022_v62, %v23319_v50  ;;  %v19369_v60 = vadd.f32 %v2695_v27, %v2224_v55  ;;  %16267 = vmatprep.mubr.msk.f32.mxu0 %vm27_vm1, %v19359_v48  ;;  %v23324_v27 = vld [vmem:[#allocation40_spill] sm:$0xff]  ;;  %v23325_v62 = vld [vmem:[#allocation7_spill] sm:$0xff] }
 0x1ab   :  { %16365 = vmatprep.mubr.msk.f32.mxu1 %vm27_vm1, %v18846_v23  ;;  %v1995_v51 = vpop.f32.mrf.mxu0  ;;  %v19391_v23 = vld [vmem:[#allocation2 + $0x309] sm:$0xff] }
 0x1ac   :  { %23320 = vst [vmem:[#allocation36_spill] sm:$0xff] %v19369_v60  ;;  %v2705_v37 = vpop.f32.mrf.mxu1  ;;  %v2226_v53 = vadd.f32 %v1995_v51, %v23322_v2  ;;  %v19380_v1 = vadd.f32 %v16120_v45, %v2227_v6  ;;  %23327 = vst [vmem:[#allocation40_spill] sm:$0xff] %v19391_v23  ;;  %v19395_v51 = vld [vmem:[#allocation2 + $0x319] sm:$0xff]  ;;  %v23328_v2 = vld [vmem:[#allocation8_spill] sm:$0xff] }
 0x1ad   :  { %v16025_v17 = vpop.f32.mrf.mxu0  ;;  %16268 = vmatmul.mubr.msk.f32.gmra.mxu0 %vm27_vm1, %v19373_v0 }
 0x1ae   :  { %23323 = vst [vmem:[#allocation37_spill] sm:$0xff] %v19380_v1  ;;  %v16123_v55 = vpop.f32.mrf.mxu1  ;;  %16366 = vmatmul.mubr.msk.f32.gmra.mxu1 %vm27_vm1, %v23324_v27  ;;  %v2229_v50 = vadd.f32 %v16025_v17, %v23325_v62  ;;  %v19387_v60 = vadd.f32 %v2705_v37, %v2226_v53  ;;  %16270 = vmatprep.mubr.msk.f32.mxu0 %vm27_vm1, %v19377_v35  ;;  %v23330_v37 = vld [vmem:[#allocation42_spill] sm:$0xff]  ;;  %v23331_v17 = vld [vmem:[#allocation41_spill] sm:$0xff] }
 0x1af   :  { %16368 = vmatprep.mubr.msk.f32.mxu1 %vm27_vm1, %v18862_v15  ;;  %v2005_v45 = vpop.f32.mrf.mxu0  ;;  %v19409_v15 = vld [vmem:[#allocation2 + $0x321] sm:$0xff] }
 0x1b0   :  { %23326 = vst [vmem:[#allocation39_spill] sm:$0xff] %v19387_v60  ;;  %v2715_v6 = vpop.f32.mrf.mxu1  ;;  %v2228_v1 = vadd.f32 %v2005_v45, %v23328_v2  ;;  %v19398_v0 = vadd.f32 %v16123_v55, %v2229_v50  ;;  %23333 = vst [vmem:[#allocation42_spill] sm:$0xff] %v19409_v15  ;;  %v19413_v45 = vld [vmem:[#allocation2 + $0x331] sm:$0xff] }
 0x1b1   :  { %v16028_v27 = vpop.f32.mrf.mxu0  ;;  %16271 = vmatmul.mubr.msk.f32.gmra.mxu0 %vm27_vm1, %v19391_v23  ;;  %v3750_v2 = vld [vmem:[#allocation2 + $0x332] sm:$0xff] }
 0x1b2   :  { %23329 = vst [vmem:[#allocation7_spill] sm:$0xff] %v19398_v0  ;;  %v16126_v53 = vpop.f32.mrf.mxu1  ;;  %16369 = vmatmul.mubr.msk.f32.gmra.mxu1 %vm27_vm1, %v23330_v37  ;;  %v2231_v62 = vadd.f32 %v16028_v27, %v23331_v17  ;;  %v19405_v60 = vadd.f32 %v2715_v6, %v2228_v1  ;;  %16273 = vmatprep.mubr.msk.f32.mxu0 %vm27_vm1, %v19395_v51  ;;  %v23334_v0 = vld [vmem:[#allocation43_spill] sm:$0xff] }
 0x1b3   :  { %16371 = vmatprep.mubr.msk.f32.mxu1 %vm27_vm1, %v18878_v30  ;;  %v2015_v55 = vpop.f32.mrf.mxu0  ;;  %v19427_v17 = vld [vmem:[#allocation2 + $0x339] sm:$0xff] }
 0x1b4   :  { %23332 = vst [vmem:[#allocation8_spill] sm:$0xff] %v19405_v60  ;;  %v2725_v50 = vpop.f32.mrf.mxu1  ;;  %v2230_v23 = vadd.f32 %v2015_v55, %v23334_v0  ;;  %v19416_v37 = vadd.f32 %v16126_v53, %v2231_v62  ;;  %v3751_v0 = vld [vmem:[#allocation2 + $0x33a] sm:$0xff]  ;;  %v4399_v55 = vld [vmem:[#allocation2 + $0x30] sm:$0xff] }
 0x1b5   :  { %v16031_v27 = vpop.f32.mrf.mxu0  ;;  %16274 = vmatmul.mubr.msk.f32.gmra.mxu0 %vm27_vm1, %v19409_v15 }
 0x1b6   :  { %23335 = vst [vmem:[#allocation41_spill] sm:$0xff] %v19416_v37  ;;  %v16129_v1 = vpop.f32.mrf.mxu1  ;;  %16372 = vmatmul.mubr.msk.f32.gmra.mxu1 %vm27_vm1, %v18890_v52  ;;  %v2233_v6 = vadd.f32 %v16031_v27, %v18886_v33  ;;  %v19423_v30 = vadd.f32 %v2725_v50, %v2230_v23  ;;  %16276 = vmatprep.mubr.msk.f32.mxu0 %vm27_vm1, %v19413_v45  ;;  %v23336_v37 = vld [vmem:[#allocation44_spill] sm:$0xff] }
 0x1b7   :  { %16374 = vmatprep.mubr.msk.f32.mxu1 %vm27_vm1, %v3750_v2  ;;  %v2025_v53 = vpop.f32.mrf.mxu0  ;;  %v4400_v2 = vld [vmem:[#allocation2 + $0x38] sm:$0xff] }
 0x1b8   :  { %v2735_v62 = vpop.f32.mrf.mxu1  ;;  %v2232_v15 = vadd.f32 %v2025_v53, %v23336_v37  ;;  %v19431_v60 = vadd.f32 %v16129_v1, %v2233_v6  ;;  %v4401_v1 = vld [vmem:[#allocation2 + $0x48] sm:$0xff] }
 0x1b9   :  { %v16034_v52 = vpop.f32.mrf.mxu0  ;;  %16277 = vmatmul.mubr.msk.f32.gmra.mxu0 %vm27_vm1, %v19427_v17 }
 0x1ba   :  { %23337 = vst [vmem:[#allocation43_spill] sm:$0xff] %v19431_v60  ;;  %v16132_v33 = vpop.f32.mrf.mxu1  ;;  %16375 = vmatmul.mubr.msk.f32.gmra.mxu1 %vm27_vm1, %v3751_v0  ;;  %v2235_v23 = vadd.f32 %v16034_v52, %v18898_v13  ;;  %v19437_v50 = vadd.f32 %v2735_v62, %v2232_v15  ;;  %16379 = vmatprep.mubr.msk.f32.mxu0 %vm27_vm1, %v4399_v55  ;;  %v23338_v13 = vld [vmem:[#allocation46_spill] sm:$0xff]  ;;  %v23339_v55 = vld [vmem:[#allocation45_spill] sm:$0xff] }
 0x1bb   :  { %16477 = vmatprep.mubr.msk.f32.mxu1 %vm27_vm1, %v18906_v28  ;;  %v2035_v37 = vpop.f32.mrf.mxu0  ;;  %v4402_v28 = vld [vmem:[#allocation2 + $0x50] sm:$0xff] }
 0x1bc   :  { %v2745_v27 = vpop.f32.mrf.mxu1  ;;  %v2234_v6 = vadd.f32 %v2035_v37, %v18909_v8  ;;  %v19443_v53 = vadd.f32 %v16132_v33, %v2235_v23  ;;  %v4403_v33 = vld [vmem:[#allocation2 + $0x60] sm:$0xff] }
 0x1bd   :  { %v16037_v60 = vpop.f32.mrf.mxu0  ;;  %16380 = vmatmul.mubr.msk.f32.vlgmr.msra.gmra.mxu0 %vm27_vm1, %v4400_v2  ;;  %v23340_v23 = vld [vmem:[#allocation47_spill] sm:$0xff] }
 0x1be   :  { %v16135_v0 = vpop.f32.mrf.mxu1  ;;  %16478 = vmatmul.mubr.msk.f32.vlgmr.msra.gmra.mxu1 %vm27_vm1, %v18925_v5  ;;  %v2237_v15 = vadd.f32 %v16037_v60, %v23338_v13  ;;  %v19449_v62 = vadd.f32 %v2745_v27, %v2234_v6  ;;  %16574 = vmatpush3.msk.msra.mxu0 %vm589_vm0, %v23339_v55  ;;  %v23341_v27 = vld [vmem:[#allocation48_spill] sm:$0xff]  ;;  %v23342_v55 = vld [vmem:[#allocation49_spill] sm:$0xff] }
 0x1bf   :  { %16382 = vmatprep.mubr.msk.f32.mxu0 %vm27_vm1, %v4401_v1  ;;  %v2045_v8 = vpop.f32.mrf.mxu0  ;;  %16480 = vmatprep.mubr.msk.f32.mxu1 %vm27_vm1, %v18929_v32  ;;  %v4404_v13 = vld [vmem:[#allocation2 + $0x68] sm:$0xff] }
 0x1c0   :  { %v2755_v52 = vpop.f32.mrf.mxu1  ;;  %v2236_v2 = vadd.f32 %v2045_v8, %v23340_v23  ;;  %v19457_v37 = vadd.f32 %v16135_v0, %v2237_v15  ;;  %v4405_v15 = vld [vmem:[#allocation2 + $0x78] sm:$0xff] }
 0x1c1   :  { %v16040_v5 = vpop.f32.mrf.mxu0  ;;  %16383 = vmatmul.mubr.msk.f32.gmra.mxu0 %vm27_vm1, %v4402_v28 }
 0x1c2   :  { %v16138_v60 = vpop.f32.mrf.mxu1  ;;  %16481 = vmatmul.mubr.msk.f32.gmra.mxu1 %vm27_vm1, %v18944_v56  ;;  %v2239_v1 = vadd.f32 %v16040_v5, %v23341_v27  ;;  %v19463_v6 = vadd.f32 %v2755_v52, %v2236_v2  ;;  %16385 = vmatprep.mubr.msk.f32.mxu0 %vm27_vm1, %v4403_v33  ;;  %v23343_v52 = vld [vmem:[#allocation50_spill] sm:$0xff]  ;;  %v4407_v27 = vld [vmem:[#allocation2 + $0x90] sm:$0xff] }
 0x1c3   :  { %16483 = vmatprep.mubr.msk.f32.mxu1 %vm27_vm1, %v18948_v43  ;;  %v2055_v32 = vpop.f32.mrf.mxu0  ;;  %v4406_v43 = vld [vmem:[#allocation2 + $0x80] sm:$0xff] }
 0x1c4   :  { %v2765_v0 = vpop.f32.mrf.mxu1  ;;  %v2238_v8 = vadd.f32 %v2055_v32, %v23342_v55  ;;  %v19469_v28 = vadd.f32 %v16138_v60, %v2239_v1  ;;  %v23344_v1 = vld [vmem:[#allocation51_spill] sm:$0xff] }
 0x1c5   :  { %v16043_v23 = vpop.f32.mrf.mxu0  ;;  %16386 = vmatmul.mubr.msk.f32.gmra.mxu0 %vm27_vm1, %v4404_v13 }
 0x1c6   :  { %v16141_v56 = vpop.f32.mrf.mxu1  ;;  %16484 = vmatmul.mubr.msk.f32.gmra.mxu1 %vm27_vm1, %v18960_v36  ;;  %v2241_v33 = vadd.f32 %v16043_v23, %v23343_v52  ;;  %v19475_v2 = vadd.f32 %v2765_v0, %v2238_v8  ;;  %16388 = vmatprep.mubr.msk.f32.mxu0 %vm27_vm1, %v4405_v15  ;;  %v23345_v0 = vld [vmem:[#allocation52_spill] sm:$0xff] }
 0x1c7   :  { %16486 = vmatprep.mubr.msk.f32.mxu1 %vm27_vm1, %v18964_v39  ;;  %v2065_v5 = vpop.f32.mrf.mxu0  ;;  %v4408_v39 = vld [vmem:[#allocation2 + $0x98] sm:$0xff]  ;;  %v4409_v52 = vld [vmem:[#allocation2 + $0xa8] sm:$0xff] }
 0x1c8   :  { %v2775_v60 = vpop.f32.mrf.mxu1  ;;  %v2240_v32 = vadd.f32 %v2065_v5, %v23344_v1  ;;  %v19481_v13 = vadd.f32 %v16141_v56, %v2241_v33  ;;  %v23346_v33 = vld [vmem:[#allocation53_spill] sm:$0xff] }
 0x1c9   :  { %v16046_v55 = vpop.f32.mrf.mxu0  ;;  %16389 = vmatmul.mubr.msk.f32.gmra.mxu0 %vm27_vm1, %v4406_v43 }
 0x1ca   :  { %v16144_v36 = vpop.f32.mrf.mxu1  ;;  %16487 = vmatmul.mubr.msk.f32.gmra.mxu1 %vm27_vm1, %v18976_v61  ;;  %v2243_v15 = vadd.f32 %v16046_v55, %v23345_v0  ;;  %v19487_v8 = vadd.f32 %v2775_v60, %v2240_v32  ;;  %16391 = vmatprep.mubr.msk.f32.mxu0 %vm27_vm1, %v4407_v27  ;;  %v23347_v60 = vld [vmem:[#allocation54_spill] sm:$0xff]  ;;  %v4411_v0 = vld [vmem:[#allocation2 + $0xc0] sm:$0xff] }
 0x1cb   :  { %16489 = vmatprep.mubr.msk.f32.mxu1 %vm27_vm1, %v18980_v3  ;;  %v2075_v23 = vpop.f32.mrf.mxu0  ;;  %v4410_v3 = vld [vmem:[#allocation2 + $0xb0] sm:$0xff] }
 0x1cc   :  { %v2785_v56 = vpop.f32.mrf.mxu1  ;;  %v2242_v5 = vadd.f32 %v2075_v23, %v23346_v33  ;;  %v19493_v43 = vadd.f32 %v16144_v36, %v2243_v15  ;;  %v23348_v15 = vld [vmem:[#allocation55_spill] sm:$0xff] }
 0x1cd   :  { %v16049_v1 = vpop.f32.mrf.mxu0  ;;  %16392 = vmatmul.mubr.msk.f32.gmra.mxu0 %vm27_vm1, %v4408_v39 }
 0x1ce   :  { %v16147_v61 = vpop.f32.mrf.mxu1  ;;  %16490 = vmatmul.mubr.msk.f32.gmra.mxu1 %vm27_vm1, %v18992_v42  ;;  %v2245_v27 = vadd.f32 %v16049_v1, %v23347_v60  ;;  %v19499_v32 = vadd.f32 %v2785_v56, %v2242_v5  ;;  %16394 = vmatprep.mubr.msk.f32.mxu0 %vm27_vm1, %v4409_v52  ;;  %v23349_v56 = vld [vmem:[#allocation56_spill] sm:$0xff]  ;;  %v4413_v60 = vld [vmem:[#allocation2 + $0xd8] sm:$0xff] }
 0x1cf   :  { %16492 = vmatprep.mubr.msk.f32.mxu1 %vm27_vm1, %v18996_v47  ;;  %v2085_v55 = vpop.f32.mrf.mxu0  ;;  %v4412_v47 = vld [vmem:[#allocation2 + $0xc8] sm:$0xff] }
 0x1d0   :  { %v2795_v36 = vpop.f32.mrf.mxu1  ;;  %v2244_v23 = vadd.f32 %v2085_v55, %v23348_v15  ;;  %v19505_v39 = vadd.f32 %v16147_v61, %v2245_v27  ;;  %v23350_v27 = vld [vmem:[#allocation57_spill] sm:$0xff] }
 0x1d1   :  { %v16052_v33 = vpop.f32.mrf.mxu0  ;;  %16395 = vmatmul.mubr.msk.f32.gmra.mxu0 %vm27_vm1, %v4410_v3 }
 0x1d2   :  { %v16150_v42 = vpop.f32.mrf.mxu1  ;;  %16493 = vmatmul.mubr.msk.f32.gmra.mxu1 %vm27_vm1, %v19008_v46  ;;  %v2247_v52 = vadd.f32 %v16052_v33, %v23349_v56  ;;  %v19511_v5 = vadd.f32 %v2795_v36, %v2244_v23  ;;  %16397 = vmatprep.mubr.msk.f32.mxu0 %vm27_vm1, %v4411_v0  ;;  %v23351_v36 = vld [vmem:[#allocation58_spill] sm:$0xff]  ;;  %v4415_v56 = vld [vmem:[#allocation2 + $0xf0] sm:$0xff] }
 0x1d3   :  { %16495 = vmatprep.mubr.msk.f32.mxu1 %vm27_vm1, %v19012_v21  ;;  %v2095_v1 = vpop.f32.mrf.mxu0  ;;  %v4414_v21 = vld [vmem:[#allocation2 + $0xe0] sm:$0xff] }
 0x1d4   :  { %v2805_v61 = vpop.f32.mrf.mxu1  ;;  %v2246_v55 = vadd.f32 %v2095_v1, %v23350_v27  ;;  %v19517_v3 = vadd.f32 %v16150_v42, %v2247_v52  ;;  %v23352_v52 = vld [vmem:[#allocation59_spill] sm:$0xff] }
 0x1d5   :  { %v16055_v15 = vpop.f32.mrf.mxu0  ;;  %16398 = vmatmul.mubr.msk.f32.gmra.mxu0 %vm27_vm1, %v4412_v47 }
 0x1d6   :  { %v16153_v46 = vpop.f32.mrf.mxu1  ;;  %16496 = vmatmul.mubr.msk.f32.gmra.mxu1 %vm27_vm1, %v19024_v57  ;;  %v2249_v0 = vadd.f32 %v16055_v15, %v23351_v36  ;;  %v19523_v23 = vadd.f32 %v2805_v61, %v2246_v55  ;;  %16400 = vmatprep.mubr.msk.f32.mxu0 %vm27_vm1, %v4413_v60  ;;  %v23353_v61 = vld [vmem:[#allocation60_spill] sm:$0xff] }
 0x1d7   :  { %16498 = vmatprep.mubr.msk.f32.mxu1 %vm27_vm1, %v19028_v34  ;;  %v2105_v33 = vpop.f32.mrf.mxu0  ;;  %v4416_v34 = vld [vmem:[#allocation2 + $0xf8] sm:$0xff]  ;;  %v4417_v36 = vld [vmem:[#allocation2 + $0x108] sm:$0xff] }
 0x1d8   :  { %v2815_v42 = vpop.f32.mrf.mxu1  ;;  %v2248_v1 = vadd.f32 %v2105_v33, %v23352_v52  ;;  %v19529_v47 = vadd.f32 %v16153_v46, %v2249_v0  ;;  %v23354_v0 = vld [vmem:[#allocation61_spill] sm:$0xff] }
 0x1d9   :  { %v16058_v27 = vpop.f32.mrf.mxu0  ;;  %16401 = vmatmul.mubr.msk.f32.gmra.mxu0 %vm27_vm1, %v4414_v21 }
 0x1da   :  { %v16156_v57 = vpop.f32.mrf.mxu1  ;;  %16499 = vmatmul.mubr.msk.f32.gmra.mxu1 %vm27_vm1, %v19040_v63  ;;  %v2251_v60 = vadd.f32 %v16058_v27, %v23353_v61  ;;  %v19535_v55 = vadd.f32 %v2815_v42, %v2248_v1  ;;  %16403 = vmatprep.mubr.msk.f32.mxu0 %vm27_vm1, %v4415_v56  ;;  %v23355_v42 = vld [vmem:[#allocation62_spill] sm:$0xff]  ;;  %v4419_v61 = vld [vmem:[#allocation2 + $0x120] sm:$0xff] }
 0x1db   :  { %16501 = vmatprep.mubr.msk.f32.mxu1 %vm27_vm1, %v19044_v38  ;;  %v2115_v15 = vpop.f32.mrf.mxu0  ;;  %v4418_v38 = vld [vmem:[#allocation2 + $0x110] sm:$0xff] }
 0x1dc   :  { %v2825_v46 = vpop.f32.mrf.mxu1  ;;  %v2250_v33 = vadd.f32 %v2115_v15, %v23354_v0  ;;  %v19541_v21 = vadd.f32 %v16156_v57, %v2251_v60  ;;  %v23356_v60 = vld [vmem:[#allocation63_spill] sm:$0xff] }
 0x1dd   :  { %v16061_v52 = vpop.f32.mrf.mxu0  ;;  %16404 = vmatmul.mubr.msk.f32.gmra.mxu0 %vm27_vm1, %v4416_v34 }
 0x1de   :  { %v16159_v63 = vpop.f32.mrf.mxu1  ;;  %16502 = vmatmul.mubr.msk.f32.gmra.mxu1 %vm27_vm1, %v19056_v14  ;;  %v2253_v56 = vadd.f32 %v16061_v52, %v23355_v42  ;;  %v19547_v1 = vadd.f32 %v2825_v46, %v2250_v33  ;;  %16406 = vmatprep.mubr.msk.f32.mxu0 %vm27_vm1, %v4417_v36  ;;  %v23357_v46 = vld [vmem:[#allocation64_spill] sm:$0xff]  ;;  %v4421_v42 = vld [vmem:[#allocation2 + $0x138] sm:$0xff] }
 0x1df   :  { %16504 = vmatprep.mubr.msk.f32.mxu1 %vm27_vm1, %v19060_v40  ;;  %v2125_v27 = vpop.f32.mrf.mxu0  ;;  %v4420_v40 = vld [vmem:[#allocation2 + $0x128] sm:$0xff] }
 0x1e0   :  { %v2835_v57 = vpop.f32.mrf.mxu1  ;;  %v2252_v15 = vadd.f32 %v2125_v27, %v23356_v60  ;;  %v19553_v34 = vadd.f32 %v16159_v63, %v2253_v56  ;;  %v23359_v56 = vld [vmem:[#allocation65_spill] sm:$0xff] }
 0x1e1   :  { %v16064_v0 = vpop.f32.mrf.mxu0  ;;  %16407 = vmatmul.mubr.msk.f32.gmra.mxu0 %vm27_vm1, %v4418_v38 }
 0x1e2   :  { %v16162_v14 = vpop.f32.mrf.mxu1  ;;  %16505 = vmatmul.mubr.msk.f32.gmra.mxu1 %vm27_vm1, %v19072_v18  ;;  %v2255_v36 = vadd.f32 %v16064_v0, %v23357_v46  ;;  %v19559_v33 = vadd.f32 %v2835_v57, %v2252_v15  ;;  %16409 = vmatprep.mubr.msk.f32.mxu0 %vm27_vm1, %v4419_v61  ;;  %v23361_v0 = vld [vmem:[#allocation67_spill] sm:$0xff]  ;;  %v23362_v57 = vld [vmem:[#allocation66_spill] sm:$0xff]  ;;  %v23364_v46 = vld [vmem:[#allocation68_spill] sm:$0xff] }
 0x1e3   :  { %16507 = vmatprep.mubr.msk.f32.mxu1 %vm27_vm1, %v19076_v44  ;;  %v2135_v52 = vpop.f32.mrf.mxu0  ;;  %v4422_v44 = vld [vmem:[#allocation2 + $0x140] sm:$0xff] }
 0x1e4   :  { %23358 = vst [vmem:[#allocation44_spill] sm:$0xff] %v19559_v33  ;;  %v2845_v63 = vpop.f32.mrf.mxu1  ;;  %v2254_v27 = vadd.f32 %v2135_v52, %v23359_v56  ;;  %v19565_v38 = vadd.f32 %v16162_v14, %v2255_v36  ;;  %v4423_v36 = vld [vmem:[#allocation2 + $0x150] sm:$0xff] }
 0x1e5   :  { %v16067_v60 = vpop.f32.mrf.mxu0  ;;  %16410 = vmatmul.mubr.msk.f32.gmra.mxu0 %vm27_vm1, %v4420_v40  ;;  %v23365_v56 = vld [vmem:[#allocation69_spill] sm:$0xff] }
 0x1e6   :  { %23360 = vst [vmem:[#allocation46_spill] sm:$0xff] %v19565_v38  ;;  %v16165_v18 = vpop.f32.mrf.mxu1  ;;  %16508 = vmatmul.mubr.msk.f32.gmra.mxu1 %vm27_vm1, %v23361_v0  ;;  %v2257_v61 = vadd.f32 %v16067_v60, %v23362_v57  ;;  %v19571_v15 = vadd.f32 %v2845_v63, %v2254_v27  ;;  %16412 = vmatprep.mubr.msk.f32.mxu0 %vm27_vm1, %v4421_v42  ;;  %v23367_v60 = vld [vmem:[#allocation71_spill] sm:$0xff]  ;;  %v23368_v63 = vld [vmem:[#allocation70_spill] sm:$0xff] }
 0x1e7   :  { %16510 = vmatprep.mubr.msk.f32.mxu1 %vm27_vm1, %v23364_v46  ;;  %v2145_v52 = vpop.f32.mrf.mxu0  ;;  %v4424_v57 = vld [vmem:[#allocation2 + $0x158] sm:$0xff]  ;;  %v23370_v46 = vld [vmem:[#allocation72_spill] sm:$0xff] }
 0x1e8   :  { %23363 = vst [vmem:[#allocation45_spill] sm:$0xff] %v19571_v15  ;;  %v2855_v14 = vpop.f32.mrf.mxu1  ;;  %v2256_v38 = vadd.f32 %v2145_v52, %v23365_v56  ;;  %v19577_v40 = vadd.f32 %v16165_v18, %v2257_v61  ;;  %v4425_v61 = vld [vmem:[#allocation2 + $0x168] sm:$0xff]  ;;  %v23371_v56 = vld [vmem:[#allocation73_spill] sm:$0xff] }
 0x1e9   :  { %v16070_v33 = vpop.f32.mrf.mxu0  ;;  %16413 = vmatmul.mubr.msk.f32.gmra.mxu0 %vm27_vm1, %v4422_v44 }
 0x1ea   :  { %23366 = vst [vmem:[#allocation47_spill] sm:$0xff] %v19577_v40  ;;  %v16168_v0 = vpop.f32.mrf.mxu1  ;;  %16511 = vmatmul.mubr.msk.f32.gmra.mxu1 %vm27_vm1, %v23367_v60  ;;  %v2259_v42 = vadd.f32 %v16070_v33, %v23368_v63  ;;  %v19583_v27 = vadd.f32 %v2855_v14, %v2256_v38  ;;  %16415 = vmatprep.mubr.msk.f32.mxu0 %vm27_vm1, %v4423_v36  ;;  %v23373_v33 = vld [vmem:[#allocation74_spill] sm:$0xff]  ;;  %v23374_v38 = vld [vmem:[#allocation9_spill] sm:$0xff] }
 0x1eb   :  { %16513 = vmatprep.mubr.msk.f32.mxu1 %vm27_vm1, %v23370_v46  ;;  %v2155_v52 = vpop.f32.mrf.mxu0  ;;  %v4426_v63 = vld [vmem:[#allocation2 + $0x170] sm:$0xff]  ;;  %v23376_v46 = vld [vmem:[#allocation10_spill] sm:$0xff] }
 0x1ec   :  { %23369 = vst [vmem:[#allocation48_spill] sm:$0xff] %v19583_v27  ;;  %v2865_v18 = vpop.f32.mrf.mxu1  ;;  %v2258_v40 = vadd.f32 %v2155_v52, %v23371_v56  ;;  %v19589_v44 = vadd.f32 %v16168_v0, %v2259_v42  ;;  %v4427_v42 = vld [vmem:[#allocation2 + $0x180] sm:$0xff] }
 0x1ed   :  { %v16073_v15 = vpop.f32.mrf.mxu0  ;;  %16416 = vmatmul.mubr.msk.f32.gmra.mxu0 %vm27_vm1, %v4424_v57  ;;  %v23377_v56 = vld [vmem:[#allocation75_spill] sm:$0xff] }
 0x1ee   :  { %23372 = vst [vmem:[#allocation49_spill] sm:$0xff] %v19589_v44  ;;  %v16171_v60 = vpop.f32.mrf.mxu1  ;;  %16514 = vmatmul.mubr.msk.f32.gmra.mxu1 %vm27_vm1, %v23373_v33  ;;  %v2261_v14 = vadd.f32 %v16073_v15, %v23374_v38  ;;  %v19595_v36 = vadd.f32 %v2865_v18, %v2258_v40  ;;  %16418 = vmatprep.mubr.msk.f32.mxu0 %vm27_vm1, %v4425_v61  ;;  %v23379_v15 = vld [vmem:[#allocation76_spill] sm:$0xff]  ;;  %v23380_v40 = vld [vmem:[#allocation11_spill] sm:$0xff] }
 0x1ef   :  { %16516 = vmatprep.mubr.msk.f32.mxu1 %vm27_vm1, %v23376_v46  ;;  %v2165_v52 = vpop.f32.mrf.mxu0  ;;  %v4428_v38 = vld [vmem:[#allocation2 + $0x188] sm:$0xff] }
 0x1f0   :  { %23375 = vst [vmem:[#allocation50_spill] sm:$0xff] %v19595_v36  ;;  %v2875_v0 = vpop.f32.mrf.mxu1  ;;  %v2260_v44 = vadd.f32 %v2165_v52, %v23377_v56  ;;  %v19601_v57 = vadd.f32 %v16171_v60, %v2261_v14  ;;  %v4429_v14 = vld [vmem:[#allocation2 + $0x198] sm:$0xff]  ;;  %v23381_v56 = vld [vmem:[#allocation12_spill] sm:$0xff] }
 0x1f1   :  { %v16076_v27 = vpop.f32.mrf.mxu0  ;;  %16419 = vmatmul.mubr.msk.f32.gmra.mxu0 %vm27_vm1, %v4426_v63  ;;  %v5139_v52 = vld [vmem:[#allocation2 + $0x199] sm:$0xff] }
 0x1f2   :  { %23378 = vst [vmem:[#allocation51_spill] sm:$0xff] %v19601_v57  ;;  %v16174_v33 = vpop.f32.mrf.mxu1  ;;  %16517 = vmatmul.mubr.msk.f32.gmra.mxu1 %vm27_vm1, %v23379_v15  ;;  %v2263_v18 = vadd.f32 %v16076_v27, %v23380_v40  ;;  %v19607_v61 = vadd.f32 %v2875_v0, %v2260_v44  ;;  %16421 = vmatprep.mubr.msk.f32.mxu0 %vm27_vm1, %v4427_v42  ;;  %v23383_v44 = vld [vmem:[#allocation13_spill] sm:$0xff]  ;;  %v5140_v15 = vld [vmem:[#allocation2 + $0x1a1] sm:$0xff] }
 0x1f3   :  { %16519 = vmatprep.mubr.msk.f32.mxu1 %vm27_vm1, %v19140_v24  ;;  %v2175_v46 = vpop.f32.mrf.mxu0  ;;  %v4430_v24 = vld [vmem:[#allocation2 + $0x1a0] sm:$0xff] }
 0x1f4   :  { %v2885_v60 = vpop.f32.mrf.mxu1  ;;  %v2262_v63 = vadd.f32 %v2175_v46, %v23381_v56  ;;  %v19613_v57 = vadd.f32 %v16174_v33, %v2263_v18  ;;  %v4431_v18 = vld [vmem:[#allocation2 + $0x1e0] sm:$0xff]  ;;  %v23384_v46 = vld [vmem:[#allocation77_spill] sm:$0xff] }
 0x1f5   :  { %v16079_v36 = vpop.f32.mrf.mxu0  ;;  %16422 = vmatmul.mubr.msk.f32.gmra.mxu0 %vm27_vm1, %v4428_v38 }
 0x1f6   :  { %23382 = vst [vmem:[#allocation52_spill] sm:$0xff] %v19613_v57  ;;  %v16177_v27 = vpop.f32.mrf.mxu1  ;;  %16520 = vmatmul.mubr.msk.f32.gmra.mxu1 %vm27_vm1, %v19152_v20  ;;  %v2265_v0 = vadd.f32 %v16079_v36, %v23383_v44  ;;  %v19619_v42 = vadd.f32 %v2885_v60, %v2262_v63  ;;  %16424 = vmatprep.mubr.msk.f32.mxu0 %vm27_vm1, %v4429_v14  ;;  %v23386_v36 = vld [vmem:[#allocation78_spill] sm:$0xff]  ;;  %v23387_v63 = vld [vmem:[#allocation79_spill] sm:$0xff] }
 0x1f7   :  { %16522 = vmatprep.mubr.msk.f32.mxu1 %vm27_vm1, %v5139_v52  ;;  %v2185_v40 = vpop.f32.mrf.mxu0  ;;  %v4432_v52 = vld [vmem:[#allocation2 + $0x1e8] sm:$0xff] }
 0x1f8   :  { %v2895_v33 = vpop.f32.mrf.mxu1  ;;  %v2264_v56 = vadd.f32 %v2185_v40, %v23384_v46  ;;  %v19624_v38 = vadd.f32 %v16177_v27, %v2265_v0  ;;  %v4433_v27 = vld [vmem:[#allocation2 + $0x1f8] sm:$0xff]  ;;  %v23388_v0 = vld [vmem:[#allocation80_spill] sm:$0xff] }
 0x1f9   :  { %v16082_v57 = vpop.f32.mrf.mxu0  ;;  %16425 = vmatmul.mubr.msk.f32.gmra.mxu0 %vm27_vm1, %v4430_v24 }
 0x1fa   :  { %23385 = vst [vmem:[#allocation53_spill] sm:$0xff] %v19624_v38  ;;  %v16180_v20 = vpop.f32.mrf.mxu1  ;;  %16523 = vmatmul.mubr.msk.f32.gmra.mxu1 %vm27_vm1, %v5140_v15  ;;  %v2267_v60 = vadd.f32 %v16082_v57, %v23386_v36  ;;  %v19629_v14 = vadd.f32 %v2895_v33, %v2264_v56  ;;  %16427 = vmatprep.mubr.msk.f32.mxu0 %vm27_vm1, %v4431_v18  ;;  %v23389_v57 = vld [vmem:[#allocation14_spill] sm:$0xff]  ;;  %v23390_v18 = vld [vmem:[#allocation15_spill] sm:$0xff] }
 0x1fb   :  { %16525 = vmatprep.mubr.msk.f32.mxu1 %vm27_vm1, %v23387_v63  ;;  %v2195_v44 = vpop.f32.mrf.mxu0  ;;  %v4434_v36 = vld [vmem:[#allocation2 + $0x200] sm:$0xff] }
 0x1fc   :  { %v2905_v40 = vpop.f32.mrf.mxu1  ;;  %v2266_v46 = vadd.f32 %v2195_v44, %v23388_v0  ;;  %v19635_v38 = vadd.f32 %v16180_v20, %v2267_v60  ;;  %v4435_v60 = vld [vmem:[#allocation2 + $0x210] sm:$0xff] }
 0x1fd   :  { %v16185_v24 = vpop.f32.mrf.mxu0  ;;  %16428 = vmatmul.mubr.msk.f32.gmra.mxu0 %vm27_vm1, %v4432_v52 }
 0x1fe   :  { %v16283_v15 = vpop.f32.mrf.mxu1  ;;  %16526 = vmatmul.mubr.msk.f32.gmra.mxu1 %vm27_vm1, %v23389_v57  ;;  %v19640_v33 = vadd.f32 %v2905_v40, %v2266_v46  ;;  %v3625_v56 = vadd.f32 %v16185_v24, %v23390_v18  ;;  %16430 = vmatprep.mubr.msk.f32.mxu0 %vm27_vm1, %v4433_v27  ;;  %v23391_v46 = vld [vmem:[#allocation16_spill] sm:$0xff]  ;;  %v23392_v24 = vld [vmem:[#allocation17_spill] sm:$0xff] }
 0x1ff   :  { %16528 = vmatprep.mubr.msk.f32.mxu1 %vm27_vm1, %v19179_v16  ;;  %v3305_v63 = vpop.f32.mrf.mxu0  ;;  %v4436_v16 = vld [vmem:[#allocation2 + $0x218] sm:$0xff]  ;;  %v4437_v18 = vld [vmem:[#allocation2 + $0x228] sm:$0xff] }
 0x200   :  { %v4015_v20 = vpop.f32.mrf.mxu1  ;;  %v3624_v44 = vadd.f32 %v3305_v63, %v19189_v26  ;;  %v19647_v52 = vadd.f32 %v16283_v15, %v3625_v56 }
 0x201   :  { %v16188_v0 = vpop.f32.mrf.mxu0  ;;  %16431 = vmatmul.mubr.msk.f32.gmra.mxu0 %vm27_vm1, %v4434_v36 }
 0x202   :  { %v16286_v40 = vpop.f32.mrf.mxu1  ;;  %16529 = vmatmul.mubr.msk.f32.gmra.mxu1 %vm27_vm1, %v23391_v46  ;;  %v3627_v27 = vadd.f32 %v16188_v0, %v23392_v24  ;;  %v19653_v57 = vadd.f32 %v4015_v20, %v3624_v44  ;;  %16433 = vmatprep.mubr.msk.f32.mxu0 %vm27_vm1, %v4435_v60  ;;  %v23393_v0 = vld [vmem:[#allocation18_spill] sm:$0xff]  ;;  %v23394_v20 = vld [vmem:[#allocation19_spill] sm:$0xff] }
 0x203   :  { %16531 = vmatprep.mubr.msk.f32.mxu1 %vm27_vm1, %v19197_v19  ;;  %v3315_v26 = vpop.f32.mrf.mxu0  ;;  %v4438_v19 = vld [vmem:[#allocation2 + $0x230] sm:$0xff]  ;;  %v4439_v24 = vld [vmem:[#allocation2 + $0x240] sm:$0xff] }
 0x204   :  { %v4025_v15 = vpop.f32.mrf.mxu1  ;;  %v3626_v56 = vadd.f32 %v3315_v26, %v19207_v10  ;;  %v19659_v36 = vadd.f32 %v16286_v40, %v3627_v27 }
 0x205   :  { %v16191_v63 = vpop.f32.mrf.mxu0  ;;  %16434 = vmatmul.mubr.msk.f32.gmra.mxu0 %vm27_vm1, %v4436_v16 }
 0x206   :  { %v16289_v46 = vpop.f32.mrf.mxu1  ;;  %16532 = vmatmul.mubr.msk.f32.gmra.mxu1 %vm27_vm1, %v23393_v0  ;;  %v3629_v60 = vadd.f32 %v16191_v63, %v23394_v20  ;;  %v19665_v44 = vadd.f32 %v4025_v15, %v3626_v56  ;;  %16436 = vmatprep.mubr.msk.f32.mxu0 %vm27_vm1, %v4437_v18  ;;  %v23395_v63 = vld [vmem:[#allocation20_spill] sm:$0xff]  ;;  %v23396_v15 = vld [vmem:[#allocation21_spill] sm:$0xff]  ;;  %v4441_v20 = vld [vmem:[#allocation2 + $0x258] sm:$0xff] }
 0x207   :  { %16534 = vmatprep.mubr.msk.f32.mxu1 %vm27_vm1, %v19215_v25  ;;  %v3325_v10 = vpop.f32.mrf.mxu0  ;;  %v4440_v25 = vld [vmem:[#allocation2 + $0x248] sm:$0xff] }
 0x208   :  { %v4035_v40 = vpop.f32.mrf.mxu1  ;;  %v3628_v27 = vadd.f32 %v3325_v10, %v19225_v7  ;;  %v19671_v16 = vadd.f32 %v16289_v46, %v3629_v60 }
 0x209   :  { %v16194_v26 = vpop.f32.mrf.mxu0  ;;  %16437 = vmatmul.mubr.msk.f32.gmra.mxu0 %vm27_vm1, %v4438_v19 }
 0x20a   :  { %v16292_v0 = vpop.f32.mrf.mxu1  ;;  %16535 = vmatmul.mubr.msk.f32.gmra.mxu1 %vm27_vm1, %v23395_v63  ;;  %v3631_v18 = vadd.f32 %v16194_v26, %v23396_v15  ;;  %v19677_v56 = vadd.f32 %v4035_v40, %v3628_v27  ;;  %16439 = vmatprep.mubr.msk.f32.mxu0 %vm27_vm1, %v4439_v24  ;;  %v23397_v26 = vld [vmem:[#allocation22_spill] sm:$0xff]  ;;  %v23398_v40 = vld [vmem:[#allocation23_spill] sm:$0xff]  ;;  %v4443_v15 = vld [vmem:[#allocation2 + $0x270] sm:$0xff] }
 0x20b   :  { %16537 = vmatprep.mubr.msk.f32.mxu1 %vm27_vm1, %v19233_v12  ;;  %v3335_v7 = vpop.f32.mrf.mxu0  ;;  %v4442_v12 = vld [vmem:[#allocation2 + $0x260] sm:$0xff] }
 0x20c   :  { %v4045_v46 = vpop.f32.mrf.mxu1  ;;  %v3630_v60 = vadd.f32 %v3335_v7, %v19243_v31  ;;  %v19683_v19 = vadd.f32 %v16292_v0, %v3631_v18 }
 0x20d   :  { %v16197_v10 = vpop.f32.mrf.mxu0  ;;  %16440 = vmatmul.mubr.msk.f32.gmra.mxu0 %vm27_vm1, %v4440_v25 }
 0x20e   :  { %v16295_v63 = vpop.f32.mrf.mxu1  ;;  %16538 = vmatmul.mubr.msk.f32.gmra.mxu1 %vm27_vm1, %v23397_v26  ;;  %v3633_v24 = vadd.f32 %v16197_v10, %v23398_v40  ;;  %v19689_v27 = vadd.f32 %v4045_v46, %v3630_v60  ;;  %16442 = vmatprep.mubr.msk.f32.mxu0 %vm27_vm1, %v4441_v20  ;;  %v23399_v10 = vld [vmem:[#allocation24_spill] sm:$0xff]  ;;  %v23400_v46 = vld [vmem:[#allocation25_spill] sm:$0xff] }
 0x20f   :  { %16540 = vmatprep.mubr.msk.f32.mxu1 %vm27_vm1, %v19251_v22  ;;  %v3345_v31 = vpop.f32.mrf.mxu0  ;;  %v4444_v22 = vld [vmem:[#allocation2 + $0x278] sm:$0xff]  ;;  %v4445_v40 = vld [vmem:[#allocation2 + $0x288] sm:$0xff] }
 0x210   :  { %v4055_v0 = vpop.f32.mrf.mxu1  ;;  %v3632_v18 = vadd.f32 %v3345_v31, %v19261_v54  ;;  %v19695_v25 = vadd.f32 %v16295_v63, %v3633_v24 }
 0x211   :  { %v16200_v7 = vpop.f32.mrf.mxu0  ;;  %16443 = vmatmul.mubr.msk.f32.gmra.mxu0 %vm27_vm1, %v4442_v12 }
 0x212   :  { %v16298_v26 = vpop.f32.mrf.mxu1  ;;  %16541 = vmatmul.mubr.msk.f32.gmra.mxu1 %vm27_vm1, %v23399_v10  ;;  %v3635_v20 = vadd.f32 %v16200_v7, %v23400_v46  ;;  %v19701_v60 = vadd.f32 %v4055_v0, %v3632_v18  ;;  %16445 = vmatprep.mubr.msk.f32.mxu0 %vm27_vm1, %v4443_v15  ;;  %v23401_v7 = vld [vmem:[#allocation26_spill] sm:$0xff]  ;;  %v23402_v0 = vld [vmem:[#allocation27_spill] sm:$0xff] }
 0x213   :  { %16543 = vmatprep.mubr.msk.f32.mxu1 %vm27_vm1, %v19269_v11  ;;  %v3355_v54 = vpop.f32.mrf.mxu0  ;;  %v4446_v11 = vld [vmem:[#allocation2 + $0x290] sm:$0xff]  ;;  %v4447_v46 = vld [vmem:[#allocation2 + $0x2a0] sm:$0xff] }
 0x214   :  { %v4065_v63 = vpop.f32.mrf.mxu1  ;;  %v3634_v24 = vadd.f32 %v3355_v54, %v19279_v58  ;;  %v19707_v12 = vadd.f32 %v16298_v26, %v3635_v20 }
 0x215   :  { %v16203_v31 = vpop.f32.mrf.mxu0  ;;  %16446 = vmatmul.mubr.msk.f32.gmra.mxu0 %vm27_vm1, %v4444_v22 }
 0x216   :  { %v16301_v10 = vpop.f32.mrf.mxu1  ;;  %16544 = vmatmul.mubr.msk.f32.gmra.mxu1 %vm27_vm1, %v23401_v7  ;;  %v3637_v15 = vadd.f32 %v16203_v31, %v23402_v0  ;;  %v19713_v18 = vadd.f32 %v4065_v63, %v3634_v24  ;;  %16448 = vmatprep.mubr.msk.f32.mxu0 %vm27_vm1, %v4445_v40  ;;  %v23403_v31 = vld [vmem:[#allocation28_spill] sm:$0xff]  ;;  %v23404_v63 = vld [vmem:[#allocation29_spill] sm:$0xff]  ;;  %v4449_v0 = vld [vmem:[#allocation2 + $0x2b8] sm:$0xff] }
 0x217   :  { %16546 = vmatprep.mubr.msk.f32.mxu1 %vm27_vm1, %v19287_v59  ;;  %v3365_v58 = vpop.f32.mrf.mxu0  ;;  %v4448_v59 = vld [vmem:[#allocation2 + $0x2a8] sm:$0xff] }
 0x218   :  { %v4075_v26 = vpop.f32.mrf.mxu1  ;;  %v3636_v20 = vadd.f32 %v3365_v58, %v19297_v41  ;;  %v19719_v22 = vadd.f32 %v16301_v10, %v3637_v15 }
 0x219   :  { %v16206_v54 = vpop.f32.mrf.mxu0  ;;  %16449 = vmatmul.mubr.msk.f32.gmra.mxu0 %vm27_vm1, %v4446_v11 }
 0x21a   :  { %v16304_v7 = vpop.f32.mrf.mxu1  ;;  %16547 = vmatmul.mubr.msk.f32.gmra.mxu1 %vm27_vm1, %v23403_v31  ;;  %v3639_v40 = vadd.f32 %v16206_v54, %v23404_v63  ;;  %v19725_v24 = vadd.f32 %v4075_v26, %v3636_v20  ;;  %16451 = vmatprep.mubr.msk.f32.mxu0 %vm27_vm1, %v4447_v46  ;;  %v23405_v54 = vld [vmem:[#allocation30_spill] sm:$0xff]  ;;  %v23406_v26 = vld [vmem:[#allocation31_spill] sm:$0xff]  ;;  %v4451_v63 = vld [vmem:[#allocation2 + $0x2d0] sm:$0xff] }
 0x21b   :  { %16549 = vmatprep.mubr.msk.f32.mxu1 %vm27_vm1, %v19305_v9  ;;  %v3375_v41 = vpop.f32.mrf.mxu0  ;;  %v4450_v9 = vld [vmem:[#allocation2 + $0x2c0] sm:$0xff] }
 0x21c   :  { %v4085_v10 = vpop.f32.mrf.mxu1  ;;  %v3638_v15 = vadd.f32 %v3375_v41, %v19315_v49  ;;  %v19731_v11 = vadd.f32 %v16304_v7, %v3639_v40  ;;  %v23408_v40 = vld [vmem:[#allocation32_spill] sm:$0xff] }
 0x21d   :  { %v16209_v58 = vpop.f32.mrf.mxu0  ;;  %16452 = vmatmul.mubr.msk.f32.gmra.mxu0 %vm27_vm1, %v4448_v59 }
 0x21e   :  { %v16307_v31 = vpop.f32.mrf.mxu1  ;;  %16550 = vmatmul.mubr.msk.f32.gmra.mxu1 %vm27_vm1, %v23405_v54  ;;  %v3641_v46 = vadd.f32 %v16209_v58, %v23406_v26  ;;  %v19737_v20 = vadd.f32 %v4085_v10, %v3638_v15  ;;  %16454 = vmatprep.mubr.msk.f32.mxu0 %vm27_vm1, %v4449_v0  ;;  %v23409_v15 = vld [vmem:[#allocation81_spill] sm:$0xff] }
 0x21f   :  { %16552 = vmatprep.mubr.msk.f32.mxu1 %vm27_vm1, %v19323_v29  ;;  %v3385_v49 = vpop.f32.mrf.mxu0  ;;  %v23410_v0 = vld [vmem:[#allocation33_spill] sm:$0xff]  ;;  %v4452_v29 = vld [vmem:[#allocation2 + $0x2d8] sm:$0xff] }
 0x220   :  { %v19742_v7 = vpop.f32.mrf.mxu1  ;;  %v19745_v59 = vadd.f32 %v3385_v49, %v23408_v40  ;;  %v19747_v41 = vadd.f32 %v16307_v31, %v3641_v46  ;;  %v4453_v31 = vld [vmem:[#allocation2 + $0x2e8] sm:$0xff]  ;;  %v23412_v46 = vld [vmem:[#allocation34_spill] sm:$0xff] }
 0x221   :  { %23407 = vst [vmem:[#allocation54_spill] sm:$0xff] %v19742_v7  ;;  %v16212_v54 = vpop.f32.mrf.mxu0  ;;  %16455 = vmatmul.mubr.msk.f32.gmra.mxu0 %vm27_vm1, %v4450_v9 }
 0x222   :  { %v16310_v10 = vpop.f32.mrf.mxu1  ;;  %16553 = vmatmul.mubr.msk.f32.gmra.mxu1 %vm27_vm1, %v23409_v15  ;;  %v3643_v58 = vadd.f32 %v16212_v54, %v23410_v0  ;;  %16457 = vmatprep.mubr.msk.f32.mxu0 %vm27_vm1, %v4451_v63  ;;  %v23414_v54 = vld [vmem:[#allocation82_spill] sm:$0xff]  ;;  %v23415_v63 = vld [vmem:[#allocation35_spill] sm:$0xff] }
 0x223   :  { %16555 = vmatprep.mubr.msk.f32.mxu1 %vm27_vm1, %v19341_v4  ;;  %v3395_v26 = vpop.f32.mrf.mxu0  ;;  %v4454_v4 = vld [vmem:[#allocation2 + $0x2f0] sm:$0xff] }
 0x224   :  { %v19756_v49 = vpop.f32.mrf.mxu1  ;;  %v19759_v40 = vadd.f32 %v3395_v26, %v23412_v46  ;;  %v19761_v9 = vadd.f32 %v16310_v10, %v3643_v58  ;;  %v4455_v10 = vld [vmem:[#allocation2 + $0x300] sm:$0xff]  ;;  %v23417_v58 = vld [vmem:[#allocation36_spill] sm:$0xff] }
 0x225   :  { %23411 = vst [vmem:[#allocation55_spill] sm:$0xff] %v19756_v49  ;;  %v16215_v7 = vpop.f32.mrf.mxu0  ;;  %16458 = vmatmul.mubr.msk.f32.gmra.mxu0 %vm27_vm1, %v4452_v29 }
 0x226   :  { %23413 = vst [vmem:[#allocation56_spill] sm:$0xff] %v19759_v40  ;;  %v16313_v15 = vpop.f32.mrf.mxu1  ;;  %16556 = vmatmul.mubr.msk.f32.gmra.mxu1 %vm27_vm1, %v23414_v54  ;;  %v3645_v0 = vadd.f32 %v16215_v7, %v23415_v63  ;;  %16460 = vmatprep.mubr.msk.f32.mxu0 %vm27_vm1, %v4453_v31  ;;  %v23419_v7 = vld [vmem:[#allocation38_spill] sm:$0xff]  ;;  %v23420_v31 = vld [vmem:[#allocation37_spill] sm:$0xff] }
 0x227   :  { %16558 = vmatprep.mubr.msk.f32.mxu1 %vm27_vm1, %v19359_v48  ;;  %v3405_v49 = vpop.f32.mrf.mxu0  ;;  %v4456_v48 = vld [vmem:[#allocation2 + $0x308] sm:$0xff] }
 0x228   :  { %v19770_v26 = vpop.f32.mrf.mxu1  ;;  %v19773_v46 = vadd.f32 %v3405_v49, %v23417_v58  ;;  %v19775_v29 = vadd.f32 %v16313_v15, %v3645_v0  ;;  %v4457_v15 = vld [vmem:[#allocation2 + $0x318] sm:$0xff]  ;;  %v23422_v0 = vld [vmem:[#allocation39_spill] sm:$0xff] }
 0x229   :  { %23416 = vst [vmem:[#allocation57_spill] sm:$0xff] %v19770_v26  ;;  %v16218_v40 = vpop.f32.mrf.mxu0  ;;  %16461 = vmatmul.mubr.msk.f32.gmra.mxu0 %vm27_vm1, %v4454_v4 }
 0x22a   :  { %23418 = vst [vmem:[#allocation58_spill] sm:$0xff] %v19773_v46  ;;  %v16316_v54 = vpop.f32.mrf.mxu1  ;;  %16559 = vmatmul.mubr.msk.f32.gmra.mxu1 %vm27_vm1, %v23419_v7  ;;  %v3647_v63 = vadd.f32 %v16218_v40, %v23420_v31  ;;  %16463 = vmatprep.mubr.msk.f32.mxu0 %vm27_vm1, %v4455_v10  ;;  %v23424_v40 = vld [vmem:[#allocation40_spill] sm:$0xff]  ;;  %v23425_v10 = vld [vmem:[#allocation7_spill] sm:$0xff] }
 0x22b   :  { %16561 = vmatprep.mubr.msk.f32.mxu1 %vm27_vm1, %v19377_v35  ;;  %v3415_v26 = vpop.f32.mrf.mxu0  ;;  %v4458_v35 = vld [vmem:[#allocation2 + $0x320] sm:$0xff] }
 0x22c   :  { %v19784_v49 = vpop.f32.mrf.mxu1  ;;  %v19787_v58 = vadd.f32 %v3415_v26, %v23422_v0  ;;  %v19789_v4 = vadd.f32 %v16316_v54, %v3647_v63  ;;  %v4459_v54 = vld [vmem:[#allocation2 + $0x330] sm:$0xff]  ;;  %v23427_v63 = vld [vmem:[#allocation8_spill] sm:$0xff] }
 0x22d   :  { %23421 = vst [vmem:[#allocation59_spill] sm:$0xff] %v19784_v49  ;;  %v16221_v46 = vpop.f32.mrf.mxu0  ;;  %16464 = vmatmul.mubr.msk.f32.gmra.mxu0 %vm27_vm1, %v4456_v48 }
 0x22e   :  { %23423 = vst [vmem:[#allocation60_spill] sm:$0xff] %v19787_v58  ;;  %v16319_v7 = vpop.f32.mrf.mxu1  ;;  %16562 = vmatmul.mubr.msk.f32.gmra.mxu1 %vm27_vm1, %v23424_v40  ;;  %v3649_v31 = vadd.f32 %v16221_v46, %v23425_v10  ;;  %16466 = vmatprep.mubr.msk.f32.mxu0 %vm27_vm1, %v4457_v15  ;;  %v23429_v46 = vld [vmem:[#allocation42_spill] sm:$0xff]  ;;  %v23430_v15 = vld [vmem:[#allocation41_spill] sm:$0xff] }
 0x22f   :  { %16564 = vmatprep.mubr.msk.f32.mxu1 %vm27_vm1, %v19395_v51  ;;  %v3425_v49 = vpop.f32.mrf.mxu0  ;;  %v4460_v51 = vld [vmem:[#allocation2 + $0x338] sm:$0xff] }
 0x230   :  { %v19798_v26 = vpop.f32.mrf.mxu1  ;;  %v19801_v0 = vadd.f32 %v3425_v49, %v23427_v63  ;;  %v19803_v48 = vadd.f32 %v16319_v7, %v3649_v31  ;;  %v4461_v7 = vld [vmem:[#allocation2 + $0x348] sm:$0xff] }
 0x231   :  { %23426 = vst [vmem:[#allocation61_spill] sm:$0xff] %v19798_v26  ;;  %v16224_v58 = vpop.f32.mrf.mxu0  ;;  %16467 = vmatmul.mubr.msk.f32.gmra.mxu0 %vm27_vm1, %v4458_v35  ;;  %v5171_v31 = vld [vmem:[#allocation2 + $0x349] sm:$0xff] }
 0x232   :  { %23428 = vst [vmem:[#allocation62_spill] sm:$0xff] %v19801_v0  ;;  %v16322_v40 = vpop.f32.mrf.mxu1  ;;  %16565 = vmatmul.mubr.msk.f32.gmra.mxu1 %vm27_vm1, %v23429_v46  ;;  %v3651_v10 = vadd.f32 %v16224_v58, %v23430_v15  ;;  %16469 = vmatprep.mubr.msk.f32.mxu0 %vm27_vm1, %v4459_v54  ;;  %v23433_v54 = vld [vmem:[#allocation43_spill] sm:$0xff]  ;;  %v5172_v15 = vld [vmem:[#allocation2 + $0x351] sm:$0xff] }
 0x233   :  { %16567 = vmatprep.mubr.msk.f32.mxu1 %vm27_vm1, %v19413_v45  ;;  %v3435_v26 = vpop.f32.mrf.mxu0  ;;  %v4462_v45 = vld [vmem:[#allocation2 + $0x350] sm:$0xff] }
 0x234   :  { %v19812_v49 = vpop.f32.mrf.mxu1  ;;  %v19815_v63 = vadd.f32 %v3435_v26, %v19423_v30  ;;  %v19817_v35 = vadd.f32 %v16322_v40, %v3651_v10  ;;  %v5819_v26 = vld [vmem:[#allocation2 + $0x32] sm:$0xff] }
 0x235   :  { %23431 = vst [vmem:[#allocation63_spill] sm:$0xff] %v19812_v49  ;;  %v16227_v0 = vpop.f32.mrf.mxu0  ;;  %16470 = vmatmul.mubr.msk.f32.gmra.mxu0 %vm27_vm1, %v4460_v51 }
 0x236   :  { %23432 = vst [vmem:[#allocation64_spill] sm:$0xff] %v19815_v63  ;;  %v16325_v58 = vpop.f32.mrf.mxu1  ;;  %16568 = vmatmul.mubr.msk.f32.gmra.mxu1 %vm27_vm1, %v19427_v17  ;;  %v3653_v46 = vadd.f32 %v16227_v0, %v23433_v54  ;;  %16472 = vmatprep.mubr.msk.f32.mxu0 %vm27_vm1, %v4461_v7  ;;  %v5820_v7 = vld [vmem:[#allocation2 + $0x3a] sm:$0xff] }
 0x237   :  { %16570 = vmatprep.mubr.msk.f32.mxu1 %vm27_vm1, %v5171_v31  ;;  %v3445_v49 = vpop.f32.mrf.mxu0 }
 0x238   :  { %v19825_v30 = vpop.f32.mrf.mxu1  ;;  %v19828_v40 = vadd.f32 %v3445_v49, %v19437_v50  ;;  %v19830_v10 = vadd.f32 %v16325_v58, %v3653_v46 }
 0x239   :  { %23434 = vst [vmem:[#allocation65_spill] sm:$0xff] %v19825_v30  ;;  %v16230_v51 = vpop.f32.mrf.mxu0  ;;  %16473 = vmatmul.mubr.msk.f32.gmra.mxu0 %vm27_vm1, %v4462_v45  ;;  %v5821_v30 = vld [vmem:[#allocation2 + $0x4a] sm:$0xff] }
 0x23a   :  { %23435 = vst [vmem:[#allocation67_spill] sm:$0xff] %v19828_v40  ;;  %v16328_v17 = vpop.f32.mrf.mxu1  ;;  %16571 = vmatmul.mubr.msk.f32.gmra.mxu1 %vm27_vm1, %v5172_v15  ;;  %v3655_v0 = vadd.f32 %v16230_v51, %v19443_v53  ;;  %16575 = vmatprep.mubr.msk.f32.mxu0 %vm27_vm1, %v5819_v26  ;;  %v5822_v53 = vld [vmem:[#allocation2 + $0x52] sm:$0xff]  ;;  %v5823_v51 = vld [vmem:[#allocation2 + $0x62] sm:$0xff] }
 0x23b   :  { %v3455_v31 = vpop.f32.mrf.mxu0 }
 0x23c   :  { %v19836_v54 = vpop.f32.mrf.mxu1  ;;  %v19839_v50 = vadd.f32 %v3455_v31, %v19449_v62  ;;  %v19841_v49 = vadd.f32 %v16328_v17, %v3655_v0 }
 0x23d   :  { %23436 = vst [vmem:[#allocation66_spill] sm:$0xff] %v19836_v54  ;;  %v16233_v58 = vpop.f32.mrf.mxu0  ;;  %16576 = vmatmul.mubr.msk.f32.vlgmr.msra.gmra.mxu0 %vm27_vm1, %v5820_v7 }
 0x23e   :  { %23437 = vst [vmem:[#allocation68_spill] sm:$0xff] %v19839_v50  ;;  %v16331_v46 = vpop.f32.mrf.mxu1  ;;  %v3657_v45 = vadd.f32 %v16233_v58, %v19457_v37  ;;  %16578 = vmatprep.mubr.msk.f32.mxu0 %vm27_vm1, %v5821_v30  ;;  %v5824_v37 = vld [vmem:[#allocation2 + $0x6a] sm:$0xff]  ;;  %v5825_v58 = vld [vmem:[#allocation2 + $0x7a] sm:$0xff] }
 0x23f   :  { %v3465_v15 = vpop.f32.mrf.mxu0 }
 0x240   :  { %v19846_v26 = vpop.f32.mrf.mxu1  ;;  %v19849_v54 = vadd.f32 %v3465_v15, %v19463_v6  ;;  %v19851_v62 = vadd.f32 %v16331_v46, %v3657_v45 }
 0x241   :  { %v16236_v17 = vpop.f32.mrf.mxu0  ;;  %16579 = vmatmul.mubr.msk.f32.gmra.mxu0 %vm27_vm1, %v5822_v53 }
 0x242   :  { %v16334_v0 = vpop.f32.mrf.mxu1  ;;  %v3659_v7 = vadd.f32 %v16236_v17, %v19469_v28  ;;  %16581 = vmatprep.mubr.msk.f32.mxu0 %vm27_vm1, %v5823_v51  ;;  %v5826_v28 = vld [vmem:[#allocation2 + $0x82] sm:$0xff]  ;;  %v5827_v17 = vld [vmem:[#allocation2 + $0x92] sm:$0xff] }
 0x243   :  { %v3475_v30 = vpop.f32.mrf.mxu0 }
 0x244   :  { %v19856_v31 = vpop.f32.mrf.mxu1  ;;  %v19859_v50 = vadd.f32 %v3475_v30, %v19475_v2  ;;  %v19861_v6 = vadd.f32 %v16334_v0, %v3659_v7 }
 0x245   :  { %23438 = vst [vmem:[#allocation69_spill] sm:$0xff] %v19856_v31  ;;  %v16239_v46 = vpop.f32.mrf.mxu0  ;;  %16582 = vmatmul.mubr.msk.f32.gmra.mxu0 %vm27_vm1, %v5824_v37 }
 0x246   :  { %23439 = vst [vmem:[#allocation71_spill] sm:$0xff] %v19859_v50  ;;  %v16337_v45 = vpop.f32.mrf.mxu1  ;;  %v3661_v53 = vadd.f32 %v16239_v46, %v19481_v13  ;;  %16584 = vmatprep.mubr.msk.f32.mxu0 %vm27_vm1, %v5825_v58  ;;  %v5828_v13 = vld [vmem:[#allocation2 + $0x9a] sm:$0xff]  ;;  %v5829_v46 = vld [vmem:[#allocation2 + $0xaa] sm:$0xff] }
 0x247   :  { %v3485_v15 = vpop.f32.mrf.mxu0 }
 0x248   :  { %v19866_v51 = vpop.f32.mrf.mxu1  ;;  %v19869_v40 = vadd.f32 %v3485_v15, %v19487_v8  ;;  %v19871_v2 = vadd.f32 %v16337_v45, %v3661_v53 }
 0x249   :  { %23440 = vst [vmem:[#allocation70_spill] sm:$0xff] %v19866_v51  ;;  %v16242_v0 = vpop.f32.mrf.mxu0  ;;  %16585 = vmatmul.mubr.msk.f32.gmra.mxu0 %vm27_vm1, %v5826_v28 }
 0x24a   :  { %23441 = vst [vmem:[#allocation72_spill] sm:$0xff] %v19869_v40  ;;  %v16340_v7 = vpop.f32.mrf.mxu1  ;;  %v3663_v37 = vadd.f32 %v16242_v0, %v19493_v43  ;;  %16587 = vmatprep.mubr.msk.f32.mxu0 %vm27_vm1, %v5827_v17  ;;  %v5830_v43 = vld [vmem:[#allocation2 + $0xb2] sm:$0xff]  ;;  %v5831_v0 = vld [vmem:[#allocation2 + $0xc2] sm:$0xff] }
 0x24b   :  { %v3495_v30 = vpop.f32.mrf.mxu0 }
 0x24c   :  { %v19876_v58 = vpop.f32.mrf.mxu1  ;;  %v19879_v51 = vadd.f32 %v3495_v30, %v19499_v32  ;;  %v19881_v8 = vadd.f32 %v16340_v7, %v3663_v37 }
 0x24d   :  { %23442 = vst [vmem:[#allocation73_spill] sm:$0xff] %v19876_v58  ;;  %v16245_v45 = vpop.f32.mrf.mxu0  ;;  %16588 = vmatmul.mubr.msk.f32.gmra.mxu0 %vm27_vm1, %v5828_v13 }
 0x24e   :  { %23443 = vst [vmem:[#allocation74_spill] sm:$0xff] %v19879_v51  ;;  %v16343_v53 = vpop.f32.mrf.mxu1  ;;  %v3665_v28 = vadd.f32 %v16245_v45, %v19505_v39  ;;  %16590 = vmatprep.mubr.msk.f32.mxu0 %vm27_vm1, %v5829_v46  ;;  %v5832_v39 = vld [vmem:[#allocation2 + $0xca] sm:$0xff]  ;;  %v5833_v45 = vld [vmem:[#allocation2 + $0xda] sm:$0xff] }
 0x24f   :  { %v3505_v15 = vpop.f32.mrf.mxu0 }
 0x250   :  { %v19886_v17 = vpop.f32.mrf.mxu1  ;;  %v19889_v58 = vadd.f32 %v3505_v15, %v19511_v5  ;;  %v19891_v32 = vadd.f32 %v16343_v53, %v3665_v28 }
 0x251   :  { %23444 = vst [vmem:[#allocation9_spill] sm:$0xff] %v19886_v17  ;;  %v16248_v7 = vpop.f32.mrf.mxu0  ;;  %16591 = vmatmul.mubr.msk.f32.gmra.mxu0 %vm27_vm1, %v5830_v43 }
 0x252   :  { %23445 = vst [vmem:[#allocation10_spill] sm:$0xff] %v19889_v58  ;;  %v16346_v37 = vpop.f32.mrf.mxu1  ;;  %v3667_v13 = vadd.f32 %v16248_v7, %v19517_v3  ;;  %16593 = vmatprep.mubr.msk.f32.mxu0 %vm27_vm1, %v5831_v0  ;;  %v5834_v3 = vld [vmem:[#allocation2 + $0xe2] sm:$0xff]  ;;  %v5835_v7 = vld [vmem:[#allocation2 + $0xf2] sm:$0xff] }
 0x253   :  { %v3515_v30 = vpop.f32.mrf.mxu0 }
 0x254   :  { %v19896_v46 = vpop.f32.mrf.mxu1  ;;  %v19899_v17 = vadd.f32 %v3515_v30, %v19523_v23  ;;  %v19901_v5 = vadd.f32 %v16346_v37, %v3667_v13 }
 0x255   :  { %23446 = vst [vmem:[#allocation75_spill] sm:$0xff] %v19896_v46  ;;  %v16251_v53 = vpop.f32.mrf.mxu0  ;;  %16594 = vmatmul.mubr.msk.f32.gmra.mxu0 %vm27_vm1, %v5832_v39 }
 0x256   :  { %23447 = vst [vmem:[#allocation76_spill] sm:$0xff] %v19899_v17  ;;  %v16349_v28 = vpop.f32.mrf.mxu1  ;;  %v3669_v43 = vadd.f32 %v16251_v53, %v19529_v47  ;;  %16596 = vmatprep.mubr.msk.f32.mxu0 %vm27_vm1, %v5833_v45  ;;  %v5836_v47 = vld [vmem:[#allocation2 + $0xfa] sm:$0xff]  ;;  %v5837_v53 = vld [vmem:[#allocation2 + $0x10a] sm:$0xff] }
 0x257   :  { %v3525_v15 = vpop.f32.mrf.mxu0  ;;  %v23457_v17 = vld [vmem:[#allocation45_spill] sm:$0xff] }
 0x258   :  { %v19906_v0 = vpop.f32.mrf.mxu1  ;;  %v19909_v46 = vadd.f32 %v3525_v15, %v19535_v55  ;;  %v19911_v23 = vadd.f32 %v16349_v28, %v3669_v43 }
 0x259   :  { %23448 = vst [vmem:[#allocation11_spill] sm:$0xff] %v19906_v0  ;;  %v16254_v37 = vpop.f32.mrf.mxu0  ;;  %16597 = vmatmul.mubr.msk.f32.gmra.mxu0 %vm27_vm1, %v5834_v3 }
 0x25a   :  { %23449 = vst [vmem:[#allocation12_spill] sm:$0xff] %v19909_v46  ;;  %v16352_v13 = vpop.f32.mrf.mxu1  ;;  %v3671_v39 = vadd.f32 %v16254_v37, %v19541_v21  ;;  %16599 = vmatprep.mubr.msk.f32.mxu0 %vm27_vm1, %v5835_v7  ;;  %v5838_v21 = vld [vmem:[#allocation2 + $0x112] sm:$0xff]  ;;  %v5839_v37 = vld [vmem:[#allocation2 + $0x122] sm:$0xff] }
 0x25b   :  { %v3535_v30 = vpop.f32.mrf.mxu0 }
 0x25c   :  { %v19916_v45 = vpop.f32.mrf.mxu1  ;;  %v19919_v0 = vadd.f32 %v3535_v30, %v19547_v1  ;;  %v19921_v55 = vadd.f32 %v16352_v13, %v3671_v39 }
 0x25d   :  { %23450 = vst [vmem:[#allocation13_spill] sm:$0xff] %v19916_v45  ;;  %v16257_v28 = vpop.f32.mrf.mxu0  ;;  %16600 = vmatmul.mubr.msk.f32.gmra.mxu0 %vm27_vm1, %v5836_v47  ;;  %v23453_v45 = vld [vmem:[#allocation44_spill] sm:$0xff]  ;;  %v23455_v47 = vld [vmem:[#allocation46_spill] sm:$0xff] }
 0x25e   :  { %23451 = vst [vmem:[#allocation77_spill] sm:$0xff] %v19919_v0  ;;  %v16355_v43 = vpop.f32.mrf.mxu1  ;;  %v3673_v3 = vadd.f32 %v16257_v28, %v19553_v34  ;;  %16602 = vmatprep.mubr.msk.f32.mxu0 %vm27_vm1, %v5837_v53  ;;  %v5840_v34 = vld [vmem:[#allocation2 + $0x12a] sm:$0xff]  ;;  %v5841_v0 = vld [vmem:[#allocation2 + $0x13a] sm:$0xff] }
 0x25f   :  { %v3545_v15 = vpop.f32.mrf.mxu0 }
 0x260   :  { %v19926_v7 = vpop.f32.mrf.mxu1  ;;  %v19929_v46 = vadd.f32 %v3545_v15, %v23453_v45  ;;  %v19931_v1 = vadd.f32 %v16355_v43, %v3673_v3 }
 0x261   :  { %23452 = vst [vmem:[#allocation78_spill] sm:$0xff] %v19926_v7  ;;  %v16260_v13 = vpop.f32.mrf.mxu0  ;;  %16603 = vmatmul.mubr.msk.f32.gmra.mxu0 %vm27_vm1, %v5838_v21  ;;  %v23459_v21 = vld [vmem:[#allocation47_spill] sm:$0xff] }
 0x262   :  { %23454 = vst [vmem:[#allocation79_spill] sm:$0xff] %v19929_v46  ;;  %v16358_v39 = vpop.f32.mrf.mxu1  ;;  %v3675_v30 = vadd.f32 %v16260_v13, %v23455_v47  ;;  %16605 = vmatprep.mubr.msk.f32.mxu0 %vm27_vm1, %v5839_v37  ;;  %v5842_v13 = vld [vmem:[#allocation2 + $0x142] sm:$0xff]  ;;  %v5843_v46 = vld [vmem:[#allocation2 + $0x152] sm:$0xff] }
 0x263   :  { %v3555_v53 = vpop.f32.mrf.mxu0 }
 0x264   :  { %v19936_v28 = vpop.f32.mrf.mxu1  ;;  %v19939_v7 = vadd.f32 %v3555_v53, %v23457_v17  ;;  %v19941_v45 = vadd.f32 %v16358_v39, %v3675_v30 }
 0x265   :  { %23456 = vst [vmem:[#allocation80_spill] sm:$0xff] %v19936_v28  ;;  %v16263_v43 = vpop.f32.mrf.mxu0  ;;  %16606 = vmatmul.mubr.msk.f32.gmra.mxu0 %vm27_vm1, %v5840_v34  ;;  %v23461_v28 = vld [vmem:[#allocation48_spill] sm:$0xff]  ;;  %v23463_v34 = vld [vmem:[#allocation49_spill] sm:$0xff] }
 0x266   :  { %23458 = vst [vmem:[#allocation14_spill] sm:$0xff] %v19939_v7  ;;  %v16361_v3 = vpop.f32.mrf.mxu1  ;;  %v3677_v15 = vadd.f32 %v16263_v43, %v23459_v21  ;;  %16608 = vmatprep.mubr.msk.f32.mxu0 %vm27_vm1, %v5841_v0  ;;  %v5844_v43 = vld [vmem:[#allocation2 + $0x15a] sm:$0xff]  ;;  %v5845_v7 = vld [vmem:[#allocation2 + $0x16a] sm:$0xff] }
 0x267   :  { %v3565_v37 = vpop.f32.mrf.mxu0 }
 0x268   :  { %v19946_v47 = vpop.f32.mrf.mxu1  ;;  %v19949_v58 = vadd.f32 %v3565_v37, %v23461_v28  ;;  %v19951_v17 = vadd.f32 %v16361_v3, %v3677_v15 }
 0x269   :  { %23460 = vst [vmem:[#allocation15_spill] sm:$0xff] %v19946_v47  ;;  %v16266_v39 = vpop.f32.mrf.mxu0  ;;  %16609 = vmatmul.mubr.msk.f32.gmra.mxu0 %vm27_vm1, %v5842_v13  ;;  %v23465_v47 = vld [vmem:[#allocation50_spill] sm:$0xff]  ;;  %v23467_v13 = vld [vmem:[#allocation51_spill] sm:$0xff] }
 0x26a   :  { %23462 = vst [vmem:[#allocation16_spill] sm:$0xff] %v19949_v58  ;;  %v16364_v30 = vpop.f32.mrf.mxu1  ;;  %v3679_v53 = vadd.f32 %v16266_v39, %v23463_v34  ;;  %16611 = vmatprep.mubr.msk.f32.mxu0 %vm27_vm1, %v5843_v46  ;;  %v5846_v39 = vld [vmem:[#allocation2 + $0x172] sm:$0xff]  ;;  %v5847_v58 = vld [vmem:[#allocation2 + $0x182] sm:$0xff] }
 0x26b   :  { %v3575_v0 = vpop.f32.mrf.mxu0 }
 0x26c   :  { %v19956_v21 = vpop.f32.mrf.mxu1  ;;  %v19959_v51 = vadd.f32 %v3575_v0, %v23465_v47  ;;  %v19961_v28 = vadd.f32 %v16364_v30, %v3679_v53 }
 0x26d   :  { %23464 = vst [vmem:[#allocation17_spill] sm:$0xff] %v19956_v21  ;;  %v16269_v3 = vpop.f32.mrf.mxu0  ;;  %16612 = vmatmul.mubr.msk.f32.gmra.mxu0 %vm27_vm1, %v5844_v43  ;;  %v23470_v43 = vld [vmem:[#allocation52_spill] sm:$0xff] }
 0x26e   :  { %23466 = vst [vmem:[#allocation18_spill] sm:$0xff] %v19959_v51  ;;  %v16367_v15 = vpop.f32.mrf.mxu1  ;;  %v3681_v37 = vadd.f32 %v16269_v3, %v23467_v13  ;;  %16614 = vmatprep.mubr.msk.f32.mxu0 %vm27_vm1, %v5845_v7  ;;  %v5848_v3 = vld [vmem:[#allocation2 + $0x18a] sm:$0xff]  ;;  %v5849_v51 = vld [vmem:[#allocation2 + $0x19a] sm:$0xff] }
 0x26f   :  { %v3585_v46 = vpop.f32.mrf.mxu0 }
 0x270   :  { %v19966_v34 = vpop.f32.mrf.mxu1  ;;  %v19969_v21 = vadd.f32 %v3585_v46, %v19607_v61  ;;  %v19971_v47 = vadd.f32 %v16367_v15, %v3681_v37 }
 0x271   :  { %23468 = vst [vmem:[#allocation19_spill] sm:$0xff] %v19966_v34  ;;  %v16272_v30 = vpop.f32.mrf.mxu0  ;;  %16615 = vmatmul.mubr.msk.f32.gmra.mxu0 %vm27_vm1, %v5846_v39  ;;  %v23473_v39 = vld [vmem:[#allocation53_spill] sm:$0xff] }
 0x272   :  { %23469 = vst [vmem:[#allocation20_spill] sm:$0xff] %v19969_v21  ;;  %v16370_v53 = vpop.f32.mrf.mxu1  ;;  %v3683_v0 = vadd.f32 %v16272_v30, %v23470_v43  ;;  %16617 = vmatprep.mubr.msk.f32.mxu0 %vm27_vm1, %v5847_v58  ;;  %v5850_v30 = vld [vmem:[#allocation2 + $0x1a2] sm:$0xff] }
 0x273   :  { %v3595_v7 = vpop.f32.mrf.mxu0  ;;  %v5851_v21 = vld [vmem:[#allocation2 + $0x1e2] sm:$0xff] }
 0x274   :  { %v19976_v13 = vpop.f32.mrf.mxu1  ;;  %v19979_v34 = vadd.f32 %v3595_v7, %v19619_v42  ;;  %v19981_v61 = vadd.f32 %v16370_v53, %v3683_v0  ;;  %v5852_v7 = vld [vmem:[#allocation2 + $0x1ea] sm:$0xff] }
 0x275   :  { %23471 = vst [vmem:[#allocation21_spill] sm:$0xff] %v19976_v13  ;;  %v16275_v15 = vpop.f32.mrf.mxu0  ;;  %16618 = vmatmul.mubr.msk.f32.gmra.mxu0 %vm27_vm1, %v5848_v3 }
 0x276   :  { %23472 = vst [vmem:[#allocation22_spill] sm:$0xff] %v19979_v34  ;;  %v16373_v37 = vpop.f32.mrf.mxu1  ;;  %v3685_v46 = vadd.f32 %v16275_v15, %v23473_v39  ;;  %16620 = vmatprep.mubr.msk.f32.mxu0 %vm27_vm1, %v5849_v51  ;;  %v5853_v15 = vld [vmem:[#allocation2 + $0x1fa] sm:$0xff] }
 0x277   :  { %v3605_v58 = vpop.f32.mrf.mxu0 }
 0x278   :  { %v19986_v43 = vpop.f32.mrf.mxu1  ;;  %v19989_v13 = vadd.f32 %v3605_v58, %v19629_v14  ;;  %v19991_v42 = vadd.f32 %v16373_v37, %v3685_v46  ;;  %v5854_v46 = vld [vmem:[#allocation2 + $0x202] sm:$0xff] }
 0x279   :  { %23474 = vst [vmem:[#allocation23_spill] sm:$0xff] %v19986_v43  ;;  %v16278_v53 = vpop.f32.mrf.mxu0  ;;  %16621 = vmatmul.mubr.msk.f32.gmra.mxu0 %vm27_vm1, %v5850_v30  ;;  %v5855_v30 = vld [vmem:[#allocation2 + $0x212] sm:$0xff] }
 0x27a   :  { %23475 = vst [vmem:[#allocation24_spill] sm:$0xff] %v19989_v13  ;;  %v16376_v0 = vpop.f32.mrf.mxu1  ;;  %v3687_v3 = vadd.f32 %v16278_v53, %v19635_v38  ;;  %16623 = vmatprep.mubr.msk.f32.mxu0 %vm27_vm1, %v5851_v21  ;;  %v5856_v53 = vld [vmem:[#allocation2 + $0x21a] sm:$0xff] }
 0x27b   :  { %v3615_v51 = vpop.f32.mrf.mxu0 }
 0x27c   :  { %v19997_v39 = vadd.f32 %v3615_v51, %v19640_v33  ;;  %v19999_v43 = vadd.f32 %v16376_v0, %v3687_v3  ;;  %v5858_v51 = vld [vmem:[#allocation2 + $0x232] sm:$0xff] }
 0x27d   :  { %v16381_v14 = vpop.f32.mrf.mxu0  ;;  %16624 = vmatmul.mubr.msk.f32.gmra.mxu0 %vm27_vm1, %v5852_v7 }
 0x27e   :  { %23476 = vst [vmem:[#allocation25_spill] sm:$0xff] %v19997_v39  ;;  %v20003_v37 = vadd.f32 %v16381_v14, %v19647_v52  ;;  %16626 = vmatprep.mubr.msk.f32.mxu0 %vm27_vm1, %v5853_v15  ;;  %v5857_v52 = vld [vmem:[#allocation2 + $0x22a] sm:$0xff] }
 0x27f   :  { %v4726_v38 = vpop.f32.mrf.mxu0 }
 0x280   :  { %v20007_v21 = vadd.f32 %v4726_v38, %v19653_v57  ;;  %v5860_v38 = vld [vmem:[#allocation2 + $0x24a] sm:$0xff] }
 0x281   :  { %v16384_v58 = vpop.f32.mrf.mxu0  ;;  %16627 = vmatmul.mubr.msk.f32.gmra.mxu0 %vm27_vm1, %v5854_v46 }
 0x282   :  { %v20011_v33 = vadd.f32 %v16384_v58, %v19659_v36  ;;  %16629 = vmatprep.mubr.msk.f32.mxu0 %vm27_vm1, %v5855_v30  ;;  %v5859_v36 = vld [vmem:[#allocation2 + $0x242] sm:$0xff] }
 0x283   :  { %v4736_v0 = vpop.f32.mrf.mxu0 }
 0x284   :  { %v20015_v3 = vadd.f32 %v4736_v0, %v19665_v44  ;;  %v5862_v0 = vld [vmem:[#allocation2 + $0x262] sm:$0xff] }
 0x285   :  { %v16387_v7 = vpop.f32.mrf.mxu0  ;;  %16630 = vmatmul.mubr.msk.f32.gmra.mxu0 %vm27_vm1, %v5856_v53 }
 0x286   :  { %v20019_v57 = vadd.f32 %v16387_v7, %v19671_v16  ;;  %16632 = vmatprep.mubr.msk.f32.mxu0 %vm27_vm1, %v5857_v52  ;;  %v5861_v16 = vld [vmem:[#allocation2 + $0x25a] sm:$0xff] }
 0x287   :  { %v4746_v15 = vpop.f32.mrf.mxu0 }
 0x288   :  { %v20023_v14 = vadd.f32 %v4746_v15, %v19677_v56  ;;  %v5864_v15 = vld [vmem:[#allocation2 + $0x27a] sm:$0xff] }
 0x289   :  { %v16390_v46 = vpop.f32.mrf.mxu0  ;;  %16633 = vmatmul.mubr.msk.f32.gmra.mxu0 %vm27_vm1, %v5858_v51 }
 0x28a   :  { %v20027_v44 = vadd.f32 %v16390_v46, %v19683_v19  ;;  %16635 = vmatprep.mubr.msk.f32.mxu0 %vm27_vm1, %v5859_v36  ;;  %v5863_v19 = vld [vmem:[#allocation2 + $0x272] sm:$0xff]  ;;  %v20046_v36 = vpop.f32.mrf.mxu1  ;;  %v5865_v46 = vld [vmem:[#allocation2 + $0x28a] sm:$0xff] }
 0x28b   :  { %v4756_v30 = vpop.f32.mrf.mxu0  ;;  %23477 = vst [vmem:[#allocation26_spill] sm:$0xff] %v20046_v36 }
 0x28c   :  { %v20031_v58 = vadd.f32 %v4756_v30, %v19689_v27 }
 0x28d   :  { %v16393_v53 = vpop.f32.mrf.mxu0  ;;  %16636 = vmatmul.mubr.msk.f32.gmra.mxu0 %vm27_vm1, %v5860_v38 }
 0x28e   :  { %v20035_v56 = vadd.f32 %v16393_v53, %v19695_v25  ;;  %16638 = vmatprep.mubr.msk.f32.mxu0 %vm27_vm1, %v5861_v16  ;;  %v20056_v16 = vpop.f32.mrf.mxu1 }
 0x28f   :  { %v4766_v52 = vpop.f32.mrf.mxu0 }
 0x290   :  { %v20039_v7 = vadd.f32 %v4766_v52, %v19701_v60 }
 0x291   :  { %v16396_v51 = vpop.f32.mrf.mxu0  ;;  %16639 = vmatmul.mubr.msk.f32.gmra.mxu0 %vm27_vm1, %v5862_v0  ;;  %v5867_v0 = vld [vmem:[#allocation2 + $0x2a2] sm:$0xff] }
 0x292   :  { %v20043_v27 = vadd.f32 %v16396_v51, %v19707_v12  ;;  %16641 = vmatprep.mubr.msk.f32.mxu0 %vm27_vm1, %v5863_v19  ;;  %v5866_v12 = vld [vmem:[#allocation2 + $0x292] sm:$0xff]  ;;  %v20066_v51 = vpop.f32.mrf.mxu1 }
 0x293   :  { %v4776_v25 = vpop.f32.mrf.mxu0 }
 0x294   :  { %v20049_v38 = vadd.f32 %v4776_v25, %v19713_v18  ;;  %v5869_v25 = vld [vmem:[#allocation2 + $0x2ba] sm:$0xff] }
 0x295   :  { %v16399_v30 = vpop.f32.mrf.mxu0  ;;  %16642 = vmatmul.mubr.msk.f32.gmra.mxu0 %vm27_vm1, %v5864_v15 }
 0x296   :  { %v20053_v60 = vadd.f32 %v16399_v30, %v19719_v22  ;;  %16644 = vmatprep.mubr.msk.f32.mxu0 %vm27_vm1, %v5865_v46  ;;  %v5868_v22 = vld [vmem:[#allocation2 + $0x2aa] sm:$0xff] }
 0x297   :  { %v4786_v53 = vpop.f32.mrf.mxu0 }
 0x298   :  { %v20059_v52 = vadd.f32 %v4786_v53, %v19725_v24 }
 0x299   :  { %v16402_v19 = vpop.f32.mrf.mxu0  ;;  %16645 = vmatmul.mubr.msk.f32.gmra.mxu0 %vm27_vm1, %v5866_v12  ;;  %v20076_v12 = vpop.f32.mrf.mxu1 }
 0x29a   :  { %v20063_v18 = vadd.f32 %v16402_v19, %v19731_v11  ;;  %16647 = vmatprep.mubr.msk.f32.mxu0 %vm27_vm1, %v5867_v0  ;;  %v5870_v11 = vld [vmem:[#allocation2 + $0x2c2] sm:$0xff]  ;;  %v5871_v0 = vld [vmem:[#allocation2 + $0x2d2] sm:$0xff] }
 0x29b   :  { %v4796_v15 = vpop.f32.mrf.mxu0 }
 0x29c   :  { %v20069_v46 = vadd.f32 %v4796_v15, %v19737_v20  ;;  %v20085_v15 = vpop.f32.mrf.mxu1 }
 0x29d   :  { %v16405_v30 = vpop.f32.mrf.mxu0  ;;  %16648 = vmatmul.mubr.msk.f32.gmra.mxu0 %vm27_vm1, %v5868_v22  ;;  %v5872_v22 = vld [vmem:[#allocation2 + $0x2da] sm:$0xff] }
 0x29e   :  { %v20073_v24 = vadd.f32 %v16405_v30, %v19747_v41  ;;  %16650 = vmatprep.mubr.msk.f32.mxu0 %vm27_vm1, %v5869_v25  ;;  %v5873_v25 = vld [vmem:[#allocation2 + $0x2ea] sm:$0xff]  ;;  %v20094_v39 = vpop.f32.mrf.mxu1 }
 0x29f   :  { %v20078_v53 = vpop.f32.mrf.mxu0 }
 0x2a0   :  { %v20103_v34 = vpop.f32.mrf.mxu1 }
 0x2a1   :  { %v16408_v19 = vpop.f32.mrf.mxu0  ;;  %16651 = vmatmul.mubr.msk.f32.gmra.mxu0 %vm27_vm1, %v5870_v11  ;;  %v5874_v11 = vld [vmem:[#allocation2 + $0x2f2] sm:$0xff] }
 0x2a2   :  { %v20082_v20 = vadd.f32 %v16408_v19, %v19761_v9  ;;  %16653 = vmatprep.mubr.msk.f32.mxu0 %vm27_vm1, %v5871_v0  ;;  %v5875_v0 = vld [vmem:[#allocation2 + $0x302] sm:$0xff]  ;;  %v20112_v31 = vpop.f32.mrf.mxu1 }
 0x2a3   :  { %v20087_v41 = vpop.f32.mrf.mxu0 }
 0x2a4   :  { %v20121_v63 = vpop.f32.mrf.mxu1 }
 0x2a5   :  { %v16411_v30 = vpop.f32.mrf.mxu0  ;;  %16654 = vmatmul.mubr.msk.f32.gmra.mxu0 %vm27_vm1, %v5872_v22  ;;  %v5876_v22 = vld [vmem:[#allocation2 + $0x30a] sm:$0xff] }
 0x2a6   :  { %v20091_v36 = vadd.f32 %v16411_v30, %v19775_v29  ;;  %16656 = vmatprep.mubr.msk.f32.mxu0 %vm27_vm1, %v5873_v25  ;;  %v5877_v25 = vld [vmem:[#allocation2 + $0x31a] sm:$0xff] }
 0x2a7   :  { %v20096_v9 = vpop.f32.mrf.mxu0 }
 0x2a9   :  { %v16414_v19 = vpop.f32.mrf.mxu0  ;;  %16657 = vmatmul.mubr.msk.f32.gmra.mxu0 %vm27_vm1, %v5874_v11  ;;  %v5878_v11 = vld [vmem:[#allocation2 + $0x322] sm:$0xff] }
 0x2aa   :  { %v20100_v13 = vadd.f32 %v16414_v19, %v19789_v4  ;;  %16659 = vmatprep.mubr.msk.f32.mxu0 %vm27_vm1, %v5875_v0  ;;  %v5879_v0 = vld [vmem:[#allocation2 + $0x332] sm:$0xff] }
 0x2ab   :  { %v20105_v29 = vpop.f32.mrf.mxu0 }
 0x2ad   :  { %v16417_v30 = vpop.f32.mrf.mxu0  ;;  %16660 = vmatmul.mubr.msk.f32.gmra.mxu0 %vm27_vm1, %v5876_v22  ;;  %v5880_v22 = vld [vmem:[#allocation2 + $0x33a] sm:$0xff] }
 0x2ae   :  { %v20109_v40 = vadd.f32 %v16417_v30, %v19803_v48  ;;  %16662 = vmatprep.mubr.msk.f32.mxu0 %vm27_vm1, %v5877_v25  ;;  %v5881_v25 = vld [vmem:[#allocation2 + $0x34a] sm:$0xff] }
 0x2af   :  { %v20114_v4 = vpop.f32.mrf.mxu0 }
 0x2b0   :  { %23478 = vst [vmem:[#allocation27_spill] sm:$0xff] %v20109_v40  ;;  %23479 = vst [vmem:[#allocation28_spill] sm:$0xff] %v20114_v4  ;;  %v20130_v4 = vpop.f32.mrf.mxu1 }
 0x2b1   :  { %v16420_v19 = vpop.f32.mrf.mxu0  ;;  %16663 = vmatmul.mubr.msk.f32.gmra.mxu0 %vm27_vm1, %v5878_v11  ;;  %v5882_v11 = vld [vmem:[#allocation2 + $0x352] sm:$0xff] }
 0x2b2   :  { %v20118_v50 = vadd.f32 %v16420_v19, %v19817_v35  ;;  %16665 = vmatprep.mubr.msk.f32.mxu0 %vm27_vm1, %v5879_v0 }
 0x2b3   :  { %v20123_v48 = vpop.f32.mrf.mxu0 }
 0x2b4   :  { %23480 = vst [vmem:[#allocation29_spill] sm:$0xff] %v20118_v50  ;;  %23481 = vst [vmem:[#allocation30_spill] sm:$0xff] %v20123_v48  ;;  %v20138_v50 = vpop.f32.mrf.mxu1 }
 0x2b5   :  { %v16423_v30 = vpop.f32.mrf.mxu0  ;;  %16666 = vmatmul.mubr.msk.f32.gmra.mxu0 %vm27_vm1, %v5880_v22 }
 0x2b6   :  { %v20127_v40 = vadd.f32 %v16423_v30, %v19830_v10  ;;  %16668 = vmatprep.mubr.msk.f32.mxu0 %vm27_vm1, %v5881_v25  ;;  %v20145_v25 = vpop.f32.mrf.mxu1 }
 0x2b7   :  { %v20132_v35 = vpop.f32.mrf.mxu0 }
 0x2b8   :  { %23482 = vst [vmem:[#allocation31_spill] sm:$0xff] %v20127_v40  ;;  %23483 = vst [vmem:[#allocation32_spill] sm:$0xff] %v20132_v35 }
 0x2b9   :  { %v16426_v0 = vpop.f32.mrf.mxu0  ;;  %16669 = vmatmul.mubr.msk.f32.gmra.mxu0 %vm27_vm1, %v5882_v11  ;;  %v20152_v11 = vpop.f32.mrf.mxu1 }
 0x2ba   :  { %v20136_v19 = vadd.f32 %v16426_v0, %v19841_v49 }
 0x2bb   :  { %v20140_v48 = vpop.f32.mrf.mxu0 }
 0x2bc   :  { %23484 = vst [vmem:[#allocation81_spill] sm:$0xff] %v20136_v19  ;;  %23485 = vst [vmem:[#allocation33_spill] sm:$0xff] %v20140_v48  ;;  %v20159_v48 = vpop.f32.mrf.mxu1 }
 0x2bd   :  { %v16429_v22 = vpop.f32.mrf.mxu0 }
 0x2be   :  { %v20143_v10 = vadd.f32 %v16429_v22, %v19851_v62 }
 0x2bf   :  { %v20147_v30 = vpop.f32.mrf.mxu0 }
 0x2c0   :  { %23486 = vst [vmem:[#allocation34_spill] sm:$0xff] %v20143_v10  ;;  %23487 = vst [vmem:[#allocation82_spill] sm:$0xff] %v20147_v30  ;;  %v20166_v30 = vpop.f32.mrf.mxu1 }
 0x2c1   :  { %v16432_v40 = vpop.f32.mrf.mxu0 }
 0x2c2   :  { %v20150_v35 = vadd.f32 %v16432_v40, %v19861_v6 }
 0x2c3   :  { %v20154_v49 = vpop.f32.mrf.mxu0 }
 0x2c4   :  { %23488 = vst [vmem:[#allocation35_spill] sm:$0xff] %v20150_v35  ;;  %23489 = vst [vmem:[#allocation36_spill] sm:$0xff] %v20154_v49  ;;  %v20173_v49 = vpop.f32.mrf.mxu1 }
 0x2c5   :  { %v16435_v0 = vpop.f32.mrf.mxu0 }
 0x2c6   :  { %v20157_v19 = vadd.f32 %v16435_v0, %v19871_v2 }
 0x2c7   :  { %v20161_v62 = vpop.f32.mrf.mxu0 }
 0x2c8   :  { %23490 = vst [vmem:[#allocation38_spill] sm:$0xff] %v20157_v19  ;;  %23491 = vst [vmem:[#allocation37_spill] sm:$0xff] %v20161_v62  ;;  %v20180_v62 = vpop.f32.mrf.mxu1 }
 0x2c9   :  { %v16438_v22 = vpop.f32.mrf.mxu0 }
 0x2ca   :  { %v20164_v10 = vadd.f32 %v16438_v22, %v19881_v8 }
 0x2cb   :  { %v20168_v40 = vpop.f32.mrf.mxu0 }
 0x2cc   :  { %23492 = vst [vmem:[#allocation39_spill] sm:$0xff] %v20164_v10  ;;  %23493 = vst [vmem:[#allocation40_spill] sm:$0xff] %v20168_v40  ;;  %v20187_v40 = vpop.f32.mrf.mxu1 }
 0x2cd   :  { %v16441_v6 = vpop.f32.mrf.mxu0 }
 0x2ce   :  { %v20171_v35 = vadd.f32 %v16441_v6, %v19891_v32 }
 0x2cf   :  { %v20175_v2 = vpop.f32.mrf.mxu0 }
 0x2d0   :  { %23494 = vst [vmem:[#allocation7_spill] sm:$0xff] %v20171_v35  ;;  %23495 = vst [vmem:[#allocation8_spill] sm:$0xff] %v20175_v2  ;;  %v20194_v2 = vpop.f32.mrf.mxu1 }
 0x2d1   :  { %v16444_v0 = vpop.f32.mrf.mxu0 }
 0x2d2   :  { %v20178_v19 = vadd.f32 %v16444_v0, %v19901_v5 }
 0x2d3   :  { %v20182_v8 = vpop.f32.mrf.mxu0 }
 0x2d4   :  { %23496 = vst [vmem:[#allocation42_spill] sm:$0xff] %v20178_v19  ;;  %23497 = vst [vmem:[#allocation41_spill] sm:$0xff] %v20182_v8  ;;  %v20201_v8 = vpop.f32.mrf.mxu1 }
 0x2d5   :  { %v16447_v22 = vpop.f32.mrf.mxu0 }
 0x2d6   :  { %v20185_v10 = vadd.f32 %v16447_v22, %v19911_v23 }
 0x2d7   :  { %v20189_v32 = vpop.f32.mrf.mxu0 }
 0x2d8   :  { %23498 = vst [vmem:[#allocation43_spill] sm:$0xff] %v20185_v10  ;;  %23499 = vst [vmem:[#allocation44_spill] sm:$0xff] %v20189_v32  ;;  %v20208_v32 = vpop.f32.mrf.mxu1 }
 0x2d9   :  { %v16450_v6 = vpop.f32.mrf.mxu0 }
 0x2da   :  { %v20192_v35 = vadd.f32 %v16450_v6, %v19921_v55 }
 0x2db   :  { %v20196_v5 = vpop.f32.mrf.mxu0 }
 0x2dc   :  { %23500 = vst [vmem:[#allocation46_spill] sm:$0xff] %v20192_v35  ;;  %23501 = vst [vmem:[#allocation45_spill] sm:$0xff] %v20196_v5  ;;  %v20215_v5 = vpop.f32.mrf.mxu1 }
 0x2dd   :  { %v16453_v0 = vpop.f32.mrf.mxu0 }
 0x2de   :  { %v20199_v19 = vadd.f32 %v16453_v0, %v19931_v1 }
 0x2df   :  { %v20203_v23 = vpop.f32.mrf.mxu0 }
 0x2e0   :  { %23502 = vst [vmem:[#allocation47_spill] sm:$0xff] %v20199_v19  ;;  %23503 = vst [vmem:[#allocation48_spill] sm:$0xff] %v20203_v23  ;;  %v20222_v23 = vpop.f32.mrf.mxu1 }
 0x2e1   :  { %v16456_v22 = vpop.f32.mrf.mxu0 }
 0x2e2   :  { %v20206_v10 = vadd.f32 %v16456_v22, %v19941_v45 }
 0x2e3   :  { %v20210_v55 = vpop.f32.mrf.mxu0 }
 0x2e4   :  { %23504 = vst [vmem:[#allocation49_spill] sm:$0xff] %v20206_v10  ;;  %23505 = vst [vmem:[#allocation50_spill] sm:$0xff] %v20210_v55  ;;  %v20229_v55 = vpop.f32.mrf.mxu1 }
 0x2e5   :  { %v16459_v6 = vpop.f32.mrf.mxu0 }
 0x2e6   :  { %v20213_v35 = vadd.f32 %v16459_v6, %v19951_v17 }
 0x2e7   :  { %v20217_v1 = vpop.f32.mrf.mxu0 }
 0x2e8   :  { %23506 = vst [vmem:[#allocation51_spill] sm:$0xff] %v20213_v35  ;;  %23507 = vst [vmem:[#allocation52_spill] sm:$0xff] %v20217_v1  ;;  %v20236_v1 = vpop.f32.mrf.mxu1 }
 0x2e9   :  { %v16462_v0 = vpop.f32.mrf.mxu0 }
 0x2ea   :  { %v20220_v19 = vadd.f32 %v16462_v0, %v19961_v28 }
 0x2eb   :  { %v20224_v45 = vpop.f32.mrf.mxu0 }
 0x2ec   :  { %23508 = vst [vmem:[#allocation53_spill] sm:$0xff] %v20220_v19  ;;  %23509 = vst [vmem:[#allocation83_spill] sm:$0xff] %v20224_v45  ;;  %v20243_v45 = vpop.f32.mrf.mxu1 }
 0x2ed   :  { %v16465_v22 = vpop.f32.mrf.mxu0  ;;  %23515 = vst [vmem:[#allocation89_spill] sm:$0xff] %v20243_v45 }
 0x2ee   :  { %v20227_v10 = vadd.f32 %v16465_v22, %v19971_v47 }
 0x2ef   :  { %v20231_v17 = vpop.f32.mrf.mxu0 }
 0x2f0   :  { %23510 = vst [vmem:[#allocation84_spill] sm:$0xff] %v20227_v10  ;;  %23511 = vst [vmem:[#allocation85_spill] sm:$0xff] %v20231_v17  ;;  %v20250_v17 = vpop.f32.mrf.mxu1 }
 0x2f1   :  { %v16468_v6 = vpop.f32.mrf.mxu0  ;;  %23518 = vst [vmem:[#allocation92_spill] sm:$0xff] %v20250_v17 }
 0x2f2   :  { %v20234_v35 = vadd.f32 %v16468_v6, %v19981_v61 }
 0x2f3   :  { %v20238_v28 = vpop.f32.mrf.mxu0 }
 0x2f4   :  { %23512 = vst [vmem:[#allocation86_spill] sm:$0xff] %v20234_v35  ;;  %23513 = vst [vmem:[#allocation87_spill] sm:$0xff] %v20238_v28  ;;  %v5755_v35 = vadd.f32 %v20066_v51, %v20007_v21  ;;  %v20256_v28 = vpop.f32.mrf.mxu1 }
 0x2f5   :  { %v16471_v0 = vpop.f32.mrf.mxu0  ;;  %23520 = vst [vmem:[#allocation94_spill] sm:$0xff] %v20256_v28 }
 0x2f6   :  { %v20241_v19 = vadd.f32 %v16471_v0, %v19991_v42  ;;  %v20260_v45 = vpop.f32.mrf.mxu1 }
 0x2f7   :  { %v20245_v47 = vpop.f32.mrf.mxu0 }
 0x2f8   :  { %23514 = vst [vmem:[#allocation88_spill] sm:$0xff] %v20241_v19  ;;  %23516 = vst [vmem:[#allocation90_spill] sm:$0xff] %v20245_v47  ;;  %v5756_v47 = vadd.f32 %v20056_v16, %v20003_v37  ;;  %v20264_v17 = vpop.f32.mrf.mxu1 }
 0x2f9   :  { %v16474_v22 = vpop.f32.mrf.mxu0 }
 0x2fa   :  { %v20248_v10 = vadd.f32 %v16474_v22, %v19999_v43  ;;  %v20268_v37 = vpop.f32.mrf.mxu1 }
 0x2fb   :  { %v20252_v61 = vpop.f32.mrf.mxu0 }
 0x2fc   :  { %23517 = vst [vmem:[#allocation91_spill] sm:$0xff] %v20248_v10  ;;  %23519 = vst [vmem:[#allocation93_spill] sm:$0xff] %v20252_v61  ;;  %v5757_v61 = vadd.f32 %v20085_v15, %v20015_v3  ;;  %v20272_v3 = vpop.f32.mrf.mxu1 }
 0x2fd   :  { %v16577_v6 = vpop.f32.mrf.mxu0 }
 0x2fe   :  { %v6466_v22 = vadd.f32 %v16577_v6, %v5756_v47  ;;  %v5759_v47 = vadd.f32 %v20103_v34, %v20023_v14 }
 0x2ff   :  { %v6146_v42 = vpop.f32.mrf.mxu0 }
 0x300   :  { %v6465_v0 = vadd.f32 %v6146_v42, %v5755_v35  ;;  %v5758_v35 = vadd.f32 %v20076_v12, %v20011_v33  ;;  %v20276_v33 = vpop.f32.mrf.mxu1 }
 0x301   :  { %v16580_v19 = vpop.f32.mrf.mxu0 }
 0x302   :  { %6529 = vxpose.xlu0.b32.start [1/16] (narrow) %v6465_v0, 8  ;;  %v6468_v42 = vadd.f32 %v16580_v19, %v5758_v35  ;;  %v5761_v19 = vadd.f32 %v20121_v63, %v20031_v58  ;;  %v20282_v34 = vpop.f32.mrf.mxu1 }
 0x303   :  { %v6156_v43 = vpop.f32.mrf.mxu0 }
 0x304   :  { %v6467_v51 = vadd.f32 %v6156_v43, %v5757_v61  ;;  %v5760_v61 = vadd.f32 %v20094_v39, %v20019_v57  ;;  %v5762_v39 = vadd.f32 %v20112_v31, %v20027_v44  ;;  %v23523_v31 = vld [vmem:[#allocation55_spill] sm:$0xff] }
 0x305   :  { %v16583_v10 = vpop.f32.mrf.mxu0 }
 0x306   :  { %6530 = vxpose.xlu0.b32.cont [2/16] (narrow) %v6466_v22, 8  ;;  %v6470_v43 = vadd.f32 %v16583_v10, %v5760_v61  ;;  %v20291_v10 = vpop.f32.mrf.mxu1  ;;  %v5763_v61 = vadd.f32 %v20138_v50, %v20039_v7 }
 0x307   :  { %v6166_v21 = vpop.f32.mrf.mxu0 }
 0x308   :  { %v6469_v6 = vadd.f32 %v6166_v21, %v5759_v47  ;;  %v23521_v21 = vld [vmem:[#allocation54_spill] sm:$0xff] }
 0x309   :  { %v16586_v28 = vpop.f32.mrf.mxu0  ;;  %v4350_v35 = vadd.f32 %v23521_v21, %v19745_v59 }
 0x30a   :  { %6531 = vxpose.xlu0.b32.cont [3/16] (narrow) %v6467_v51, 8  ;;  %v6472_v63 = vadd.f32 %v16586_v28, %v5762_v39  ;;  %v5772_v28 = vadd.f32 %v20187_v40, %v20073_v24 }
 0x30b   :  { %v6176_v16 = vpop.f32.mrf.mxu0  ;;  %v5061_v57 = vadd.f32 %v20078_v53, %v4350_v35 }
 0x30d   :  { %v16589_v0 = vpop.f32.mrf.mxu0  ;;  %v5771_v59 = vadd.f32 %v20194_v2, %v5061_v57 }
 0x30e   :  { %6532 = vxpose.xlu0.b32.cont [4/16] (narrow) %v6468_v42, 8  ;;  %v6471_v42 = vadd.f32 %v6176_v16, %v5761_v19  ;;  %v20298_v16 = vpop.f32.mrf.mxu1  ;;  %v23522_v19 = vld [vmem:[#allocation56_spill] sm:$0xff] }
 0x30f   :  { %v6186_v15 = vpop.f32.mrf.mxu0  ;;  %v4352_v44 = vadd.f32 %v23523_v31, %v23522_v19 }
 0x310   :  { %v6473_v21 = vadd.f32 %v6186_v15, %v5763_v61  ;;  %v20307_v7 = vpop.f32.mrf.mxu1  ;;  %v5765_v15 = vadd.f32 %v20152_v11, %v20049_v38 }
 0x311   :  { %v16592_v22 = vpop.f32.mrf.mxu0  ;;  %v5063_v50 = vadd.f32 %v20087_v41, %v4352_v44  ;;  %v23525_v41 = vld [vmem:[#allocation57_spill] sm:$0xff] }
 0x312   :  { %6533 = vxpose.xlu0.b32.cont [5/16] (narrow) %v6469_v6, 8 }
 0x313   :  { %v6196_v12 = vpop.f32.mrf.mxu0  ;;  %v5773_v61 = vadd.f32 %v20208_v32, %v5063_v50 }
 0x315   :  { %v20278_v51 = vpop.f32.mrf.mxu0 }
 0x316   :  { %6534 = vxpose.xlu0.b32.cont [6/16] (narrow) %v6470_v43, 8 }
 0x317   :  { %v6206_v14 = vpop.f32.mrf.mxu0 }
 0x319   :  { %v20286_v47 = vpop.f32.mrf.mxu0 }
 0x31a   :  { %6535 = vxpose.xlu0.b32.cont [7/16] (narrow) %v6471_v42, 8  ;;  %v5764_v42 = vadd.f32 %v20130_v4, %v20035_v56  ;;  %v20312_v56 = vpop.f32.mrf.mxu1  ;;  %v23524_v4 = vld [vmem:[#allocation58_spill] sm:$0xff] }
 0x31b   :  { %v20293_v6 = vpop.f32.mrf.mxu0  ;;  %v4354_v40 = vadd.f32 %v23525_v41, %v23524_v4  ;;  %v23531_v41 = vld [vmem:[#allocation82_spill] sm:$0xff] }
 0x31c   :  { %v6474_v39 = vadd.f32 %v16589_v0, %v5764_v42  ;;  %v5766_v0 = vadd.f32 %v20145_v25, %v20043_v27  ;;  %v20321_v11 = vpop.f32.mrf.mxu1  ;;  %v23526_v25 = vld [vmem:[#allocation60_spill] sm:$0xff] }
 0x31d   :  { %v16601_v58 = vpop.f32.mrf.mxu0  ;;  %v5065_v38 = vadd.f32 %v20096_v9, %v4354_v40  ;;  %v23527_v9 = vld [vmem:[#allocation59_spill] sm:$0xff] }
 0x31e   :  { %6536 = vxpose.xlu0.b32.cont [8/16] (narrow) %v6472_v63, 8  ;;  %v6482_v57 = vadd.f32 %v16601_v58, %v5772_v28  ;;  %v5774_v58 = vadd.f32 %v20201_v8, %v20082_v20  ;;  %v6476_v31 = vadd.f32 %v16592_v22, %v5766_v0  ;;  %v20326_v27 = vpop.f32.mrf.mxu1  ;;  %v4356_v8 = vadd.f32 %v23527_v9, %v23526_v25 }
 0x31f   :  { %v6226_v43 = vpop.f32.mrf.mxu0  ;;  %v5768_v22 = vadd.f32 %v20159_v48, %v20053_v60  ;;  %v23528_v48 = vld [vmem:[#allocation62_spill] sm:$0xff] }
 0x320   :  { %v6481_v53 = vadd.f32 %v6226_v43, %v5771_v59  ;;  %v6475_v43 = vadd.f32 %v6196_v12, %v5765_v15  ;;  %v5767_v12 = vadd.f32 %v20166_v30, %v20059_v52  ;;  %v5776_v52 = vadd.f32 %v20215_v5, %v20091_v36  ;;  %v23529_v5 = vld [vmem:[#allocation61_spill] sm:$0xff] }
 0x321   :  { %v16604_v35 = vpop.f32.mrf.mxu0  ;;  %v5067_v30 = vadd.f32 %v20105_v29, %v4356_v8  ;;  %v4358_v15 = vadd.f32 %v23529_v5, %v23528_v48 }
 0x322   :  { %6561 = vxpose.xlu1.b32.start [1/16] (narrow) %v6481_v53, 8  ;;  %6537 = vxpose.xlu0.b32.cont [9/16] (narrow) %v6473_v21, 8  ;;  %v6484_v44 = vadd.f32 %v16604_v35, %v5774_v58  ;;  %v5775_v21 = vadd.f32 %v20222_v23, %v5065_v38  ;;  %v6477_v28 = vadd.f32 %v6206_v14, %v5767_v12  ;;  %v20337_v23 = vpop.f32.mrf.mxu1  ;;  %v23533_v58 = vld [vmem:[#allocation64_spill] sm:$0xff]  ;;  %v23534_v38 = vld [vmem:[#allocation63_spill] sm:$0xff] }
 0x323   :  { %v6236_v2 = vpop.f32.mrf.mxu0  ;;  %v5769_v14 = vadd.f32 %v20180_v62, %v20069_v46  ;;  %v5777_v60 = vadd.f32 %v20236_v1, %v5067_v30  ;;  %v5770_v46 = vadd.f32 %v20173_v49, %v20063_v18  ;;  %v5778_v1 = vadd.f32 %v20229_v55, %v20100_v13  ;;  %v23532_v18 = vld [vmem:[#allocation92_spill] sm:$0xff] }
 0x324   :  { %v6483_v59 = vadd.f32 %v6236_v2, %v5773_v61  ;;  %v6478_v2 = vadd.f32 %v20278_v51, %v5768_v22  ;;  %v20345_v36 = vpop.f32.mrf.mxu1  ;;  %v4366_v51 = vadd.f32 %v19846_v26, %v19849_v54 }
 0x325   :  { %v16607_v63 = vpop.f32.mrf.mxu0  ;;  %v6479_v61 = vadd.f32 %v20293_v6, %v5769_v14  ;;  %v6480_v26 = vadd.f32 %v20286_v47, %v5770_v46  ;;  %v23537_v47 = vld [vmem:[#allocation27_spill] sm:$0xff]  ;;  %v23544_v46 = vld [vmem:[#allocation72_spill] sm:$0xff] }
 0x326   :  { %6562 = vxpose.xlu1.b32.cont [2/16] (narrow) %v6482_v57, 8  ;;  %6538 = vxpose.xlu0.b32.cont [10/16] (narrow) %v6474_v39, 8  ;;  %v6486_v39 = vadd.f32 %v16607_v63, %v5776_v52  ;;  %v5077_v40 = vadd.f32 %v23531_v41, %v4366_v51  ;;  %v23541_v52 = vld [vmem:[#allocation36_spill] sm:$0xff] }
 0x327   :  { %v6246_v24 = vpop.f32.mrf.mxu0 }
 0x328   :  { %v6485_v42 = vadd.f32 %v6246_v24, %v5775_v21  ;;  %v23530_v24 = vld [vmem:[#allocation28_spill] sm:$0xff]  ;;  %v5787_v0 = vadd.f32 %v20291_v10, %v5077_v40  ;;  %v23540_v10 = vld [vmem:[#allocation34_spill] sm:$0xff] }
 0x329   :  { %v16610_v19 = vpop.f32.mrf.mxu0  ;;  %v5069_v4 = vadd.f32 %v23530_v24, %v4358_v15  ;;  %v5788_v22 = vadd.f32 %v20282_v34, %v23540_v10  ;;  %v23542_v34 = vld [vmem:[#allocation67_spill] sm:$0xff]  ;;  %v23547_v40 = vld [vmem:[#allocation94_spill] sm:$0xff] }
 0x32a   :  { %6563 = vxpose.xlu1.b32.cont [3/16] (narrow) %v6483_v59, 8  ;;  %6539 = vxpose.xlu0.b32.cont [11/16] (narrow) %v6475_v43, 8  ;;  %v20362_v59 = vpop.f32.mrf.mxu1  ;;  %v6488_v6 = vadd.f32 %v16610_v19, %v5778_v1  ;;  %v23538_v19 = vld [vmem:[#allocation89_spill] sm:$0xff]  ;;  %v23545_v1 = vld [vmem:[#allocation70_spill] sm:$0xff] }
 0x32b   :  { %v6256_v32 = vpop.f32.mrf.mxu0  ;;  %v5779_v49 = vadd.f32 %v23532_v18, %v5069_v4  ;;  %v5780_v9 = vadd.f32 %v23538_v19, %v23537_v47  ;;  %v4370_v24 = vadd.f32 %v23545_v1, %v23544_v46  ;;  %v23553_v19 = vld [vmem:[#allocation74_spill] sm:$0xff]  ;;  %v23560_v46 = vld [vmem:[#allocation9_spill] sm:$0xff] }
 0x32c   :  { %v6487_v63 = vadd.f32 %v6256_v32, %v5777_v60  ;;  %v20369_v13 = vpop.f32.mrf.mxu1  ;;  %v4360_v32 = vadd.f32 %v23534_v38, %v23533_v58 }
 0x32d   :  { %v16613_v53 = vpop.f32.mrf.mxu0 }
 0x32e   :  { %6564 = vxpose.xlu1.b32.cont [4/16] (narrow) %v6484_v44, 8  ;;  %6540 = vxpose.xlu0.b32.cont [12/16] (narrow) %v6476_v31, 8  ;;  %v23535_v31 = vld [vmem:[#allocation71_spill] sm:$0xff]  ;;  %v23536_v44 = vld [vmem:[#allocation69_spill] sm:$0xff]  ;;  %v6490_v14 = vadd.f32 %v16613_v53, %v5780_v9 }
 0x32f   :  { %v6266_v20 = vpop.f32.mrf.mxu0  ;;  %v4368_v12 = vadd.f32 %v23536_v44, %v23535_v31  ;;  %v23546_v53 = vld [vmem:[#allocation29_spill] sm:$0xff] }
 0x330   :  { %v6489_v21 = vadd.f32 %v6266_v20, %v5779_v49  ;;  %v23550_v49 = vld [vmem:[#allocation37_spill] sm:$0xff] }
 0x331   :  { %v20330_v50 = vpop.f32.mrf.mxu0  ;;  %v5079_v30 = vadd.f32 %v23541_v52, %v4368_v12  ;;  %v23554_v9 = vld [vmem:[#allocation73_spill] sm:$0xff]  ;;  %v23557_v52 = vld [vmem:[#allocation38_spill] sm:$0xff] }
 0x332   :  { %6565 = vxpose.xlu1.b32.cont [5/16] (narrow) %v6485_v42, 8  ;;  %6541 = vxpose.xlu0.b32.cont [13/16] (narrow) %v6477_v28, 8  ;;  %v23539_v42 = vld [vmem:[#allocation30_spill] sm:$0xff] }
 0x333   :  { %v6276_v35 = vpop.f32.mrf.mxu0  ;;  %v5071_v28 = vadd.f32 %v23539_v42, %v4360_v32  ;;  %v5789_v5 = vadd.f32 %v20307_v7, %v5079_v30  ;;  %v23549_v7 = vld [vmem:[#allocation35_spill] sm:$0xff]  ;;  %v4372_v42 = vadd.f32 %v23554_v9, %v23553_v19  ;;  %v5792_v30 = vadd.f32 %v20312_v56, %v23557_v52  ;;  %v23570_v19 = vld [vmem:[#allocation80_spill] sm:$0xff] }
 0x334   :  { %v5790_v18 = vadd.f32 %v20298_v16, %v23549_v7  ;;  %v23566_v7 = vld [vmem:[#allocation48_spill] sm:$0xff] }
 0x335   :  { %v20340_v57 = vpop.f32.mrf.mxu0  ;;  %v5781_v48 = vadd.f32 %v20260_v45, %v5071_v28  ;;  %v23548_v45 = vld [vmem:[#allocation32_spill] sm:$0xff] }
 0x336   :  { %6566 = vxpose.xlu1.b32.cont [6/16] (narrow) %v6486_v39, 8  ;;  %6542 = vxpose.xlu0.b32.cont [14/16] (narrow) %v6478_v2, 8  ;;  %v20381_v2 = vpop.f32.mrf.mxu1 }
 0x337   :  { %v20347_v29 = vpop.f32.mrf.mxu0  ;;  %v6491_v41 = vadd.f32 %v6276_v35, %v5781_v48 }
 0x338   :  { %v20385_v15 = vpop.f32.mrf.mxu1 }
 0x339   :  { %v20356_v62 = vpop.f32.mrf.mxu0 }
 0x33a   :  { %6567 = vxpose.xlu1.b32.cont [7/16] (narrow) %v6487_v63, 8  ;;  %6543 = vxpose.xlu0.b32.cont [15/16] (narrow) %v6479_v61, 8  ;;  %v23543_v63 = vld [vmem:[#allocation65_spill] sm:$0xff] }
 0x33b   :  { %v20364_v54 = vpop.f32.mrf.mxu0  ;;  %v4362_v61 = vadd.f32 %v23543_v63, %v23542_v34 }
 0x33d   :  { %v16625_v43 = vpop.f32.mrf.mxu0 }
 0x33e   :  { %6568 = vxpose.xlu1.b32.cont [8/16] (narrow) %v6488_v6, 8  ;;  %6544 = vxpose.xlu0.b32.end [16/16] (narrow) %v6480_v26, 8  ;;  %v6498_v60 = vadd.f32 %v16625_v43, %v5788_v22  ;;  %v5782_v26 = vadd.f32 %v23547_v40, %v23546_v53  ;;  %v5073_v43 = vadd.f32 %v23548_v45, %v4362_v61  ;;  %v23559_v61 = vld [vmem:[#allocation10_spill] sm:$0xff]  ;;  %v23565_v45 = vld [vmem:[#allocation8_spill] sm:$0xff] }
 0x33f   :  { %v6306_v55 = vpop.f32.mrf.mxu0  ;;  %v4374_v1 = vadd.f32 %v23560_v46, %v23559_v61  ;;  %v23577_v46 = vld [vmem:[#allocation16_spill] sm:$0xff] }
 0x340   :  { %v6497_v25 = vadd.f32 %v6306_v55, %v5787_v0  ;;  %v5081_v0 = vadd.f32 %v23550_v49, %v4370_v24  ;;  %v20397_v55 = vpop.f32.mrf.mxu1  ;;  %v6492_v38 = vadd.f32 %v20330_v50, %v5782_v26  ;;  %v5783_v31 = vadd.f32 %v20268_v37, %v5073_v43  ;;  %v23561_v24 = vld [vmem:[#allocation79_spill] sm:$0xff] }
 0x341   :  { %v16628_v8 = vpop.f32.mrf.mxu0  ;;  %v5085_v43 = vadd.f32 %v23565_v45, %v4374_v1 }
 0x342   :  { %6569 = vxpose.xlu1.b32.cont [9/16] (narrow) %v6489_v21, 8  ;;  %6593 = vxpose.xlu0.b32.start [1/16] (narrow) %v6497_v25, 8  ;;  %v6500_v32 = vadd.f32 %v16628_v8, %v5790_v18  ;;  %v5791_v44 = vadd.f32 %v20321_v11, %v5081_v0  ;;  %v20404_v12 = vpop.f32.mrf.mxu1  ;;  %v23551_v21 = vld [vmem:[#allocation68_spill] sm:$0xff]  ;;  %v23552_v25 = vld [vmem:[#allocation66_spill] sm:$0xff]  ;;  %v6493_v50 = vadd.f32 %v20347_v29, %v5783_v31  ;;  %v23555_v8 = vld [vmem:[#allocation31_spill] sm:$0xff] }
 0x343   :  { %v6316_v39 = vpop.f32.mrf.mxu0  ;;  %v4364_v47 = vadd.f32 %v23552_v25, %v23551_v21  ;;  %v5784_v10 = vadd.f32 %v20264_v17, %v23555_v8  ;;  %v23556_v11 = vld [vmem:[#allocation33_spill] sm:$0xff]  ;;  %v23568_v21 = vld [vmem:[#allocation75_spill] sm:$0xff] }
 0x344   :  { %v6499_v4 = vadd.f32 %v6316_v39, %v5789_v5  ;;  %v23558_v39 = vld [vmem:[#allocation40_spill] sm:$0xff]  ;;  %v23572_v8 = vld [vmem:[#allocation41_spill] sm:$0xff] }
 0x345   :  { %v16631_v20 = vpop.f32.mrf.mxu0  ;;  %v5075_v22 = vadd.f32 %v23556_v11, %v4364_v47  ;;  %v6494_v5 = vadd.f32 %v20340_v57, %v5784_v10  ;;  %v23569_v47 = vld [vmem:[#allocation14_spill] sm:$0xff] }
 0x346   :  { %6570 = vxpose.xlu1.b32.cont [10/16] (narrow) %v6490_v14, 8  ;;  %6594 = vxpose.xlu0.b32.cont [2/16] (narrow) %v6498_v60, 8  ;;  %v5083_v14 = vadd.f32 %v23558_v39, %v4372_v42  ;;  %v20419_v60 = vpop.f32.mrf.mxu1  ;;  %v6502_v29 = vadd.f32 %v16631_v20, %v5792_v30  ;;  %v23563_v20 = vld [vmem:[#allocation81_spill] sm:$0xff]  ;;  %v4384_v9 = vadd.f32 %v23570_v19, %v23569_v47 }
 0x347   :  { %v6326_v51 = vpop.f32.mrf.mxu0  ;;  %v5785_v17 = vadd.f32 %v20276_v33, %v5075_v22  ;;  %v5786_v40 = vadd.f32 %v20272_v3, %v23563_v20  ;;  %v5795_v3 = vadd.f32 %v20362_v59, %v5085_v43  ;;  %v23573_v59 = vld [vmem:[#allocation47_spill] sm:$0xff]  ;;  %v23574_v22 = vld [vmem:[#allocation50_spill] sm:$0xff]  ;;  %v23588_v47 = vld [vmem:[#allocation45_spill] sm:$0xff] }
 0x348   :  { %v6501_v28 = vadd.f32 %v6326_v51, %v5791_v44  ;;  %v5793_v34 = vadd.f32 %v20337_v23, %v5083_v14  ;;  %v16551_v63 = vpop.f32.mrf.mxu1  ;;  %v23564_v23 = vld [vmem:[#allocation39_spill] sm:$0xff]  ;;  %v23567_v44 = vld [vmem:[#allocation76_spill] sm:$0xff]  ;;  %v5095_v52 = vadd.f32 %v23574_v22, %v4384_v9 }
 0x349   :  { %v16634_v6 = vpop.f32.mrf.mxu0  ;;  %v6495_v57 = vadd.f32 %v20364_v54, %v5785_v17  ;;  %v5794_v26 = vadd.f32 %v20326_v27, %v23564_v23  ;;  %v4376_v25 = vadd.f32 %v23568_v21, %v23567_v44  ;;  %v5804_v11 = vadd.f32 %v16551_v63, %v23573_v59  ;;  %v23575_v17 = vld [vmem:[#allocation12_spill] sm:$0xff]  ;;  %v23578_v63 = vld [vmem:[#allocation15_spill] sm:$0xff] }
 0x34a   :  { %6571 = vxpose.xlu1.b32.cont [11/16] (narrow) %v6491_v41, 8  ;;  %6595 = vxpose.xlu0.b32.cont [3/16] (narrow) %v6499_v4, 8  ;;  %v23562_v4 = vld [vmem:[#allocation78_spill] sm:$0xff]  ;;  %v5676_v49 = vpop.f32.mrf.mxu1  ;;  %v4386_v1 = vadd.f32 %v23578_v63, %v23577_v46  ;;  %v23582_v23 = vld [vmem:[#allocation52_spill] sm:$0xff]  ;;  %v23587_v21 = vld [vmem:[#allocation43_spill] sm:$0xff] }
 0x34b   :  { %v6336_v58 = vpop.f32.mrf.mxu0  ;;  %v4382_v41 = vadd.f32 %v23562_v4, %v23561_v24  ;;  %v6504_v54 = vadd.f32 %v16634_v6, %v5794_v26  ;;  %v5087_v10 = vadd.f32 %v23572_v8, %v4376_v25  ;;  %v23591_v59 = vld [vmem:[#allocation20_spill] sm:$0xff]  ;;  %v23596_v63 = vld [vmem:[#allocation22_spill] sm:$0xff] }
 0x34c   :  { %v6503_v53 = vadd.f32 %v6336_v58, %v5793_v34  ;;  %v6496_v58 = vadd.f32 %v20356_v62, %v5786_v40  ;;  %v16554_v31 = vpop.f32.mrf.mxu1  ;;  %v23576_v34 = vld [vmem:[#allocation11_spill] sm:$0xff]  ;;  %v23581_v40 = vld [vmem:[#allocation49_spill] sm:$0xff]  ;;  %v5097_v26 = vadd.f32 %v23582_v23, %v4386_v1 }
 0x34d   :  { %v20400_v35 = vpop.f32.mrf.mxu0  ;;  %v5093_v18 = vadd.f32 %v23566_v7, %v4382_v41  ;;  %v4378_v61 = vadd.f32 %v23576_v34, %v23575_v17  ;;  %v23579_v41 = vld [vmem:[#allocation42_spill] sm:$0xff]  ;;  %v23597_v1 = vld [vmem:[#allocation21_spill] sm:$0xff] }
 0x34e   :  { %6572 = vxpose.xlu1.b32.cont [12/16] (narrow) %v6492_v38, 8  ;;  %6596 = vxpose.xlu0.b32.cont [4/16] (narrow) %v6500_v32, 8  ;;  %v5686_v30 = vpop.f32.mrf.mxu1 }
 0x34f   :  { %v6346_v16 = vpop.f32.mrf.mxu0  ;;  %v5803_v32 = vadd.f32 %v5676_v49, %v5093_v18 }
 0x350   :  { %v6505_v42 = vadd.f32 %v6346_v16, %v5795_v3  ;;  %v5797_v16 = vadd.f32 %v20381_v2, %v5087_v10  ;;  %v5806_v2 = vadd.f32 %v16554_v31, %v23581_v40  ;;  %v23585_v3 = vld [vmem:[#allocation18_spill] sm:$0xff] }
 0x351   :  { %v20413_v37 = vpop.f32.mrf.mxu0 }
 0x352   :  { %6573 = vxpose.xlu1.b32.cont [13/16] (narrow) %v6493_v50, 8  ;;  %6597 = vxpose.xlu0.b32.cont [5/16] (narrow) %v6501_v28, 8  ;;  %v23571_v50 = vld [vmem:[#allocation7_spill] sm:$0xff] }
 0x353   :  { %v6356_v48 = vpop.f32.mrf.mxu0  ;;  %v5796_v62 = vadd.f32 %v20345_v36, %v23571_v50  ;;  %v16557_v36 = vpop.f32.mrf.mxu1 }
 0x354   :  { %v6507_v24 = vadd.f32 %v6356_v48, %v5797_v16  ;;  %v23594_v16 = vld [vmem:[#allocation53_spill] sm:$0xff] }
 0x355   :  { %v20422_v51 = vpop.f32.mrf.mxu0  ;;  %v6506_v39 = vadd.f32 %v20400_v35, %v5796_v62  ;;  %v5696_v45 = vpop.f32.mrf.mxu1 }
 0x356   :  { %6574 = vxpose.xlu1.b32.cont [14/16] (narrow) %v6494_v5, 8  ;;  %6598 = vxpose.xlu0.b32.cont [6/16] (narrow) %v6502_v29, 8  ;;  %v5805_v29 = vadd.f32 %v5686_v30, %v5095_v52  ;;  %v5807_v49 = vadd.f32 %v5696_v45, %v5097_v26  ;;  %v23600_v26 = vld [vmem:[#allocation24_spill] sm:$0xff]  ;;  %v23601_v45 = vld [vmem:[#allocation23_spill] sm:$0xff] }
 0x357   :  { %v20426_v56 = vpop.f32.mrf.mxu0 }
 0x359   :  { %v20435_v33 = vpop.f32.mrf.mxu0 }
 0x35a   :  { %6575 = vxpose.xlu1.b32.cont [15/16] (narrow) %v6495_v57, 8  ;;  %6599 = vxpose.xlu0.b32.cont [7/16] (narrow) %v6503_v53, 8  ;;  %v5798_v53 = vadd.f32 %v20369_v13, %v23579_v41  ;;  %v23580_v57 = vld [vmem:[#allocation44_spill] sm:$0xff]  ;;  %v16560_v13 = vpop.f32.mrf.mxu1 }
 0x35b   :  { %v20441_v0 = vpop.f32.mrf.mxu0  ;;  %v5089_v20 = vadd.f32 %v23580_v57, %v4378_v61  ;;  %v23598_v41 = vld [vmem:[#allocation84_spill] sm:$0xff] }
 0x35c   :  { %v6508_v43 = vadd.f32 %v20413_v37, %v5798_v53  ;;  %v5800_v37 = vadd.f32 %v20385_v15, %v23587_v21  ;;  %v5706_v50 = vpop.f32.mrf.mxu1 }
 0x35d   :  { %v16649_v38 = vpop.f32.mrf.mxu0  ;;  %v5799_v48 = vadd.f32 %v20397_v55, %v5089_v20  ;;  %v23589_v55 = vld [vmem:[#allocation51_spill] sm:$0xff] }
 0x35e   :  { %6576 = vxpose.xlu1.b32.end [16/16] (narrow) %v6496_v58, 8  ;;  %6600 = vxpose.xlu0.b32.cont [8/16] (narrow) %v6504_v54, 8  ;;  %v6514_v14 = vadd.f32 %v16649_v38, %v5804_v11  ;;  %v23583_v58 = vld [vmem:[#allocation77_spill] sm:$0xff]  ;;  %v5808_v9 = vadd.f32 %v16557_v36, %v23589_v55  ;;  %v6510_v62 = vadd.f32 %v20422_v51, %v5800_v37  ;;  %v16563_v15 = vpop.f32.mrf.mxu1  ;;  %v23592_v11 = vld [vmem:[#allocation19_spill] sm:$0xff] }
 0x35f   :  { %v6386_v27 = vpop.f32.mrf.mxu0  ;;  %v23584_v54 = vld [vmem:[#allocation13_spill] sm:$0xff]  ;;  %v4390_v22 = vadd.f32 %v23592_v11, %v23591_v59  ;;  %v5810_v51 = vadd.f32 %v16560_v13, %v23594_v16  ;;  %v5812_v53 = vadd.f32 %v16563_v15, %v23598_v41  ;;  %v23603_v13 = vld [vmem:[#allocation90_spill] sm:$0xff]  ;;  %v23609_v41 = vmov 0.0  }
 0x360   :  { %v6513_v28 = vadd.f32 %v6386_v27, %v5803_v32  ;;  %v4380_v38 = vadd.f32 %v23584_v54, %v23583_v58  ;;  %v23586_v32 = vld [vmem:[#allocation17_spill] sm:$0xff]  ;;  %v6509_v27 = vadd.f32 %v20426_v56, %v5799_v48  ;;  %v23602_v48 = vld [vmem:[#allocation86_spill] sm:$0xff]  ;;  %6841 = vst.msk [vmem:[#allocation3 + $0x18] sm:$0xff] %vm6836_vm3, %v23609_v41  ;;  %6842 = vst.msk [vmem:[#allocation3 + $0x20] sm:$0xff] %vm6836_vm3, %v23609_v41 }
 0x361   :  { %v16652_v6 = vpop.f32.mrf.mxu0  ;;  %v4388_v31 = vadd.f32 %v23586_v32, %v23585_v3  ;;  %v23607_v55 = vld [vmem:[#allocation93_spill] sm:$0xff]  ;;  %6837 = vst.msk [vmem:[#allocation3] sm:$0xff] %vm6836_vm3, %v23609_v41  ;;  %6838 = vst.msk [vmem:[#allocation3 + $0x8] sm:$0xff] %vm6836_vm3, %v23609_v41 }
 0x362   :  { %6625 = vxpose.xlu1.b32.start [1/16] (narrow) %v6513_v28, 8  ;;  %6601 = vxpose.xlu0.b32.cont [9/16] (narrow) %v6505_v42, 8  ;;  %v6516_v7 = vadd.f32 %v16652_v6, %v5806_v2  ;;  %v5091_v19 = vadd.f32 %v23588_v47, %v4380_v38  ;;  %v23590_v42 = vld [vmem:[#allocation83_spill] sm:$0xff]  ;;  %v23606_v47 = vld [vmem:[#allocation88_spill] sm:$0xff]  ;;  %6844 = vst.msk [vmem:[#allocation3 + $0x30] sm:$0xff] %vm6836_vm3, %v23609_v41  ;;  %6845 = vst.msk [vmem:[#allocation3 + $0x38] sm:$0xff] %vm6836_vm3, %v23609_v41 }
 0x363   :  { %v6396_v5 = vpop.f32.mrf.mxu0  ;;  %v5099_v28 = vadd.f32 %v23590_v42, %v4388_v31  ;;  %6847 = vst.msk [vmem:[#allocation3 + $0x48] sm:$0xff] %vm6836_vm3, %v23609_v41  ;;  %6848 = vst.msk [vmem:[#allocation3 + $0x50] sm:$0xff] %vm6836_vm3, %v23609_v41 }
 0x364   :  { %v6515_v4 = vadd.f32 %v6396_v5, %v5805_v29  ;;  %v5801_v56 = vadd.f32 %v20419_v60, %v5091_v19  ;;  %v23595_v29 = vld [vmem:[#allocation85_spill] sm:$0xff]  ;;  %v5716_v60 = vpop.f32.mrf.mxu1  ;;  %6850 = vst.msk [vmem:[#allocation3 + $0x60] sm:$0xff] %vm6836_vm3, %v23609_v41  ;;  %6851 = vst.msk [vmem:[#allocation3 + $0x68] sm:$0xff] %vm6836_vm3, %v23609_v41 }
 0x365   :  { %v16655_v35 = vpop.f32.mrf.mxu0  ;;  %v5809_v10 = vadd.f32 %v5706_v50, %v5099_v28  ;;  %v5101_v36 = vadd.f32 %v23595_v29, %v4390_v22  ;;  %6853 = vst.msk [vmem:[#allocation3 + $0x78] sm:$0xff] %vm6836_vm3, %v23609_v41  ;;  %6854 = vst.msk [vmem:[#allocation3 + $0x80] sm:$0xff] %vm6836_vm3, %v23609_v41 }
 0x366   :  { %6626 = vxpose.xlu1.b32.cont [2/16] (narrow) %v6514_v14, 8  ;;  %6602 = vxpose.xlu0.b32.cont [10/16] (narrow) %v6506_v39, 8  ;;  %v6518_v6 = vadd.f32 %v16655_v35, %v5808_v9  ;;  %v6511_v52 = vadd.f32 %v20441_v0, %v5801_v56  ;;  %v23593_v14 = vld [vmem:[#allocation46_spill] sm:$0xff]  ;;  %v16566_v0 = vpop.f32.mrf.mxu1  ;;  %v23599_v35 = vld [vmem:[#allocation87_spill] sm:$0xff]  ;;  %6856 = vst.msk [vmem:[#allocation3 + $0x90] sm:$0xff] %vm6836_vm3, %v23609_v41  ;;  %6857 = vst.msk [vmem:[#allocation3 + $0x98] sm:$0xff] %vm6836_vm3, %v23609_v41 }
 0x367   :  { %v6406_v18 = vpop.f32.mrf.mxu0  ;;  %v5802_v5 = vadd.f32 %v20404_v12, %v23593_v14  ;;  %v5811_v46 = vadd.f32 %v5716_v60, %v5101_v36  ;;  %v17593_v14 = vmov 0   ;;  %6859 = vst.msk [vmem:[#allocation3 + $0xa8] sm:$0xff] %vm6836_vm3, %v23609_v41  ;;  %6860 = vst.msk [vmem:[#allocation3 + $0xb0] sm:$0xff] %vm6836_vm3, %v23609_v41 }
 0x368   :  { %v6517_v44 = vadd.f32 %v6406_v18, %v5807_v49  ;;  %v5726_v20 = vpop.f32.mrf.mxu1  ;;  %v5814_v49 = vadd.f32 %v16566_v0, %v23602_v48  ;;  %6862 = vst.msk [vmem:[#allocation3 + $0xc0] sm:$0xff] %vm6836_vm3, %v23609_v41  ;;  %6863 = vst.msk [vmem:[#allocation3 + $0xc8] sm:$0xff] %vm6836_vm3, %v23609_v41 }
 0x369   :  { %v16658_v25 = vpop.f32.mrf.mxu0  ;;  %v6512_v17 = vadd.f32 %v20435_v33, %v5802_v5  ;;  %v6694_v5 = vld [vmem:[%s23104_s3] sm:$0xff]  ;;  %6865 = vst.msk [vmem:[#allocation3 + $0xd8] sm:$0xff] %vm6836_vm3, %v23609_v41  ;;  %6866 = vst.msk [vmem:[#allocation3 + $0xe0] sm:$0xff] %vm6836_vm3, %v23609_v41 }
 0x36a   :  { %6627 = vxpose.xlu1.b32.cont [3/16] (narrow) %v6515_v4, 8  ;;  %6603 = vxpose.xlu0.b32.cont [11/16] (narrow) %v6507_v24, 8  ;;  %v6520_v34 = vadd.f32 %v16658_v25, %v5810_v51  ;;  %v4392_v24 = vadd.f32 %v23597_v1, %v23596_v63  ;;  %v16569_v23 = vpop.f32.mrf.mxu1  ;;  %6868 = vst.msk [vmem:[#allocation3 + $0xf0] sm:$0xff] %vm6836_vm3, %v23609_v41  ;;  %6869 = vst.msk [vmem:[#allocation3 + $0xf8] sm:$0xff] %vm6836_vm3, %v23609_v41 }
 0x36b   :  { %v6416_v8 = vpop.f32.mrf.mxu0  ;;  %v5816_v19 = vadd.f32 %v16569_v23, %v23606_v47  ;;  %6871 = vst.msk [vmem:[#allocation3 + $0x108] sm:$0xff] %vm6836_vm3, %v23609_v41  ;;  %6872 = vst.msk [vmem:[#allocation3 + $0x110] sm:$0xff] %vm6836_vm3, %v23609_v41 }
 0x36c   :  { %v6519_v30 = vadd.f32 %v6416_v8, %v5809_v10  ;;  %v5103_v57 = vadd.f32 %v23599_v35, %v4392_v24  ;;  %v5736_v54 = vpop.f32.mrf.mxu1  ;;  %v23608_v8 = vld [vmem:[#allocation91_spill] sm:$0xff]  ;;  %6874 = vst.msk [vmem:[#allocation3 + $0x120] sm:$0xff] %vm6836_vm3, %v23609_v41  ;;  %6875 = vst.msk [vmem:[#allocation3 + $0x128] sm:$0xff] %vm6836_vm3, %v23609_v41 }
 0x36d   :  { %v16661_v39 = vpop.f32.mrf.mxu0  ;;  %6877 = vst.msk [vmem:[#allocation3 + $0x138] sm:$0xff] %vm6836_vm3, %v23609_v41  ;;  %6878 = vst.msk [vmem:[#allocation3 + $0x140] sm:$0xff] %vm6836_vm3, %v23609_v41 }
 0x36e   :  { %6628 = vxpose.xlu1.b32.cont [4/16] (narrow) %v6516_v7, 8  ;;  %6604 = vxpose.xlu0.b32.cont [12/16] (narrow) %v6508_v43, 8  ;;  %v6522_v40 = vadd.f32 %v16661_v39, %v5812_v53  ;;  %v5813_v33 = vadd.f32 %v5726_v20, %v5103_v57  ;;  %v4394_v43 = vadd.f32 %v23601_v45, %v23600_v26  ;;  %v16572_v31 = vpop.f32.mrf.mxu1 }
 0x36f   :  { %v6426_v61 = vpop.f32.mrf.mxu0  ;;  %v5818_v56 = vadd.f32 %v16572_v31, %v23608_v8  ;;  %6880 = vst.msk [vmem:[#allocation3 + $0x150] sm:$0xff] %vm6836_vm3, %v23609_v41  ;;  %6881 = vst.msk [vmem:[#allocation3 + $0x158] sm:$0xff] %vm6836_vm3, %v23609_v41 }
 0x370   :  { %v6521_v4 = vadd.f32 %v6426_v61, %v5811_v46  ;;  %v5105_v58 = vadd.f32 %v23603_v13, %v4394_v43  ;;  %v5746_v42 = vpop.f32.mrf.mxu1  ;;  %6883 = vst.msk [vmem:[#allocation3 + $0x168] sm:$0xff] %vm6836_vm3, %v23609_v41  ;;  %6884 = vst.msk [vmem:[#allocation3 + $0x170] sm:$0xff] %vm6836_vm3, %v23609_v41  ;;  %v7076_v13 = vld [vmem:[#allocation3 + $0x1] sm:$0xff] }
 0x371   :  { %v16664_v12 = vpop.f32.mrf.mxu0  ;;  %6886 = vst.msk [vmem:[#allocation3 + $0x180] sm:$0xff] %vm6836_vm3, %v23609_v41  ;;  %6887 = vst.msk [vmem:[#allocation3 + $0x188] sm:$0xff] %vm6836_vm3, %v23609_v41  ;;  %16673 = vmatprep.mubr.msk.f32.mxu1 %vm6836_vm3, %v7076_v13 }
 0x372   :  { %6629 = vxpose.xlu1.b32.cont [5/16] (narrow) %v6517_v44, 8  ;;  %6605 = vxpose.xlu0.b32.cont [13/16] (narrow) %v6509_v27, 8  ;;  %v6524_v38 = vadd.f32 %v16664_v12, %v5814_v49  ;;  %v5815_v32 = vadd.f32 %v5736_v54, %v5105_v58  ;;  %v23604_v27 = vld [vmem:[#allocation25_spill] sm:$0xff]  ;;  %v23605_v44 = vld [vmem:[#allocation26_spill] sm:$0xff]  ;;  %v14035_v12 = vld [vmem:[%s23105_s4 + $0x8] sm:$0xff]  ;;  %6889 = vst.msk [vmem:[#allocation3 + $0x198] sm:$0xff] %vm6836_vm3, %v23609_v41 }
 0x373   :  { %v6436_v2 = vpop.f32.mrf.mxu0  ;;  %v4396_v21 = vadd.f32 %v23605_v44, %v23604_v27  ;;  %16671 = vmatprep.subr.mxu1 %v14035_v12  ;;  %6890 = vst.msk [vmem:[#allocation3 + $0x1a0] sm:$0xff] %vm6836_vm3, %v23609_v41  ;;  %6892 = vst.msk [vmem:[#allocation3 + $0x1b0] sm:$0xff] %vm6836_vm3, %v23609_v41  ;;  %v7075_v49 = vld [vmem:[%s23105_s4] sm:$0xff]  ;;  %v7012_v54 = vld [vmem:[#allocation3 + $0x8] sm:$0xff] }
 0x374   :  { %v6523_v7 = vadd.f32 %v6436_v2, %v5813_v33  ;;  %16672 = vmatpush3.msra.mxu1 %v14035_v12  ;;  %6893 = vst.msk [vmem:[#allocation3 + $0x1b8] sm:$0xff] %vm6836_vm3, %v23609_v41  ;;  %6895 = vst.msk [vmem:[#allocation3 + $0x1c8] sm:$0xff] %vm6836_vm3, %v23609_v41  ;;  %v7011_v58 = vld [vmem:[#allocation3] sm:$0xff]  ;;  %16769 = vmatprep.subr.mxu0 %v7075_v49 }
 0x375   :  { %v16667_v18 = vpop.f32.mrf.mxu0  ;;  %v5107_v9 = vadd.f32 %v23607_v55, %v4396_v21  ;;  %6896 = vst.msk [vmem:[#allocation3 + $0x1d0] sm:$0xff] %vm6836_vm3, %v23609_v41  ;;  %6898 = vst.msk [vmem:[#allocation3 + $0x1e0] sm:$0xff] %vm6836_vm3, %v23609_v41  ;;  %16770 = vmatpush3.msra.mxu0 %v7075_v49  ;;  %16771 = vmatprep.mubr.msk.f32.mxu0 %vm6836_vm3, %v7011_v58 }
 0x376   :  { %6630 = vxpose.xlu1.b32.cont [6/16] (narrow) %v6518_v6, 8  ;;  %6606 = vxpose.xlu0.b32.cont [14/16] (narrow) %v6510_v62, 8  ;;  %v6526_v28 = vadd.f32 %v16667_v18, %v5816_v19  ;;  %6899 = vst.msk [vmem:[#allocation3 + $0x1e8] sm:$0xff] %vm6836_vm3, %v23609_v41  ;;  %6901 = vst.msk [vmem:[#allocation3 + $0x1f8] sm:$0xff] %vm6836_vm3, %v23609_v41 }
 0x377   :  { %v6446_v3 = vpop.f32.mrf.mxu0  ;;  %v5817_v62 = vadd.f32 %v5746_v42, %v5107_v9  ;;  %6902 = vst.msk [vmem:[#allocation3 + $0x200] sm:$0xff] %vm6836_vm3, %v23609_v41  ;;  %6904 = vst.msk [vmem:[#allocation3 + $0x210] sm:$0xff] %vm6836_vm3, %v23609_v41  ;;  %16772 = vmatmul.mubr.msk.f32.vlgmr.msra.gmra.mxu0 %vm6836_vm3, %v7012_v54 }
 0x378   :  { %v6525_v37 = vadd.f32 %v6446_v3, %v5815_v32  ;;  %6905 = vst.msk [vmem:[#allocation3 + $0x218] sm:$0xff] %vm6836_vm3, %v23609_v41  ;;  %6907 = vst.msk [vmem:[#allocation3 + $0x228] sm:$0xff] %vm6836_vm3, %v23609_v41  ;;  %v14164_v3 = vld [vmem:[%s23105_s4 + $0x10] sm:$0xff] }
 0x379   :  { %v16670_v25 = vpop.f32.mrf.mxu0  ;;  %6908 = vst.msk [vmem:[#allocation3 + $0x230] sm:$0xff] %vm6836_vm3, %v23609_v41  ;;  %6910 = vst.msk [vmem:[#allocation3 + $0x240] sm:$0xff] %vm6836_vm3, %v23609_v41  ;;  %16867 = vmatprep.subr.mxu1 %v14164_v3 }
 0x37a   :  { %6631 = vxpose.xlu1.b32.cont [7/16] (narrow) %v6519_v30, 8  ;;  %6607 = vxpose.xlu0.b32.cont [15/16] (narrow) %v6511_v52, 8  ;;  %v6528_v10 = vadd.f32 %v16670_v25, %v5818_v56  ;;  %6911 = vst.msk [vmem:[#allocation3 + $0x248] sm:$0xff] %vm6836_vm3, %v23609_v41  ;;  %6913 = vst.msk [vmem:[#allocation3 + $0x258] sm:$0xff] %vm6836_vm3, %v23609_v41 }
 0x37b   :  { %v6456_v50 = vpop.f32.mrf.mxu0  ;;  %6914 = vst.msk [vmem:[#allocation3 + $0x260] sm:$0xff] %vm6836_vm3, %v23609_v41  ;;  %6916 = vst.msk [vmem:[#allocation3 + $0x270] sm:$0xff] %vm6836_vm3, %v23609_v41 }
 0x37c   :  { %v6527_v6 = vadd.f32 %v6456_v50, %v5817_v62  ;;  %6917 = vst.msk [vmem:[#allocation3 + $0x278] sm:$0xff] %vm6836_vm3, %v23609_v41  ;;  %6919 = vst.msk [vmem:[#allocation3 + $0x288] sm:$0xff] %vm6836_vm3, %v23609_v41 }
 0x37d   :  { %6920 = vst.msk [vmem:[#allocation3 + $0x290] sm:$0xff] %vm6836_vm3, %v23609_v41  ;;  %6922 = vst.msk [vmem:[#allocation3 + $0x2a0] sm:$0xff] %vm6836_vm3, %v23609_v41 }
 0x37e   :  { %6632 = vxpose.xlu1.b32.cont [8/16] (narrow) %v6520_v34, 8  ;;  %6608 = vxpose.xlu0.b32.end [16/16] (narrow) %v6512_v17, 8  ;;  %v6545_v15 = vpop.trf.xlu0  ;;  %6923 = vst.msk [vmem:[#allocation3 + $0x2a8] sm:$0xff] %vm6836_vm3, %v23609_v41  ;;  %6925 = vst.msk [vmem:[#allocation3 + $0x2b8] sm:$0xff] %vm6836_vm3, %v23609_v41 }
 0x37f   :  { %6926 = vst.msk [vmem:[#allocation3 + $0x2c0] sm:$0xff] %vm6836_vm3, %v23609_v41  ;;  %6928 = vst.msk [vmem:[#allocation3 + $0x2d0] sm:$0xff] %vm6836_vm3, %v23609_v41 }
 0x380   :  { %6929 = vst.msk [vmem:[#allocation3 + $0x2d8] sm:$0xff] %vm6836_vm3, %v23609_v41  ;;  %6931 = vst.msk [vmem:[#allocation3 + $0x2e8] sm:$0xff] %vm6836_vm3, %v23609_v41 }
 0x381   :  { %6932 = vst.msk [vmem:[#allocation3 + $0x2f0] sm:$0xff] %vm6836_vm3, %v23609_v41  ;;  %6934 = vst.msk [vmem:[#allocation3 + $0x300] sm:$0xff] %vm6836_vm3, %v23609_v41 }
 0x382   :  { %6633 = vxpose.xlu1.b32.cont [9/16] (narrow) %v6521_v4, 8  ;;  %v6684_v4 = vld [vmem:[%s23103_s2] sm:$0xff]  ;;  %6935 = vst.msk [vmem:[#allocation3 + $0x308] sm:$0xff] %vm6836_vm3, %v23609_v41  ;;  %6937 = vst.msk [vmem:[#allocation3 + $0x318] sm:$0xff] %vm6836_vm3, %v23609_v41 }
 0x383   :  { %6938 = vst.msk [vmem:[#allocation3 + $0x320] sm:$0xff] %vm6836_vm3, %v23609_v41  ;;  %6940 = vst.msk [vmem:[#allocation3 + $0x330] sm:$0xff] %vm6836_vm3, %v23609_v41 }
 0x384   :  { %6941 = vst.msk [vmem:[#allocation3 + $0x338] sm:$0xff] %vm6836_vm3, %v23609_v41  ;;  %6943 = vst.msk [vmem:[#allocation3 + $0x348] sm:$0xff] %vm6836_vm3, %v23609_v41 }
 0x385   :  { %6944 = vst.msk [vmem:[#allocation3 + $0x350] sm:$0xff] %vm6836_vm3, %v23609_v41 }
 0x386   :  { %6634 = vxpose.xlu1.b32.cont [10/16] (narrow) %v6522_v40, 8  ;;  %6843 = vst.msk [vmem:[#allocation3 + $0x28] sm:$0x3] %vm6839_vm4, %v23609_v41  ;;  %6840 = vst.msk [vmem:[#allocation3 + $0x10] sm:$0x3] %vm6839_vm4, %v23609_v41 }
 0x387   :  { %6846 = vst.msk [vmem:[#allocation3 + $0x40] sm:$0x3] %vm6839_vm4, %v23609_v41  ;;  %6849 = vst.msk [vmem:[#allocation3 + $0x58] sm:$0x3] %vm6839_vm4, %v23609_v41 }
 0x388   :  { %6852 = vst.msk [vmem:[#allocation3 + $0x70] sm:$0x3] %vm6839_vm4, %v23609_v41  ;;  %6855 = vst.msk [vmem:[#allocation3 + $0x88] sm:$0x3] %vm6839_vm4, %v23609_v41 }
 0x389   :  { %6858 = vst.msk [vmem:[#allocation3 + $0xa0] sm:$0x3] %vm6839_vm4, %v23609_v41  ;;  %6861 = vst.msk [vmem:[#allocation3 + $0xb8] sm:$0x3] %vm6839_vm4, %v23609_v41 }
 0x38a   :  { %6635 = vxpose.xlu1.b32.cont [11/16] (narrow) %v6523_v7, 8  ;;  %6864 = vst.msk [vmem:[#allocation3 + $0xd0] sm:$0x3] %vm6839_vm4, %v23609_v41  ;;  %6867 = vst.msk [vmem:[#allocation3 + $0xe8] sm:$0x3] %vm6839_vm4, %v23609_v41 }
 0x38b   :  { %6870 = vst.msk [vmem:[#allocation3 + $0x100] sm:$0x3] %vm6839_vm4, %v23609_v41  ;;  %6873 = vst.msk [vmem:[#allocation3 + $0x118] sm:$0x3] %vm6839_vm4, %v23609_v41 }
 0x38c   :  { %6876 = vst.msk [vmem:[#allocation3 + $0x130] sm:$0x3] %vm6839_vm4, %v23609_v41  ;;  %6879 = vst.msk [vmem:[#allocation3 + $0x148] sm:$0x3] %vm6839_vm4, %v23609_v41 }
 0x38d   :  { %6882 = vst.msk [vmem:[#allocation3 + $0x160] sm:$0x3] %vm6839_vm4, %v23609_v41  ;;  %6885 = vst.msk [vmem:[#allocation3 + $0x178] sm:$0x3] %vm6839_vm4, %v23609_v41 }
 0x38e   :  { %6636 = vxpose.xlu1.b32.cont [12/16] (narrow) %v6524_v38, 8  ;;  %6888 = vst.msk [vmem:[#allocation3 + $0x190] sm:$0x3] %vm6839_vm4, %v23609_v41  ;;  %6891 = vst.msk [vmem:[#allocation3 + $0x1a8] sm:$0x3] %vm6839_vm4, %v23609_v41  ;;  %v7077_v38 = vld [vmem:[#allocation3 + $0x9] sm:$0xff] }
 0x38f   :  { %6894 = vst.msk [vmem:[#allocation3 + $0x1c0] sm:$0x3] %vm6839_vm4, %v23609_v41  ;;  %6897 = vst.msk [vmem:[#allocation3 + $0x1d8] sm:$0x3] %vm6839_vm4, %v23609_v41  ;;  %16674 = vmatmul.mubr.msk.f32.vlgmr.msra.gmra.mxu1 %vm6836_vm3, %v7077_v38 }
 0x390   :  { %6900 = vst.msk [vmem:[#allocation3 + $0x1f0] sm:$0x3] %vm6839_vm4, %v23609_v41  ;;  %6903 = vst.msk [vmem:[#allocation3 + $0x208] sm:$0x3] %vm6839_vm4, %v23609_v41  ;;  %16868 = vmatpush3.msra.mxu1 %v14164_v3 }
 0x391   :  { %6906 = vst.msk [vmem:[#allocation3 + $0x220] sm:$0x3] %vm6839_vm4, %v23609_v41  ;;  %6909 = vst.msk [vmem:[#allocation3 + $0x238] sm:$0x3] %vm6839_vm4, %v23609_v41 }
 0x392   :  { %6637 = vxpose.xlu1.b32.cont [13/16] (narrow) %v6525_v37, 8  ;;  %6912 = vst.msk [vmem:[#allocation3 + $0x250] sm:$0x3] %vm6839_vm4, %v23609_v41  ;;  %6915 = vst.msk [vmem:[#allocation3 + $0x268] sm:$0x3] %vm6839_vm4, %v23609_v41 }
 0x393   :  { %6918 = vst.msk [vmem:[#allocation3 + $0x280] sm:$0x3] %vm6839_vm4, %v23609_v41  ;;  %6921 = vst.msk [vmem:[#allocation3 + $0x298] sm:$0x3] %vm6839_vm4, %v23609_v41 }
 0x394   :  { %6924 = vst.msk [vmem:[#allocation3 + $0x2b0] sm:$0x3] %vm6839_vm4, %v23609_v41  ;;  %6927 = vst.msk [vmem:[#allocation3 + $0x2c8] sm:$0x3] %vm6839_vm4, %v23609_v41 }
 0x395   :  { %6930 = vst.msk [vmem:[#allocation3 + $0x2e0] sm:$0x3] %vm6839_vm4, %v23609_v41  ;;  %6933 = vst.msk [vmem:[#allocation3 + $0x2f8] sm:$0x3] %vm6839_vm4, %v23609_v41 }
 0x396   :  { %6638 = vxpose.xlu1.b32.cont [14/16] (narrow) %v6526_v28, 8  ;;  %6936 = vst.msk [vmem:[#allocation3 + $0x310] sm:$0x3] %vm6839_vm4, %v23609_v41  ;;  %6939 = vst.msk [vmem:[#allocation3 + $0x328] sm:$0x3] %vm6839_vm4, %v23609_v41 }
 0x397   :  { %6942 = vst.msk [vmem:[#allocation3 + $0x340] sm:$0x3] %vm6839_vm4, %v23609_v41  ;;  %6945 = vst.msk [vmem:[#allocation3 + $0x358] sm:$0x3] %vm6839_vm4, %v23609_v41 }
 0x39a   :  { %6639 = vxpose.xlu1.b32.cont [15/16] (narrow) %v6527_v6, 8 }
 0x39e   :  { %6640 = vxpose.xlu1.b32.end [16/16] (narrow) %v6528_v10, 8  ;;  %v6577_v59 = vpop.trf.xlu1 }
 0x39f   :  { %v6657_v11 = vadd.f32 %v6577_v59, %v6545_v15 }
 0x3a7   :  { %17557 = vset.pattern.permute.xlu0 %v17593_v14 }
 0x3bc   :  { %17556 = vset.pattern.permute.xlu1 %v17593_v14 }
 0x3be   :  { %v6609_v22 = vpop.trf.xlu0 }
 0x3bf   :  { %v6658_v52 = vadd.f32 %v6657_v11, %v6609_v22 }
 0x3de   :  { %v6641_v30 = vpop.trf.xlu1 }
 0x3df   :  { %v6659_v39 = vadd.f32 %v6658_v52, %v6641_v30 }
 0x3e1   :  { %6660 = vadd.xlane.f32.xlu0 %v6659_v39 }
 0x3f7   :  { %6697 = vperm.xlu0 %17557, %v6694_v5  }
 0x46a   :  { %v6661_v16 = vpop.xlane.xlu0 %6660 }
 0x46b   :  { %v6663_v51 = vmul.f32 0.001953125, %v6661_v16 }
 0x46d   :  { %v20503_v29 = vsub.f32 %v6545_v15, %v6663_v51  ;;  %v20505_v36 = vsub.f32 %v6577_v59, %v6663_v51  ;;  %v20507_v60 = vsub.f32 %v6609_v22, %v6663_v51  ;;  %v20509_v17 = vsub.f32 %v6641_v30, %v6663_v51 }
 0x46f   :  { %v6668_v34 = vmul.f32 %v20503_v29, %v20503_v29  ;;  %v6669_v61 = vmul.f32 %v20505_v36, %v20505_v36  ;;  %v6670_v46 = vmul.f32 %v20507_v60, %v20507_v60  ;;  %v6671_v63 = vmul.f32 %v20509_v17, %v20509_v17 }
 0x471   :  { %v6672_v0 = vadd.f32 %v6669_v61, %v6668_v34 }
 0x472   :  { %v20677_v23 = vpop.permute.xlu0 %6697 }
 0x473   :  { %v6673_v1 = vadd.f32 %v6672_v0, %v6670_v46 }
 0x475   :  { %v6674_v24 = vadd.f32 %v6673_v1, %v6671_v63 }
 0x477   :  { %6675 = vadd.xlane.f32.xlu1 %v6674_v24  ;;  %v14229_v24 = vld [vmem:[%s23105_s4 + $0x18] sm:$0xff] }
 0x478   :  { %16965 = vmatprep.subr.mxu0 %v14229_v24 }
 0x479   :  { %16966 = vmatpush3.msra.mxu0 %v14229_v24 }
 0x488   :  { %6687 = vperm.xlu1 %17556, %v6684_v4   ;;  %v20832_v4 = vld [vmem:[%s23105_s4 + $0x20] sm:$0xff] }
 0x489   :  { %17063 = vmatprep.subr.mxu1 %v20832_v4 }
 0x500   :  { %v6676_v53 = vpop.xlane.xlu1 %6675 }
 0x501   :  { %v6677_v35 = vmul.f32 0.001953125, %v6676_v53 }
 0x503   :  { %v6678_v57 = vadd.f32 1e-05, %v6677_v35 }
 0x504   :  { %v20671_v40 = vpop.permute.xlu1 %6687 }
 0x505   :  { %17558 = vrsqrt.f32 %v6678_v57 }
 0x512   :  { %v20669_v20 = vpop.eup %17558 }
 0x513   :  { %v6680_v2 = vmul.f32 %v20669_v20, %v20503_v29  ;;  %v6681_v33 = vmul.f32 %v20669_v20, %v20505_v36  ;;  %v6682_v32 = vmul.f32 %v20669_v20, %v20507_v60  ;;  %v6683_v31 = vmul.f32 %v20669_v20, %v20509_v17 }
 0x515   :  { %v6690_v26 = vmul.f32 %v20671_v40, %v6680_v2  ;;  %v6691_v45 = vmul.f32 %v20671_v40, %v6681_v33  ;;  %v6692_v27 = vmul.f32 %v20671_v40, %v6682_v32  ;;  %v6693_v44 = vmul.f32 %v20671_v40, %v6683_v31 }
 0x517   :  { %v6700_v43 = vadd.f32 %v20677_v23, %v6690_v26  ;;  %v6701_v7 = vadd.f32 %v20677_v23, %v6691_v45  ;;  %v6703_v21 = vadd.f32 %v20677_v23, %v6693_v44  ;;  %v6702_v37 = vadd.f32 %v20677_v23, %v6692_v27 }
 0x519   :  { %v6704_v18 = vmax.f32 %v6700_v43, 0.0  ;;  %v6705_v48 = vmax.f32 %v6701_v7, 0.0  ;;  %v6707_v25 = vmax.f32 %v6703_v21, 0.0  ;;  %v6706_v47 = vmax.f32 %v6702_v37, 0.0 }
 0x51b   :  { %6740 = vxpose.xlu0.b32.start.end [1/1] (short) %v6705_v48, 128  ;;  %6708 = vxpose.xlu1.b32.start.end [1/1] (short) %v6704_v18, 128 }
 0x558   :  { %6804 = vxpose.xlu0.b32.start.end [1/1] (short) %v6707_v25, 128  ;;  %6772 = vxpose.xlu1.b32.start.end [1/1] (short) %v6706_v47, 128 }
 0x597   :  { %v6724_v19 = vpop.trf.xlu1  ;;  %v6756_v55 = vpop.trf.xlu0 }
 0x598   :  { %6947 = vst.msk [vmem:[#allocation3 + $0x19] sm:$0xff] %vm6836_vm3, %v6724_v19  ;;  %6963 = vst.msk [vmem:[#allocation3 + $0xd9] sm:$0xff] %vm6836_vm3, %v6756_v55 }
 0x59b   :  { %v6725_v9 = vpop.trf.xlu1  ;;  %v6757_v42 = vpop.trf.xlu0 }
 0x59c   :  { %6948 = vst.msk [vmem:[#allocation3 + $0x21] sm:$0xff] %vm6836_vm3, %v6725_v9  ;;  %6964 = vst.msk [vmem:[#allocation3 + $0xe1] sm:$0xff] %vm6836_vm3, %v6757_v42 }
 0x59f   :  { %v6726_v28 = vpop.trf.xlu1  ;;  %v7078_v50 = vld [vmem:[#allocation3 + $0x19] sm:$0xff]  ;;  %v6758_v6 = vpop.trf.xlu0 }
 0x5a0   :  { %v20777_v62 = vld [vmem:[#allocation3 + $0x18] sm:$0xff]  ;;  %6949 = vst.msk [vmem:[#allocation3 + $0x31] sm:$0xff] %vm6836_vm3, %v6726_v28  ;;  %16676 = vmatprep.mubr.msk.f32.mxu1 %vm6836_vm3, %v7078_v50  ;;  %6965 = vst.msk [vmem:[#allocation3 + $0xf1] sm:$0xff] %vm6836_vm3, %v6758_v6 }
 0x5a1   :  { %16774 = vmatprep.mubr.msk.f32.mxu0 %vm6836_vm3, %v20777_v62  ;;  %v7094_v6 = vld [vmem:[#allocation3 + $0xd9] sm:$0xff] }
 0x5a3   :  { %v6727_v8 = vpop.trf.xlu1  ;;  %v7079_v56 = vld [vmem:[#allocation3 + $0x21] sm:$0xff]  ;;  %v6759_v15 = vpop.trf.xlu0 }
 0x5a4   :  { %v20784_v10 = vld [vmem:[#allocation3 + $0x20] sm:$0xff]  ;;  %6950 = vst.msk [vmem:[#allocation3 + $0x39] sm:$0xff] %vm6836_vm3, %v6727_v8  ;;  %16677 = vmatmul.mubr.msk.f32.gmra.mxu1 %vm6836_vm3, %v7079_v56  ;;  %6966 = vst.msk [vmem:[#allocation3 + $0xf9] sm:$0xff] %vm6836_vm3, %v6759_v15  ;;  %v20897_v8 = vld [vmem:[#allocation3 + $0xd8] sm:$0xff] }
 0x5a5   :  { %16775 = vmatmul.mubr.msk.f32.gmra.mxu0 %vm6836_vm3, %v20784_v10  ;;  %v7095_v15 = vld [vmem:[#allocation3 + $0xe1] sm:$0xff] }
 0x5a7   :  { %v6728_v59 = vpop.trf.xlu1  ;;  %v7080_v11 = vld [vmem:[#allocation3 + $0x31] sm:$0xff]  ;;  %v6760_v52 = vpop.trf.xlu0 }
 0x5a8   :  { %v20791_v22 = vld [vmem:[#allocation3 + $0x30] sm:$0xff]  ;;  %6951 = vst.msk [vmem:[#allocation3 + $0x49] sm:$0xff] %vm6836_vm3, %v6728_v59  ;;  %16679 = vmatprep.mubr.msk.f32.mxu1 %vm6836_vm3, %v7080_v11  ;;  %6967 = vst.msk [vmem:[#allocation3 + $0x109] sm:$0xff] %vm6836_vm3, %v6760_v52  ;;  %v20903_v59 = vld [vmem:[#allocation3 + $0xe0] sm:$0xff] }
 0x5a9   :  { %16777 = vmatprep.mubr.msk.f32.mxu0 %vm6836_vm3, %v20791_v22  ;;  %v7096_v52 = vld [vmem:[#allocation3 + $0xf1] sm:$0xff] }
 0x5ab   :  { %v6729_v30 = vpop.trf.xlu1  ;;  %v7081_v39 = vld [vmem:[#allocation3 + $0x39] sm:$0xff]  ;;  %v6761_v5 = vpop.trf.xlu0 }
 0x5ac   :  { %v20798_v14 = vld [vmem:[#allocation3 + $0x38] sm:$0xff]  ;;  %6952 = vst.msk [vmem:[#allocation3 + $0x51] sm:$0xff] %vm6836_vm3, %v6729_v30  ;;  %16680 = vmatmul.mubr.msk.f32.gmra.mxu1 %vm6836_vm3, %v7081_v39  ;;  %6968 = vst.msk [vmem:[#allocation3 + $0x111] sm:$0xff] %vm6836_vm3, %v6761_v5  ;;  %v20909_v30 = vld [vmem:[#allocation3 + $0xf0] sm:$0xff]  ;;  %v16675_v39 = vpop.f32.mrf.mxu1  ;;  %v16773_v5 = vpop.f32.mrf.mxu0 }
 0x5ad   :  { %16778 = vmatmul.mubr.msk.f32.gmra.mxu0 %vm6836_vm3, %v20798_v14 }
 0x5af   :  { %v6730_v16 = vpop.trf.xlu1  ;;  %v7082_v51 = vld [vmem:[#allocation3 + $0x49] sm:$0xff]  ;;  %v6762_v36 = vpop.trf.xlu0 }
 0x5b0   :  { %v20805_v29 = vld [vmem:[#allocation3 + $0x48] sm:$0xff]  ;;  %6953 = vst.msk [vmem:[#allocation3 + $0x61] sm:$0xff] %vm6836_vm3, %v6730_v16  ;;  %16682 = vmatprep.mubr.msk.f32.mxu1 %vm6836_vm3, %v7082_v51  ;;  %6969 = vst.msk [vmem:[#allocation3 + $0x121] sm:$0xff] %vm6836_vm3, %v6762_v36  ;;  %v20915_v16 = vadd.f32 %v16773_v5, %v16675_v39  ;;  %v7097_v36 = vld [vmem:[#allocation3 + $0xf9] sm:$0xff] }
 0x5b1   :  { %16780 = vmatprep.mubr.msk.f32.mxu0 %vm6836_vm3, %v20805_v29 }
 0x5b2   :  { %23610 = vst [vmem:[#allocation54_spill] sm:$0xff] %v20915_v16 }
 0x5b3   :  { %v6731_v60 = vpop.trf.xlu1  ;;  %v7083_v17 = vld [vmem:[#allocation3 + $0x51] sm:$0xff]  ;;  %v6763_v61 = vpop.trf.xlu0 }
 0x5b4   :  { %v20812_v34 = vld [vmem:[#allocation3 + $0x50] sm:$0xff]  ;;  %6954 = vst.msk [vmem:[#allocation3 + $0x69] sm:$0xff] %vm6836_vm3, %v6731_v60  ;;  %16683 = vmatmul.mubr.msk.f32.gmra.mxu1 %vm6836_vm3, %v7083_v17  ;;  %6970 = vst.msk [vmem:[#allocation3 + $0x129] sm:$0xff] %vm6836_vm3, %v6763_v61  ;;  %v20917_v60 = vld [vmem:[#allocation3 + $0xf8] sm:$0xff] }
 0x5b5   :  { %16781 = vmatmul.mubr.msk.f32.gmra.mxu0 %vm6836_vm3, %v20812_v34  ;;  %v7098_v61 = vld [vmem:[#allocation3 + $0x109] sm:$0xff] }
 0x5b6   :  { %v20929_v24 = vld [vmem:[#allocation3 + $0x110] sm:$0xff] }
 0x5b7   :  { %v6732_v46 = vpop.trf.xlu1  ;;  %v7084_v0 = vld [vmem:[#allocation3 + $0x61] sm:$0xff]  ;;  %v6764_v1 = vpop.trf.xlu0 }
 0x5b8   :  { %v20819_v63 = vld [vmem:[#allocation3 + $0x60] sm:$0xff]  ;;  %6955 = vst.msk [vmem:[#allocation3 + $0x79] sm:$0xff] %vm6836_vm3, %v6732_v46  ;;  %16685 = vmatprep.mubr.msk.f32.mxu1 %vm6836_vm3, %v7084_v0  ;;  %6971 = vst.msk [vmem:[#allocation3 + $0x139] sm:$0xff] %vm6836_vm3, %v6764_v1  ;;  %v20923_v46 = vld [vmem:[#allocation3 + $0x108] sm:$0xff] }
 0x5b9   :  { %16783 = vmatprep.mubr.msk.f32.mxu0 %vm6836_vm3, %v20819_v63  ;;  %v7099_v1 = vld [vmem:[#allocation3 + $0x111] sm:$0xff] }
 0x5bb   :  { %v6733_v12 = vpop.trf.xlu1  ;;  %v7085_v41 = vld [vmem:[#allocation3 + $0x69] sm:$0xff]  ;;  %v6765_v35 = vpop.trf.xlu0 }
 0x5bc   :  { %v20835_v53 = vld [vmem:[#allocation3 + $0x68] sm:$0xff]  ;;  %6956 = vst.msk [vmem:[#allocation3 + $0x81] sm:$0xff] %vm6836_vm3, %v6733_v12  ;;  %16686 = vmatmul.mubr.msk.f32.gmra.mxu1 %vm6836_vm3, %v7085_v41  ;;  %6972 = vst.msk [vmem:[#allocation3 + $0x141] sm:$0xff] %vm6836_vm3, %v6765_v35  ;;  %v20935_v35 = vld [vmem:[#allocation3 + $0x120] sm:$0xff] }
 0x5bd   :  { %16784 = vmatmul.mubr.msk.f32.gmra.mxu0 %vm6836_vm3, %v20835_v53  ;;  %v7100_v41 = vld [vmem:[#allocation3 + $0x121] sm:$0xff] }
 0x5bf   :  { %v6734_v57 = vpop.trf.xlu1  ;;  %v7086_v20 = vld [vmem:[#allocation3 + $0x79] sm:$0xff]  ;;  %v6766_v2 = vpop.trf.xlu0 }
 0x5c0   :  { %v20842_v40 = vld [vmem:[#allocation3 + $0x78] sm:$0xff]  ;;  %6957 = vst.msk [vmem:[#allocation3 + $0x91] sm:$0xff] %vm6836_vm3, %v6734_v57  ;;  %16688 = vmatprep.mubr.msk.f32.mxu1 %vm6836_vm3, %v7086_v20  ;;  %6973 = vst.msk [vmem:[#allocation3 + $0x151] sm:$0xff] %vm6836_vm3, %v6766_v2  ;;  %v7101_v20 = vld [vmem:[#allocation3 + $0x129] sm:$0xff] }
 0x5c1   :  { %16786 = vmatprep.mubr.msk.f32.mxu0 %vm6836_vm3, %v20842_v40  ;;  %v20941_v2 = vld [vmem:[#allocation3 + $0x128] sm:$0xff] }
 0x5c3   :  { %v6735_v33 = vpop.trf.xlu1  ;;  %v7087_v23 = vld [vmem:[#allocation3 + $0x81] sm:$0xff]  ;;  %v6767_v45 = vpop.trf.xlu0 }
 0x5c4   :  { %v20849_v26 = vld [vmem:[#allocation3 + $0x80] sm:$0xff]  ;;  %6958 = vst.msk [vmem:[#allocation3 + $0x99] sm:$0xff] %vm6836_vm3, %v6735_v33  ;;  %16689 = vmatmul.mubr.msk.f32.gmra.mxu1 %vm6836_vm3, %v7087_v23  ;;  %6974 = vst.msk [vmem:[#allocation3 + $0x159] sm:$0xff] %vm6836_vm3, %v6767_v45  ;;  %v20947_v45 = vld [vmem:[#allocation3 + $0x138] sm:$0xff] }
 0x5c5   :  { %16787 = vmatmul.mubr.msk.f32.gmra.mxu0 %vm6836_vm3, %v20849_v26  ;;  %v7102_v23 = vld [vmem:[#allocation3 + $0x139] sm:$0xff] }
 0x5c7   :  { %v6736_v43 = vpop.trf.xlu1  ;;  %v7088_v7 = vld [vmem:[#allocation3 + $0x91] sm:$0xff]  ;;  %v6768_v48 = vpop.trf.xlu0 }
 0x5c8   :  { %v20856_v18 = vld [vmem:[#allocation3 + $0x90] sm:$0xff]  ;;  %6959 = vst.msk [vmem:[#allocation3 + $0xa9] sm:$0xff] %vm6836_vm3, %v6736_v43  ;;  %16691 = vmatprep.mubr.msk.f32.mxu1 %vm6836_vm3, %v7088_v7  ;;  %6975 = vst.msk [vmem:[#allocation3 + $0x169] sm:$0xff] %vm6836_vm3, %v6768_v48  ;;  %v7103_v7 = vld [vmem:[#allocation3 + $0x141] sm:$0xff] }
 0x5c9   :  { %16789 = vmatprep.mubr.msk.f32.mxu0 %vm6836_vm3, %v20856_v18  ;;  %v20953_v48 = vld [vmem:[#allocation3 + $0x140] sm:$0xff] }
 0x5cb   :  { %v6737_v49 = vpop.trf.xlu1  ;;  %v7089_v13 = vld [vmem:[#allocation3 + $0x99] sm:$0xff]  ;;  %v6769_v54 = vpop.trf.xlu0 }
 0x5cc   :  { %v20863_v58 = vld [vmem:[#allocation3 + $0x98] sm:$0xff]  ;;  %6960 = vst.msk [vmem:[#allocation3 + $0xb1] sm:$0xff] %vm6836_vm3, %v6737_v49  ;;  %16692 = vmatmul.mubr.msk.f32.gmra.mxu1 %vm6836_vm3, %v7089_v13  ;;  %6976 = vst.msk [vmem:[#allocation3 + $0x171] sm:$0xff] %vm6836_vm3, %v6769_v54  ;;  %v20959_v54 = vld [vmem:[#allocation3 + $0x150] sm:$0xff] }
 0x5cd   :  { %16790 = vmatmul.mubr.msk.f32.gmra.mxu0 %vm6836_vm3, %v20863_v58  ;;  %v7104_v13 = vld [vmem:[#allocation3 + $0x151] sm:$0xff] }
 0x5cf   :  { %v6738_v38 = vpop.trf.xlu1  ;;  %v7090_v3 = vld [vmem:[#allocation3 + $0xa9] sm:$0xff]  ;;  %v6770_v31 = vpop.trf.xlu0 }
 0x5d0   :  { %v20870_v32 = vld [vmem:[#allocation3 + $0xa8] sm:$0xff]  ;;  %6961 = vst.msk [vmem:[#allocation3 + $0xc1] sm:$0xff] %vm6836_vm3, %v6738_v38  ;;  %16694 = vmatprep.mubr.msk.f32.mxu1 %vm6836_vm3, %v7090_v3  ;;  %6977 = vst.msk [vmem:[#allocation3 + $0x181] sm:$0xff] %vm6836_vm3, %v6770_v31 }
 0x5d1   :  { %16792 = vmatprep.mubr.msk.f32.mxu0 %vm6836_vm3, %v20870_v32  ;;  %v7106_v38 = vld [vmem:[#allocation3 + $0x169] sm:$0xff] }
 0x5d2   :  { %v20965_v3 = vld [vmem:[#allocation3 + $0x168] sm:$0xff] }
 0x5d3   :  { %v6739_v27 = vpop.trf.xlu1  ;;  %v7091_v44 = vld [vmem:[#allocation3 + $0xb1] sm:$0xff]  ;;  %v6771_v37 = vpop.trf.xlu0 }
 0x5d4   :  { %v20877_v21 = vld [vmem:[#allocation3 + $0xb0] sm:$0xff]  ;;  %6962 = vst.msk [vmem:[#allocation3 + $0xc9] sm:$0xff] %vm6836_vm3, %v6739_v27  ;;  %16695 = vmatmul.mubr.msk.f32.gmra.mxu1 %vm6836_vm3, %v7091_v44  ;;  %6978 = vst.msk [vmem:[#allocation3 + $0x189] sm:$0xff] %vm6836_vm3, %v6771_v37  ;;  %v7105_v27 = vld [vmem:[#allocation3 + $0x159] sm:$0xff] }
 0x5d5   :  { %16793 = vmatmul.mubr.msk.f32.gmra.mxu0 %vm6836_vm3, %v20877_v21  ;;  %v20967_v44 = vld [vmem:[#allocation3 + $0x158] sm:$0xff] }
 0x5d7   :  { %v6788_v25 = vpop.trf.xlu1  ;;  %v7092_v47 = vld [vmem:[#allocation3 + $0xc1] sm:$0xff]  ;;  %v6820_v55 = vpop.trf.xlu0 }
 0x5d8   :  { %v20884_v19 = vld [vmem:[#allocation3 + $0xc0] sm:$0xff]  ;;  %6979 = vst.msk [vmem:[#allocation3 + $0x1c9] sm:$0xff] %vm6836_vm3, %v6788_v25  ;;  %16697 = vmatprep.mubr.msk.f32.mxu1 %vm6836_vm3, %v7092_v47  ;;  %6995 = vst.msk [vmem:[#allocation3 + $0x289] sm:$0xff] %vm6836_vm3, %v6820_v55  ;;  %v7107_v25 = vld [vmem:[#allocation3 + $0x171] sm:$0xff] }
 0x5d9   :  { %16795 = vmatprep.mubr.msk.f32.mxu0 %vm6836_vm3, %v20884_v19  ;;  %v7108_v47 = vld [vmem:[#allocation3 + $0x1b1] sm:$0xff] }
 0x5da   :  { %v7043_v55 = vld [vmem:[#allocation3 + $0x1b0] sm:$0xff] }
 0x5db   :  { %v6789_v9 = vpop.trf.xlu1  ;;  %v7093_v42 = vld [vmem:[#allocation3 + $0xc9] sm:$0xff]  ;;  %v6821_v50 = vpop.trf.xlu0 }
 0x5dc   :  { %v20891_v28 = vld [vmem:[#allocation3 + $0xc8] sm:$0xff]  ;;  %6980 = vst.msk [vmem:[#allocation3 + $0x1d1] sm:$0xff] %vm6836_vm3, %v6789_v9  ;;  %16698 = vmatmul.mubr.msk.f32.gmra.mxu1 %vm6836_vm3, %v7093_v42  ;;  %6996 = vst.msk [vmem:[#allocation3 + $0x291] sm:$0xff] %vm6836_vm3, %v6821_v50  ;;  %v20977_v42 = vld [vmem:[#allocation3 + $0x170] sm:$0xff] }
 0x5dd   :  { %16796 = vmatmul.mubr.msk.f32.gmra.mxu0 %vm6836_vm3, %v20891_v28  ;;  %16700 = vmatprep.mubr.msk.f32.mxu1 %vm6836_vm3, %v7094_v6  ;;  %v7109_v6 = vld [vmem:[#allocation3 + $0x1b9] sm:$0xff] }
 0x5de   :  { %16798 = vmatprep.mubr.msk.f32.mxu0 %vm6836_vm3, %v20897_v8 }
 0x5df   :  { %v6790_v56 = vpop.trf.xlu1  ;;  %v6822_v11 = vpop.trf.xlu0  ;;  %v20989_v39 = vld [vmem:[#allocation3 + $0x1c8] sm:$0xff] }
 0x5e0   :  { %6981 = vst.msk [vmem:[#allocation3 + $0x1e1] sm:$0xff] %vm6836_vm3, %v6790_v56  ;;  %16701 = vmatmul.mubr.msk.f32.gmra.mxu1 %vm6836_vm3, %v7095_v15  ;;  %6997 = vst.msk [vmem:[#allocation3 + $0x2a1] sm:$0xff] %vm6836_vm3, %v6822_v11  ;;  %v7044_v56 = vld [vmem:[#allocation3 + $0x1b8] sm:$0xff] }
 0x5e1   :  { %16799 = vmatmul.mubr.msk.f32.gmra.mxu0 %vm6836_vm3, %v20903_v59  ;;  %16703 = vmatprep.mubr.msk.f32.mxu1 %vm6836_vm3, %v7096_v52  ;;  %v7110_v52 = vld [vmem:[#allocation3 + $0x1c9] sm:$0xff] }
 0x5e2   :  { %16801 = vmatprep.mubr.msk.f32.mxu0 %vm6836_vm3, %v20909_v30 }
 0x5e3   :  { %v6791_v51 = vpop.trf.xlu1  ;;  %v6823_v17 = vpop.trf.xlu0 }
 0x5e4   :  { %6982 = vst.msk [vmem:[#allocation3 + $0x1e9] sm:$0xff] %vm6836_vm3, %v6791_v51  ;;  %16704 = vmatmul.mubr.msk.f32.gmra.mxu1 %vm6836_vm3, %v7097_v36  ;;  %6998 = vst.msk [vmem:[#allocation3 + $0x2a9] sm:$0xff] %vm6836_vm3, %v6823_v17  ;;  %v7111_v51 = vld [vmem:[#allocation3 + $0x1d1] sm:$0xff] }
 0x5e5   :  { %16802 = vmatmul.mubr.msk.f32.gmra.mxu0 %vm6836_vm3, %v20917_v60  ;;  %16706 = vmatprep.mubr.msk.f32.mxu1 %vm6836_vm3, %v7098_v61  ;;  %v20995_v36 = vld [vmem:[#allocation3 + $0x1d0] sm:$0xff] }
 0x5e6   :  { %16804 = vmatprep.mubr.msk.f32.mxu0 %vm6836_vm3, %v20923_v46 }
 0x5e7   :  { %v6792_v0 = vpop.trf.xlu1  ;;  %v6824_v12 = vpop.trf.xlu0  ;;  %v7112_v61 = vld [vmem:[#allocation3 + $0x1e1] sm:$0xff] }
 0x5e8   :  { %6983 = vst.msk [vmem:[#allocation3 + $0x1f9] sm:$0xff] %vm6836_vm3, %v6792_v0  ;;  %16707 = vmatmul.mubr.msk.f32.gmra.mxu1 %vm6836_vm3, %v7099_v1  ;;  %6999 = vst.msk [vmem:[#allocation3 + $0x2b9] sm:$0xff] %vm6836_vm3, %v6824_v12  ;;  %v21001_v0 = vld [vmem:[#allocation3 + $0x1e0] sm:$0xff] }
 0x5e9   :  { %16805 = vmatmul.mubr.msk.f32.gmra.mxu0 %vm6836_vm3, %v20929_v24  ;;  %16709 = vmatprep.mubr.msk.f32.mxu1 %vm6836_vm3, %v7100_v41 }
 0x5ea   :  { %16807 = vmatprep.mubr.msk.f32.mxu0 %vm6836_vm3, %v20935_v35 }
 0x5eb   :  { %v6793_v57 = vpop.trf.xlu1  ;;  %v6825_v33 = vpop.trf.xlu0  ;;  %v7113_v12 = vld [vmem:[#allocation3 + $0x1e9] sm:$0xff] }
 0x5ec   :  { %6984 = vst.msk [vmem:[#allocation3 + $0x201] sm:$0xff] %vm6836_vm3, %v6793_v57  ;;  %16710 = vmatmul.mubr.msk.f32.gmra.mxu1 %vm6836_vm3, %v7101_v20  ;;  %7000 = vst.msk [vmem:[#allocation3 + $0x2c1] sm:$0xff] %vm6836_vm3, %v6825_v33  ;;  %v21007_v41 = vld [vmem:[#allocation3 + $0x1e8] sm:$0xff] }
 0x5ed   :  { %16808 = vmatmul.mubr.msk.f32.gmra.mxu0 %vm6836_vm3, %v20941_v2  ;;  %16712 = vmatprep.mubr.msk.f32.mxu1 %vm6836_vm3, %v7102_v23 }
 0x5ee   :  { %16810 = vmatprep.mubr.msk.f32.mxu0 %vm6836_vm3, %v20947_v45 }
 0x5ef   :  { %v6794_v43 = vpop.trf.xlu1  ;;  %v6826_v49 = vpop.trf.xlu0  ;;  %v7114_v20 = vld [vmem:[#allocation3 + $0x1f9] sm:$0xff] }
 0x5f0   :  { %6985 = vst.msk [vmem:[#allocation3 + $0x211] sm:$0xff] %vm6836_vm3, %v6794_v43  ;;  %16713 = vmatmul.mubr.msk.f32.gmra.mxu1 %vm6836_vm3, %v7103_v7  ;;  %7001 = vst.msk [vmem:[#allocation3 + $0x2d1] sm:$0xff] %vm6836_vm3, %v6826_v49  ;;  %v21013_v33 = vld [vmem:[#allocation3 + $0x1f8] sm:$0xff] }
 0x5f1   :  { %16811 = vmatmul.mubr.msk.f32.gmra.mxu0 %vm6836_vm3, %v20953_v48  ;;  %16715 = vmatprep.mubr.msk.f32.mxu1 %vm6836_vm3, %v7104_v13 }
 0x5f2   :  { %16813 = vmatprep.mubr.msk.f32.mxu0 %vm6836_vm3, %v20959_v54 }
 0x5f3   :  { %v6795_v31 = vpop.trf.xlu1  ;;  %v6827_v37 = vpop.trf.xlu0  ;;  %v7115_v43 = vld [vmem:[#allocation3 + $0x201] sm:$0xff] }
 0x5f4   :  { %6986 = vst.msk [vmem:[#allocation3 + $0x219] sm:$0xff] %vm6836_vm3, %v6795_v31  ;;  %16716 = vmatmul.mubr.msk.f32.gmra.mxu1 %vm6836_vm3, %v7105_v27  ;;  %7002 = vst.msk [vmem:[#allocation3 + $0x2d9] sm:$0xff] %vm6836_vm3, %v6827_v37  ;;  %v21019_v7 = vld [vmem:[#allocation3 + $0x200] sm:$0xff] }
 0x5f5   :  { %16814 = vmatmul.mubr.msk.f32.gmra.mxu0 %vm6836_vm3, %v20967_v44  ;;  %16718 = vmatprep.mubr.msk.f32.mxu1 %vm6836_vm3, %v7106_v38 }
 0x5f6   :  { %16816 = vmatprep.mubr.msk.f32.mxu0 %vm6836_vm3, %v20965_v3 }
 0x5f7   :  { %v6796_v9 = vpop.trf.xlu1  ;;  %v6828_v50 = vpop.trf.xlu0  ;;  %v7116_v13 = vld [vmem:[#allocation3 + $0x211] sm:$0xff] }
 0x5f8   :  { %6987 = vst.msk [vmem:[#allocation3 + $0x229] sm:$0xff] %vm6836_vm3, %v6796_v9  ;;  %16719 = vmatmul.mubr.msk.f32.gmra.mxu1 %vm6836_vm3, %v7107_v25  ;;  %7003 = vst.msk [vmem:[#allocation3 + $0x2e9] sm:$0xff] %vm6836_vm3, %v6828_v50  ;;  %v21025_v38 = vld [vmem:[#allocation3 + $0x210] sm:$0xff] }
 0x5f9   :  { %16817 = vmatmul.mubr.msk.f32.gmra.mxu0 %vm6836_vm3, %v20977_v42  ;;  %16721 = vmatprep.mubr.msk.f32.mxu1 %vm6836_vm3, %v7108_v47 }
 0x5fa   :  { %16819 = vmatprep.mubr.msk.f32.mxu0 %vm6836_vm3, %v7043_v55 }
 0x5fb   :  { %v6797_v15 = vpop.trf.xlu1  ;;  %v6829_v11 = vpop.trf.xlu0  ;;  %v7117_v27 = vld [vmem:[#allocation3 + $0x219] sm:$0xff] }
 0x5fc   :  { %6988 = vst.msk [vmem:[#allocation3 + $0x231] sm:$0xff] %vm6836_vm3, %v6797_v15  ;;  %16722 = vmatmul.mubr.msk.f32.gmra.mxu1 %vm6836_vm3, %v7109_v6  ;;  %7004 = vst.msk [vmem:[#allocation3 + $0x2f1] sm:$0xff] %vm6836_vm3, %v6829_v11  ;;  %v21031_v37 = vld [vmem:[#allocation3 + $0x218] sm:$0xff] }
 0x5fd   :  { %16820 = vmatmul.mubr.msk.f32.gmra.mxu0 %vm6836_vm3, %v7044_v56  ;;  %16724 = vmatprep.mubr.msk.f32.mxu1 %vm6836_vm3, %v7110_v52 }
 0x5fe   :  { %16822 = vmatprep.mubr.msk.f32.mxu0 %vm6836_vm3, %v20989_v39 }
 0x5ff   :  { %v6798_v5 = vpop.trf.xlu1  ;;  %v6830_v17 = vpop.trf.xlu0  ;;  %v7118_v47 = vld [vmem:[#allocation3 + $0x229] sm:$0xff] }
 0x600   :  { %6989 = vst.msk [vmem:[#allocation3 + $0x241] sm:$0xff] %vm6836_vm3, %v6798_v5  ;;  %16725 = vmatmul.mubr.msk.f32.gmra.mxu1 %vm6836_vm3, %v7111_v51  ;;  %7005 = vst.msk [vmem:[#allocation3 + $0x301] sm:$0xff] %vm6836_vm3, %v6830_v17  ;;  %v21037_v55 = vld [vmem:[#allocation3 + $0x228] sm:$0xff] }
 0x601   :  { %16823 = vmatmul.mubr.msk.f32.gmra.mxu0 %vm6836_vm3, %v20995_v36  ;;  %16727 = vmatprep.mubr.msk.f32.mxu1 %vm6836_vm3, %v7112_v61 }
 0x602   :  { %16825 = vmatprep.mubr.msk.f32.mxu0 %vm6836_vm3, %v21001_v0 }
 0x603   :  { %v6799_v1 = vpop.trf.xlu1  ;;  %v6831_v57 = vpop.trf.xlu0  ;;  %v7119_v50 = vld [vmem:[#allocation3 + $0x231] sm:$0xff] }
 0x604   :  { %6990 = vst.msk [vmem:[#allocation3 + $0x249] sm:$0xff] %vm6836_vm3, %v6799_v1  ;;  %16728 = vmatmul.mubr.msk.f32.gmra.mxu1 %vm6836_vm3, %v7113_v12  ;;  %7006 = vst.msk [vmem:[#allocation3 + $0x309] sm:$0xff] %vm6836_vm3, %v6831_v57  ;;  %v21043_v6 = vld [vmem:[#allocation3 + $0x230] sm:$0xff] }
 0x605   :  { %16826 = vmatmul.mubr.msk.f32.gmra.mxu0 %vm6836_vm3, %v21007_v41  ;;  %16730 = vmatprep.mubr.msk.f32.mxu1 %vm6836_vm3, %v7114_v20 }
 0x606   :  { %16828 = vmatprep.mubr.msk.f32.mxu0 %vm6836_vm3, %v21013_v33 }
 0x607   :  { %v6800_v23 = vpop.trf.xlu1  ;;  %v6832_v49 = vpop.trf.xlu0  ;;  %v7120_v56 = vld [vmem:[#allocation3 + $0x241] sm:$0xff] }
 0x608   :  { %6991 = vst.msk [vmem:[#allocation3 + $0x259] sm:$0xff] %vm6836_vm3, %v6800_v23  ;;  %16731 = vmatmul.mubr.msk.f32.gmra.mxu1 %vm6836_vm3, %v7115_v43  ;;  %7007 = vst.msk [vmem:[#allocation3 + $0x319] sm:$0xff] %vm6836_vm3, %v6832_v49  ;;  %v21049_v15 = vld [vmem:[#allocation3 + $0x240] sm:$0xff]  ;;  %v7126_v43 = vld [vmem:[#allocation3 + $0x289] sm:$0xff] }
 0x609   :  { %16829 = vmatmul.mubr.msk.f32.gmra.mxu0 %vm6836_vm3, %v21019_v7  ;;  %16733 = vmatprep.mubr.msk.f32.mxu1 %vm6836_vm3, %v7116_v13  ;;  %v21080_v49 = vld [vmem:[#allocation3 + $0x288] sm:$0xff]  ;;  %v7127_v13 = vld [vmem:[#allocation3 + $0x291] sm:$0xff] }
 0x60a   :  { %16831 = vmatprep.mubr.msk.f32.mxu0 %vm6836_vm3, %v21025_v38 }
 0x60b   :  { %v6801_v31 = vpop.trf.xlu1  ;;  %v6833_v25 = vpop.trf.xlu0  ;;  %v7121_v52 = vld [vmem:[#allocation3 + $0x249] sm:$0xff] }
 0x60c   :  { %6992 = vst.msk [vmem:[#allocation3 + $0x261] sm:$0xff] %vm6836_vm3, %v6801_v31  ;;  %16734 = vmatmul.mubr.msk.f32.gmra.mxu1 %vm6836_vm3, %v7117_v27  ;;  %7008 = vst.msk [vmem:[#allocation3 + $0x321] sm:$0xff] %vm6836_vm3, %v6833_v25  ;;  %v21054_v5 = vld [vmem:[#allocation3 + $0x248] sm:$0xff]  ;;  %v21085_v31 = vld [vmem:[#allocation3 + $0x290] sm:$0xff] }
 0x60d   :  { %16832 = vmatmul.mubr.msk.f32.gmra.mxu0 %vm6836_vm3, %v21031_v37  ;;  %16736 = vmatprep.mubr.msk.f32.mxu1 %vm6836_vm3, %v7118_v47  ;;  %v7128_v27 = vld [vmem:[#allocation3 + $0x2a1] sm:$0xff]  ;;  %v7129_v47 = vld [vmem:[#allocation3 + $0x2a9] sm:$0xff] }
 0x60e   :  { %16834 = vmatprep.mubr.msk.f32.mxu0 %vm6836_vm3, %v21037_v55  ;;  %v21090_v25 = vld [vmem:[#allocation3 + $0x2a0] sm:$0xff]  ;;  %v7137_v16 = vld [vmem:[#allocation3 + $0x309] sm:$0xff] }
 0x60f   :  { %v6802_v9 = vpop.trf.xlu1  ;;  %v7122_v51 = vld [vmem:[#allocation3 + $0x259] sm:$0xff] }
 0x610   :  { %6993 = vst.msk [vmem:[#allocation3 + $0x271] sm:$0xff] %vm6836_vm3, %v6802_v9  ;;  %16737 = vmatmul.mubr.msk.f32.gmra.mxu1 %vm6836_vm3, %v7119_v50  ;;  %v21060_v17 = vld [vmem:[#allocation3 + $0x258] sm:$0xff]  ;;  %v21095_v9 = vld [vmem:[#allocation3 + $0x2a8] sm:$0xff] }
 0x611   :  { %16835 = vmatmul.mubr.msk.f32.gmra.mxu0 %vm6836_vm3, %v21043_v6  ;;  %16739 = vmatprep.mubr.msk.f32.mxu1 %vm6836_vm3, %v7120_v56  ;;  %v7130_v50 = vld [vmem:[#allocation3 + $0x2b9] sm:$0xff] }
 0x612   :  { %16837 = vmatprep.mubr.msk.f32.mxu0 %vm6836_vm3, %v21049_v15  ;;  %v21100_v56 = vld [vmem:[#allocation3 + $0x2b8] sm:$0xff] }
 0x613   :  { %v6803_v11 = vpop.trf.xlu1  ;;  %v7123_v61 = vld [vmem:[#allocation3 + $0x261] sm:$0xff] }
 0x614   :  { %6994 = vst.msk [vmem:[#allocation3 + $0x279] sm:$0xff] %vm6836_vm3, %v6803_v11  ;;  %16740 = vmatmul.mubr.msk.f32.gmra.mxu1 %vm6836_vm3, %v7121_v52  ;;  %v21065_v1 = vld [vmem:[#allocation3 + $0x260] sm:$0xff] }
 0x615   :  { %16838 = vmatmul.mubr.msk.f32.gmra.mxu0 %vm6836_vm3, %v21054_v5  ;;  %16742 = vmatprep.mubr.msk.f32.mxu1 %vm6836_vm3, %v7122_v51  ;;  %v7131_v11 = vld [vmem:[#allocation3 + $0x2c1] sm:$0xff]  ;;  %v7132_v51 = vld [vmem:[#allocation3 + $0x2d1] sm:$0xff] }
 0x616   :  { %16840 = vmatprep.mubr.msk.f32.mxu0 %vm6836_vm3, %v21060_v17  ;;  %v21105_v52 = vld [vmem:[#allocation3 + $0x2c0] sm:$0xff] }
 0x617   :  { %v7124_v12 = vld [vmem:[#allocation3 + $0x271] sm:$0xff] }
 0x618   :  { %v21067_v57 = vld [vmem:[#allocation3 + $0x270] sm:$0xff]  ;;  %16743 = vmatmul.mubr.msk.f32.gmra.mxu1 %vm6836_vm3, %v7123_v61 }
 0x619   :  { %16841 = vmatmul.mubr.msk.f32.gmra.mxu0 %vm6836_vm3, %v21065_v1  ;;  %16745 = vmatprep.mubr.msk.f32.mxu1 %vm6836_vm3, %v7124_v12  ;;  %v21110_v61 = vld [vmem:[#allocation3 + $0x2d0] sm:$0xff]  ;;  %v7133_v12 = vld [vmem:[#allocation3 + $0x2d9] sm:$0xff] }
 0x61a   :  { %16843 = vmatprep.mubr.msk.f32.mxu0 %vm6836_vm3, %v21067_v57 }
 0x61b   :  { %v7125_v20 = vld [vmem:[#allocation3 + $0x279] sm:$0xff] }
 0x61c   :  { %v21075_v23 = vld [vmem:[#allocation3 + $0x278] sm:$0xff]  ;;  %16746 = vmatmul.mubr.msk.f32.gmra.mxu1 %vm6836_vm3, %v7125_v20 }
 0x61d   :  { %16844 = vmatmul.mubr.msk.f32.gmra.mxu0 %vm6836_vm3, %v21075_v23  ;;  %16748 = vmatprep.mubr.msk.f32.mxu1 %vm6836_vm3, %v7126_v43  ;;  %v21115_v20 = vld [vmem:[#allocation3 + $0x2d8] sm:$0xff]  ;;  %v6834_v43 = vpop.trf.xlu0 }
 0x61e   :  { %16846 = vmatprep.mubr.msk.f32.mxu0 %vm6836_vm3, %v21080_v49  ;;  %7009 = vst.msk [vmem:[#allocation3 + $0x331] sm:$0xff] %vm6836_vm3, %v6834_v43  ;;  %v7138_v43 = vld [vmem:[#allocation3 + $0x319] sm:$0xff] }
 0x620   :  { %16749 = vmatmul.mubr.msk.f32.gmra.mxu1 %vm6836_vm3, %v7127_v13  ;;  %v7134_v13 = vld [vmem:[#allocation3 + $0x2e9] sm:$0xff] }
 0x621   :  { %16847 = vmatmul.mubr.msk.f32.gmra.mxu0 %vm6836_vm3, %v21085_v31  ;;  %16751 = vmatprep.mubr.msk.f32.mxu1 %vm6836_vm3, %v7128_v27  ;;  %v21120_v27 = vld [vmem:[#allocation3 + $0x2e8] sm:$0xff] }
 0x622   :  { %16849 = vmatprep.mubr.msk.f32.mxu0 %vm6836_vm3, %v21090_v25  ;;  %23611 = vst [vmem:[#allocation56_spill] sm:$0xff] %v21120_v27 }
 0x624   :  { %16752 = vmatmul.mubr.msk.f32.gmra.mxu1 %vm6836_vm3, %v7129_v47  ;;  %v7135_v47 = vld [vmem:[#allocation3 + $0x2f1] sm:$0xff] }
 0x625   :  { %16850 = vmatmul.mubr.msk.f32.gmra.mxu0 %vm6836_vm3, %v21095_v9  ;;  %16754 = vmatprep.mubr.msk.f32.mxu1 %vm6836_vm3, %v7130_v50  ;;  %v21126_v50 = vld [vmem:[#allocation3 + $0x2f0] sm:$0xff] }
 0x626   :  { %16852 = vmatprep.mubr.msk.f32.mxu0 %vm6836_vm3, %v21100_v56 }
 0x628   :  { %16755 = vmatmul.mubr.msk.f32.gmra.mxu1 %vm6836_vm3, %v7131_v11  ;;  %v6835_v11 = vpop.trf.xlu0 }
 0x629   :  { %16853 = vmatmul.mubr.msk.f32.gmra.mxu0 %vm6836_vm3, %v21105_v52  ;;  %16757 = vmatprep.mubr.msk.f32.mxu1 %vm6836_vm3, %v7132_v51  ;;  %v7136_v51 = vld [vmem:[#allocation3 + $0x301] sm:$0xff]  ;;  %7010 = vst.msk [vmem:[#allocation3 + $0x339] sm:$0xff] %vm6836_vm3, %v6835_v11 }
 0x62a   :  { %16855 = vmatprep.mubr.msk.f32.mxu0 %vm6836_vm3, %v21110_v61  ;;  %v8296_v11 = vld [vmem:[#allocation3 + $0x2] sm:$0xff] }
 0x62c   :  { %16758 = vmatmul.mubr.msk.f32.gmra.mxu1 %vm6836_vm3, %v7133_v12  ;;  %v21131_v12 = vld [vmem:[#allocation3 + $0x300] sm:$0xff] }
 0x62d   :  { %16856 = vmatmul.mubr.msk.f32.gmra.mxu0 %vm6836_vm3, %v21115_v20  ;;  %16760 = vmatprep.mubr.msk.f32.mxu1 %vm6836_vm3, %v7134_v13  ;;  %v21137_v13 = vld [vmem:[#allocation3 + $0x318] sm:$0xff] }
 0x62e   :  { %16858 = vmatprep.mubr.msk.f32.mxu0 %vm6836_vm3, %v21120_v27  ;;  %v21139_v27 = vld [vmem:[#allocation3 + $0x308] sm:$0xff] }
 0x630   :  { %16761 = vmatmul.mubr.msk.f32.gmra.mxu1 %vm6836_vm3, %v7135_v47  ;;  %v7139_v47 = vld [vmem:[#allocation3 + $0x321] sm:$0xff] }
 0x631   :  { %16859 = vmatmul.mubr.msk.f32.gmra.mxu0 %vm6836_vm3, %v21126_v50  ;;  %16763 = vmatprep.mubr.msk.f32.mxu1 %vm6836_vm3, %v7136_v51  ;;  %v21147_v51 = vld [vmem:[#allocation3 + $0x320] sm:$0xff] }
 0x632   :  { %16861 = vmatprep.mubr.msk.f32.mxu0 %vm6836_vm3, %v21131_v12  ;;  %23612 = vst [vmem:[#allocation55_spill] sm:$0xff] %v21147_v51 }
 0x634   :  { %16764 = vmatmul.mubr.msk.f32.gmra.mxu1 %vm6836_vm3, %v7137_v16  ;;  %v8297_v16 = vld [vmem:[#allocation3 + $0xa] sm:$0xff] }
 0x635   :  { %16862 = vmatmul.mubr.msk.f32.gmra.mxu0 %vm6836_vm3, %v21139_v27  ;;  %16766 = vmatprep.mubr.msk.f32.mxu1 %vm6836_vm3, %v7138_v43  ;;  %v14359_v43 = vld [vmem:[%s23105_s4 + $0x28] sm:$0xff] }
 0x636   :  { %16864 = vmatprep.mubr.msk.f32.mxu0 %vm6836_vm3, %v21137_v13  ;;  %17161 = vmatprep.subr.mxu0 %v14359_v43 }
 0x638   :  { %16767 = vmatmul.mubr.msk.f32.gmra.mxu1 %vm6836_vm3, %v7139_v47  ;;  %v21161_v47 = vld [vmem:[#allocation3 + $0x1a] sm:$0xff] }
 0x639   :  { %16865 = vmatmul.mubr.msk.f32.gmra.mxu0 %vm6836_vm3, %v21147_v51  ;;  %16869 = vmatprep.mubr.msk.f32.mxu1 %vm6836_vm3, %v8296_v11  ;;  %v21166_v51 = vld [vmem:[%s23105_s4 + $0x30] sm:$0xff]  ;;  %v21278_v11 = vpop.f32.mrf.mxu1 }
 0x63a   :  { %16967 = vmatprep.mubr.msk.f32.mxu0 %vm6836_vm3, %v20777_v62  ;;  %v21173_v62 = vld [vmem:[#allocation3 + $0x22] sm:$0xff]  ;;  %23615 = vst [vmem:[#allocation60_spill] sm:$0xff] %v21278_v11 }
 0x63c   :  { %16870 = vmatmul.mubr.msk.f32.vlgmr.msra.gmra.mxu1 %vm6836_vm3, %v8297_v16 }
 0x63d   :  { %16968 = vmatmul.mubr.msk.f32.vlgmr.msra.gmra.mxu0 %vm6836_vm3, %v20784_v10  ;;  %17064 = vmatpush3.msra.mxu1 %v20832_v4  ;;  %v21180_v10 = vld [vmem:[#allocation3 + $0x32] sm:$0xff]  ;;  %v21192_v4 = vld [vmem:[#allocation3 + $0x4a] sm:$0xff] }
 0x63e   :  { %16872 = vmatprep.mubr.msk.f32.mxu1 %vm6836_vm3, %v21161_v47  ;;  %16970 = vmatprep.mubr.msk.f32.mxu0 %vm6836_vm3, %v20791_v22  ;;  %v21186_v22 = vld [vmem:[#allocation3 + $0x3a] sm:$0xff] }
 0x63f   :  { %17162 = vmatpush3.msra.mxu0 %v14359_v43  ;;  %17259 = vmatprep.subr.mxu1 %v21166_v51 }
 0x640   :  { %16873 = vmatmul.mubr.msk.f32.gmra.mxu1 %vm6836_vm3, %v21173_v62 }
 0x641   :  { %16971 = vmatmul.mubr.msk.f32.gmra.mxu0 %vm6836_vm3, %v20798_v14  ;;  %16875 = vmatprep.mubr.msk.f32.mxu1 %vm6836_vm3, %v21180_v10  ;;  %v21198_v14 = vld [vmem:[#allocation3 + $0x52] sm:$0xff] }
 0x642   :  { %16973 = vmatprep.mubr.msk.f32.mxu0 %vm6836_vm3, %v20805_v29  ;;  %v21204_v29 = vld [vmem:[#allocation3 + $0x62] sm:$0xff] }
 0x644   :  { %16876 = vmatmul.mubr.msk.f32.gmra.mxu1 %vm6836_vm3, %v21186_v22 }
 0x645   :  { %16974 = vmatmul.mubr.msk.f32.gmra.mxu0 %vm6836_vm3, %v20812_v34  ;;  %16878 = vmatprep.mubr.msk.f32.mxu1 %vm6836_vm3, %v21192_v4  ;;  %v21210_v34 = vld [vmem:[#allocation3 + $0x6a] sm:$0xff] }
 0x646   :  { %16976 = vmatprep.mubr.msk.f32.mxu0 %vm6836_vm3, %v20819_v63  ;;  %v21216_v63 = vld [vmem:[#allocation3 + $0x7a] sm:$0xff] }
 0x648   :  { %16879 = vmatmul.mubr.msk.f32.gmra.mxu1 %vm6836_vm3, %v21198_v14 }
 0x649   :  { %16977 = vmatmul.mubr.msk.f32.gmra.mxu0 %vm6836_vm3, %v20835_v53  ;;  %16881 = vmatprep.mubr.msk.f32.mxu1 %vm6836_vm3, %v21204_v29  ;;  %v21222_v53 = vld [vmem:[#allocation3 + $0x82] sm:$0xff] }
 0x64a   :  { %16979 = vmatprep.mubr.msk.f32.mxu0 %vm6836_vm3, %v20842_v40  ;;  %v21228_v40 = vld [vmem:[#allocation3 + $0x92] sm:$0xff] }
 0x64c   :  { %16882 = vmatmul.mubr.msk.f32.gmra.mxu1 %vm6836_vm3, %v21210_v34 }
 0x64d   :  { %16980 = vmatmul.mubr.msk.f32.gmra.mxu0 %vm6836_vm3, %v20849_v26  ;;  %16884 = vmatprep.mubr.msk.f32.mxu1 %vm6836_vm3, %v21216_v63  ;;  %v21234_v26 = vld [vmem:[#allocation3 + $0x9a] sm:$0xff] }
 0x64e   :  { %16982 = vmatprep.mubr.msk.f32.mxu0 %vm6836_vm3, %v20856_v18  ;;  %v21240_v18 = vld [vmem:[#allocation3 + $0xaa] sm:$0xff] }
 0x650   :  { %16885 = vmatmul.mubr.msk.f32.gmra.mxu1 %vm6836_vm3, %v21222_v53 }
 0x651   :  { %16983 = vmatmul.mubr.msk.f32.gmra.mxu0 %vm6836_vm3, %v20863_v58  ;;  %16887 = vmatprep.mubr.msk.f32.mxu1 %vm6836_vm3, %v21228_v40  ;;  %v21246_v58 = vld [vmem:[#allocation3 + $0xb2] sm:$0xff] }
 0x652   :  { %16985 = vmatprep.mubr.msk.f32.mxu0 %vm6836_vm3, %v20870_v32  ;;  %v21252_v32 = vld [vmem:[#allocation3 + $0xc2] sm:$0xff] }
 0x654   :  { %16888 = vmatmul.mubr.msk.f32.gmra.mxu1 %vm6836_vm3, %v21234_v26 }
 0x655   :  { %16986 = vmatmul.mubr.msk.f32.gmra.mxu0 %vm6836_vm3, %v20877_v21  ;;  %16890 = vmatprep.mubr.msk.f32.mxu1 %vm6836_vm3, %v21240_v18  ;;  %v21258_v21 = vld [vmem:[#allocation3 + $0xca] sm:$0xff] }
 0x656   :  { %16988 = vmatprep.mubr.msk.f32.mxu0 %vm6836_vm3, %v20884_v19  ;;  %v21264_v19 = vld [vmem:[#allocation3 + $0xda] sm:$0xff] }
 0x658   :  { %16891 = vmatmul.mubr.msk.f32.gmra.mxu1 %vm6836_vm3, %v21246_v58 }
 0x659   :  { %16989 = vmatmul.mubr.msk.f32.gmra.mxu0 %vm6836_vm3, %v20891_v28  ;;  %16893 = vmatprep.mubr.msk.f32.mxu1 %vm6836_vm3, %v21252_v32  ;;  %v21270_v28 = vld [vmem:[#allocation3 + $0xe2] sm:$0xff] }
 0x65a   :  { %16991 = vmatprep.mubr.msk.f32.mxu0 %vm6836_vm3, %v20897_v8  ;;  %23613 = vst [vmem:[#allocation58_spill] sm:$0xff] %v21270_v28  ;;  %v21276_v8 = vld [vmem:[#allocation3 + $0xf2] sm:$0xff] }
 0x65b   :  { %23614 = vst [vmem:[#allocation57_spill] sm:$0xff] %v21276_v8 }
 0x65c   :  { %16894 = vmatmul.mubr.msk.f32.gmra.mxu1 %vm6836_vm3, %v21258_v21 }
 0x65d   :  { %16992 = vmatmul.mubr.msk.f32.gmra.mxu0 %vm6836_vm3, %v20903_v59  ;;  %16896 = vmatprep.mubr.msk.f32.mxu1 %vm6836_vm3, %v21264_v19  ;;  %v21280_v59 = vpop.f32.mrf.mxu0 }
 0x65e   :  { %16994 = vmatprep.mubr.msk.f32.mxu0 %vm6836_vm3, %v20909_v30  ;;  %23616 = vst [vmem:[#allocation59_spill] sm:$0xff] %v21280_v59  ;;  %v21286_v30 = vld [vmem:[#allocation3 + $0xfa] sm:$0xff] }
 0x660   :  { %16897 = vmatmul.mubr.msk.f32.gmra.mxu1 %vm6836_vm3, %v21270_v28  ;;  %v21302_v28 = vld [vmem:[#allocation3 + $0x112] sm:$0xff] }
 0x661   :  { %16995 = vmatmul.mubr.msk.f32.gmra.mxu0 %vm6836_vm3, %v20917_v60  ;;  %16899 = vmatprep.mubr.msk.f32.mxu1 %vm6836_vm3, %v21276_v8  ;;  %v21292_v60 = vld [vmem:[#allocation3 + $0x10a] sm:$0xff] }
 0x662   :  { %16997 = vmatprep.mubr.msk.f32.mxu0 %vm6836_vm3, %v20923_v46 }
 0x664   :  { %v16678_v16 = vpop.f32.mrf.mxu1  ;;  %16900 = vmatmul.mubr.msk.f32.gmra.mxu1 %vm6836_vm3, %v21286_v30 }
 0x665   :  { %v16776_v43 = vpop.f32.mrf.mxu0  ;;  %16998 = vmatmul.mubr.msk.f32.gmra.mxu0 %vm6836_vm3, %v20929_v24  ;;  %16902 = vmatprep.mubr.msk.f32.mxu1 %vm6836_vm3, %v21292_v60  ;;  %v21308_v24 = vld [vmem:[#allocation3 + $0x122] sm:$0xff] }
 0x666   :  { %v21294_v11 = vadd.f32 %v16776_v43, %v16678_v16  ;;  %17000 = vmatprep.mubr.msk.f32.mxu0 %vm6836_vm3, %v20935_v35  ;;  %v7410_v46 = vpop.f32.mrf.mxu1  ;;  %v21314_v35 = vld [vmem:[#allocation3 + $0x12a] sm:$0xff]  ;;  %v21320_v43 = vld [vmem:[#allocation3 + $0x13a] sm:$0xff] }
 0x667   :  { %v7987_v59 = vpop.f32.mrf.mxu0 }
 0x668   :  { %23617 = vst [vmem:[#allocation62_spill] sm:$0xff] %v21294_v11  ;;  %v21300_v8 = vadd.f32 %v7987_v59, %v7410_v46  ;;  %16903 = vmatmul.mubr.msk.f32.gmra.mxu1 %vm6836_vm3, %v21302_v28  ;;  %v21330_v11 = vld [vmem:[#allocation3 + $0x142] sm:$0xff] }
 0x669   :  { %17001 = vmatmul.mubr.msk.f32.gmra.mxu0 %vm6836_vm3, %v20941_v2  ;;  %16905 = vmatprep.mubr.msk.f32.mxu1 %vm6836_vm3, %v21308_v24  ;;  %23621 = vst [vmem:[#allocation92_spill] sm:$0xff] %v21330_v11 }
 0x66a   :  { %23618 = vst [vmem:[#allocation61_spill] sm:$0xff] %v21300_v8  ;;  %17003 = vmatprep.mubr.msk.f32.mxu0 %vm6836_vm3, %v20947_v45 }
 0x66c   :  { %v16681_v59 = vpop.f32.mrf.mxu1  ;;  %16906 = vmatmul.mubr.msk.f32.gmra.mxu1 %vm6836_vm3, %v21314_v35 }
 0x66d   :  { %v16779_v16 = vpop.f32.mrf.mxu0  ;;  %17004 = vmatmul.mubr.msk.f32.gmra.mxu0 %vm6836_vm3, %v20953_v48  ;;  %16908 = vmatprep.mubr.msk.f32.mxu1 %vm6836_vm3, %v21320_v43  ;;  %v21336_v48 = vld [vmem:[#allocation3 + $0x152] sm:$0xff] }
 0x66e   :  { %v21322_v2 = vadd.f32 %v16779_v16, %v16681_v59  ;;  %17006 = vmatprep.mubr.msk.f32.mxu0 %vm6836_vm3, %v20959_v54  ;;  %v7420_v45 = vpop.f32.mrf.mxu1  ;;  %23622 = vst [vmem:[#allocation64_spill] sm:$0xff] %v21336_v48  ;;  %v21342_v54 = vld [vmem:[#allocation3 + $0x15a] sm:$0xff] }
 0x66f   :  { %v7997_v46 = vpop.f32.mrf.mxu0  ;;  %23623 = vst [vmem:[#allocation63_spill] sm:$0xff] %v21342_v54 }
 0x670   :  { %23619 = vst [vmem:[#allocation28_spill] sm:$0xff] %v21322_v2  ;;  %v21328_v8 = vadd.f32 %v7997_v46, %v7420_v45  ;;  %16909 = vmatmul.mubr.msk.f32.gmra.mxu1 %vm6836_vm3, %v21330_v11  ;;  %v21348_v45 = vld [vmem:[#allocation3 + $0x16a] sm:$0xff]  ;;  %v8328_v2 = vld [vmem:[#allocation3 + $0x1b2] sm:$0xff] }
 0x671   :  { %17007 = vmatmul.mubr.msk.f32.gmra.mxu0 %vm6836_vm3, %v20967_v44  ;;  %16911 = vmatprep.mubr.msk.f32.mxu1 %vm6836_vm3, %v21336_v48  ;;  %v9033_v44 = vld [vmem:[#allocation3 + $0x180] sm:$0xff]  ;;  %v21357_v11 = vld [vmem:[#allocation3 + $0x172] sm:$0xff] }
 0x672   :  { %23620 = vst [vmem:[#allocation82_spill] sm:$0xff] %v21328_v8  ;;  %17009 = vmatprep.mubr.msk.f32.mxu0 %vm6836_vm3, %v20965_v3 }
 0x674   :  { %v16684_v59 = vpop.f32.mrf.mxu1  ;;  %16912 = vmatmul.mubr.msk.f32.gmra.mxu1 %vm6836_vm3, %v21342_v54  ;;  %v9034_v54 = vld [vmem:[#allocation3 + $0x188] sm:$0xff] }
 0x675   :  { %v16782_v16 = vpop.f32.mrf.mxu0  ;;  %17010 = vmatmul.mubr.msk.f32.gmra.mxu0 %vm6836_vm3, %v20977_v42  ;;  %16914 = vmatprep.mubr.msk.f32.mxu1 %vm6836_vm3, %v21348_v45  ;;  %v8329_v42 = vld [vmem:[#allocation3 + $0x1ba] sm:$0xff] }
 0x676   :  { %v21350_v46 = vadd.f32 %v16782_v16, %v16684_v59  ;;  %17012 = vmatprep.mubr.msk.f32.mxu0 %vm6836_vm3, %v9033_v44  ;;  %v7430_v3 = vpop.f32.mrf.mxu1 }
 0x677   :  { %v8007_v8 = vpop.f32.mrf.mxu0 }
 0x678   :  { %v21355_v48 = vadd.f32 %v8007_v8, %v7430_v3  ;;  %16915 = vmatmul.mubr.msk.f32.gmra.mxu1 %vm6836_vm3, %v21357_v11  ;;  %v21368_v8 = vld [vmem:[#allocation3 + $0x1ca] sm:$0xff]  ;;  %v21378_v3 = vld [vmem:[#allocation3 + $0x1d2] sm:$0xff] }
 0x679   :  { %17013 = vmatmul.mubr.msk.f32.gmra.mxu0 %vm6836_vm3, %v9034_v54  ;;  %16917 = vmatprep.mubr.msk.f32.mxu1 %vm6836_vm3, %v8328_v2 }
 0x67a   :  { %17015 = vmatprep.mubr.msk.f32.mxu0 %vm6836_vm3, %v20989_v39 }
 0x67c   :  { %v16687_v59 = vpop.f32.mrf.mxu1  ;;  %16918 = vmatmul.mubr.msk.f32.gmra.mxu1 %vm6836_vm3, %v8329_v42 }
 0x67d   :  { %v16785_v16 = vpop.f32.mrf.mxu0  ;;  %17016 = vmatmul.mubr.msk.f32.gmra.mxu0 %vm6836_vm3, %v20995_v36  ;;  %16920 = vmatprep.mubr.msk.f32.mxu1 %vm6836_vm3, %v21368_v8  ;;  %v21384_v36 = vld [vmem:[#allocation3 + $0x1e2] sm:$0xff] }
 0x67e   :  { %v21370_v44 = vadd.f32 %v16785_v16, %v16687_v59  ;;  %17018 = vmatprep.mubr.msk.f32.mxu0 %vm6836_vm3, %v21001_v0  ;;  %v7440_v39 = vpop.f32.mrf.mxu1  ;;  %v21390_v0 = vld [vmem:[#allocation3 + $0x1ea] sm:$0xff]  ;;  %v21396_v16 = vld [vmem:[#allocation3 + $0x1fa] sm:$0xff] }
 0x67f   :  { %v8017_v2 = vpop.f32.mrf.mxu0 }
 0x680   :  { %v21376_v54 = vadd.f32 %v8017_v2, %v7440_v39  ;;  %16921 = vmatmul.mubr.msk.f32.gmra.mxu1 %vm6836_vm3, %v21378_v3 }
 0x681   :  { %17019 = vmatmul.mubr.msk.f32.gmra.mxu0 %vm6836_vm3, %v21007_v41  ;;  %16923 = vmatprep.mubr.msk.f32.mxu1 %vm6836_vm3, %v21384_v36 }
 0x682   :  { %23624 = vst [vmem:[#allocation71_spill] sm:$0xff] %v21376_v54  ;;  %17021 = vmatprep.mubr.msk.f32.mxu0 %vm6836_vm3, %v21013_v33  ;;  %v21406_v54 = vld [vmem:[#allocation3 + $0x202] sm:$0xff] }
 0x684   :  { %v16690_v42 = vpop.f32.mrf.mxu1  ;;  %16924 = vmatmul.mubr.msk.f32.gmra.mxu1 %vm6836_vm3, %v21390_v0 }
 0x685   :  { %v16788_v59 = vpop.f32.mrf.mxu0  ;;  %17022 = vmatmul.mubr.msk.f32.gmra.mxu0 %vm6836_vm3, %v21019_v7  ;;  %16926 = vmatprep.mubr.msk.f32.mxu1 %vm6836_vm3, %v21396_v16  ;;  %v21412_v7 = vld [vmem:[#allocation3 + $0x212] sm:$0xff] }
 0x686   :  { %v21398_v41 = vadd.f32 %v16788_v59, %v16690_v42  ;;  %17024 = vmatprep.mubr.msk.f32.mxu0 %vm6836_vm3, %v21025_v38  ;;  %v7450_v33 = vpop.f32.mrf.mxu1  ;;  %v21418_v38 = vld [vmem:[#allocation3 + $0x21a] sm:$0xff] }
 0x687   :  { %v8027_v39 = vpop.f32.mrf.mxu0 }
 0x688   :  { %23625 = vst [vmem:[#allocation69_spill] sm:$0xff] %v21398_v41  ;;  %v21404_v2 = vadd.f32 %v8027_v39, %v7450_v33  ;;  %16927 = vmatmul.mubr.msk.f32.gmra.mxu1 %vm6836_vm3, %v21406_v54  ;;  %v21424_v33 = vld [vmem:[#allocation3 + $0x22a] sm:$0xff]  ;;  %v21434_v41 = vld [vmem:[#allocation3 + $0x232] sm:$0xff] }
 0x689   :  { %17025 = vmatmul.mubr.msk.f32.gmra.mxu0 %vm6836_vm3, %v21031_v37  ;;  %16929 = vmatprep.mubr.msk.f32.mxu1 %vm6836_vm3, %v21412_v7 }
 0x68a   :  { %23626 = vst [vmem:[#allocation27_spill] sm:$0xff] %v21404_v2  ;;  %17027 = vmatprep.mubr.msk.f32.mxu0 %vm6836_vm3, %v21037_v55 }
 0x68c   :  { %v16693_v42 = vpop.f32.mrf.mxu1  ;;  %16930 = vmatmul.mubr.msk.f32.gmra.mxu1 %vm6836_vm3, %v21418_v38 }
 0x68d   :  { %v16791_v59 = vpop.f32.mrf.mxu0  ;;  %17028 = vmatmul.mubr.msk.f32.gmra.mxu0 %vm6836_vm3, %v21043_v6  ;;  %16932 = vmatprep.mubr.msk.f32.mxu1 %vm6836_vm3, %v21424_v33  ;;  %v21440_v6 = vld [vmem:[#allocation3 + $0x242] sm:$0xff] }
 0x68e   :  { %v21426_v37 = vadd.f32 %v16791_v59, %v16693_v42  ;;  %17030 = vmatprep.mubr.msk.f32.mxu0 %vm6836_vm3, %v21049_v15  ;;  %v7460_v55 = vpop.f32.mrf.mxu1  ;;  %v21446_v15 = vld [vmem:[#allocation3 + $0x24a] sm:$0xff] }
 0x68f   :  { %v8037_v39 = vpop.f32.mrf.mxu0 }
 0x690   :  { %23627 = vst [vmem:[#allocation89_spill] sm:$0xff] %v21426_v37  ;;  %v21432_v2 = vadd.f32 %v8037_v39, %v7460_v55  ;;  %16933 = vmatmul.mubr.msk.f32.gmra.mxu1 %vm6836_vm3, %v21434_v41  ;;  %v21452_v55 = vld [vmem:[#allocation3 + $0x25a] sm:$0xff]  ;;  %v21462_v37 = vld [vmem:[#allocation3 + $0x262] sm:$0xff] }
 0x691   :  { %17031 = vmatmul.mubr.msk.f32.gmra.mxu0 %vm6836_vm3, %v21054_v5  ;;  %16935 = vmatprep.mubr.msk.f32.mxu1 %vm6836_vm3, %v21440_v6 }
 0x692   :  { %23628 = vst [vmem:[#allocation30_spill] sm:$0xff] %v21432_v2  ;;  %17033 = vmatprep.mubr.msk.f32.mxu0 %vm6836_vm3, %v21060_v17 }
 0x694   :  { %v16696_v42 = vpop.f32.mrf.mxu1  ;;  %16936 = vmatmul.mubr.msk.f32.gmra.mxu1 %vm6836_vm3, %v21446_v15 }
 0x695   :  { %v16794_v59 = vpop.f32.mrf.mxu0  ;;  %17034 = vmatmul.mubr.msk.f32.gmra.mxu0 %vm6836_vm3, %v21065_v1  ;;  %16938 = vmatprep.mubr.msk.f32.mxu1 %vm6836_vm3, %v21452_v55  ;;  %v21468_v1 = vld [vmem:[#allocation3 + $0x272] sm:$0xff] }
 0x696   :  { %v21454_v5 = vadd.f32 %v16794_v59, %v16696_v42  ;;  %17036 = vmatprep.mubr.msk.f32.mxu0 %vm6836_vm3, %v21067_v57  ;;  %v7470_v17 = vpop.f32.mrf.mxu1  ;;  %23631 = vst [vmem:[#allocation67_spill] sm:$0xff] %v21468_v1  ;;  %v21474_v57 = vld [vmem:[#allocation3 + $0x27a] sm:$0xff] }
 0x697   :  { %v8047_v39 = vpop.f32.mrf.mxu0  ;;  %23632 = vst [vmem:[#allocation65_spill] sm:$0xff] %v21474_v57 }
 0x698   :  { %23629 = vst [vmem:[#allocation34_spill] sm:$0xff] %v21454_v5  ;;  %v21460_v2 = vadd.f32 %v8047_v39, %v7470_v17  ;;  %16939 = vmatmul.mubr.msk.f32.gmra.mxu1 %vm6836_vm3, %v21462_v37  ;;  %v21480_v17 = vld [vmem:[#allocation3 + $0x28a] sm:$0xff]  ;;  %v21490_v5 = vld [vmem:[#allocation3 + $0x292] sm:$0xff] }
 0x699   :  { %17037 = vmatmul.mubr.msk.f32.gmra.mxu0 %vm6836_vm3, %v21075_v23  ;;  %16941 = vmatprep.mubr.msk.f32.mxu1 %vm6836_vm3, %v21468_v1 }
 0x69a   :  { %23630 = vst [vmem:[#allocation36_spill] sm:$0xff] %v21460_v2  ;;  %17039 = vmatprep.mubr.msk.f32.mxu0 %vm6836_vm3, %v21080_v49 }
 0x69c   :  { %v16699_v42 = vpop.f32.mrf.mxu1  ;;  %16942 = vmatmul.mubr.msk.f32.gmra.mxu1 %vm6836_vm3, %v21474_v57 }
 0x69d   :  { %v16797_v59 = vpop.f32.mrf.mxu0  ;;  %17040 = vmatmul.mubr.msk.f32.gmra.mxu0 %vm6836_vm3, %v21085_v31  ;;  %16944 = vmatprep.mubr.msk.f32.mxu1 %vm6836_vm3, %v21480_v17  ;;  %v21496_v31 = vld [vmem:[#allocation3 + $0x2a2] sm:$0xff] }
 0x69e   :  { %v21482_v23 = vadd.f32 %v16797_v59, %v16699_v42  ;;  %17042 = vmatprep.mubr.msk.f32.mxu0 %vm6836_vm3, %v21090_v25  ;;  %v7480_v49 = vpop.f32.mrf.mxu1 }
 0x69f   :  { %v8057_v39 = vpop.f32.mrf.mxu0 }
 0x6a0   :  { %23633 = vst [vmem:[#allocation72_spill] sm:$0xff] %v21482_v23  ;;  %v21488_v2 = vadd.f32 %v8057_v39, %v7480_v49  ;;  %v16702_v57 = vpop.f32.mrf.mxu1  ;;  %16945 = vmatmul.mubr.msk.f32.gmra.mxu1 %vm6836_vm3, %v21490_v5  ;;  %v21506_v39 = vld [vmem:[#allocation3 + $0x2aa] sm:$0xff] }
 0x6a1   :  { %v16800_v1 = vpop.f32.mrf.mxu0  ;;  %17043 = vmatmul.mubr.msk.f32.gmra.mxu0 %vm6836_vm3, %v21095_v9  ;;  %16947 = vmatprep.mubr.msk.f32.mxu1 %vm6836_vm3, %v21496_v31  ;;  %v21512_v9 = vld [vmem:[#allocation3 + $0x2ba] sm:$0xff] }
 0x6a2   :  { %23634 = vst [vmem:[#allocation70_spill] sm:$0xff] %v21488_v2  ;;  %v21498_v42 = vadd.f32 %v16800_v1, %v16702_v57  ;;  %17045 = vmatprep.mubr.msk.f32.mxu0 %vm6836_vm3, %v21100_v56  ;;  %v7490_v25 = vpop.f32.mrf.mxu1 }
 0x6a3   :  { %v8067_v59 = vpop.f32.mrf.mxu0 }
 0x6a4   :  { %23635 = vst [vmem:[#allocation29_spill] sm:$0xff] %v21498_v42  ;;  %v21504_v49 = vadd.f32 %v8067_v59, %v7490_v25  ;;  %v16705_v2 = vpop.f32.mrf.mxu1  ;;  %16948 = vmatmul.mubr.msk.f32.gmra.mxu1 %vm6836_vm3, %v21506_v39  ;;  %v21522_v59 = vld [vmem:[#allocation3 + $0x2c2] sm:$0xff] }
 0x6a5   :  { %v16803_v23 = vpop.f32.mrf.mxu0  ;;  %17046 = vmatmul.mubr.msk.f32.gmra.mxu0 %vm6836_vm3, %v21105_v52  ;;  %16950 = vmatprep.mubr.msk.f32.mxu1 %vm6836_vm3, %v21512_v9  ;;  %23639 = vst [vmem:[#allocation37_spill] sm:$0xff] %v21522_v59  ;;  %v21528_v52 = vld [vmem:[#allocation3 + $0x2d2] sm:$0xff] }
 0x6a6   :  { %23636 = vst [vmem:[#allocation94_spill] sm:$0xff] %v21504_v49  ;;  %v21514_v1 = vadd.f32 %v16803_v23, %v16705_v2  ;;  %17048 = vmatprep.mubr.msk.f32.mxu0 %vm6836_vm3, %v21110_v61  ;;  %v7500_v56 = vpop.f32.mrf.mxu1  ;;  %v23641_v61 = vld [vmem:[#allocation56_spill] sm:$0xff] }
 0x6a7   :  { %v8077_v57 = vpop.f32.mrf.mxu0 }
 0x6a8   :  { %23637 = vst [vmem:[#allocation32_spill] sm:$0xff] %v21514_v1  ;;  %v21520_v25 = vadd.f32 %v8077_v57, %v7500_v56  ;;  %v16708_v49 = vpop.f32.mrf.mxu1  ;;  %16951 = vmatmul.mubr.msk.f32.gmra.mxu1 %vm6836_vm3, %v21522_v59 }
 0x6a9   :  { %v16806_v42 = vpop.f32.mrf.mxu0  ;;  %17049 = vmatmul.mubr.msk.f32.gmra.mxu0 %vm6836_vm3, %v21115_v20  ;;  %16953 = vmatprep.mubr.msk.f32.mxu1 %vm6836_vm3, %v21528_v52  ;;  %v21544_v20 = vld [vmem:[#allocation3 + $0x2ea] sm:$0xff] }
 0x6aa   :  { %23638 = vst [vmem:[#allocation35_spill] sm:$0xff] %v21520_v25  ;;  %v21530_v2 = vadd.f32 %v16806_v42, %v16708_v49  ;;  %17051 = vmatprep.mubr.msk.f32.mxu0 %vm6836_vm3, %v23641_v61  ;;  %v7510_v23 = vpop.f32.mrf.mxu1  ;;  %v21538_v25 = vld [vmem:[#allocation3 + $0x2da] sm:$0xff] }
 0x6ab   :  { %v8087_v56 = vpop.f32.mrf.mxu0 }
 0x6ac   :  { %23640 = vst [vmem:[#allocation68_spill] sm:$0xff] %v21530_v2  ;;  %v21536_v57 = vadd.f32 %v8087_v56, %v7510_v23  ;;  %v16711_v1 = vpop.f32.mrf.mxu1  ;;  %16954 = vmatmul.mubr.msk.f32.gmra.mxu1 %vm6836_vm3, %v21538_v25  ;;  %v21554_v56 = vld [vmem:[#allocation3 + $0x2f2] sm:$0xff] }
 0x6ad   :  { %v16809_v59 = vpop.f32.mrf.mxu0  ;;  %17052 = vmatmul.mubr.msk.f32.gmra.mxu0 %vm6836_vm3, %v21126_v50  ;;  %16956 = vmatprep.mubr.msk.f32.mxu1 %vm6836_vm3, %v21544_v20  ;;  %23645 = vst [vmem:[#allocation31_spill] sm:$0xff] %v21554_v56  ;;  %v21560_v50 = vld [vmem:[#allocation3 + $0x302] sm:$0xff] }
 0x6ae   :  { %23642 = vst [vmem:[#allocation66_spill] sm:$0xff] %v21536_v57  ;;  %v21546_v42 = vadd.f32 %v16809_v59, %v16711_v1  ;;  %17054 = vmatprep.mubr.msk.f32.mxu0 %vm6836_vm3, %v21131_v12  ;;  %v7520_v49 = vpop.f32.mrf.mxu1  ;;  %23646 = vst [vmem:[#allocation33_spill] sm:$0xff] %v21560_v50 }
 0x6af   :  { %v8097_v61 = vpop.f32.mrf.mxu0 }
 0x6b0   :  { %23643 = vst [vmem:[#allocation74_spill] sm:$0xff] %v21546_v42  ;;  %v21552_v23 = vadd.f32 %v8097_v61, %v7520_v49  ;;  %v16714_v57 = vpop.f32.mrf.mxu1  ;;  %16957 = vmatmul.mubr.msk.f32.gmra.mxu1 %vm6836_vm3, %v21554_v56  ;;  %v9065_v49 = vld [vmem:[#allocation3 + $0x330] sm:$0xff] }
 0x6b1   :  { %v16812_v2 = vpop.f32.mrf.mxu0  ;;  %17055 = vmatmul.mubr.msk.f32.gmra.mxu0 %vm6836_vm3, %v21139_v27  ;;  %16959 = vmatprep.mubr.msk.f32.mxu1 %vm6836_vm3, %v21560_v50  ;;  %v23650_v27 = vld [vmem:[#allocation55_spill] sm:$0xff] }
 0x6b2   :  { %23644 = vst [vmem:[#allocation73_spill] sm:$0xff] %v21552_v23  ;;  %v21562_v1 = vadd.f32 %v16812_v2, %v16714_v57  ;;  %17057 = vmatprep.mubr.msk.f32.mxu0 %vm6836_vm3, %v21137_v13  ;;  %v7530_v12 = vpop.f32.mrf.mxu1  ;;  %v21570_v23 = vld [vmem:[#allocation3 + $0x30a] sm:$0xff]  ;;  %v21576_v2 = vld [vmem:[#allocation3 + $0x31a] sm:$0xff] }
 0x6b3   :  { %v8107_v59 = vpop.f32.mrf.mxu0  ;;  %23649 = vst [vmem:[#allocation10_spill] sm:$0xff] %v21570_v23  ;;  %v9066_v13 = vld [vmem:[#allocation3 + $0x338] sm:$0xff] }
 0x6b4   :  { %23647 = vst [vmem:[#allocation38_spill] sm:$0xff] %v21562_v1  ;;  %v21568_v61 = vadd.f32 %v8107_v59, %v7530_v12  ;;  %v16717_v42 = vpop.f32.mrf.mxu1  ;;  %16960 = vmatmul.mubr.msk.f32.gmra.mxu1 %vm6836_vm3, %v21570_v23  ;;  %v21585_v1 = vld [vmem:[#allocation3 + $0x322] sm:$0xff] }
 0x6b5   :  { %v16815_v56 = vpop.f32.mrf.mxu0  ;;  %17058 = vmatmul.mubr.msk.f32.gmra.mxu0 %vm6836_vm3, %v23650_v27  ;;  %16962 = vmatprep.mubr.msk.f32.mxu1 %vm6836_vm3, %v21576_v2  ;;  %23653 = vst [vmem:[#allocation78_spill] sm:$0xff] %v21585_v1 }
 0x6b6   :  { %23648 = vst [vmem:[#allocation40_spill] sm:$0xff] %v21568_v61  ;;  %v21578_v57 = vadd.f32 %v16815_v56, %v16717_v42  ;;  %17060 = vmatprep.mubr.msk.f32.mxu0 %vm6836_vm3, %v9065_v49  ;;  %v7540_v12 = vpop.f32.mrf.mxu1  ;;  %v9710_v42 = vld [vmem:[#allocation3 + $0x19] sm:$0xff] }
 0x6b7   :  { %v8117_v59 = vpop.f32.mrf.mxu0 }
 0x6b8   :  { %23651 = vst [vmem:[#allocation9_spill] sm:$0xff] %v21578_v57  ;;  %v21583_v61 = vadd.f32 %v8117_v59, %v7540_v12  ;;  %v16720_v23 = vpop.f32.mrf.mxu1  ;;  %16963 = vmatmul.mubr.msk.f32.gmra.mxu1 %vm6836_vm3, %v21585_v1  ;;  %v9711_v59 = vld [vmem:[#allocation3 + $0x21] sm:$0xff] }
 0x6b9   :  { %v16818_v50 = vpop.f32.mrf.mxu0  ;;  %17061 = vmatmul.mubr.msk.f32.gmra.mxu0 %vm6836_vm3, %v9066_v13  ;;  %17065 = vmatprep.mubr.msk.f32.mxu1 %vm6836_vm3, %v9710_v42 }
 0x6ba   :  { %23652 = vst [vmem:[#allocation79_spill] sm:$0xff] %v21583_v61  ;;  %v21590_v56 = vadd.f32 %v16818_v50, %v16720_v23  ;;  %17163 = vmatprep.mubr.msk.f32.mxu0 %vm6836_vm3, %v21161_v47  ;;  %v7550_v49 = vpop.f32.mrf.mxu1  ;;  %v14489_v61 = vld [vmem:[%s23105_s4 + $0x38] sm:$0xff]  ;;  %v21613_v47 = vld [vmem:[%s23105_s4 + $0x40] sm:$0xff] }
 0x6bb   :  { %v8127_v27 = vpop.f32.mrf.mxu0  ;;  %v21603_v23 = vld [vmem:[#allocation3 + $0x31] sm:$0xff]  ;;  %17357 = vmatprep.subr.mxu0 %v14489_v61 }
 0x6bc   :  { %v21595_v12 = vadd.f32 %v8127_v27, %v7550_v49  ;;  %v16723_v57 = vpop.f32.mrf.mxu1  ;;  %17066 = vmatmul.mubr.msk.f32.vlgmr.msra.gmra.mxu1 %vm6836_vm3, %v9711_v59  ;;  %v21626_v49 = vld [vmem:[#allocation3 + $0x49] sm:$0xff] }
 0x6bd   :  { %v16821_v1 = vpop.f32.mrf.mxu0  ;;  %17164 = vmatmul.mubr.msk.f32.vlgmr.msra.gmra.mxu0 %vm6836_vm3, %v21173_v62  ;;  %17260 = vmatpush3.msra.mxu1 %v21166_v51 }
 0x6be   :  { %v21605_v50 = vadd.f32 %v16821_v1, %v16723_v57  ;;  %17068 = vmatprep.mubr.msk.f32.mxu1 %vm6836_vm3, %v21603_v23  ;;  %17166 = vmatprep.mubr.msk.f32.mxu0 %vm6836_vm3, %v21180_v10  ;;  %v7560_v13 = vpop.f32.mrf.mxu1  ;;  %v21619_v1 = vld [vmem:[#allocation3 + $0x39] sm:$0xff] }
 0x6bf   :  { %v8137_v42 = vpop.f32.mrf.mxu0  ;;  %17358 = vmatpush3.msra.mxu0 %v14489_v61  ;;  %17455 = vmatprep.subr.mxu1 %v21613_v47 }
 0x6c0   :  { %v21617_v62 = vadd.f32 %v8137_v42, %v7560_v13  ;;  %v16726_v51 = vpop.f32.mrf.mxu1  ;;  %17069 = vmatmul.mubr.msk.f32.gmra.mxu1 %vm6836_vm3, %v21619_v1  ;;  %v21636_v13 = vld [vmem:[#allocation3 + $0x51] sm:$0xff] }
 0x6c1   :  { %v16824_v57 = vpop.f32.mrf.mxu0  ;;  %17167 = vmatmul.mubr.msk.f32.gmra.mxu0 %vm6836_vm3, %v21186_v22  ;;  %17071 = vmatprep.mubr.msk.f32.mxu1 %vm6836_vm3, %v21626_v49  ;;  %v21642_v22 = vld [vmem:[#allocation3 + $0x61] sm:$0xff] }
 0x6c2   :  { %23654 = vst [vmem:[#allocation81_spill] sm:$0xff] %v21617_v62  ;;  %v21628_v10 = vadd.f32 %v16824_v57, %v16726_v51  ;;  %17169 = vmatprep.mubr.msk.f32.mxu0 %vm6836_vm3, %v21192_v4  ;;  %v7570_v61 = vpop.f32.mrf.mxu1 }
 0x6c3   :  { %v8147_v27 = vpop.f32.mrf.mxu0 }
 0x6c4   :  { %23655 = vst [vmem:[#allocation39_spill] sm:$0xff] %v21628_v10  ;;  %v21634_v59 = vadd.f32 %v8147_v27, %v7570_v61  ;;  %v16729_v42 = vpop.f32.mrf.mxu1  ;;  %17072 = vmatmul.mubr.msk.f32.gmra.mxu1 %vm6836_vm3, %v21636_v13  ;;  %v21652_v27 = vld [vmem:[#allocation3 + $0x69] sm:$0xff] }
 0x6c5   :  { %v16827_v62 = vpop.f32.mrf.mxu0  ;;  %17170 = vmatmul.mubr.msk.f32.gmra.mxu0 %vm6836_vm3, %v21198_v14  ;;  %17074 = vmatprep.mubr.msk.f32.mxu1 %vm6836_vm3, %v21642_v22  ;;  %v21658_v14 = vld [vmem:[#allocation3 + $0x79] sm:$0xff] }
 0x6c6   :  { %23656 = vst [vmem:[#allocation8_spill] sm:$0xff] %v21634_v59  ;;  %v21644_v51 = vadd.f32 %v16827_v62, %v16729_v42  ;;  %17172 = vmatprep.mubr.msk.f32.mxu0 %vm6836_vm3, %v21204_v29  ;;  %v7580_v4 = vpop.f32.mrf.mxu1 }
 0x6c7   :  { %v8157_v57 = vpop.f32.mrf.mxu0 }
 0x6c8   :  { %23657 = vst [vmem:[#allocation48_spill] sm:$0xff] %v21644_v51  ;;  %v21650_v61 = vadd.f32 %v8157_v57, %v7580_v4  ;;  %v16732_v59 = vpop.f32.mrf.mxu1  ;;  %17075 = vmatmul.mubr.msk.f32.gmra.mxu1 %vm6836_vm3, %v21652_v27  ;;  %v21668_v57 = vld [vmem:[#allocation3 + $0x81] sm:$0xff] }
 0x6c9   :  { %v16830_v10 = vpop.f32.mrf.mxu0  ;;  %17173 = vmatmul.mubr.msk.f32.gmra.mxu0 %vm6836_vm3, %v21210_v34  ;;  %17077 = vmatprep.mubr.msk.f32.mxu1 %vm6836_vm3, %v21658_v14  ;;  %v21674_v34 = vld [vmem:[#allocation3 + $0x91] sm:$0xff] }
 0x6ca   :  { %23658 = vst [vmem:[#allocation76_spill] sm:$0xff] %v21650_v61  ;;  %v21660_v62 = vadd.f32 %v16830_v10, %v16732_v59  ;;  %17175 = vmatprep.mubr.msk.f32.mxu0 %vm6836_vm3, %v21216_v63  ;;  %v7590_v29 = vpop.f32.mrf.mxu1 }
 0x6cb   :  { %v8167_v42 = vpop.f32.mrf.mxu0 }
 0x6cc   :  { %23659 = vst [vmem:[#allocation75_spill] sm:$0xff] %v21660_v62  ;;  %v21666_v4 = vadd.f32 %v8167_v42, %v7590_v29  ;;  %v16735_v61 = vpop.f32.mrf.mxu1  ;;  %17078 = vmatmul.mubr.msk.f32.gmra.mxu1 %vm6836_vm3, %v21668_v57  ;;  %v21684_v42 = vld [vmem:[#allocation3 + $0x99] sm:$0xff] }
 0x6cd   :  { %v16833_v51 = vpop.f32.mrf.mxu0  ;;  %17176 = vmatmul.mubr.msk.f32.gmra.mxu0 %vm6836_vm3, %v21222_v53  ;;  %17080 = vmatprep.mubr.msk.f32.mxu1 %vm6836_vm3, %v21674_v34  ;;  %v21690_v53 = vld [vmem:[#allocation3 + $0xa9] sm:$0xff] }
 0x6ce   :  { %23660 = vst [vmem:[#allocation14_spill] sm:$0xff] %v21666_v4  ;;  %v21676_v10 = vadd.f32 %v16833_v51, %v16735_v61  ;;  %17178 = vmatprep.mubr.msk.f32.mxu0 %vm6836_vm3, %v21228_v40  ;;  %v7600_v63 = vpop.f32.mrf.mxu1 }
 0x6cf   :  { %v8177_v59 = vpop.f32.mrf.mxu0 }
 0x6d0   :  { %23661 = vst [vmem:[#allocation80_spill] sm:$0xff] %v21676_v10  ;;  %v21682_v29 = vadd.f32 %v8177_v59, %v7600_v63  ;;  %v16738_v4 = vpop.f32.mrf.mxu1  ;;  %17081 = vmatmul.mubr.msk.f32.gmra.mxu1 %vm6836_vm3, %v21684_v42  ;;  %v21700_v59 = vld [vmem:[#allocation3 + $0xb1] sm:$0xff] }
 0x6d1   :  { %v16836_v62 = vpop.f32.mrf.mxu0  ;;  %17179 = vmatmul.mubr.msk.f32.gmra.mxu0 %vm6836_vm3, %v21234_v26  ;;  %17083 = vmatprep.mubr.msk.f32.mxu1 %vm6836_vm3, %v21690_v53  ;;  %v21706_v26 = vld [vmem:[#allocation3 + $0xc1] sm:$0xff] }
 0x6d2   :  { %23662 = vst [vmem:[#allocation7_spill] sm:$0xff] %v21682_v29  ;;  %v21692_v51 = vadd.f32 %v16836_v62, %v16738_v4  ;;  %17181 = vmatprep.mubr.msk.f32.mxu0 %vm6836_vm3, %v21240_v18  ;;  %v7610_v40 = vpop.f32.mrf.mxu1 }
 0x6d3   :  { %v8187_v61 = vpop.f32.mrf.mxu0 }
 0x6d4   :  { %23663 = vst [vmem:[#allocation41_spill] sm:$0xff] %v21692_v51  ;;  %v21698_v63 = vadd.f32 %v8187_v61, %v7610_v40  ;;  %v16741_v29 = vpop.f32.mrf.mxu1  ;;  %17084 = vmatmul.mubr.msk.f32.gmra.mxu1 %vm6836_vm3, %v21700_v59  ;;  %v21716_v61 = vld [vmem:[#allocation3 + $0xc9] sm:$0xff] }
 0x6d5   :  { %v16839_v10 = vpop.f32.mrf.mxu0  ;;  %17182 = vmatmul.mubr.msk.f32.gmra.mxu0 %vm6836_vm3, %v21246_v58  ;;  %17086 = vmatprep.mubr.msk.f32.mxu1 %vm6836_vm3, %v21706_v26  ;;  %v21722_v58 = vld [vmem:[#allocation3 + $0xd9] sm:$0xff] }
 0x6d6   :  { %23664 = vst [vmem:[#allocation47_spill] sm:$0xff] %v21698_v63  ;;  %v21708_v62 = vadd.f32 %v16839_v10, %v16741_v29  ;;  %17184 = vmatprep.mubr.msk.f32.mxu0 %vm6836_vm3, %v21252_v32  ;;  %v7620_v18 = vpop.f32.mrf.mxu1  ;;  %23667 = vst [vmem:[#allocation11_spill] sm:$0xff] %v21722_v58 }
 0x6d7   :  { %v8197_v4 = vpop.f32.mrf.mxu0 }
 0x6d8   :  { %23665 = vst [vmem:[#allocation50_spill] sm:$0xff] %v21708_v62  ;;  %v21714_v40 = vadd.f32 %v8197_v4, %v7620_v18  ;;  %v16744_v63 = vpop.f32.mrf.mxu1  ;;  %17087 = vmatmul.mubr.msk.f32.gmra.mxu1 %vm6836_vm3, %v21716_v61  ;;  %v21732_v4 = vld [vmem:[#allocation3 + $0xe1] sm:$0xff] }
 0x6d9   :  { %v16842_v51 = vpop.f32.mrf.mxu0  ;;  %17185 = vmatmul.mubr.msk.f32.gmra.mxu0 %vm6836_vm3, %v21258_v21  ;;  %17089 = vmatprep.mubr.msk.f32.mxu1 %vm6836_vm3, %v21722_v58  ;;  %23670 = vst [vmem:[#allocation42_spill] sm:$0xff] %v21732_v4  ;;  %v23671_v21 = vld [vmem:[#allocation58_spill] sm:$0xff] }
 0x6da   :  { %23666 = vst [vmem:[#allocation12_spill] sm:$0xff] %v21714_v40  ;;  %v21724_v10 = vadd.f32 %v16842_v51, %v16744_v63  ;;  %17187 = vmatprep.mubr.msk.f32.mxu0 %vm6836_vm3, %v21264_v19  ;;  %v7630_v32 = vpop.f32.mrf.mxu1  ;;  %v21738_v51 = vld [vmem:[#allocation3 + $0xf1] sm:$0xff] }
 0x6db   :  { %v8207_v29 = vpop.f32.mrf.mxu0  ;;  %v23673_v19 = vld [vmem:[#allocation57_spill] sm:$0xff] }
 0x6dc   :  { %23668 = vst [vmem:[#allocation16_spill] sm:$0xff] %v21724_v10  ;;  %v21730_v18 = vadd.f32 %v8207_v29, %v7630_v32  ;;  %v16747_v40 = vpop.f32.mrf.mxu1  ;;  %17090 = vmatmul.mubr.msk.f32.gmra.mxu1 %vm6836_vm3, %v21732_v4  ;;  %v21748_v10 = vld [vmem:[#allocation3 + $0xf9] sm:$0xff] }
 0x6dd   :  { %v16845_v62 = vpop.f32.mrf.mxu0  ;;  %17188 = vmatmul.mubr.msk.f32.gmra.mxu0 %vm6836_vm3, %v23671_v21  ;;  %17092 = vmatprep.mubr.msk.f32.mxu1 %vm6836_vm3, %v21738_v51 }
 0x6de   :  { %23669 = vst [vmem:[#allocation15_spill] sm:$0xff] %v21730_v18  ;;  %v21740_v63 = vadd.f32 %v16845_v62, %v16747_v40  ;;  %17190 = vmatprep.mubr.msk.f32.mxu0 %vm6836_vm3, %v23673_v19  ;;  %v7640_v32 = vpop.f32.mrf.mxu1  ;;  %v21754_v62 = vld [vmem:[#allocation3 + $0x109] sm:$0xff] }
 0x6df   :  { %v8217_v29 = vpop.f32.mrf.mxu0 }
 0x6e0   :  { %23672 = vst [vmem:[#allocation44_spill] sm:$0xff] %v21740_v63  ;;  %v21746_v18 = vadd.f32 %v8217_v29, %v7640_v32  ;;  %v16750_v4 = vpop.f32.mrf.mxu1  ;;  %17093 = vmatmul.mubr.msk.f32.gmra.mxu1 %vm6836_vm3, %v21748_v10  ;;  %v21764_v29 = vld [vmem:[#allocation3 + $0x111] sm:$0xff] }
 0x6e1   :  { %v16848_v58 = vpop.f32.mrf.mxu0  ;;  %17191 = vmatmul.mubr.msk.f32.gmra.mxu0 %vm6836_vm3, %v21286_v30  ;;  %17095 = vmatprep.mubr.msk.f32.mxu1 %vm6836_vm3, %v21754_v62  ;;  %v21770_v30 = vld [vmem:[#allocation3 + $0x121] sm:$0xff] }
 0x6e2   :  { %23674 = vst [vmem:[#allocation49_spill] sm:$0xff] %v21746_v18  ;;  %v21756_v40 = vadd.f32 %v16848_v58, %v16750_v4  ;;  %17193 = vmatprep.mubr.msk.f32.mxu0 %vm6836_vm3, %v21292_v60  ;;  %v7650_v21 = vpop.f32.mrf.mxu1 }
 0x6e3   :  { %v8227_v19 = vpop.f32.mrf.mxu0 }
 0x6e4   :  { %23675 = vst [vmem:[#allocation52_spill] sm:$0xff] %v21756_v40  ;;  %v21762_v32 = vadd.f32 %v8227_v19, %v7650_v21  ;;  %v16753_v18 = vpop.f32.mrf.mxu1  ;;  %17096 = vmatmul.mubr.msk.f32.gmra.mxu1 %vm6836_vm3, %v21764_v29  ;;  %v21780_v19 = vld [vmem:[#allocation3 + $0x129] sm:$0xff] }
 0x6e5   :  { %v16851_v63 = vpop.f32.mrf.mxu0  ;;  %17194 = vmatmul.mubr.msk.f32.gmra.mxu0 %vm6836_vm3, %v21302_v28  ;;  %17098 = vmatprep.mubr.msk.f32.mxu1 %vm6836_vm3, %v21770_v30  ;;  %v21786_v28 = vld [vmem:[#allocation3 + $0x139] sm:$0xff] }
 0x6e6   :  { %23676 = vst [vmem:[#allocation77_spill] sm:$0xff] %v21762_v32  ;;  %v21772_v58 = vadd.f32 %v16851_v63, %v16753_v18  ;;  %17196 = vmatprep.mubr.msk.f32.mxu0 %vm6836_vm3, %v21308_v24  ;;  %v7660_v60 = vpop.f32.mrf.mxu1  ;;  %23679 = vst [vmem:[#allocation17_spill] sm:$0xff] %v21786_v28 }
 0x6e7   :  { %v8237_v4 = vpop.f32.mrf.mxu0 }
 0x6e8   :  { %23677 = vst [vmem:[#allocation13_spill] sm:$0xff] %v21772_v58  ;;  %v21778_v21 = vadd.f32 %v8237_v4, %v7660_v60  ;;  %v16756_v32 = vpop.f32.mrf.mxu1  ;;  %17099 = vmatmul.mubr.msk.f32.gmra.mxu1 %vm6836_vm3, %v21780_v19  ;;  %v21796_v4 = vld [vmem:[#allocation3 + $0x141] sm:$0xff] }
 0x6e9   :  { %v16854_v40 = vpop.f32.mrf.mxu0  ;;  %17197 = vmatmul.mubr.msk.f32.gmra.mxu0 %vm6836_vm3, %v21314_v35  ;;  %17101 = vmatprep.mubr.msk.f32.mxu1 %vm6836_vm3, %v21786_v28  ;;  %23682 = vst [vmem:[#allocation51_spill] sm:$0xff] %v21796_v4  ;;  %v23683_v35 = vld [vmem:[#allocation92_spill] sm:$0xff] }
 0x6ea   :  { %23678 = vst [vmem:[#allocation18_spill] sm:$0xff] %v21778_v21  ;;  %v21788_v18 = vadd.f32 %v16854_v40, %v16756_v32  ;;  %17199 = vmatprep.mubr.msk.f32.mxu0 %vm6836_vm3, %v21320_v43  ;;  %v7670_v24 = vpop.f32.mrf.mxu1  ;;  %v21802_v40 = vld [vmem:[#allocation3 + $0x151] sm:$0xff]  ;;  %v23685_v43 = vld [vmem:[#allocation64_spill] sm:$0xff] }
 0x6eb   :  { %v8247_v63 = vpop.f32.mrf.mxu0 }
 0x6ec   :  { %23680 = vst [vmem:[#allocation43_spill] sm:$0xff] %v21788_v18  ;;  %v21794_v60 = vadd.f32 %v8247_v63, %v7670_v24  ;;  %v16759_v21 = vpop.f32.mrf.mxu1  ;;  %17102 = vmatmul.mubr.msk.f32.gmra.mxu1 %vm6836_vm3, %v21796_v4  ;;  %v21812_v18 = vld [vmem:[#allocation3 + $0x159] sm:$0xff] }
 0x6ed   :  { %v16857_v58 = vpop.f32.mrf.mxu0  ;;  %17200 = vmatmul.mubr.msk.f32.gmra.mxu0 %vm6836_vm3, %v23683_v35  ;;  %17104 = vmatprep.mubr.msk.f32.mxu1 %vm6836_vm3, %v21802_v40  ;;  %23687 = vst [vmem:[#allocation19_spill] sm:$0xff] %v21812_v18  ;;  %v23688_v35 = vld [vmem:[#allocation63_spill] sm:$0xff] }
 0x6ee   :  { %23681 = vst [vmem:[#allocation45_spill] sm:$0xff] %v21794_v60  ;;  %v21804_v32 = vadd.f32 %v16857_v58, %v16759_v21  ;;  %17202 = vmatprep.mubr.msk.f32.mxu0 %vm6836_vm3, %v23685_v43  ;;  %v7680_v24 = vpop.f32.mrf.mxu1  ;;  %v21818_v58 = vld [vmem:[#allocation3 + $0x169] sm:$0xff] }
 0x6ef   :  { %v8257_v63 = vpop.f32.mrf.mxu0  ;;  %23689 = vst [vmem:[#allocation46_spill] sm:$0xff] %v21818_v58 }
 0x6f0   :  { %23684 = vst [vmem:[#allocation83_spill] sm:$0xff] %v21804_v32  ;;  %v21810_v60 = vadd.f32 %v8257_v63, %v7680_v24  ;;  %v16762_v4 = vpop.f32.mrf.mxu1  ;;  %17105 = vmatmul.mubr.msk.f32.gmra.mxu1 %vm6836_vm3, %v21812_v18 }
 0x6f1   :  { %v16860_v28 = vpop.f32.mrf.mxu0  ;;  %17203 = vmatmul.mubr.msk.f32.gmra.mxu0 %vm6836_vm3, %v23688_v35  ;;  %17107 = vmatprep.mubr.msk.f32.mxu1 %vm6836_vm3, %v21818_v58 }
 0x6f2   :  { %23686 = vst [vmem:[#allocation20_spill] sm:$0xff] %v21810_v60  ;;  %v21820_v21 = vadd.f32 %v16860_v28, %v16762_v4  ;;  %17205 = vmatprep.mubr.msk.f32.mxu0 %vm6836_vm3, %v21348_v45  ;;  %v7690_v43 = vpop.f32.mrf.mxu1  ;;  %v21828_v60 = vld [vmem:[#allocation3 + $0x171] sm:$0xff]  ;;  %v21834_v28 = vld [vmem:[#allocation3 + $0x181] sm:$0xff] }
 0x6f3   :  { %v8267_v24 = vpop.f32.mrf.mxu0  ;;  %23692 = vst [vmem:[#allocation22_spill] sm:$0xff] %v21828_v60  ;;  %23693 = vst [vmem:[#allocation21_spill] sm:$0xff] %v21834_v28  ;;  %v10447_v4 = vld [vmem:[#allocation3 + $0x182] sm:$0xff] }
 0x6f4   :  { %23690 = vst [vmem:[#allocation53_spill] sm:$0xff] %v21820_v21  ;;  %v21826_v63 = vadd.f32 %v8267_v24, %v7690_v43  ;;  %v16765_v32 = vpop.f32.mrf.mxu1  ;;  %17108 = vmatmul.mubr.msk.f32.gmra.mxu1 %vm6836_vm3, %v21828_v60  ;;  %v10448_v21 = vld [vmem:[#allocation3 + $0x18a] sm:$0xff] }
 0x6f5   :  { %v16863_v18 = vpop.f32.mrf.mxu0  ;;  %17206 = vmatmul.mubr.msk.f32.gmra.mxu0 %vm6836_vm3, %v21357_v11  ;;  %17110 = vmatprep.mubr.msk.f32.mxu1 %vm6836_vm3, %v21834_v28  ;;  %v9742_v11 = vld [vmem:[#allocation3 + $0x1c9] sm:$0xff] }
 0x6f6   :  { %23691 = vst [vmem:[#allocation85_spill] sm:$0xff] %v21826_v63  ;;  %v21836_v35 = vadd.f32 %v16863_v18, %v16765_v32  ;;  %17208 = vmatprep.mubr.msk.f32.mxu0 %vm6836_vm3, %v10447_v4  ;;  %v7700_v45 = vpop.f32.mrf.mxu1  ;;  %v21843_v63 = vld [vmem:[#allocation3 + $0x189] sm:$0xff] }
 0x6f7   :  { %v8277_v43 = vpop.f32.mrf.mxu0  ;;  %23696 = vst [vmem:[#allocation24_spill] sm:$0xff] %v21843_v63 }
 0x6f8   :  { %23694 = vst [vmem:[#allocation84_spill] sm:$0xff] %v21836_v35  ;;  %v21841_v24 = vadd.f32 %v8277_v43, %v7700_v45  ;;  %v16768_v60 = vpop.f32.mrf.mxu1  ;;  %17111 = vmatmul.mubr.msk.f32.gmra.mxu1 %vm6836_vm3, %v21843_v63  ;;  %v9743_v43 = vld [vmem:[#allocation3 + $0x1d1] sm:$0xff] }
 0x6f9   :  { %v16866_v58 = vpop.f32.mrf.mxu0  ;;  %17209 = vmatmul.mubr.msk.f32.gmra.mxu0 %vm6836_vm3, %v10448_v21  ;;  %17113 = vmatprep.mubr.msk.f32.mxu1 %vm6836_vm3, %v9742_v11  ;;  %v21858_v21 = vld [vmem:[#allocation3 + $0x1e1] sm:$0xff] }
 0x6fa   :  { %23695 = vst [vmem:[#allocation87_spill] sm:$0xff] %v21841_v24  ;;  %v21848_v18 = vadd.f32 %v16866_v58, %v16768_v60  ;;  %17211 = vmatprep.mubr.msk.f32.mxu0 %vm6836_vm3, %v21368_v8  ;;  %v7710_v32 = vpop.f32.mrf.mxu1  ;;  %v23699_v60 = vld [vmem:[#allocation60_spill] sm:$0xff]  ;;  %v23700_v58 = vld [vmem:[#allocation59_spill] sm:$0xff] }
 0x6fb   :  { %v8287_v4 = vpop.f32.mrf.mxu0  ;;  %v7978_v11 = vadd.f32 %v23700_v58, %v23699_v60 }
 0x6fc   :  { %23697 = vst [vmem:[#allocation23_spill] sm:$0xff] %v21848_v18  ;;  %v21853_v45 = vadd.f32 %v8287_v4, %v7710_v32  ;;  %v16871_v24 = vpop.f32.mrf.mxu1  ;;  %17114 = vmatmul.mubr.msk.f32.gmra.mxu1 %vm6836_vm3, %v9743_v43  ;;  %v23701_v18 = vld [vmem:[#allocation54_spill] sm:$0xff] }
 0x6fd   :  { %v16969_v35 = vpop.f32.mrf.mxu0  ;;  %17212 = vmatmul.mubr.msk.f32.gmra.mxu0 %vm6836_vm3, %v21378_v3  ;;  %v8940_v63 = vadd.f32 %v16871_v24, %v23701_v18  ;;  %17116 = vmatprep.mubr.msk.f32.mxu1 %vm6836_vm3, %v21858_v21  ;;  %v21875_v24 = vld [vmem:[#allocation3 + $0x1f9] sm:$0xff] }
 0x6fe   :  { %23698 = vst [vmem:[#allocation86_spill] sm:$0xff] %v21853_v45  ;;  %17214 = vmatprep.mubr.msk.f32.mxu0 %vm6836_vm3, %v21384_v36  ;;  %v8620_v8 = vpop.f32.mrf.mxu1  ;;  %v21869_v45 = vld [vmem:[#allocation3 + $0x1e9] sm:$0xff]  ;;  %v23704_v36 = vld [vmem:[#allocation62_spill] sm:$0xff] }
 0x6ff   :  { %v9327_v32 = vpop.f32.mrf.mxu0  ;;  %v21867_v4 = vadd.f32 %v16969_v35, %v8940_v63  ;;  %v8939_v43 = vadd.f32 %v8620_v8, %v7978_v11  ;;  %23703 = vst [vmem:[#allocation25_spill] sm:$0xff] %v21869_v45  ;;  %v23706_v11 = vld [vmem:[#allocation61_spill] sm:$0xff] }
 0x700   :  { %v16874_v3 = vpop.f32.mrf.mxu1  ;;  %17117 = vmatmul.mubr.msk.f32.gmra.mxu1 %vm6836_vm3, %v21869_v45 }
 0x701   :  { %23702 = vst [vmem:[#allocation90_spill] sm:$0xff] %v21867_v4  ;;  %v16972_v28 = vpop.f32.mrf.mxu0  ;;  %17215 = vmatmul.mubr.msk.f32.gmra.mxu0 %vm6836_vm3, %v21390_v0  ;;  %v21877_v18 = vadd.f32 %v9327_v32, %v8939_v43  ;;  %v8942_v60 = vadd.f32 %v16874_v3, %v23704_v36  ;;  %17119 = vmatprep.mubr.msk.f32.mxu1 %vm6836_vm3, %v21875_v24  ;;  %v21887_v4 = vld [vmem:[#allocation3 + $0x201] sm:$0xff]  ;;  %v21893_v32 = vld [vmem:[#allocation3 + $0x211] sm:$0xff] }
 0x702   :  { %17217 = vmatprep.mubr.msk.f32.mxu0 %vm6836_vm3, %v21396_v16  ;;  %v8630_v63 = vpop.f32.mrf.mxu1  ;;  %23707 = vst [vmem:[#allocation88_spill] sm:$0xff] %v21887_v4  ;;  %v23708_v16 = vld [vmem:[#allocation28_spill] sm:$0xff] }
 0x703   :  { %v9337_v35 = vpop.f32.mrf.mxu0  ;;  %v21884_v58 = vadd.f32 %v16972_v28, %v8942_v60  ;;  %v8941_v8 = vadd.f32 %v8630_v63, %v23706_v11  ;;  %v23709_v63 = vld [vmem:[#allocation82_spill] sm:$0xff] }
 0x704   :  { %v16877_v0 = vpop.f32.mrf.mxu1  ;;  %17120 = vmatmul.mubr.msk.f32.gmra.mxu1 %vm6836_vm3, %v21887_v4 }
 0x705   :  { %23705 = vst [vmem:[#allocation26_spill] sm:$0xff] %v21884_v58  ;;  %v16975_v45 = vpop.f32.mrf.mxu0  ;;  %17218 = vmatmul.mubr.msk.f32.gmra.mxu0 %vm6836_vm3, %v21406_v54  ;;  %v21895_v43 = vadd.f32 %v9337_v35, %v8941_v8  ;;  %v8944_v3 = vadd.f32 %v16877_v0, %v23708_v16  ;;  %17122 = vmatprep.mubr.msk.f32.mxu1 %vm6836_vm3, %v21893_v32  ;;  %v21905_v58 = vld [vmem:[#allocation3 + $0x219] sm:$0xff]  ;;  %v21911_v35 = vld [vmem:[#allocation3 + $0x229] sm:$0xff] }
 0x706   :  { %17220 = vmatprep.mubr.msk.f32.mxu0 %vm6836_vm3, %v21412_v7  ;;  %v8640_v28 = vpop.f32.mrf.mxu1 }
 0x707   :  { %v9347_v36 = vpop.f32.mrf.mxu0  ;;  %v21902_v60 = vadd.f32 %v16975_v45, %v8944_v3  ;;  %v8943_v11 = vadd.f32 %v8640_v28, %v23709_v63  ;;  %v21923_v28 = vld [vmem:[#allocation3 + $0x231] sm:$0xff] }
 0x708   :  { %v16880_v54 = vpop.f32.mrf.mxu1  ;;  %17123 = vmatmul.mubr.msk.f32.gmra.mxu1 %vm6836_vm3, %v21905_v58 }
 0x709   :  { %v16978_v4 = vpop.f32.mrf.mxu0  ;;  %17221 = vmatmul.mubr.msk.f32.gmra.mxu0 %vm6836_vm3, %v21418_v38  ;;  %v21913_v8 = vadd.f32 %v9347_v36, %v8943_v11  ;;  %v8946_v7 = vadd.f32 %v16880_v54, %v21350_v46  ;;  %17125 = vmatprep.mubr.msk.f32.mxu1 %vm6836_vm3, %v21911_v35  ;;  %v21929_v46 = vld [vmem:[#allocation3 + $0x241] sm:$0xff] }
 0x70a   :  { %17223 = vmatprep.mubr.msk.f32.mxu0 %vm6836_vm3, %v21424_v33  ;;  %v8650_v45 = vpop.f32.mrf.mxu1  ;;  %v23712_v54 = vld [vmem:[#allocation71_spill] sm:$0xff] }
 0x70b   :  { %v9357_v0 = vpop.f32.mrf.mxu0  ;;  %v21920_v16 = vadd.f32 %v16978_v4, %v8946_v7  ;;  %v8945_v3 = vadd.f32 %v8650_v45, %v21355_v48  ;;  %v21941_v45 = vld [vmem:[#allocation3 + $0x249] sm:$0xff] }
 0x70c   :  { %v16883_v38 = vpop.f32.mrf.mxu1  ;;  %17126 = vmatmul.mubr.msk.f32.gmra.mxu1 %vm6836_vm3, %v21923_v28  ;;  %23713 = vst [vmem:[#allocation56_spill] sm:$0xff] %v21941_v45 }
 0x70d   :  { %23710 = vst [vmem:[#allocation93_spill] sm:$0xff] %v21920_v16  ;;  %v16981_v63 = vpop.f32.mrf.mxu0  ;;  %17224 = vmatmul.mubr.msk.f32.gmra.mxu0 %vm6836_vm3, %v21434_v41  ;;  %v21931_v36 = vadd.f32 %v9357_v0, %v8945_v3  ;;  %v8948_v33 = vadd.f32 %v16883_v38, %v21370_v44  ;;  %17128 = vmatprep.mubr.msk.f32.mxu1 %vm6836_vm3, %v21929_v46  ;;  %v21947_v44 = vld [vmem:[#allocation3 + $0x259] sm:$0xff] }
 0x70e   :  { %17226 = vmatprep.mubr.msk.f32.mxu0 %vm6836_vm3, %v21440_v6  ;;  %v8660_v48 = vpop.f32.mrf.mxu1  ;;  %v23715_v6 = vld [vmem:[#allocation69_spill] sm:$0xff] }
 0x70f   :  { %v9367_v4 = vpop.f32.mrf.mxu0  ;;  %v21938_v11 = vadd.f32 %v16981_v63, %v8948_v33  ;;  %v8947_v7 = vadd.f32 %v8660_v48, %v23712_v54  ;;  %v23717_v48 = vld [vmem:[#allocation27_spill] sm:$0xff] }
 0x710   :  { %v16886_v41 = vpop.f32.mrf.mxu1  ;;  %17129 = vmatmul.mubr.msk.f32.gmra.mxu1 %vm6836_vm3, %v21941_v45 }
 0x711   :  { %23711 = vst [vmem:[#allocation91_spill] sm:$0xff] %v21938_v11  ;;  %v16984_v16 = vpop.f32.mrf.mxu0  ;;  %17227 = vmatmul.mubr.msk.f32.gmra.mxu0 %vm6836_vm3, %v21446_v15  ;;  %v21949_v0 = vadd.f32 %v9367_v4, %v8947_v7  ;;  %v8950_v3 = vadd.f32 %v16886_v41, %v23715_v6  ;;  %17131 = vmatprep.mubr.msk.f32.mxu1 %vm6836_vm3, %v21947_v44  ;;  %v21959_v11 = vld [vmem:[#allocation3 + $0x261] sm:$0xff]  ;;  %v21965_v4 = vld [vmem:[#allocation3 + $0x271] sm:$0xff] }
 0x712   :  { %17229 = vmatprep.mubr.msk.f32.mxu0 %vm6836_vm3, %v21452_v55  ;;  %v8670_v38 = vpop.f32.mrf.mxu1  ;;  %23718 = vst [vmem:[#allocation57_spill] sm:$0xff] %v21959_v11  ;;  %v23720_v55 = vld [vmem:[#allocation89_spill] sm:$0xff] }
 0x713   :  { %23714 = vst [vmem:[#allocation55_spill] sm:$0xff] %v21949_v0  ;;  %v9377_v63 = vpop.f32.mrf.mxu0  ;;  %v21956_v33 = vadd.f32 %v16984_v16, %v8950_v3  ;;  %v8949_v54 = vadd.f32 %v8670_v38, %v23717_v48  ;;  %v23721_v16 = vld [vmem:[#allocation67_spill] sm:$0xff]  ;;  %v23723_v48 = vld [vmem:[#allocation30_spill] sm:$0xff] }
 0x714   :  { %v16889_v15 = vpop.f32.mrf.mxu1  ;;  %17132 = vmatmul.mubr.msk.f32.gmra.mxu1 %vm6836_vm3, %v21959_v11  ;;  %v21977_v11 = vld [vmem:[#allocation3 + $0x279] sm:$0xff] }
 0x715   :  { %23716 = vst [vmem:[#allocation58_spill] sm:$0xff] %v21956_v33  ;;  %v16987_v45 = vpop.f32.mrf.mxu0  ;;  %17230 = vmatmul.mubr.msk.f32.gmra.mxu0 %vm6836_vm3, %v21462_v37  ;;  %v21967_v7 = vadd.f32 %v9377_v63, %v8949_v54  ;;  %v8952_v41 = vadd.f32 %v16889_v15, %v23720_v55  ;;  %17134 = vmatprep.mubr.msk.f32.mxu1 %vm6836_vm3, %v21965_v4  ;;  %23724 = vst [vmem:[#allocation63_spill] sm:$0xff] %v21977_v11  ;;  %v23725_v63 = vld [vmem:[#allocation65_spill] sm:$0xff]  ;;  %v23726_v55 = vld [vmem:[#allocation34_spill] sm:$0xff] }
 0x716   :  { %17232 = vmatprep.mubr.msk.f32.mxu0 %vm6836_vm3, %v23721_v16  ;;  %v8680_v6 = vpop.f32.mrf.mxu1  ;;  %v21983_v54 = vld [vmem:[#allocation3 + $0x289] sm:$0xff] }
 0x717   :  { %23719 = vst [vmem:[#allocation92_spill] sm:$0xff] %v21967_v7  ;;  %v9387_v3 = vpop.f32.mrf.mxu0  ;;  %v21974_v38 = vadd.f32 %v16987_v45, %v8952_v41  ;;  %v8951_v33 = vadd.f32 %v8680_v6, %v23723_v48  ;;  %v23728_v48 = vld [vmem:[#allocation36_spill] sm:$0xff] }
 0x718   :  { %v16892_v37 = vpop.f32.mrf.mxu1  ;;  %17135 = vmatmul.mubr.msk.f32.gmra.mxu1 %vm6836_vm3, %v21977_v11  ;;  %v21995_v11 = vld [vmem:[#allocation3 + $0x291] sm:$0xff] }
 0x719   :  { %23722 = vst [vmem:[#allocation64_spill] sm:$0xff] %v21974_v38  ;;  %v16990_v0 = vpop.f32.mrf.mxu0  ;;  %17233 = vmatmul.mubr.msk.f32.gmra.mxu0 %vm6836_vm3, %v23725_v63  ;;  %v21985_v15 = vadd.f32 %v9387_v3, %v8951_v33  ;;  %v8954_v16 = vadd.f32 %v16892_v37, %v23726_v55  ;;  %17137 = vmatprep.mubr.msk.f32.mxu1 %vm6836_vm3, %v21983_v54  ;;  %23729 = vst [vmem:[#allocation59_spill] sm:$0xff] %v21995_v11  ;;  %v22001_v33 = vld [vmem:[#allocation3 + $0x2a1] sm:$0xff] }
 0x71a   :  { %17235 = vmatprep.mubr.msk.f32.mxu0 %vm6836_vm3, %v21480_v17  ;;  %v8690_v45 = vpop.f32.mrf.mxu1  ;;  %v23730_v17 = vld [vmem:[#allocation72_spill] sm:$0xff] }
 0x71b   :  { %v9397_v41 = vpop.f32.mrf.mxu0  ;;  %v21992_v6 = vadd.f32 %v16990_v0, %v8954_v16  ;;  %v8953_v38 = vadd.f32 %v8690_v45, %v23728_v48  ;;  %v23732_v45 = vld [vmem:[#allocation70_spill] sm:$0xff] }
 0x71c   :  { %v16895_v63 = vpop.f32.mrf.mxu1  ;;  %17138 = vmatmul.mubr.msk.f32.gmra.mxu1 %vm6836_vm3, %v21995_v11 }
 0x71d   :  { %23727 = vst [vmem:[#allocation60_spill] sm:$0xff] %v21992_v6  ;;  %v16993_v7 = vpop.f32.mrf.mxu0  ;;  %17236 = vmatmul.mubr.msk.f32.gmra.mxu0 %vm6836_vm3, %v21490_v5  ;;  %v22003_v3 = vadd.f32 %v9397_v41, %v8953_v38  ;;  %v8956_v37 = vadd.f32 %v16895_v63, %v23730_v17  ;;  %17140 = vmatprep.mubr.msk.f32.mxu1 %vm6836_vm3, %v22001_v33  ;;  %v22013_v6 = vld [vmem:[#allocation3 + $0x2a9] sm:$0xff]  ;;  %v22019_v38 = vld [vmem:[#allocation3 + $0x2b9] sm:$0xff] }
 0x71e   :  { %17238 = vmatprep.mubr.msk.f32.mxu0 %vm6836_vm3, %v21496_v31  ;;  %v8700_v0 = vpop.f32.mrf.mxu1  ;;  %23733 = vst [vmem:[#allocation62_spill] sm:$0xff] %v22013_v6  ;;  %v23735_v31 = vld [vmem:[#allocation29_spill] sm:$0xff] }
 0x71f   :  { %v9407_v55 = vpop.f32.mrf.mxu0  ;;  %v22010_v16 = vadd.f32 %v16993_v7, %v8956_v37  ;;  %v8955_v48 = vadd.f32 %v8700_v0, %v23732_v45  ;;  %v23737_v0 = vld [vmem:[#allocation94_spill] sm:$0xff] }
 0x720   :  { %v16898_v5 = vpop.f32.mrf.mxu1  ;;  %17141 = vmatmul.mubr.msk.f32.gmra.mxu1 %vm6836_vm3, %v22013_v6 }
 0x721   :  { %23731 = vst [vmem:[#allocation54_spill] sm:$0xff] %v22010_v16  ;;  %v16996_v11 = vpop.f32.mrf.mxu0  ;;  %17239 = vmatmul.mubr.msk.f32.gmra.mxu0 %vm6836_vm3, %v21506_v39  ;;  %v22021_v41 = vadd.f32 %v9407_v55, %v8955_v48  ;;  %v8958_v63 = vadd.f32 %v16898_v5, %v23735_v31  ;;  %17143 = vmatprep.mubr.msk.f32.mxu1 %vm6836_vm3, %v22019_v38  ;;  %v22031_v16 = vld [vmem:[#allocation3 + $0x2c1] sm:$0xff]  ;;  %v23739_v55 = vld [vmem:[#allocation37_spill] sm:$0xff] }
 0x722   :  { %17241 = vmatprep.mubr.msk.f32.mxu0 %vm6836_vm3, %v21512_v9  ;;  %v8710_v7 = vpop.f32.mrf.mxu1  ;;  %23738 = vst [vmem:[#allocation82_spill] sm:$0xff] %v22031_v16  ;;  %v22037_v48 = vld [vmem:[#allocation3 + $0x2d1] sm:$0xff]  ;;  %v23740_v9 = vld [vmem:[#allocation32_spill] sm:$0xff] }
 0x723   :  { %23734 = vst [vmem:[#allocation61_spill] sm:$0xff] %v22021_v41  ;;  %v9417_v17 = vpop.f32.mrf.mxu0  ;;  %v22028_v37 = vadd.f32 %v16996_v11, %v8958_v63  ;;  %v8957_v45 = vadd.f32 %v8710_v7, %v23737_v0  ;;  %v23742_v0 = vld [vmem:[#allocation35_spill] sm:$0xff] }
 0x724   :  { %v16901_v39 = vpop.f32.mrf.mxu1  ;;  %17144 = vmatmul.mubr.msk.f32.gmra.mxu1 %vm6836_vm3, %v22031_v16  ;;  %v22049_v16 = vld [vmem:[#allocation3 + $0x2d9] sm:$0xff] }
 0x725   :  { %23736 = vst [vmem:[#allocation28_spill] sm:$0xff] %v22028_v37  ;;  %v16999_v6 = vpop.f32.mrf.mxu0  ;;  %17242 = vmatmul.mubr.msk.f32.gmra.mxu0 %vm6836_vm3, %v23739_v55  ;;  %v22039_v5 = vadd.f32 %v9417_v17, %v8957_v45  ;;  %v8960_v31 = vadd.f32 %v16901_v39, %v23740_v9  ;;  %17146 = vmatprep.mubr.msk.f32.mxu1 %vm6836_vm3, %v22037_v48  ;;  %23743 = vst [vmem:[#allocation69_spill] sm:$0xff] %v22049_v16  ;;  %v22055_v17 = vld [vmem:[#allocation3 + $0x2e9] sm:$0xff] }
 0x726   :  { %17244 = vmatprep.mubr.msk.f32.mxu0 %vm6836_vm3, %v21528_v52  ;;  %v8720_v11 = vpop.f32.mrf.mxu1  ;;  %23744 = vst [vmem:[#allocation27_spill] sm:$0xff] %v22055_v17  ;;  %v23746_v52 = vld [vmem:[#allocation68_spill] sm:$0xff] }
 0x727   :  { %v9427_v63 = vpop.f32.mrf.mxu0  ;;  %v22046_v7 = vadd.f32 %v16999_v6, %v8960_v31  ;;  %v8959_v37 = vadd.f32 %v8720_v11, %v23742_v0  ;;  %v23748_v11 = vld [vmem:[#allocation66_spill] sm:$0xff] }
 0x728   :  { %v16904_v55 = vpop.f32.mrf.mxu1  ;;  %17147 = vmatmul.mubr.msk.f32.gmra.mxu1 %vm6836_vm3, %v22049_v16 }
 0x729   :  { %23741 = vst [vmem:[#allocation71_spill] sm:$0xff] %v22046_v7  ;;  %v17002_v41 = vpop.f32.mrf.mxu0  ;;  %17245 = vmatmul.mubr.msk.f32.gmra.mxu0 %vm6836_vm3, %v21538_v25  ;;  %v22057_v45 = vadd.f32 %v9427_v63, %v8959_v37  ;;  %v8962_v39 = vadd.f32 %v16904_v55, %v23746_v52  ;;  %17149 = vmatprep.mubr.msk.f32.mxu1 %vm6836_vm3, %v22055_v17  ;;  %v22067_v7 = vld [vmem:[#allocation3 + $0x2f1] sm:$0xff]  ;;  %v23750_v37 = vld [vmem:[#allocation31_spill] sm:$0xff] }
 0x72a   :  { %17247 = vmatprep.mubr.msk.f32.mxu0 %vm6836_vm3, %v21544_v20  ;;  %v8730_v6 = vpop.f32.mrf.mxu1  ;;  %23749 = vst [vmem:[#allocation30_spill] sm:$0xff] %v22067_v7  ;;  %v22073_v63 = vld [vmem:[#allocation3 + $0x301] sm:$0xff]  ;;  %v23753_v20 = vld [vmem:[#allocation74_spill] sm:$0xff] }
 0x72b   :  { %23745 = vst [vmem:[#allocation89_spill] sm:$0xff] %v22057_v45  ;;  %v9437_v9 = vpop.f32.mrf.mxu0  ;;  %v22064_v31 = vadd.f32 %v17002_v41, %v8962_v39  ;;  %v8961_v0 = vadd.f32 %v8730_v6, %v23748_v11  ;;  %23751 = vst [vmem:[#allocation65_spill] sm:$0xff] %v22073_v63  ;;  %v23754_v41 = vld [vmem:[#allocation33_spill] sm:$0xff] }
 0x72c   :  { %v16907_v25 = vpop.f32.mrf.mxu1  ;;  %17150 = vmatmul.mubr.msk.f32.gmra.mxu1 %vm6836_vm3, %v22067_v7  ;;  %v22085_v45 = vld [vmem:[#allocation3 + $0x309] sm:$0xff] }
 0x72d   :  { %23747 = vst [vmem:[#allocation67_spill] sm:$0xff] %v22064_v31  ;;  %v17005_v16 = vpop.f32.mrf.mxu0  ;;  %17248 = vmatmul.mubr.msk.f32.gmra.mxu0 %vm6836_vm3, %v23750_v37  ;;  %v22075_v55 = vadd.f32 %v9437_v9, %v8961_v0  ;;  %v8964_v52 = vadd.f32 %v16907_v25, %v23753_v20  ;;  %17152 = vmatprep.mubr.msk.f32.mxu1 %vm6836_vm3, %v22073_v63  ;;  %v23756_v31 = vld [vmem:[#allocation73_spill] sm:$0xff]  ;;  %23757 = vst [vmem:[#allocation72_spill] sm:$0xff] %v22085_v45  ;;  %v23758_v9 = vld [vmem:[#allocation10_spill] sm:$0xff] }
 0x72e   :  { %17250 = vmatprep.mubr.msk.f32.mxu0 %vm6836_vm3, %v23754_v41  ;;  %v8740_v39 = vpop.f32.mrf.mxu1  ;;  %v22091_v0 = vld [vmem:[#allocation3 + $0x319] sm:$0xff] }
 0x72f   :  { %23752 = vst [vmem:[#allocation34_spill] sm:$0xff] %v22075_v55  ;;  %v9447_v6 = vpop.f32.mrf.mxu0  ;;  %v22082_v11 = vadd.f32 %v17005_v16, %v8964_v52  ;;  %v8963_v7 = vadd.f32 %v8740_v39, %v23756_v31  ;;  %23759 = vst [vmem:[#allocation70_spill] sm:$0xff] %v22091_v0  ;;  %v23761_v20 = vld [vmem:[#allocation38_spill] sm:$0xff]  ;;  %v23763_v39 = vld [vmem:[#allocation40_spill] sm:$0xff] }
 0x730   :  { %v16910_v37 = vpop.f32.mrf.mxu1  ;;  %17153 = vmatmul.mubr.msk.f32.gmra.mxu1 %vm6836_vm3, %v22085_v45  ;;  %v22103_v45 = vld [vmem:[#allocation3 + $0x321] sm:$0xff] }
 0x731   :  { %23755 = vst [vmem:[#allocation36_spill] sm:$0xff] %v22082_v11  ;;  %v17008_v17 = vpop.f32.mrf.mxu0  ;;  %17251 = vmatmul.mubr.msk.f32.gmra.mxu0 %vm6836_vm3, %v23758_v9  ;;  %v22093_v25 = vadd.f32 %v9447_v6, %v8963_v7  ;;  %v8966_v41 = vadd.f32 %v16910_v37, %v23761_v20  ;;  %17155 = vmatprep.mubr.msk.f32.mxu1 %vm6836_vm3, %v22091_v0  ;;  %23764 = vst [vmem:[#allocation37_spill] sm:$0xff] %v22103_v45  ;;  %v23765_v7 = vld [vmem:[#allocation78_spill] sm:$0xff]  ;;  %v23766_v20 = vld [vmem:[#allocation9_spill] sm:$0xff] }
 0x732   :  { %17253 = vmatprep.mubr.msk.f32.mxu0 %vm6836_vm3, %v21576_v2  ;;  %v8750_v16 = vpop.f32.mrf.mxu1  ;;  %v22109_v6 = vld [vmem:[#allocation3 + $0x331] sm:$0xff] }
 0x733   :  { %23760 = vst [vmem:[#allocation29_spill] sm:$0xff] %v22093_v25  ;;  %v9457_v31 = vpop.f32.mrf.mxu0  ;;  %v22100_v52 = vadd.f32 %v17008_v17, %v8966_v41  ;;  %v8965_v11 = vadd.f32 %v8750_v16, %v23763_v39  ;;  %v10479_v37 = vld [vmem:[#allocation3 + $0x332] sm:$0xff] }
 0x734   :  { %v16913_v9 = vpop.f32.mrf.mxu1  ;;  %17156 = vmatmul.mubr.msk.f32.gmra.mxu1 %vm6836_vm3, %v22103_v45  ;;  %v22120_v25 = vld [vmem:[#allocation3 + $0x339] sm:$0xff] }
 0x735   :  { %23762 = vst [vmem:[#allocation94_spill] sm:$0xff] %v22100_v52  ;;  %v17011_v55 = vpop.f32.mrf.mxu0  ;;  %17254 = vmatmul.mubr.msk.f32.gmra.mxu0 %vm6836_vm3, %v23765_v7  ;;  %v22111_v2 = vadd.f32 %v9457_v31, %v8965_v11  ;;  %v8968_v17 = vadd.f32 %v16913_v9, %v23766_v20  ;;  %17158 = vmatprep.mubr.msk.f32.mxu1 %vm6836_vm3, %v22109_v6  ;;  %v23768_v52 = vld [vmem:[#allocation79_spill] sm:$0xff]  ;;  %v11125_v11 = vld [vmem:[#allocation3 + $0x30] sm:$0xff] }
 0x736   :  { %17256 = vmatprep.mubr.msk.f32.mxu0 %vm6836_vm3, %v10479_v37  ;;  %v8760_v41 = vpop.f32.mrf.mxu1  ;;  %v10480_v7 = vld [vmem:[#allocation3 + $0x33a] sm:$0xff] }
 0x737   :  { %v9467_v16 = vpop.f32.mrf.mxu0  ;;  %v22117_v39 = vadd.f32 %v17011_v55, %v8968_v17  ;;  %v8967_v45 = vadd.f32 %v8760_v41, %v23768_v52  ;;  %v11126_v17 = vld [vmem:[#allocation3 + $0x38] sm:$0xff] }
 0x738   :  { %v16916_v0 = vpop.f32.mrf.mxu1  ;;  %17159 = vmatmul.mubr.msk.f32.gmra.mxu1 %vm6836_vm3, %v22120_v25 }
 0x739   :  { %23767 = vst [vmem:[#allocation32_spill] sm:$0xff] %v22117_v39  ;;  %v17014_v63 = vpop.f32.mrf.mxu0  ;;  %17257 = vmatmul.mubr.msk.f32.gmra.mxu0 %vm6836_vm3, %v10480_v7  ;;  %v22125_v31 = vadd.f32 %v9467_v16, %v8967_v45  ;;  %v8970_v9 = vadd.f32 %v16916_v0, %v21590_v56  ;;  %17261 = vmatprep.mubr.msk.f32.mxu1 %vm6836_vm3, %v11125_v11  ;;  %v11127_v56 = vld [vmem:[#allocation3 + $0x48] sm:$0xff]  ;;  %v23769_v16 = vld [vmem:[#allocation81_spill] sm:$0xff] }
 0x73a   :  { %17359 = vmatprep.mubr.msk.f32.mxu0 %vm6836_vm3, %v21603_v23  ;;  %v8770_v55 = vpop.f32.mrf.mxu1  ;;  %v11128_v11 = vld [vmem:[#allocation3 + $0x50] sm:$0xff] }
 0x73b   :  { %v9477_v52 = vpop.f32.mrf.mxu0  ;;  %v22131_v37 = vadd.f32 %v17014_v63, %v8970_v9  ;;  %v8969_v20 = vadd.f32 %v8770_v55, %v21595_v12  ;;  %v23770_v55 = vld [vmem:[#allocation39_spill] sm:$0xff] }
 0x73c   :  { %v16919_v41 = vpop.f32.mrf.mxu1  ;;  %17262 = vmatmul.mubr.msk.f32.vlgmr.msra.gmra.mxu1 %vm6836_vm3, %v11126_v17  ;;  %v23771_v17 = vld [vmem:[#allocation8_spill] sm:$0xff] }
 0x73d   :  { %v17017_v39 = vpop.f32.mrf.mxu0  ;;  %17360 = vmatmul.mubr.msk.f32.vlgmr.msra.gmra.mxu0 %vm6836_vm3, %v21619_v1  ;;  %v22137_v45 = vadd.f32 %v9477_v52, %v8969_v20  ;;  %v8972_v0 = vadd.f32 %v16919_v41, %v21605_v50  ;;  %17456 = vmatpush3.msra.mxu1 %v21613_v47  ;;  %v11129_v50 = vld [vmem:[#allocation3 + $0x60] sm:$0xff] }
 0x73e   :  { %17264 = vmatprep.mubr.msk.f32.mxu1 %vm6836_vm3, %v11127_v56  ;;  %17362 = vmatprep.mubr.msk.f32.mxu0 %vm6836_vm3, %v21626_v49  ;;  %v8780_v12 = vpop.f32.mrf.mxu1  ;;  %v11130_v56 = vld [vmem:[#allocation3 + $0x68] sm:$0xff] }
 0x73f   :  { %v9487_v23 = vpop.f32.mrf.mxu0  ;;  %v22144_v63 = vadd.f32 %v17017_v39, %v8972_v0  ;;  %v8971_v7 = vadd.f32 %v8780_v12, %v23769_v16  ;;  %v23772_v16 = vld [vmem:[#allocation48_spill] sm:$0xff] }
 0x740   :  { %v16922_v1 = vpop.f32.mrf.mxu1  ;;  %17265 = vmatmul.mubr.msk.f32.gmra.mxu1 %vm6836_vm3, %v11128_v11 }
 0x741   :  { %v17020_v9 = vpop.f32.mrf.mxu0  ;;  %17363 = vmatmul.mubr.msk.f32.gmra.mxu0 %vm6836_vm3, %v21636_v13  ;;  %v22150_v47 = vadd.f32 %v9487_v23, %v8971_v7  ;;  %v8974_v52 = vadd.f32 %v16922_v1, %v23770_v55  ;;  %17267 = vmatprep.mubr.msk.f32.mxu1 %vm6836_vm3, %v11129_v50  ;;  %v11131_v13 = vld [vmem:[#allocation3 + $0x78] sm:$0xff]  ;;  %v11132_v55 = vld [vmem:[#allocation3 + $0x80] sm:$0xff] }
 0x742   :  { %17365 = vmatprep.mubr.msk.f32.mxu0 %vm6836_vm3, %v21642_v22  ;;  %v8790_v49 = vpop.f32.mrf.mxu1 }
 0x743   :  { %v9497_v39 = vpop.f32.mrf.mxu0  ;;  %v22156_v20 = vadd.f32 %v17020_v9, %v8974_v52  ;;  %v8973_v41 = vadd.f32 %v8790_v49, %v23771_v17  ;;  %v23773_v9 = vld [vmem:[#allocation76_spill] sm:$0xff]  ;;  %v23774_v17 = vld [vmem:[#allocation75_spill] sm:$0xff] }
 0x744   :  { %v16925_v0 = vpop.f32.mrf.mxu1  ;;  %17268 = vmatmul.mubr.msk.f32.gmra.mxu1 %vm6836_vm3, %v11130_v56 }
 0x745   :  { %v17023_v12 = vpop.f32.mrf.mxu0  ;;  %17366 = vmatmul.mubr.msk.f32.gmra.mxu0 %vm6836_vm3, %v21652_v27  ;;  %v22162_v23 = vadd.f32 %v9497_v39, %v8973_v41  ;;  %v8976_v7 = vadd.f32 %v16925_v0, %v23772_v16  ;;  %17270 = vmatprep.mubr.msk.f32.mxu1 %vm6836_vm3, %v11131_v13  ;;  %v11133_v27 = vld [vmem:[#allocation3 + $0x90] sm:$0xff]  ;;  %v11134_v16 = vld [vmem:[#allocation3 + $0x98] sm:$0xff] }
 0x746   :  { %17368 = vmatprep.mubr.msk.f32.mxu0 %vm6836_vm3, %v21658_v14  ;;  %v8800_v22 = vpop.f32.mrf.mxu1 }
 0x747   :  { %v9507_v11 = vpop.f32.mrf.mxu0  ;;  %v22168_v1 = vadd.f32 %v17023_v12, %v8976_v7  ;;  %v8975_v50 = vadd.f32 %v8800_v22, %v23773_v9  ;;  %v23775_v12 = vld [vmem:[#allocation14_spill] sm:$0xff]  ;;  %v23776_v9 = vld [vmem:[#allocation80_spill] sm:$0xff] }
 0x748   :  { %v16928_v52 = vpop.f32.mrf.mxu1  ;;  %17271 = vmatmul.mubr.msk.f32.gmra.mxu1 %vm6836_vm3, %v11132_v55 }
 0x749   :  { %v17026_v49 = vpop.f32.mrf.mxu0  ;;  %17369 = vmatmul.mubr.msk.f32.gmra.mxu0 %vm6836_vm3, %v21668_v57  ;;  %v22174_v39 = vadd.f32 %v9507_v11, %v8975_v50  ;;  %v8978_v41 = vadd.f32 %v16928_v52, %v23774_v17  ;;  %17273 = vmatprep.mubr.msk.f32.mxu1 %vm6836_vm3, %v11133_v27  ;;  %v11135_v57 = vld [vmem:[#allocation3 + $0xa8] sm:$0xff]  ;;  %v11136_v17 = vld [vmem:[#allocation3 + $0xb0] sm:$0xff] }
 0x74a   :  { %17371 = vmatprep.mubr.msk.f32.mxu0 %vm6836_vm3, %v21674_v34  ;;  %v8810_v14 = vpop.f32.mrf.mxu1 }
 0x74b   :  { %v9517_v56 = vpop.f32.mrf.mxu0  ;;  %v22180_v0 = vadd.f32 %v17026_v49, %v8978_v41  ;;  %v8977_v13 = vadd.f32 %v8810_v14, %v23775_v12  ;;  %v23777_v49 = vld [vmem:[#allocation7_spill] sm:$0xff]  ;;  %v23778_v12 = vld [vmem:[#allocation41_spill] sm:$0xff] }
 0x74c   :  { %v16931_v7 = vpop.f32.mrf.mxu1  ;;  %17274 = vmatmul.mubr.msk.f32.gmra.mxu1 %vm6836_vm3, %v11134_v16 }
 0x74d   :  { %v17029_v22 = vpop.f32.mrf.mxu0  ;;  %17372 = vmatmul.mubr.msk.f32.gmra.mxu0 %vm6836_vm3, %v21684_v42  ;;  %v22186_v11 = vadd.f32 %v9517_v56, %v8977_v13  ;;  %v8980_v50 = vadd.f32 %v16931_v7, %v23776_v9  ;;  %17276 = vmatprep.mubr.msk.f32.mxu1 %vm6836_vm3, %v11135_v57  ;;  %v11137_v42 = vld [vmem:[#allocation3 + $0xc0] sm:$0xff]  ;;  %v11138_v9 = vld [vmem:[#allocation3 + $0xc8] sm:$0xff] }
 0x74e   :  { %17374 = vmatprep.mubr.msk.f32.mxu0 %vm6836_vm3, %v21690_v53  ;;  %v8820_v34 = vpop.f32.mrf.mxu1 }
 0x74f   :  { %v9527_v55 = vpop.f32.mrf.mxu0  ;;  %v22192_v52 = vadd.f32 %v17029_v22, %v8980_v50  ;;  %v8979_v27 = vadd.f32 %v8820_v34, %v23777_v49  ;;  %v23779_v22 = vld [vmem:[#allocation47_spill] sm:$0xff]  ;;  %v23780_v49 = vld [vmem:[#allocation50_spill] sm:$0xff] }
 0x750   :  { %v16934_v41 = vpop.f32.mrf.mxu1  ;;  %17277 = vmatmul.mubr.msk.f32.gmra.mxu1 %vm6836_vm3, %v11136_v17 }
 0x751   :  { %v17032_v14 = vpop.f32.mrf.mxu0  ;;  %17375 = vmatmul.mubr.msk.f32.gmra.mxu0 %vm6836_vm3, %v21700_v59  ;;  %v22198_v56 = vadd.f32 %v9527_v55, %v8979_v27  ;;  %v8982_v13 = vadd.f32 %v16934_v41, %v23778_v12  ;;  %17279 = vmatprep.mubr.msk.f32.mxu1 %vm6836_vm3, %v11137_v42  ;;  %v11139_v59 = vld [vmem:[#allocation3 + $0xd8] sm:$0xff]  ;;  %v23782_v42 = vld [vmem:[#allocation12_spill] sm:$0xff] }
 0x752   :  { %17377 = vmatprep.mubr.msk.f32.mxu0 %vm6836_vm3, %v21706_v26  ;;  %v8830_v53 = vpop.f32.mrf.mxu1  ;;  %v23781_v26 = vld [vmem:[#allocation11_spill] sm:$0xff] }
 0x753   :  { %v9537_v16 = vpop.f32.mrf.mxu0  ;;  %v22204_v7 = vadd.f32 %v17032_v14, %v8982_v13  ;;  %v8981_v57 = vadd.f32 %v8830_v53, %v23779_v22  ;;  %v11140_v13 = vld [vmem:[#allocation3 + $0xe0] sm:$0xff] }
 0x754   :  { %v16937_v50 = vpop.f32.mrf.mxu1  ;;  %17280 = vmatmul.mubr.msk.f32.gmra.mxu1 %vm6836_vm3, %v11138_v9  ;;  %v23784_v9 = vld [vmem:[#allocation16_spill] sm:$0xff] }
 0x755   :  { %v17035_v34 = vpop.f32.mrf.mxu0  ;;  %17378 = vmatmul.mubr.msk.f32.gmra.mxu0 %vm6836_vm3, %v21716_v61  ;;  %v22210_v55 = vadd.f32 %v9537_v16, %v8981_v57  ;;  %v8984_v27 = vadd.f32 %v16937_v50, %v23780_v49  ;;  %17282 = vmatprep.mubr.msk.f32.mxu1 %vm6836_vm3, %v11139_v59  ;;  %v23783_v61 = vld [vmem:[#allocation42_spill] sm:$0xff]  ;;  %v11141_v16 = vld [vmem:[#allocation3 + $0xf0] sm:$0xff] }
 0x756   :  { %17380 = vmatprep.mubr.msk.f32.mxu0 %vm6836_vm3, %v23781_v26  ;;  %v8840_v17 = vpop.f32.mrf.mxu1 }
 0x757   :  { %v9547_v41 = vpop.f32.mrf.mxu0  ;;  %v22216_v14 = vadd.f32 %v17035_v34, %v8984_v27  ;;  %v8983_v12 = vadd.f32 %v8840_v17, %v23782_v42  ;;  %v23785_v27 = vld [vmem:[#allocation15_spill] sm:$0xff]  ;;  %v11142_v17 = vld [vmem:[#allocation3 + $0xf8] sm:$0xff] }
 0x758   :  { %v16940_v53 = vpop.f32.mrf.mxu1  ;;  %17283 = vmatmul.mubr.msk.f32.gmra.mxu1 %vm6836_vm3, %v11140_v13 }
 0x759   :  { %v17038_v22 = vpop.f32.mrf.mxu0  ;;  %17381 = vmatmul.mubr.msk.f32.gmra.mxu0 %vm6836_vm3, %v23783_v61  ;;  %v22222_v57 = vadd.f32 %v9547_v41, %v8983_v12  ;;  %v8986_v50 = vadd.f32 %v16940_v53, %v23784_v9  ;;  %17285 = vmatprep.mubr.msk.f32.mxu1 %vm6836_vm3, %v11141_v16  ;;  %v11143_v41 = vld [vmem:[#allocation3 + $0x108] sm:$0xff]  ;;  %v23787_v9 = vld [vmem:[#allocation49_spill] sm:$0xff] }
 0x75a   :  { %17383 = vmatprep.mubr.msk.f32.mxu0 %vm6836_vm3, %v21738_v51  ;;  %v8850_v34 = vpop.f32.mrf.mxu1  ;;  %v23786_v53 = vld [vmem:[#allocation44_spill] sm:$0xff] }
 0x75b   :  { %v9557_v59 = vpop.f32.mrf.mxu0  ;;  %v22228_v49 = vadd.f32 %v17038_v22, %v8986_v50  ;;  %v8985_v26 = vadd.f32 %v8850_v34, %v23785_v27  ;;  %v11144_v34 = vld [vmem:[#allocation3 + $0x110] sm:$0xff] }
 0x75c   :  { %v16943_v42 = vpop.f32.mrf.mxu1  ;;  %17286 = vmatmul.mubr.msk.f32.gmra.mxu1 %vm6836_vm3, %v11142_v17 }
 0x75d   :  { %v17041_v13 = vpop.f32.mrf.mxu0  ;;  %17384 = vmatmul.mubr.msk.f32.gmra.mxu0 %vm6836_vm3, %v21748_v10  ;;  %v22234_v12 = vadd.f32 %v9557_v59, %v8985_v26  ;;  %v8988_v61 = vadd.f32 %v16943_v42, %v23786_v53  ;;  %17288 = vmatprep.mubr.msk.f32.mxu1 %vm6836_vm3, %v11143_v41  ;;  %v11145_v10 = vld [vmem:[#allocation3 + $0x120] sm:$0xff]  ;;  %v23788_v26 = vld [vmem:[#allocation52_spill] sm:$0xff]  ;;  %v23790_v53 = vld [vmem:[#allocation77_spill] sm:$0xff] }
 0x75e   :  { %17386 = vmatprep.mubr.msk.f32.mxu0 %vm6836_vm3, %v21754_v62  ;;  %v8860_v51 = vpop.f32.mrf.mxu1 }
 0x75f   :  { %v9567_v22 = vpop.f32.mrf.mxu0  ;;  %v22240_v16 = vadd.f32 %v17041_v13, %v8988_v61  ;;  %v8987_v50 = vadd.f32 %v8860_v51, %v23787_v9  ;;  %v11146_v51 = vld [vmem:[#allocation3 + $0x128] sm:$0xff] }
 0x760   :  { %v16946_v27 = vpop.f32.mrf.mxu1  ;;  %17289 = vmatmul.mubr.msk.f32.gmra.mxu1 %vm6836_vm3, %v11144_v34 }
 0x761   :  { %v17044_v17 = vpop.f32.mrf.mxu0  ;;  %17387 = vmatmul.mubr.msk.f32.gmra.mxu0 %vm6836_vm3, %v21764_v29  ;;  %v22246_v59 = vadd.f32 %v9567_v22, %v8987_v50  ;;  %v8990_v42 = vadd.f32 %v16946_v27, %v23788_v26  ;;  %17291 = vmatprep.mubr.msk.f32.mxu1 %vm6836_vm3, %v11145_v10  ;;  %v11147_v29 = vld [vmem:[#allocation3 + $0x138] sm:$0xff]  ;;  %v23792_v50 = vld [vmem:[#allocation13_spill] sm:$0xff] }
 0x762   :  { %17389 = vmatprep.mubr.msk.f32.mxu0 %vm6836_vm3, %v21770_v30  ;;  %v8870_v62 = vpop.f32.mrf.mxu1  ;;  %v23793_v30 = vld [vmem:[#allocation17_spill] sm:$0xff] }
 0x763   :  { %v9577_v13 = vpop.f32.mrf.mxu0  ;;  %v22252_v41 = vadd.f32 %v17044_v17, %v8990_v42  ;;  %v8989_v61 = vadd.f32 %v8870_v62, %v23790_v53  ;;  %v23795_v42 = vld [vmem:[#allocation18_spill] sm:$0xff]  ;;  %v11148_v53 = vld [vmem:[#allocation3 + $0x140] sm:$0xff] }
 0x764   :  { %v16949_v9 = vpop.f32.mrf.mxu1  ;;  %17292 = vmatmul.mubr.msk.f32.gmra.mxu1 %vm6836_vm3, %v11146_v51 }
 0x765   :  { %23789 = vst [vmem:[#allocation35_spill] sm:$0xff] %v22252_v41  ;;  %v17047_v34 = vpop.f32.mrf.mxu0  ;;  %17390 = vmatmul.mubr.msk.f32.gmra.mxu0 %vm6836_vm3, %v21780_v19  ;;  %v22258_v22 = vadd.f32 %v9577_v13, %v8989_v61  ;;  %v8992_v27 = vadd.f32 %v16949_v9, %v23792_v50  ;;  %17294 = vmatprep.mubr.msk.f32.mxu1 %vm6836_vm3, %v11147_v29  ;;  %v23796_v19 = vld [vmem:[#allocation51_spill] sm:$0xff]  ;;  %v11149_v13 = vld [vmem:[#allocation3 + $0x150] sm:$0xff] }
 0x766   :  { %17392 = vmatprep.mubr.msk.f32.mxu0 %vm6836_vm3, %v23793_v30  ;;  %v8880_v17 = vpop.f32.mrf.mxu1  ;;  %v23798_v9 = vld [vmem:[#allocation43_spill] sm:$0xff]  ;;  %v23800_v30 = vld [vmem:[#allocation45_spill] sm:$0xff] }
 0x767   :  { %23791 = vst [vmem:[#allocation68_spill] sm:$0xff] %v22258_v22  ;;  %v9587_v10 = vpop.f32.mrf.mxu0  ;;  %v22264_v26 = vadd.f32 %v17047_v34, %v8992_v27  ;;  %v8991_v62 = vadd.f32 %v8880_v17, %v23795_v42  ;;  %v11150_v42 = vld [vmem:[#allocation3 + $0x158] sm:$0xff] }
 0x768   :  { %v16952_v51 = vpop.f32.mrf.mxu1  ;;  %17295 = vmatmul.mubr.msk.f32.gmra.mxu1 %vm6836_vm3, %v11148_v53 }
 0x769   :  { %23794 = vst [vmem:[#allocation66_spill] sm:$0xff] %v22264_v26  ;;  %v17050_v41 = vpop.f32.mrf.mxu0  ;;  %17393 = vmatmul.mubr.msk.f32.gmra.mxu0 %vm6836_vm3, %v23796_v19  ;;  %v22270_v61 = vadd.f32 %v9587_v10, %v8991_v62  ;;  %v8994_v29 = vadd.f32 %v16952_v51, %v23798_v9  ;;  %17297 = vmatprep.mubr.msk.f32.mxu1 %vm6836_vm3, %v11149_v13  ;;  %v23801_v10 = vld [vmem:[#allocation19_spill] sm:$0xff]  ;;  %v11151_v62 = vld [vmem:[#allocation3 + $0x168] sm:$0xff] }
 0x76a   :  { %17395 = vmatprep.mubr.msk.f32.mxu0 %vm6836_vm3, %v21802_v40  ;;  %v8890_v34 = vpop.f32.mrf.mxu1  ;;  %v23803_v19 = vld [vmem:[#allocation83_spill] sm:$0xff]  ;;  %v23804_v40 = vld [vmem:[#allocation46_spill] sm:$0xff] }
 0x76b   :  { %23797 = vst [vmem:[#allocation31_spill] sm:$0xff] %v22270_v61  ;;  %v9597_v50 = vpop.f32.mrf.mxu0  ;;  %v22276_v27 = vadd.f32 %v17050_v41, %v8994_v29  ;;  %v8993_v17 = vadd.f32 %v8890_v34, %v23800_v30  ;;  %v23806_v34 = vld [vmem:[#allocation20_spill] sm:$0xff] }
 0x76c   :  { %v16955_v53 = vpop.f32.mrf.mxu1  ;;  %17298 = vmatmul.mubr.msk.f32.gmra.mxu1 %vm6836_vm3, %v11150_v42  ;;  %v11152_v42 = vld [vmem:[#allocation3 + $0x170] sm:$0xff] }
 0x76d   :  { %23799 = vst [vmem:[#allocation74_spill] sm:$0xff] %v22276_v27  ;;  %v17053_v26 = vpop.f32.mrf.mxu0  ;;  %17396 = vmatmul.mubr.msk.f32.gmra.mxu0 %vm6836_vm3, %v23801_v10  ;;  %v22282_v51 = vadd.f32 %v9597_v50, %v8993_v17  ;;  %v8996_v13 = vadd.f32 %v16955_v53, %v23803_v19  ;;  %17300 = vmatprep.mubr.msk.f32.mxu1 %vm6836_vm3, %v11151_v62  ;;  %v23807_v50 = vld [vmem:[#allocation22_spill] sm:$0xff]  ;;  %v11153_v17 = vld [vmem:[#allocation3 + $0x180] sm:$0xff]  ;;  %v23809_v10 = vld [vmem:[#allocation53_spill] sm:$0xff] }
 0x76e   :  { %17398 = vmatprep.mubr.msk.f32.mxu0 %vm6836_vm3, %v23804_v40  ;;  %v8900_v41 = vpop.f32.mrf.mxu1  ;;  %v23810_v19 = vld [vmem:[#allocation21_spill] sm:$0xff]  ;;  %v11155_v40 = vld [vmem:[#allocation3 + $0x198] sm:$0xff] }
 0x76f   :  { %23802 = vst [vmem:[#allocation33_spill] sm:$0xff] %v22282_v51  ;;  %v9607_v9 = vpop.f32.mrf.mxu0  ;;  %v22288_v29 = vadd.f32 %v17053_v26, %v8996_v13  ;;  %v8995_v30 = vadd.f32 %v8900_v41, %v23806_v34  ;;  %v11862_v41 = vld [vmem:[#allocation3 + $0x199] sm:$0xff]  ;;  %v11154_v51 = vld [vmem:[#allocation3 + $0x188] sm:$0xff] }
 0x770   :  { %v16958_v27 = vpop.f32.mrf.mxu1  ;;  %17301 = vmatmul.mubr.msk.f32.gmra.mxu1 %vm6836_vm3, %v11152_v42  ;;  %v23812_v42 = vld [vmem:[#allocation85_spill] sm:$0xff] }
 0x771   :  { %23805 = vst [vmem:[#allocation73_spill] sm:$0xff] %v22288_v29  ;;  %v17056_v61 = vpop.f32.mrf.mxu0  ;;  %17399 = vmatmul.mubr.msk.f32.gmra.mxu0 %vm6836_vm3, %v23807_v50  ;;  %v22294_v53 = vadd.f32 %v9607_v9, %v8995_v30  ;;  %v8998_v62 = vadd.f32 %v16958_v27, %v23809_v10  ;;  %17303 = vmatprep.mubr.msk.f32.mxu1 %vm6836_vm3, %v11153_v17  ;;  %v23813_v9 = vld [vmem:[#allocation24_spill] sm:$0xff] }
 0x772   :  { %17401 = vmatprep.mubr.msk.f32.mxu0 %vm6836_vm3, %v23810_v19  ;;  %v8910_v26 = vpop.f32.mrf.mxu1  ;;  %v23814_v30 = vld [vmem:[#allocation84_spill] sm:$0xff] }
 0x773   :  { %23808 = vst [vmem:[#allocation10_spill] sm:$0xff] %v22294_v53  ;;  %v9617_v13 = vpop.f32.mrf.mxu0  ;;  %v22300_v34 = vadd.f32 %v17056_v61, %v8998_v62  ;;  %v8997_v29 = vadd.f32 %v8910_v26, %v23812_v42  ;;  %v11156_v61 = vld [vmem:[#allocation3 + $0x1a0] sm:$0xff] }
 0x774   :  { %v16961_v50 = vpop.f32.mrf.mxu1  ;;  %17304 = vmatmul.mubr.msk.f32.gmra.mxu1 %vm6836_vm3, %v11154_v51  ;;  %v11863_v10 = vld [vmem:[#allocation3 + $0x1a1] sm:$0xff] }
 0x775   :  { %23811 = vst [vmem:[#allocation38_spill] sm:$0xff] %v22300_v34  ;;  %v17059_v22 = vpop.f32.mrf.mxu0  ;;  %17402 = vmatmul.mubr.msk.f32.gmra.mxu0 %vm6836_vm3, %v23813_v9  ;;  %v22306_v27 = vadd.f32 %v9617_v13, %v8997_v29  ;;  %v9000_v17 = vadd.f32 %v16961_v50, %v23814_v30  ;;  %17306 = vmatprep.mubr.msk.f32.mxu1 %vm6836_vm3, %v11155_v40  ;;  %v23815_v42 = vld [vmem:[#allocation87_spill] sm:$0xff]  ;;  %v23817_v30 = vld [vmem:[#allocation86_spill] sm:$0xff] }
 0x776   :  { %17404 = vmatprep.mubr.msk.f32.mxu0 %vm6836_vm3, %v11862_v41  ;;  %v8920_v62 = vpop.f32.mrf.mxu1  ;;  %v11157_v29 = vld [vmem:[#allocation3 + $0x1e0] sm:$0xff] }
 0x777   :  { %v9627_v19 = vpop.f32.mrf.mxu0  ;;  %v22311_v26 = vadd.f32 %v17059_v22, %v9000_v17  ;;  %v8999_v34 = vadd.f32 %v8920_v62, %v23815_v42  ;;  %v23816_v40 = vld [vmem:[#allocation23_spill] sm:$0xff]  ;;  %v11158_v62 = vld [vmem:[#allocation3 + $0x1e8] sm:$0xff] }
 0x778   :  { %v16964_v51 = vpop.f32.mrf.mxu1  ;;  %17307 = vmatmul.mubr.msk.f32.gmra.mxu1 %vm6836_vm3, %v11156_v61 }
 0x779   :  { %v17062_v53 = vpop.f32.mrf.mxu0  ;;  %17405 = vmatmul.mubr.msk.f32.gmra.mxu0 %vm6836_vm3, %v11863_v10  ;;  %v22316_v13 = vadd.f32 %v9627_v19, %v8999_v34  ;;  %v9002_v50 = vadd.f32 %v16964_v51, %v23816_v40  ;;  %17309 = vmatprep.mubr.msk.f32.mxu1 %vm6836_vm3, %v11157_v29  ;;  %v23818_v34 = vld [vmem:[#allocation25_spill] sm:$0xff]  ;;  %v11159_v10 = vld [vmem:[#allocation3 + $0x1f8] sm:$0xff] }
 0x77a   :  { %17407 = vmatprep.mubr.msk.f32.mxu0 %vm6836_vm3, %v21858_v21  ;;  %v8930_v22 = vpop.f32.mrf.mxu1  ;;  %v23819_v51 = vld [vmem:[#allocation90_spill] sm:$0xff] }
 0x77b   :  { %v9637_v41 = vpop.f32.mrf.mxu0  ;;  %v22322_v9 = vadd.f32 %v17062_v53, %v9002_v50  ;;  %v9001_v17 = vadd.f32 %v8930_v22, %v23817_v30  ;;  %v11160_v22 = vld [vmem:[#allocation3 + $0x200] sm:$0xff] }
 0x77c   :  { %v17067_v61 = vpop.f32.mrf.mxu1  ;;  %17310 = vmatmul.mubr.msk.f32.gmra.mxu1 %vm6836_vm3, %v11158_v62 }
 0x77d   :  { %v17165_v42 = vpop.f32.mrf.mxu0  ;;  %17408 = vmatmul.mubr.msk.f32.gmra.mxu0 %vm6836_vm3, %v23818_v34  ;;  %v22328_v19 = vadd.f32 %v9637_v41, %v9001_v17  ;;  %v10354_v29 = vadd.f32 %v17067_v61, %v23819_v51  ;;  %17312 = vmatprep.mubr.msk.f32.mxu1 %vm6836_vm3, %v11159_v10  ;;  %v23820_v41 = vld [vmem:[#allocation88_spill] sm:$0xff]  ;;  %v11161_v17 = vld [vmem:[#allocation3 + $0x210] sm:$0xff]  ;;  %v23821_v34 = vld [vmem:[#allocation26_spill] sm:$0xff] }
 0x77e   :  { %17410 = vmatprep.mubr.msk.f32.mxu0 %vm6836_vm3, %v21875_v24  ;;  %v10034_v21 = vpop.f32.mrf.mxu1 }
 0x77f   :  { %v10741_v53 = vpop.f32.mrf.mxu0  ;;  %v22334_v40 = vadd.f32 %v17165_v42, %v10354_v29  ;;  %v10353_v50 = vadd.f32 %v10034_v21, %v21877_v18  ;;  %v11162_v29 = vld [vmem:[#allocation3 + $0x218] sm:$0xff] }
 0x780   :  { %v17070_v30 = vpop.f32.mrf.mxu1  ;;  %17313 = vmatmul.mubr.msk.f32.gmra.mxu1 %vm6836_vm3, %v11160_v22 }
 0x781   :  { %v17168_v62 = vpop.f32.mrf.mxu0  ;;  %17411 = vmatmul.mubr.msk.f32.gmra.mxu0 %vm6836_vm3, %v23820_v41  ;;  %v22340_v61 = vadd.f32 %v10741_v53, %v10353_v50  ;;  %v10356_v10 = vadd.f32 %v17070_v30, %v23821_v34  ;;  %17315 = vmatprep.mubr.msk.f32.mxu1 %vm6836_vm3, %v11161_v17  ;;  %v11163_v53 = vld [vmem:[#allocation3 + $0x228] sm:$0xff]  ;;  %v11164_v17 = vld [vmem:[#allocation3 + $0x230] sm:$0xff] }
 0x782   :  { %17413 = vmatprep.mubr.msk.f32.mxu0 %vm6836_vm3, %v21893_v32  ;;  %v10044_v24 = vpop.f32.mrf.mxu1 }
 0x783   :  { %v10751_v18 = vpop.f32.mrf.mxu0  ;;  %v22346_v42 = vadd.f32 %v17168_v62, %v10356_v10  ;;  %v10355_v51 = vadd.f32 %v10044_v24, %v21895_v43  ;;  %v23822_v24 = vld [vmem:[#allocation93_spill] sm:$0xff] }
 0x784   :  { %v17073_v21 = vpop.f32.mrf.mxu1  ;;  %17316 = vmatmul.mubr.msk.f32.gmra.mxu1 %vm6836_vm3, %v11162_v29 }
 0x785   :  { %v17171_v22 = vpop.f32.mrf.mxu0  ;;  %17414 = vmatmul.mubr.msk.f32.gmra.mxu0 %vm6836_vm3, %v21905_v58  ;;  %v22352_v50 = vadd.f32 %v10751_v18, %v10355_v51  ;;  %v10358_v30 = vadd.f32 %v17073_v21, %v21902_v60  ;;  %17318 = vmatprep.mubr.msk.f32.mxu1 %vm6836_vm3, %v11163_v53  ;;  %v11165_v58 = vld [vmem:[#allocation3 + $0x240] sm:$0xff]  ;;  %v11166_v21 = vld [vmem:[#allocation3 + $0x248] sm:$0xff] }
 0x786   :  { %17416 = vmatprep.mubr.msk.f32.mxu0 %vm6836_vm3, %v21911_v35  ;;  %v10054_v32 = vpop.f32.mrf.mxu1 }
 0x787   :  { %v10761_v43 = vpop.f32.mrf.mxu0  ;;  %v22358_v62 = vadd.f32 %v17171_v22, %v10358_v30  ;;  %v10357_v41 = vadd.f32 %v10054_v32, %v21913_v8  ;;  %v11167_v30 = vld [vmem:[#allocation3 + $0x258] sm:$0xff] }
 0x788   :  { %v17076_v34 = vpop.f32.mrf.mxu1  ;;  %17319 = vmatmul.mubr.msk.f32.gmra.mxu1 %vm6836_vm3, %v11164_v17 }
 0x789   :  { %v17174_v10 = vpop.f32.mrf.mxu0  ;;  %17417 = vmatmul.mubr.msk.f32.gmra.mxu0 %vm6836_vm3, %v21923_v28  ;;  %v22364_v60 = vadd.f32 %v10761_v43, %v10357_v41  ;;  %v10360_v18 = vadd.f32 %v17076_v34, %v23822_v24  ;;  %17321 = vmatprep.mubr.msk.f32.mxu1 %vm6836_vm3, %v11165_v58  ;;  %v23823_v28 = vld [vmem:[#allocation56_spill] sm:$0xff]  ;;  %v23824_v43 = vld [vmem:[#allocation91_spill] sm:$0xff] }
 0x78a   :  { %17419 = vmatprep.mubr.msk.f32.mxu0 %vm6836_vm3, %v21929_v46  ;;  %v10064_v35 = vpop.f32.mrf.mxu1  ;;  %v23825_v34 = vld [vmem:[#allocation55_spill] sm:$0xff] }
 0x78b   :  { %v10771_v8 = vpop.f32.mrf.mxu0  ;;  %v22370_v51 = vadd.f32 %v17174_v10, %v10360_v18  ;;  %v10359_v29 = vadd.f32 %v10064_v35, %v21931_v36  ;;  %v11168_v58 = vld [vmem:[#allocation3 + $0x260] sm:$0xff]  ;;  %v23826_v35 = vld [vmem:[#allocation57_spill] sm:$0xff] }
 0x78c   :  { %v17079_v22 = vpop.f32.mrf.mxu1  ;;  %17322 = vmatmul.mubr.msk.f32.gmra.mxu1 %vm6836_vm3, %v11166_v21  ;;  %v23827_v21 = vld [vmem:[#allocation58_spill] sm:$0xff] }
 0x78d   :  { %v17177_v53 = vpop.f32.mrf.mxu0  ;;  %17420 = vmatmul.mubr.msk.f32.gmra.mxu0 %vm6836_vm3, %v23823_v28  ;;  %v22376_v32 = vadd.f32 %v10771_v8, %v10359_v29  ;;  %v10362_v41 = vadd.f32 %v17079_v22, %v23824_v43  ;;  %17324 = vmatprep.mubr.msk.f32.mxu1 %vm6836_vm3, %v11167_v30  ;;  %v11169_v8 = vld [vmem:[#allocation3 + $0x270] sm:$0xff]  ;;  %v23828_v30 = vld [vmem:[#allocation92_spill] sm:$0xff] }
 0x78e   :  { %17422 = vmatprep.mubr.msk.f32.mxu0 %vm6836_vm3, %v21947_v44  ;;  %v10074_v46 = vpop.f32.mrf.mxu1 }
 0x78f   :  { %v10781_v36 = vpop.f32.mrf.mxu0  ;;  %v22382_v17 = vadd.f32 %v17177_v53, %v10362_v41  ;;  %v10361_v10 = vadd.f32 %v10074_v46, %v23825_v34  ;;  %v11170_v41 = vld [vmem:[#allocation3 + $0x278] sm:$0xff] }
 0x790   :  { %v17082_v24 = vpop.f32.mrf.mxu1  ;;  %17325 = vmatmul.mubr.msk.f32.gmra.mxu1 %vm6836_vm3, %v11168_v58 }
 0x791   :  { %v17180_v18 = vpop.f32.mrf.mxu0  ;;  %17423 = vmatmul.mubr.msk.f32.gmra.mxu0 %vm6836_vm3, %v23826_v35  ;;  %v22388_v29 = vadd.f32 %v10781_v36, %v10361_v10  ;;  %v10364_v22 = vadd.f32 %v17082_v24, %v23827_v21  ;;  %17327 = vmatprep.mubr.msk.f32.mxu1 %vm6836_vm3, %v11169_v8  ;;  %v23829_v36 = vld [vmem:[#allocation63_spill] sm:$0xff]  ;;  %v11171_v10 = vld [vmem:[#allocation3 + $0x288] sm:$0xff] }
 0x792   :  { %17425 = vmatprep.mubr.msk.f32.mxu0 %vm6836_vm3, %v21965_v4  ;;  %v10084_v44 = vpop.f32.mrf.mxu1  ;;  %v23830_v24 = vld [vmem:[#allocation64_spill] sm:$0xff] }
 0x793   :  { %v10791_v53 = vpop.f32.mrf.mxu0  ;;  %v22394_v28 = vadd.f32 %v17180_v18, %v10364_v22  ;;  %v10363_v43 = vadd.f32 %v10084_v44, %v23828_v30  ;;  %v11172_v22 = vld [vmem:[#allocation3 + $0x290] sm:$0xff] }
 0x794   :  { %v17085_v46 = vpop.f32.mrf.mxu1  ;;  %17328 = vmatmul.mubr.msk.f32.gmra.mxu1 %vm6836_vm3, %v11170_v41 }
 0x795   :  { %v17183_v34 = vpop.f32.mrf.mxu0  ;;  %17426 = vmatmul.mubr.msk.f32.gmra.mxu0 %vm6836_vm3, %v23829_v36  ;;  %v22400_v58 = vadd.f32 %v10791_v53, %v10363_v43  ;;  %v10366_v35 = vadd.f32 %v17085_v46, %v23830_v24  ;;  %17330 = vmatprep.mubr.msk.f32.mxu1 %vm6836_vm3, %v11171_v10  ;;  %v23831_v53 = vld [vmem:[#allocation59_spill] sm:$0xff]  ;;  %v23832_v46 = vld [vmem:[#allocation60_spill] sm:$0xff] }
 0x796   :  { %17428 = vmatprep.mubr.msk.f32.mxu0 %vm6836_vm3, %v21983_v54  ;;  %v10094_v4 = vpop.f32.mrf.mxu1  ;;  %v11173_v43 = vld [vmem:[#allocation3 + $0x2a0] sm:$0xff]  ;;  %v11174_v24 = vld [vmem:[#allocation3 + $0x2a8] sm:$0xff] }
 0x797   :  { %v10801_v18 = vpop.f32.mrf.mxu0  ;;  %v22406_v8 = vadd.f32 %v17183_v34, %v10366_v35  ;;  %v10365_v21 = vadd.f32 %v10094_v4, %v21985_v15 }
 0x798   :  { %v17088_v44 = vpop.f32.mrf.mxu1  ;;  %17331 = vmatmul.mubr.msk.f32.gmra.mxu1 %vm6836_vm3, %v11172_v22 }
 0x799   :  { %v17186_v30 = vpop.f32.mrf.mxu0  ;;  %17429 = vmatmul.mubr.msk.f32.gmra.mxu0 %vm6836_vm3, %v23831_v53  ;;  %v22412_v41 = vadd.f32 %v10801_v18, %v10365_v21  ;;  %v10368_v36 = vadd.f32 %v17088_v44, %v23832_v46  ;;  %17333 = vmatprep.mubr.msk.f32.mxu1 %vm6836_vm3, %v11173_v43  ;;  %v23833_v18 = vld [vmem:[#allocation62_spill] sm:$0xff]  ;;  %v23835_v43 = vld [vmem:[#allocation61_spill] sm:$0xff] }
 0x79a   :  { %17431 = vmatprep.mubr.msk.f32.mxu0 %vm6836_vm3, %v22001_v33  ;;  %v10104_v54 = vpop.f32.mrf.mxu1  ;;  %v11175_v21 = vld [vmem:[#allocation3 + $0x2b8] sm:$0xff] }
 0x79b   :  { %v10811_v15 = vpop.f32.mrf.mxu0  ;;  %v22418_v34 = vadd.f32 %v17186_v30, %v10368_v36  ;;  %v10367_v10 = vadd.f32 %v10104_v54, %v22003_v3  ;;  %v23834_v44 = vld [vmem:[#allocation54_spill] sm:$0xff]  ;;  %v11176_v36 = vld [vmem:[#allocation3 + $0x2c0] sm:$0xff] }
 0x79c   :  { %v17091_v35 = vpop.f32.mrf.mxu1  ;;  %17334 = vmatmul.mubr.msk.f32.gmra.mxu1 %vm6836_vm3, %v11174_v24 }
 0x79d   :  { %v17189_v4 = vpop.f32.mrf.mxu0  ;;  %17432 = vmatmul.mubr.msk.f32.gmra.mxu0 %vm6836_vm3, %v23833_v18  ;;  %v22424_v22 = vadd.f32 %v10811_v15, %v10367_v10  ;;  %v10370_v53 = vadd.f32 %v17091_v35, %v23834_v44  ;;  %17336 = vmatprep.mubr.msk.f32.mxu1 %vm6836_vm3, %v11175_v21  ;;  %v23836_v15 = vld [vmem:[#allocation82_spill] sm:$0xff]  ;;  %v11177_v10 = vld [vmem:[#allocation3 + $0x2d0] sm:$0xff]  ;;  %v23838_v18 = vld [vmem:[#allocation28_spill] sm:$0xff] }
 0x79e   :  { %17434 = vmatprep.mubr.msk.f32.mxu0 %vm6836_vm3, %v22019_v38  ;;  %v10114_v33 = vpop.f32.mrf.mxu1 }
 0x79f   :  { %v10821_v3 = vpop.f32.mrf.mxu0  ;;  %v22430_v30 = vadd.f32 %v17189_v4, %v10370_v53  ;;  %v10369_v46 = vadd.f32 %v10114_v33, %v23835_v43  ;;  %v11178_v33 = vld [vmem:[#allocation3 + $0x2d8] sm:$0xff] }
 0x7a0   :  { %v17094_v54 = vpop.f32.mrf.mxu1  ;;  %17337 = vmatmul.mubr.msk.f32.gmra.mxu1 %vm6836_vm3, %v11176_v36 }
 0x7a1   :  { %v17192_v24 = vpop.f32.mrf.mxu0  ;;  %17435 = vmatmul.mubr.msk.f32.gmra.mxu0 %vm6836_vm3, %v23836_v15  ;;  %v22436_v35 = vadd.f32 %v10821_v3, %v10369_v46  ;;  %v10372_v21 = vadd.f32 %v17094_v54, %v23838_v18  ;;  %17339 = vmatprep.mubr.msk.f32.mxu1 %vm6836_vm3, %v11177_v10  ;;  %v23840_v3 = vld [vmem:[#allocation69_spill] sm:$0xff]  ;;  %v11179_v46 = vld [vmem:[#allocation3 + $0x2e8] sm:$0xff]  ;;  %v23842_v15 = vld [vmem:[#allocation71_spill] sm:$0xff] }
 0x7a2   :  { %17437 = vmatprep.mubr.msk.f32.mxu0 %vm6836_vm3, %v22037_v48  ;;  %v10124_v38 = vpop.f32.mrf.mxu1  ;;  %v23843_v48 = vld [vmem:[#allocation27_spill] sm:$0xff] }
 0x7a3   :  { %23837 = vst [vmem:[#allocation40_spill] sm:$0xff] %v22436_v35  ;;  %v10831_v4 = vpop.f32.mrf.mxu0  ;;  %v22442_v44 = vadd.f32 %v17192_v24, %v10372_v21  ;;  %v10371_v53 = vadd.f32 %v10124_v38, %v22039_v5  ;;  %v23845_v21 = vld [vmem:[#allocation89_spill] sm:$0xff] }
 0x7a4   :  { %v17097_v43 = vpop.f32.mrf.mxu1  ;;  %17340 = vmatmul.mubr.msk.f32.gmra.mxu1 %vm6836_vm3, %v11178_v33  ;;  %v11180_v33 = vld [vmem:[#allocation3 + $0x2f0] sm:$0xff] }
 0x7a5   :  { %23839 = vst [vmem:[#allocation78_spill] sm:$0xff] %v22442_v44  ;;  %v17195_v36 = vpop.f32.mrf.mxu0  ;;  %17438 = vmatmul.mubr.msk.f32.gmra.mxu0 %vm6836_vm3, %v23840_v3  ;;  %v22448_v54 = vadd.f32 %v10831_v4, %v10371_v53  ;;  %v10374_v10 = vadd.f32 %v17097_v43, %v23842_v15  ;;  %17342 = vmatprep.mubr.msk.f32.mxu1 %vm6836_vm3, %v11179_v46  ;;  %v23846_v4 = vld [vmem:[#allocation30_spill] sm:$0xff]  ;;  %v11181_v53 = vld [vmem:[#allocation3 + $0x300] sm:$0xff]  ;;  %v23849_v15 = vld [vmem:[#allocation65_spill] sm:$0xff] }
 0x7a6   :  { %17440 = vmatprep.mubr.msk.f32.mxu0 %vm6836_vm3, %v23843_v48  ;;  %v10134_v24 = vpop.f32.mrf.mxu1  ;;  %v23848_v3 = vld [vmem:[#allocation67_spill] sm:$0xff] }
 0x7a7   :  { %23841 = vst [vmem:[#allocation9_spill] sm:$0xff] %v22448_v54  ;;  %v10841_v5 = vpop.f32.mrf.mxu0  ;;  %v22454_v18 = vadd.f32 %v17195_v36, %v10374_v10  ;;  %v10373_v38 = vadd.f32 %v10134_v24, %v23845_v21  ;;  %v23851_v24 = vld [vmem:[#allocation34_spill] sm:$0xff] }
 0x7a8   :  { %v17100_v44 = vpop.f32.mrf.mxu1  ;;  %17343 = vmatmul.mubr.msk.f32.gmra.mxu1 %vm6836_vm3, %v11180_v33  ;;  %v11182_v33 = vld [vmem:[#allocation3 + $0x308] sm:$0xff] }
 0x7a9   :  { %23844 = vst [vmem:[#allocation79_spill] sm:$0xff] %v22454_v18  ;;  %v17198_v35 = vpop.f32.mrf.mxu0  ;;  %17441 = vmatmul.mubr.msk.f32.gmra.mxu0 %vm6836_vm3, %v23846_v4  ;;  %v22460_v43 = vadd.f32 %v10841_v5, %v10373_v38  ;;  %v10376_v46 = vadd.f32 %v17100_v44, %v23848_v3  ;;  %17345 = vmatprep.mubr.msk.f32.mxu1 %vm6836_vm3, %v11181_v53  ;;  %v23852_v5 = vld [vmem:[#allocation72_spill] sm:$0xff]  ;;  %v11183_v44 = vld [vmem:[#allocation3 + $0x318] sm:$0xff] }
 0x7aa   :  { %17443 = vmatprep.mubr.msk.f32.mxu0 %vm6836_vm3, %v23849_v15  ;;  %v10144_v36 = vpop.f32.mrf.mxu1  ;;  %v23853_v4 = vld [vmem:[#allocation36_spill] sm:$0xff]  ;;  %v23854_v3 = vld [vmem:[#allocation70_spill] sm:$0xff] }
 0x7ab   :  { %23847 = vst [vmem:[#allocation81_spill] sm:$0xff] %v22460_v43  ;;  %v10851_v10 = vpop.f32.mrf.mxu0  ;;  %v22466_v48 = vadd.f32 %v17198_v35, %v10376_v46  ;;  %v10375_v21 = vadd.f32 %v10144_v36, %v23851_v24  ;;  %v23856_v36 = vld [vmem:[#allocation29_spill] sm:$0xff] }
 0x7ac   :  { %v17103_v18 = vpop.f32.mrf.mxu1  ;;  %17346 = vmatmul.mubr.msk.f32.gmra.mxu1 %vm6836_vm3, %v11182_v33  ;;  %v11184_v33 = vld [vmem:[#allocation3 + $0x320] sm:$0xff] }
 0x7ad   :  { %23850 = vst [vmem:[#allocation39_spill] sm:$0xff] %v22466_v48  ;;  %v17201_v54 = vpop.f32.mrf.mxu0  ;;  %17444 = vmatmul.mubr.msk.f32.gmra.mxu0 %vm6836_vm3, %v23852_v5  ;;  %v22472_v38 = vadd.f32 %v10851_v10, %v10375_v21  ;;  %v10378_v53 = vadd.f32 %v17103_v18, %v23853_v4  ;;  %17348 = vmatprep.mubr.msk.f32.mxu1 %vm6836_vm3, %v11183_v44  ;;  %v23857_v10 = vld [vmem:[#allocation37_spill] sm:$0xff]  ;;  %v23858_v5 = vld [vmem:[#allocation94_spill] sm:$0xff] }
 0x7ae   :  { %17446 = vmatprep.mubr.msk.f32.mxu0 %vm6836_vm3, %v23854_v3  ;;  %v10154_v35 = vpop.f32.mrf.mxu1  ;;  %v11185_v18 = vld [vmem:[#allocation3 + $0x330] sm:$0xff] }
 0x7af   :  { %v10861_v46 = vpop.f32.mrf.mxu0  ;;  %v22478_v15 = vadd.f32 %v17201_v54, %v10378_v53  ;;  %v10377_v24 = vadd.f32 %v10154_v35, %v23856_v36  ;;  %v11187_v53 = vld [vmem:[#allocation3 + $0x348] sm:$0xff] }
 0x7b0   :  { %v17106_v48 = vpop.f32.mrf.mxu1  ;;  %17349 = vmatmul.mubr.msk.f32.gmra.mxu1 %vm6836_vm3, %v11184_v33  ;;  %v11894_v3 = vld [vmem:[#allocation3 + $0x349] sm:$0xff]  ;;  %v11186_v33 = vld [vmem:[#allocation3 + $0x338] sm:$0xff] }
 0x7b1   :  { %23855 = vst [vmem:[#allocation8_spill] sm:$0xff] %v22478_v15  ;;  %v17204_v43 = vpop.f32.mrf.mxu0  ;;  %17447 = vmatmul.mubr.msk.f32.gmra.mxu0 %vm6836_vm3, %v23857_v10  ;;  %v22484_v21 = vadd.f32 %v10861_v46, %v10377_v24  ;;  %v10380_v44 = vadd.f32 %v17106_v48, %v23858_v5  ;;  %17351 = vmatprep.mubr.msk.f32.mxu1 %vm6836_vm3, %v11185_v18  ;;  %v23859_v46 = vld [vmem:[#allocation32_spill] sm:$0xff]  ;;  %v11188_v24 = vld [vmem:[#allocation3 + $0x350] sm:$0xff] }
 0x7b2   :  { %17449 = vmatprep.mubr.msk.f32.mxu0 %vm6836_vm3, %v22109_v6  ;;  %v10164_v54 = vpop.f32.mrf.mxu1 }
 0x7b3   :  { %v10871_v4 = vpop.f32.mrf.mxu0  ;;  %v22490_v35 = vadd.f32 %v17204_v43, %v10380_v44  ;;  %v10379_v36 = vadd.f32 %v10164_v54, %v22111_v2  ;;  %v11895_v43 = vld [vmem:[#allocation3 + $0x351] sm:$0xff] }
 0x7b4   :  { %v17109_v10 = vpop.f32.mrf.mxu1  ;;  %17352 = vmatmul.mubr.msk.f32.gmra.mxu1 %vm6836_vm3, %v11186_v33 }
 0x7b5   :  { %v17207_v15 = vpop.f32.mrf.mxu0  ;;  %17450 = vmatmul.mubr.msk.f32.gmra.mxu0 %vm6836_vm3, %v22120_v25  ;;  %v22496_v48 = vadd.f32 %v10871_v4, %v10379_v36  ;;  %v10382_v6 = vadd.f32 %v17109_v10, %v23859_v46  ;;  %17354 = vmatprep.mubr.msk.f32.mxu1 %vm6836_vm3, %v11187_v53  ;;  %v12539_v25 = vld [vmem:[#allocation3 + $0x32] sm:$0xff] }
 0x7b6   :  { %17452 = vmatprep.mubr.msk.f32.mxu0 %vm6836_vm3, %v11894_v3  ;;  %v10174_v18 = vpop.f32.mrf.mxu1 }
 0x7b7   :  { %v10881_v2 = vpop.f32.mrf.mxu0  ;;  %v22501_v5 = vadd.f32 %v17207_v15, %v10382_v6  ;;  %v10381_v44 = vadd.f32 %v10174_v18, %v22125_v31  ;;  %v12540_v31 = vld [vmem:[#allocation3 + $0x3a] sm:$0xff] }
 0x7b8   :  { %v17112_v54 = vpop.f32.mrf.mxu1  ;;  %17355 = vmatmul.mubr.msk.f32.gmra.mxu1 %vm6836_vm3, %v11188_v24  ;;  %v12541_v24 = vld [vmem:[#allocation3 + $0x4a] sm:$0xff] }
 0x7b9   :  { %v17210_v33 = vpop.f32.mrf.mxu0  ;;  %17453 = vmatmul.mubr.msk.f32.gmra.mxu0 %vm6836_vm3, %v11895_v43  ;;  %v22506_v4 = vadd.f32 %v10881_v2, %v10381_v44  ;;  %v10384_v53 = vadd.f32 %v17112_v54, %v22131_v37  ;;  %17457 = vmatprep.mubr.msk.f32.mxu1 %vm6836_vm3, %v12539_v25 }
 0x7ba   :  { %v10184_v3 = vpop.f32.mrf.mxu1 }
 0x7bb   :  { %v10891_v36 = vpop.f32.mrf.mxu0  ;;  %v22510_v10 = vadd.f32 %v17210_v33, %v10384_v53  ;;  %v10383_v15 = vadd.f32 %v10184_v3, %v22137_v45  ;;  %v12542_v33 = vld [vmem:[#allocation3 + $0x52] sm:$0xff]  ;;  %v12543_v53 = vld [vmem:[#allocation3 + $0x62] sm:$0xff] }
 0x7bc   :  { %v17115_v46 = vpop.f32.mrf.mxu1  ;;  %17458 = vmatmul.mubr.msk.f32.vlgmr.msra.gmra.mxu1 %vm6836_vm3, %v12540_v31 }
 0x7bd   :  { %v17213_v6 = vpop.f32.mrf.mxu0  ;;  %v22514_v18 = vadd.f32 %v10891_v36, %v10383_v15  ;;  %v10386_v43 = vadd.f32 %v17115_v46, %v22144_v63  ;;  %17460 = vmatprep.mubr.msk.f32.mxu1 %vm6836_vm3, %v12541_v24 }
 0x7be   :  { %v10194_v37 = vpop.f32.mrf.mxu1 }
 0x7bf   :  { %v10901_v2 = vpop.f32.mrf.mxu0  ;;  %v22518_v44 = vadd.f32 %v17213_v6, %v10386_v43  ;;  %v10385_v54 = vadd.f32 %v10194_v37, %v22150_v47  ;;  %v12544_v6 = vld [vmem:[#allocation3 + $0x6a] sm:$0xff]  ;;  %v12545_v43 = vld [vmem:[#allocation3 + $0x7a] sm:$0xff] }
 0x7c0   :  { %v17118_v45 = vpop.f32.mrf.mxu1  ;;  %17461 = vmatmul.mubr.msk.f32.gmra.mxu1 %vm6836_vm3, %v12542_v33 }
 0x7c1   :  { %v17216_v25 = vpop.f32.mrf.mxu0  ;;  %v22522_v3 = vadd.f32 %v10901_v2, %v10385_v54  ;;  %v10388_v36 = vadd.f32 %v17118_v45, %v22156_v20  ;;  %17463 = vmatprep.mubr.msk.f32.mxu1 %vm6836_vm3, %v12543_v53 }
 0x7c2   :  { %v10204_v63 = vpop.f32.mrf.mxu1 }
 0x7c3   :  { %v10911_v15 = vpop.f32.mrf.mxu0  ;;  %v22526_v31 = vadd.f32 %v17216_v25, %v10388_v36  ;;  %v10387_v46 = vadd.f32 %v10204_v63, %v22162_v23  ;;  %v12546_v25 = vld [vmem:[#allocation3 + $0x82] sm:$0xff]  ;;  %v12547_v36 = vld [vmem:[#allocation3 + $0x92] sm:$0xff] }
 0x7c4   :  { %v17121_v47 = vpop.f32.mrf.mxu1  ;;  %17464 = vmatmul.mubr.msk.f32.gmra.mxu1 %vm6836_vm3, %v12544_v6 }
 0x7c5   :  { %v17219_v24 = vpop.f32.mrf.mxu0  ;;  %v22530_v37 = vadd.f32 %v10911_v15, %v10387_v46  ;;  %v10390_v2 = vadd.f32 %v17121_v47, %v22168_v1  ;;  %17466 = vmatprep.mubr.msk.f32.mxu1 %vm6836_vm3, %v12545_v43 }
 0x7c6   :  { %v10214_v20 = vpop.f32.mrf.mxu1 }
 0x7c7   :  { %v10921_v54 = vpop.f32.mrf.mxu0  ;;  %v22534_v33 = vadd.f32 %v17219_v24, %v10390_v2  ;;  %v10389_v45 = vadd.f32 %v10214_v20, %v22174_v39  ;;  %v12548_v24 = vld [vmem:[#allocation3 + $0x9a] sm:$0xff]  ;;  %v12549_v2 = vld [vmem:[#allocation3 + $0xaa] sm:$0xff] }
 0x7c8   :  { %v17124_v23 = vpop.f32.mrf.mxu1  ;;  %17467 = vmatmul.mubr.msk.f32.gmra.mxu1 %vm6836_vm3, %v12546_v25 }
 0x7c9   :  { %v17222_v53 = vpop.f32.mrf.mxu0  ;;  %v22538_v63 = vadd.f32 %v10921_v54, %v10389_v45  ;;  %v10392_v15 = vadd.f32 %v17124_v23, %v22180_v0  ;;  %17469 = vmatprep.mubr.msk.f32.mxu1 %vm6836_vm3, %v12547_v36 }
 0x7ca   :  { %v10224_v1 = vpop.f32.mrf.mxu1 }
 0x7cb   :  { %v10931_v46 = vpop.f32.mrf.mxu0  ;;  %v22542_v6 = vadd.f32 %v17222_v53, %v10392_v15  ;;  %v10391_v47 = vadd.f32 %v10224_v1, %v22186_v11  ;;  %v12550_v53 = vld [vmem:[#allocation3 + $0xb2] sm:$0xff]  ;;  %v12551_v15 = vld [vmem:[#allocation3 + $0xc2] sm:$0xff] }
 0x7cc   :  { %v17127_v39 = vpop.f32.mrf.mxu1  ;;  %17470 = vmatmul.mubr.msk.f32.gmra.mxu1 %vm6836_vm3, %v12548_v24 }
 0x7cd   :  { %v17225_v43 = vpop.f32.mrf.mxu0  ;;  %v22546_v20 = vadd.f32 %v10931_v46, %v10391_v47  ;;  %v10394_v54 = vadd.f32 %v17127_v39, %v22192_v52  ;;  %17472 = vmatprep.mubr.msk.f32.mxu1 %vm6836_vm3, %v12549_v2 }
 0x7ce   :  { %v10234_v0 = vpop.f32.mrf.mxu1 }
 0x7cf   :  { %v10941_v45 = vpop.f32.mrf.mxu0  ;;  %v22550_v25 = vadd.f32 %v17225_v43, %v10394_v54  ;;  %v10393_v23 = vadd.f32 %v10234_v0, %v22198_v56  ;;  %v12552_v43 = vld [vmem:[#allocation3 + $0xca] sm:$0xff]  ;;  %v12553_v54 = vld [vmem:[#allocation3 + $0xda] sm:$0xff] }
 0x7d0   :  { %v17130_v11 = vpop.f32.mrf.mxu1  ;;  %17473 = vmatmul.mubr.msk.f32.gmra.mxu1 %vm6836_vm3, %v12550_v53 }
 0x7d1   :  { %v17228_v36 = vpop.f32.mrf.mxu0  ;;  %v22554_v1 = vadd.f32 %v10941_v45, %v10393_v23  ;;  %v10396_v46 = vadd.f32 %v17130_v11, %v22204_v7  ;;  %17475 = vmatprep.mubr.msk.f32.mxu1 %vm6836_vm3, %v12551_v15 }
 0x7d2   :  { %v10244_v52 = vpop.f32.mrf.mxu1 }
 0x7d3   :  { %v10951_v47 = vpop.f32.mrf.mxu0  ;;  %v22558_v24 = vadd.f32 %v17228_v36, %v10396_v46  ;;  %v10395_v39 = vadd.f32 %v10244_v52, %v22210_v55  ;;  %v12554_v36 = vld [vmem:[#allocation3 + $0xe2] sm:$0xff]  ;;  %v12555_v46 = vld [vmem:[#allocation3 + $0xf2] sm:$0xff] }
 0x7d4   :  { %v17133_v56 = vpop.f32.mrf.mxu1  ;;  %17476 = vmatmul.mubr.msk.f32.gmra.mxu1 %vm6836_vm3, %v12552_v43 }
 0x7d5   :  { %v17231_v2 = vpop.f32.mrf.mxu0  ;;  %v22562_v0 = vadd.f32 %v10951_v47, %v10395_v39  ;;  %v10398_v45 = vadd.f32 %v17133_v56, %v22216_v14  ;;  %17478 = vmatprep.mubr.msk.f32.mxu1 %vm6836_vm3, %v12553_v54 }
 0x7d6   :  { %v10254_v7 = vpop.f32.mrf.mxu1 }
 0x7d7   :  { %v10961_v23 = vpop.f32.mrf.mxu0  ;;  %v22566_v53 = vadd.f32 %v17231_v2, %v10398_v45  ;;  %v10397_v11 = vadd.f32 %v10254_v7, %v22222_v57  ;;  %v12556_v2 = vld [vmem:[#allocation3 + $0xfa] sm:$0xff]  ;;  %v12557_v45 = vld [vmem:[#allocation3 + $0x10a] sm:$0xff] }
 0x7d8   :  { %v17136_v55 = vpop.f32.mrf.mxu1  ;;  %17479 = vmatmul.mubr.msk.f32.gmra.mxu1 %vm6836_vm3, %v12554_v36 }
 0x7d9   :  { %v17234_v15 = vpop.f32.mrf.mxu0  ;;  %v22570_v52 = vadd.f32 %v10961_v23, %v10397_v11  ;;  %v10400_v47 = vadd.f32 %v17136_v55, %v22228_v49  ;;  %17481 = vmatprep.mubr.msk.f32.mxu1 %vm6836_vm3, %v12555_v46 }
 0x7da   :  { %v10264_v14 = vpop.f32.mrf.mxu1 }
 0x7db   :  { %v10971_v39 = vpop.f32.mrf.mxu0  ;;  %v22574_v43 = vadd.f32 %v17234_v15, %v10400_v47  ;;  %v10399_v56 = vadd.f32 %v10264_v14, %v22234_v12  ;;  %v12558_v15 = vld [vmem:[#allocation3 + $0x112] sm:$0xff]  ;;  %v12559_v47 = vld [vmem:[#allocation3 + $0x122] sm:$0xff] }
 0x7dc   :  { %v17139_v57 = vpop.f32.mrf.mxu1  ;;  %17482 = vmatmul.mubr.msk.f32.gmra.mxu1 %vm6836_vm3, %v12556_v2 }
 0x7dd   :  { %v17237_v54 = vpop.f32.mrf.mxu0  ;;  %v22578_v7 = vadd.f32 %v10971_v39, %v10399_v56  ;;  %v10402_v23 = vadd.f32 %v17139_v57, %v22240_v16  ;;  %17484 = vmatprep.mubr.msk.f32.mxu1 %vm6836_vm3, %v12557_v45  ;;  %v23862_v39 = vld [vmem:[#allocation35_spill] sm:$0xff] }
 0x7de   :  { %v10274_v49 = vpop.f32.mrf.mxu1 }
 0x7df   :  { %v10981_v11 = vpop.f32.mrf.mxu0  ;;  %v22582_v36 = vadd.f32 %v17237_v54, %v10402_v23  ;;  %v10401_v55 = vadd.f32 %v10274_v49, %v22246_v59  ;;  %v23864_v54 = vld [vmem:[#allocation68_spill] sm:$0xff] }
 0x7e0   :  { %v17142_v12 = vpop.f32.mrf.mxu1  ;;  %17485 = vmatmul.mubr.msk.f32.gmra.mxu1 %vm6836_vm3, %v12558_v15  ;;  %v12560_v23 = vld [vmem:[#allocation3 + $0x12a] sm:$0xff] }
 0x7e1   :  { %23860 = vst [vmem:[#allocation48_spill] sm:$0xff] %v22582_v36  ;;  %v17240_v46 = vpop.f32.mrf.mxu0  ;;  %v22586_v14 = vadd.f32 %v10981_v11, %v10401_v55  ;;  %v10404_v56 = vadd.f32 %v17142_v12, %v23862_v39  ;;  %17487 = vmatprep.mubr.msk.f32.mxu1 %vm6836_vm3, %v12559_v47  ;;  %v12561_v36 = vld [vmem:[#allocation3 + $0x13a] sm:$0xff] }
 0x7e2   :  { %v10284_v16 = vpop.f32.mrf.mxu1  ;;  %v23866_v11 = vld [vmem:[#allocation66_spill] sm:$0xff] }
 0x7e3   :  { %23861 = vst [vmem:[#allocation76_spill] sm:$0xff] %v22586_v14  ;;  %v10991_v2 = vpop.f32.mrf.mxu0  ;;  %v22590_v57 = vadd.f32 %v17240_v46, %v10404_v56  ;;  %v10403_v45 = vadd.f32 %v10284_v16, %v23864_v54  ;;  %v23868_v46 = vld [vmem:[#allocation31_spill] sm:$0xff]  ;;  %v12563_v14 = vld [vmem:[#allocation3 + $0x152] sm:$0xff] }
 0x7e4   :  { %v17145_v59 = vpop.f32.mrf.mxu1  ;;  %17488 = vmatmul.mubr.msk.f32.gmra.mxu1 %vm6836_vm3, %v12560_v23 }
 0x7e5   :  { %23863 = vst [vmem:[#allocation75_spill] sm:$0xff] %v22590_v57  ;;  %v17243_v49 = vpop.f32.mrf.mxu0  ;;  %v22594_v15 = vadd.f32 %v10991_v2, %v10403_v45  ;;  %v10406_v55 = vadd.f32 %v17145_v59, %v23866_v11  ;;  %17490 = vmatprep.mubr.msk.f32.mxu1 %vm6836_vm3, %v12561_v36  ;;  %v12562_v57 = vld [vmem:[#allocation3 + $0x142] sm:$0xff]  ;;  %v23870_v2 = vld [vmem:[#allocation74_spill] sm:$0xff] }
 0x7e6   :  { %v10294_v12 = vpop.f32.mrf.mxu1 }
 0x7e7   :  { %23865 = vst [vmem:[#allocation14_spill] sm:$0xff] %v22594_v15  ;;  %v11001_v47 = vpop.f32.mrf.mxu0  ;;  %v22598_v39 = vadd.f32 %v17243_v49, %v10406_v55  ;;  %v10405_v56 = vadd.f32 %v10294_v12, %v23868_v46  ;;  %v23872_v49 = vld [vmem:[#allocation33_spill] sm:$0xff] }
 0x7e8   :  { %v17148_v16 = vpop.f32.mrf.mxu1  ;;  %17491 = vmatmul.mubr.msk.f32.gmra.mxu1 %vm6836_vm3, %v12562_v57  ;;  %v12565_v15 = vld [vmem:[#allocation3 + $0x16a] sm:$0xff] }
 0x7e9   :  { %23867 = vst [vmem:[#allocation80_spill] sm:$0xff] %v22598_v39  ;;  %v17246_v54 = vpop.f32.mrf.mxu0  ;;  %v22602_v23 = vadd.f32 %v11001_v47, %v10405_v56  ;;  %v10408_v45 = vadd.f32 %v17148_v16, %v23870_v2  ;;  %17493 = vmatprep.mubr.msk.f32.mxu1 %vm6836_vm3, %v12563_v14  ;;  %v12564_v39 = vld [vmem:[#allocation3 + $0x15a] sm:$0xff]  ;;  %v23874_v47 = vld [vmem:[#allocation73_spill] sm:$0xff] }
 0x7ea   :  { %v10304_v59 = vpop.f32.mrf.mxu1 }
 0x7eb   :  { %23869 = vst [vmem:[#allocation7_spill] sm:$0xff] %v22602_v23  ;;  %v11011_v36 = vpop.f32.mrf.mxu0  ;;  %v22606_v11 = vadd.f32 %v17246_v54, %v10408_v45  ;;  %v10407_v55 = vadd.f32 %v10304_v59, %v23872_v49  ;;  %v23875_v54 = vld [vmem:[#allocation10_spill] sm:$0xff]  ;;  %v12567_v23 = vld [vmem:[#allocation3 + $0x182] sm:$0xff] }
 0x7ec   :  { %v17151_v12 = vpop.f32.mrf.mxu1  ;;  %17494 = vmatmul.mubr.msk.f32.gmra.mxu1 %vm6836_vm3, %v12564_v39 }
 0x7ed   :  { %23871 = vst [vmem:[#allocation41_spill] sm:$0xff] %v22606_v11  ;;  %v17249_v46 = vpop.f32.mrf.mxu0  ;;  %v22610_v57 = vadd.f32 %v11011_v36, %v10407_v55  ;;  %v10410_v56 = vadd.f32 %v17151_v12, %v23874_v47  ;;  %17496 = vmatprep.mubr.msk.f32.mxu1 %vm6836_vm3, %v12565_v15  ;;  %v12566_v11 = vld [vmem:[#allocation3 + $0x172] sm:$0xff]  ;;  %v12569_v47 = vld [vmem:[#allocation3 + $0x19a] sm:$0xff] }
 0x7ee   :  { %v10314_v16 = vpop.f32.mrf.mxu1  ;;  %v23876_v36 = vld [vmem:[#allocation38_spill] sm:$0xff] }
 0x7ef   :  { %23873 = vst [vmem:[#allocation47_spill] sm:$0xff] %v22610_v57  ;;  %v11021_v14 = vpop.f32.mrf.mxu0  ;;  %v22614_v2 = vadd.f32 %v17249_v46, %v10410_v56  ;;  %v10409_v45 = vadd.f32 %v10314_v16, %v23875_v54  ;;  %v12568_v56 = vld [vmem:[#allocation3 + $0x18a] sm:$0xff] }
 0x7f0   :  { %v17154_v59 = vpop.f32.mrf.mxu1  ;;  %17497 = vmatmul.mubr.msk.f32.gmra.mxu1 %vm6836_vm3, %v12566_v11 }
 0x7f1   :  { %v17252_v49 = vpop.f32.mrf.mxu0  ;;  %v22618_v39 = vadd.f32 %v11021_v14, %v10409_v45  ;;  %v10412_v55 = vadd.f32 %v17154_v59, %v23876_v36  ;;  %17499 = vmatprep.mubr.msk.f32.mxu1 %vm6836_vm3, %v12567_v23  ;;  %v12570_v45 = vld [vmem:[#allocation3 + $0x1a2] sm:$0xff] }
 0x7f2   :  { %v10324_v12 = vpop.f32.mrf.mxu1 }
 0x7f3   :  { %v11031_v15 = vpop.f32.mrf.mxu0  ;;  %v22622_v57 = vadd.f32 %v17252_v49, %v10412_v55  ;;  %v10411_v46 = vadd.f32 %v10324_v12, %v22306_v27  ;;  %v12571_v12 = vld [vmem:[#allocation3 + $0x1e2] sm:$0xff] }
 0x7f4   :  { %v17157_v16 = vpop.f32.mrf.mxu1  ;;  %17500 = vmatmul.mubr.msk.f32.gmra.mxu1 %vm6836_vm3, %v12568_v56  ;;  %v12572_v56 = vld [vmem:[#allocation3 + $0x1ea] sm:$0xff] }
 0x7f5   :  { %23877 = vst [vmem:[#allocation50_spill] sm:$0xff] %v22622_v57  ;;  %v17255_v54 = vpop.f32.mrf.mxu0  ;;  %v22626_v11 = vadd.f32 %v11031_v15, %v10411_v46  ;;  %v10414_v14 = vadd.f32 %v17157_v16, %v22311_v26  ;;  %17502 = vmatprep.mubr.msk.f32.mxu1 %vm6836_vm3, %v12569_v47 }
 0x7f6   :  { %v10334_v23 = vpop.f32.mrf.mxu1 }
 0x7f7   :  { %v11041_v59 = vpop.f32.mrf.mxu0  ;;  %v22630_v36 = vadd.f32 %v17255_v54, %v10414_v14  ;;  %v10413_v49 = vadd.f32 %v10334_v23, %v22316_v13  ;;  %v12573_v13 = vld [vmem:[#allocation3 + $0x1fa] sm:$0xff] }
 0x7f8   :  { %v17160_v55 = vpop.f32.mrf.mxu1  ;;  %17503 = vmatmul.mubr.msk.f32.gmra.mxu1 %vm6836_vm3, %v12570_v45 }
 0x7f9   :  { %v17258_v27 = vpop.f32.mrf.mxu0  ;;  %v22634_v57 = vadd.f32 %v11041_v59, %v10413_v49  ;;  %v10416_v15 = vadd.f32 %v17160_v55, %v22322_v9  ;;  %17505 = vmatprep.mubr.msk.f32.mxu1 %vm6836_vm3, %v12571_v12  ;;  %v12574_v59 = vld [vmem:[#allocation3 + $0x202] sm:$0xff]  ;;  %v12576_v12 = vld [vmem:[#allocation3 + $0x21a] sm:$0xff] }
 0x7fa   :  { %v10344_v26 = vpop.f32.mrf.mxu1 }
 0x7fb   :  { %v22638_v47 = vadd.f32 %v17258_v27, %v10416_v15  ;;  %v10415_v46 = vadd.f32 %v10344_v26, %v22328_v19  ;;  %v11051_v16 = vpop.f32.mrf.mxu0  ;;  %v12575_v19 = vld [vmem:[#allocation3 + $0x212] sm:$0xff] }
 0x7fc   :  { %v17263_v54 = vpop.f32.mrf.mxu1  ;;  %17506 = vmatmul.mubr.msk.f32.gmra.mxu1 %vm6836_vm3, %v12572_v56  ;;  %v12578_v56 = vld [vmem:[#allocation3 + $0x232] sm:$0xff] }
 0x7fd   :  { %v22642_v14 = vadd.f32 %v11051_v16, %v10415_v46  ;;  %v22645_v45 = vadd.f32 %v17263_v54, %v22334_v40  ;;  %17508 = vmatprep.mubr.msk.f32.mxu1 %vm6836_vm3, %v12573_v13 }
 0x7fe   :  { %v11449_v9 = vpop.f32.mrf.mxu1 }
 0x7ff   :  { %v22649_v23 = vadd.f32 %v11449_v9, %v22340_v61  ;;  %v12577_v61 = vld [vmem:[#allocation3 + $0x22a] sm:$0xff] }
 0x800   :  { %v17266_v49 = vpop.f32.mrf.mxu1  ;;  %17509 = vmatmul.mubr.msk.f32.gmra.mxu1 %vm6836_vm3, %v12574_v59  ;;  %v12580_v9 = vld [vmem:[#allocation3 + $0x24a] sm:$0xff] }
 0x801   :  { %v22653_v55 = vadd.f32 %v17266_v49, %v22346_v42  ;;  %17511 = vmatprep.mubr.msk.f32.mxu1 %vm6836_vm3, %v12575_v19 }
 0x802   :  { %v11459_v27 = vpop.f32.mrf.mxu1 }
 0x803   :  { %v22657_v40 = vadd.f32 %v11459_v27, %v22352_v50  ;;  %v12579_v50 = vld [vmem:[#allocation3 + $0x242] sm:$0xff] }
 0x804   :  { %v17269_v15 = vpop.f32.mrf.mxu1  ;;  %17512 = vmatmul.mubr.msk.f32.gmra.mxu1 %vm6836_vm3, %v12576_v12  ;;  %v12582_v27 = vld [vmem:[#allocation3 + $0x262] sm:$0xff] }
 0x805   :  { %v22661_v26 = vadd.f32 %v17269_v15, %v22358_v62  ;;  %17514 = vmatprep.mubr.msk.f32.mxu1 %vm6836_vm3, %v12577_v61 }
 0x806   :  { %v11469_v46 = vpop.f32.mrf.mxu1 }
 0x807   :  { %v22665_v42 = vadd.f32 %v11469_v46, %v22364_v60  ;;  %v12581_v60 = vld [vmem:[#allocation3 + $0x25a] sm:$0xff] }
 0x808   :  { %v17272_v16 = vpop.f32.mrf.mxu1  ;;  %17515 = vmatmul.mubr.msk.f32.gmra.mxu1 %vm6836_vm3, %v12578_v56  ;;  %v12584_v46 = vld [vmem:[#allocation3 + $0x27a] sm:$0xff] }
 0x809   :  { %v22669_v54 = vadd.f32 %v17272_v16, %v22370_v51  ;;  %17517 = vmatprep.mubr.msk.f32.mxu1 %vm6836_vm3, %v12579_v50 }
 0x80a   :  { %v11479_v13 = vpop.f32.mrf.mxu1 }
 0x80b   :  { %v22673_v62 = vadd.f32 %v11479_v13, %v22376_v32  ;;  %v12583_v32 = vld [vmem:[#allocation3 + $0x272] sm:$0xff] }
 0x80c   :  { %v17275_v59 = vpop.f32.mrf.mxu1  ;;  %17518 = vmatmul.mubr.msk.f32.gmra.mxu1 %vm6836_vm3, %v12580_v9  ;;  %v12586_v13 = vld [vmem:[#allocation3 + $0x292] sm:$0xff]  ;;  %v22699_v9 = vpop.f32.mrf.mxu0 }
 0x80d   :  { %v22677_v49 = vadd.f32 %v17275_v59, %v22382_v17  ;;  %17520 = vmatprep.mubr.msk.f32.mxu1 %vm6836_vm3, %v12581_v60 }
 0x80e   :  { %v11489_v19 = vpop.f32.mrf.mxu1 }
 0x80f   :  { %v22681_v51 = vadd.f32 %v11489_v19, %v22388_v29  ;;  %v12585_v29 = vld [vmem:[#allocation3 + $0x28a] sm:$0xff] }
 0x810   :  { %v17278_v12 = vpop.f32.mrf.mxu1  ;;  %17521 = vmatmul.mubr.msk.f32.gmra.mxu1 %vm6836_vm3, %v12582_v27  ;;  %v12588_v27 = vld [vmem:[#allocation3 + $0x2aa] sm:$0xff] }
 0x811   :  { %v22685_v15 = vadd.f32 %v17278_v12, %v22394_v28  ;;  %17523 = vmatprep.mubr.msk.f32.mxu1 %vm6836_vm3, %v12583_v32  ;;  %v22709_v12 = vpop.f32.mrf.mxu0  ;;  %v12589_v32 = vld [vmem:[#allocation3 + $0x2ba] sm:$0xff] }
 0x812   :  { %v11499_v61 = vpop.f32.mrf.mxu1 }
 0x813   :  { %v22689_v17 = vadd.f32 %v11499_v61, %v22400_v58  ;;  %v12587_v58 = vld [vmem:[#allocation3 + $0x2a2] sm:$0xff] }
 0x814   :  { %v17281_v56 = vpop.f32.mrf.mxu1  ;;  %17524 = vmatmul.mubr.msk.f32.gmra.mxu1 %vm6836_vm3, %v12584_v46  ;;  %v23882_v46 = vld [vmem:[#allocation40_spill] sm:$0xff] }
 0x815   :  { %v22693_v16 = vadd.f32 %v17281_v56, %v22406_v8  ;;  %17526 = vmatprep.mubr.msk.f32.mxu1 %vm6836_vm3, %v12585_v29  ;;  %v12590_v29 = vld [vmem:[#allocation3 + $0x2c2] sm:$0xff] }
 0x816   :  { %v11509_v50 = vpop.f32.mrf.mxu1 }
 0x817   :  { %23878 = vst [vmem:[#allocation11_spill] sm:$0xff] %v22693_v16  ;;  %v22697_v28 = vadd.f32 %v11509_v50, %v22412_v41  ;;  %v22719_v50 = vpop.f32.mrf.mxu0 }
 0x818   :  { %v17284_v59 = vpop.f32.mrf.mxu1  ;;  %17527 = vmatmul.mubr.msk.f32.gmra.mxu1 %vm6836_vm3, %v12586_v13  ;;  %v12591_v13 = vld [vmem:[#allocation3 + $0x2d2] sm:$0xff] }
 0x819   :  { %23879 = vst [vmem:[#allocation12_spill] sm:$0xff] %v22697_v28  ;;  %v22703_v60 = vadd.f32 %v17284_v59, %v22418_v34  ;;  %17529 = vmatprep.mubr.msk.f32.mxu1 %vm6836_vm3, %v12587_v58  ;;  %v23883_v59 = vld [vmem:[#allocation78_spill] sm:$0xff]  ;;  %v23890_v28 = vld [vmem:[#allocation39_spill] sm:$0xff] }
 0x81a   :  { %v11519_v8 = vpop.f32.mrf.mxu1 }
 0x81b   :  { %23880 = vst [vmem:[#allocation42_spill] sm:$0xff] %v22703_v60  ;;  %v22707_v19 = vadd.f32 %v11519_v8, %v22424_v22  ;;  %v23885_v8 = vld [vmem:[#allocation9_spill] sm:$0xff]  ;;  %v23886_v60 = vld [vmem:[#allocation79_spill] sm:$0xff] }
 0x81c   :  { %v17287_v41 = vpop.f32.mrf.mxu1  ;;  %17530 = vmatmul.mubr.msk.f32.gmra.mxu1 %vm6836_vm3, %v12588_v27 }
 0x81d   :  { %23881 = vst [vmem:[#allocation16_spill] sm:$0xff] %v22707_v19  ;;  %v22713_v61 = vadd.f32 %v17287_v41, %v22430_v30  ;;  %17532 = vmatprep.mubr.msk.f32.mxu1 %vm6836_vm3, %v12589_v32  ;;  %v12592_v41 = vld [vmem:[#allocation3 + $0x2da] sm:$0xff]  ;;  %v22729_v32 = vpop.f32.mrf.mxu0 }
 0x81e   :  { %v11529_v34 = vpop.f32.mrf.mxu1 }
 0x81f   :  { %v22717_v56 = vadd.f32 %v11529_v34, %v23882_v46  ;;  %v12593_v46 = vld [vmem:[#allocation3 + $0x2ea] sm:$0xff]  ;;  %v22739_v16 = vpop.f32.mrf.mxu0 }
 0x820   :  { %v17290_v22 = vpop.f32.mrf.mxu1  ;;  %17533 = vmatmul.mubr.msk.f32.gmra.mxu1 %vm6836_vm3, %v12590_v29 }
 0x821   :  { %v22723_v58 = vadd.f32 %v17290_v22, %v23883_v59  ;;  %17535 = vmatprep.mubr.msk.f32.mxu1 %vm6836_vm3, %v12591_v13  ;;  %v23888_v22 = vld [vmem:[#allocation81_spill] sm:$0xff] }
 0x822   :  { %v11539_v30 = vpop.f32.mrf.mxu1  ;;  %v12594_v13 = vld [vmem:[#allocation3 + $0x2f2] sm:$0xff] }
 0x823   :  { %23884 = vst [vmem:[#allocation15_spill] sm:$0xff] %v22723_v58  ;;  %v22727_v27 = vadd.f32 %v11539_v30, %v23885_v8  ;;  %v12595_v8 = vld [vmem:[#allocation3 + $0x302] sm:$0xff] }
 0x824   :  { %v17293_v34 = vpop.f32.mrf.mxu1  ;;  %17536 = vmatmul.mubr.msk.f32.gmra.mxu1 %vm6836_vm3, %v12592_v41 }
 0x825   :  { %v22733_v19 = vadd.f32 %v17293_v34, %v23886_v60  ;;  %17538 = vmatprep.mubr.msk.f32.mxu1 %vm6836_vm3, %v12593_v46  ;;  %v12596_v34 = vld [vmem:[#allocation3 + $0x30a] sm:$0xff]  ;;  %v22749_v46 = vpop.f32.mrf.mxu0 }
 0x826   :  { %v11549_v29 = vpop.f32.mrf.mxu1 }
 0x827   :  { %23887 = vst [vmem:[#allocation44_spill] sm:$0xff] %v22733_v19  ;;  %v22737_v59 = vadd.f32 %v11549_v29, %v23888_v22  ;;  %v12597_v22 = vld [vmem:[#allocation3 + $0x31a] sm:$0xff]  ;;  %v23892_v19 = vld [vmem:[#allocation8_spill] sm:$0xff] }
 0x828   :  { %v17296_v30 = vpop.f32.mrf.mxu1  ;;  %17539 = vmatmul.mubr.msk.f32.gmra.mxu1 %vm6836_vm3, %v12594_v13 }
 0x829   :  { %23889 = vst [vmem:[#allocation49_spill] sm:$0xff] %v22737_v59  ;;  %v22743_v58 = vadd.f32 %v17296_v30, %v23890_v28  ;;  %17541 = vmatprep.mubr.msk.f32.mxu1 %vm6836_vm3, %v12595_v8  ;;  %v12598_v30 = vld [vmem:[#allocation3 + $0x322] sm:$0xff]  ;;  %v22759_v8 = vpop.f32.mrf.mxu0 }
 0x82a   :  { %v11559_v60 = vpop.f32.mrf.mxu1 }
 0x82b   :  { %23891 = vst [vmem:[#allocation52_spill] sm:$0xff] %v22743_v58  ;;  %v22747_v41 = vadd.f32 %v11559_v60, %v22472_v38  ;;  %v12599_v60 = vld [vmem:[#allocation3 + $0x332] sm:$0xff] }
 0x82c   :  { %v17299_v29 = vpop.f32.mrf.mxu1  ;;  %17542 = vmatmul.mubr.msk.f32.gmra.mxu1 %vm6836_vm3, %v12596_v34  ;;  %v12601_v34 = vld [vmem:[#allocation3 + $0x34a] sm:$0xff] }
 0x82d   :  { %v22753_v59 = vadd.f32 %v17299_v29, %v23892_v19  ;;  %17544 = vmatprep.mubr.msk.f32.mxu1 %vm6836_vm3, %v12597_v22  ;;  %v12600_v22 = vld [vmem:[#allocation3 + $0x33a] sm:$0xff] }
 0x82e   :  { %v11569_v28 = vpop.f32.mrf.mxu1 }
 0x82f   :  { %23893 = vst [vmem:[#allocation77_spill] sm:$0xff] %v22753_v59  ;;  %v22757_v13 = vadd.f32 %v11569_v28, %v22484_v21  ;;  %v22769_v21 = vpop.f32.mrf.mxu0 }
 0x830   :  { %v17302_v38 = vpop.f32.mrf.mxu1  ;;  %17545 = vmatmul.mubr.msk.f32.gmra.mxu1 %vm6836_vm3, %v12598_v30 }
 0x831   :  { %v22763_v58 = vadd.f32 %v17302_v38, %v22490_v35  ;;  %17547 = vmatprep.mubr.msk.f32.mxu1 %vm6836_vm3, %v12599_v60  ;;  %v12602_v35 = vld [vmem:[#allocation3 + $0x352] sm:$0xff]  ;;  %v22779_v60 = vpop.f32.mrf.mxu0 }
 0x832   :  { %v11579_v19 = vpop.f32.mrf.mxu1 }
 0x833   :  { %23894 = vst [vmem:[#allocation13_spill] sm:$0xff] %v22763_v58  ;;  %v22767_v29 = vadd.f32 %v11579_v19, %v22496_v48 }
 0x834   :  { %v17305_v28 = vpop.f32.mrf.mxu1  ;;  %17548 = vmatmul.mubr.msk.f32.gmra.mxu1 %vm6836_vm3, %v12600_v22 }
 0x835   :  { %v22773_v59 = vadd.f32 %v17305_v28, %v22501_v5  ;;  %17550 = vmatprep.mubr.msk.f32.mxu1 %vm6836_vm3, %v12601_v34  ;;  %v22788_v5 = vpop.f32.mrf.mxu0 }
 0x836   :  { %v11589_v30 = vpop.f32.mrf.mxu1 }
 0x837   :  { %23895 = vst [vmem:[#allocation17_spill] sm:$0xff] %v22773_v59  ;;  %v22777_v38 = vadd.f32 %v11589_v30, %v22506_v4  ;;  %v22796_v59 = vpop.f32.mrf.mxu0 }
 0x838   :  { %v17308_v48 = vpop.f32.mrf.mxu1  ;;  %17551 = vmatmul.mubr.msk.f32.gmra.mxu1 %vm6836_vm3, %v12602_v35 }
 0x839   :  { %23896 = vst [vmem:[#allocation18_spill] sm:$0xff] %v22777_v38  ;;  %v22783_v19 = vadd.f32 %v17308_v48, %v22510_v10 }
 0x83a   :  { %v11599_v58 = vpop.f32.mrf.mxu1 }
 0x83b   :  { %23897 = vst [vmem:[#allocation51_spill] sm:$0xff] %v22783_v19  ;;  %v22786_v22 = vadd.f32 %v11599_v58, %v22514_v18  ;;  %v22804_v58 = vpop.f32.mrf.mxu0 }
 0x83c   :  { %v17311_v34 = vpop.f32.mrf.mxu1 }
 0x83d   :  { %23898 = vst [vmem:[#allocation43_spill] sm:$0xff] %v22786_v22  ;;  %v22791_v28 = vadd.f32 %v17311_v34, %v22518_v44 }
 0x83e   :  { %v11609_v4 = vpop.f32.mrf.mxu1 }
 0x83f   :  { %v22794_v30 = vadd.f32 %v11609_v4, %v22522_v3  ;;  %v22812_v4 = vpop.f32.mrf.mxu0 }
 0x840   :  { %v17314_v35 = vpop.f32.mrf.mxu1 }
 0x841   :  { %v22799_v10 = vadd.f32 %v17314_v35, %v22526_v31 }
 0x842   :  { %v11619_v48 = vpop.f32.mrf.mxu1 }
 0x843   :  { %v22802_v18 = vadd.f32 %v11619_v48, %v22530_v37  ;;  %v22820_v48 = vpop.f32.mrf.mxu0 }
 0x844   :  { %v17317_v19 = vpop.f32.mrf.mxu1 }
 0x845   :  { %v22807_v44 = vadd.f32 %v17317_v19, %v22534_v33 }
 0x846   :  { %v11629_v34 = vpop.f32.mrf.mxu1 }
 0x847   :  { %23899 = vst [vmem:[#allocation45_spill] sm:$0xff] %v22807_v44  ;;  %v22810_v3 = vadd.f32 %v11629_v34, %v22538_v63  ;;  %v22828_v34 = vpop.f32.mrf.mxu0 }
 0x848   :  { %v17320_v22 = vpop.f32.mrf.mxu1 }
 0x849   :  { %23900 = vst [vmem:[#allocation19_spill] sm:$0xff] %v22810_v3  ;;  %v22815_v31 = vadd.f32 %v17320_v22, %v22542_v6  ;;  %v23923_v3 = vld [vmem:[#allocation41_spill] sm:$0xff] }
 0x84a   :  { %v11639_v35 = vpop.f32.mrf.mxu1 }
 0x84b   :  { %23901 = vst [vmem:[#allocation83_spill] sm:$0xff] %v22815_v31  ;;  %v22818_v37 = vadd.f32 %v11639_v35, %v22546_v20  ;;  %v22836_v35 = vpop.f32.mrf.mxu0 }
 0x84c   :  { %v17323_v38 = vpop.f32.mrf.mxu1 }
 0x84d   :  { %23902 = vst [vmem:[#allocation46_spill] sm:$0xff] %v22818_v37  ;;  %v22823_v33 = vadd.f32 %v17323_v38, %v22550_v25  ;;  %v23919_v37 = vld [vmem:[#allocation80_spill] sm:$0xff] }
 0x84e   :  { %v11649_v19 = vpop.f32.mrf.mxu1 }
 0x84f   :  { %23903 = vst [vmem:[#allocation20_spill] sm:$0xff] %v22823_v33  ;;  %v22826_v63 = vadd.f32 %v11649_v19, %v22554_v1  ;;  %v22844_v19 = vpop.f32.mrf.mxu0 }
 0x850   :  { %v17326_v44 = vpop.f32.mrf.mxu1 }
 0x851   :  { %23904 = vst [vmem:[#allocation22_spill] sm:$0xff] %v22826_v63  ;;  %v22831_v6 = vadd.f32 %v17326_v44, %v22558_v24  ;;  %v23915_v63 = vld [vmem:[#allocation75_spill] sm:$0xff] }
 0x852   :  { %v11659_v22 = vpop.f32.mrf.mxu1 }
 0x853   :  { %23905 = vst [vmem:[#allocation53_spill] sm:$0xff] %v22831_v6  ;;  %v22834_v20 = vadd.f32 %v11659_v22, %v22562_v0  ;;  %v22852_v22 = vpop.f32.mrf.mxu0 }
 0x854   :  { %v17329_v31 = vpop.f32.mrf.mxu1 }
 0x855   :  { %23906 = vst [vmem:[#allocation21_spill] sm:$0xff] %v22834_v20  ;;  %v22839_v25 = vadd.f32 %v17329_v31, %v22566_v53  ;;  %v23911_v20 = vld [vmem:[#allocation48_spill] sm:$0xff] }
 0x856   :  { %v11669_v38 = vpop.f32.mrf.mxu1 }
 0x857   :  { %23907 = vst [vmem:[#allocation85_spill] sm:$0xff] %v22839_v25  ;;  %v22842_v1 = vadd.f32 %v11669_v38, %v22570_v52  ;;  %v23913_v25 = vld [vmem:[#allocation76_spill] sm:$0xff]  ;;  %v22860_v38 = vpop.f32.mrf.mxu0 }
 0x858   :  { %v17332_v33 = vpop.f32.mrf.mxu1 }
 0x859   :  { %23908 = vst [vmem:[#allocation24_spill] sm:$0xff] %v22842_v1  ;;  %v22847_v24 = vadd.f32 %v17332_v33, %v22574_v43 }
 0x85a   :  { %v11679_v44 = vpop.f32.mrf.mxu1 }
 0x85b   :  { %23909 = vst [vmem:[#allocation84_spill] sm:$0xff] %v22847_v24  ;;  %v22850_v0 = vadd.f32 %v11679_v44, %v22578_v7  ;;  %v23917_v24 = vld [vmem:[#allocation14_spill] sm:$0xff]  ;;  %v22868_v44 = vpop.f32.mrf.mxu0 }
 0x85c   :  { %v17335_v6 = vpop.f32.mrf.mxu1 }
 0x85d   :  { %23910 = vst [vmem:[#allocation87_spill] sm:$0xff] %v22850_v0  ;;  %v22855_v53 = vadd.f32 %v17335_v6, %v23911_v20 }
 0x85e   :  { %v11689_v31 = vpop.f32.mrf.mxu1 }
 0x85f   :  { %23912 = vst [vmem:[#allocation23_spill] sm:$0xff] %v22855_v53  ;;  %v22858_v52 = vadd.f32 %v11689_v31, %v23913_v25  ;;  %v23921_v53 = vld [vmem:[#allocation7_spill] sm:$0xff]  ;;  %v22876_v31 = vpop.f32.mrf.mxu0 }
 0x860   :  { %v17338_v1 = vpop.f32.mrf.mxu1 }
 0x861   :  { %23914 = vst [vmem:[#allocation86_spill] sm:$0xff] %v22858_v52  ;;  %v22863_v43 = vadd.f32 %v17338_v1, %v23915_v63 }
 0x862   :  { %v11699_v33 = vpop.f32.mrf.mxu1 }
 0x863   :  { %23916 = vst [vmem:[#allocation25_spill] sm:$0xff] %v22863_v43  ;;  %v22866_v7 = vadd.f32 %v11699_v33, %v23917_v24  ;;  %v23925_v43 = vld [vmem:[#allocation47_spill] sm:$0xff]  ;;  %v22884_v33 = vpop.f32.mrf.mxu0 }
 0x864   :  { %v17341_v0 = vpop.f32.mrf.mxu1 }
 0x865   :  { %23918 = vst [vmem:[#allocation90_spill] sm:$0xff] %v22866_v7  ;;  %v22871_v6 = vadd.f32 %v17341_v0, %v23919_v37 }
 0x866   :  { %v11709_v20 = vpop.f32.mrf.mxu1 }
 0x867   :  { %23920 = vst [vmem:[#allocation88_spill] sm:$0xff] %v22871_v6  ;;  %v22874_v25 = vadd.f32 %v11709_v20, %v23921_v53  ;;  %v22892_v20 = vpop.f32.mrf.mxu0 }
 0x868   :  { %v17344_v52 = vpop.f32.mrf.mxu1 }
 0x869   :  { %23922 = vst [vmem:[#allocation26_spill] sm:$0xff] %v22874_v25  ;;  %v22879_v63 = vadd.f32 %v17344_v52, %v23923_v3  ;;  %v23927_v25 = vld [vmem:[#allocation50_spill] sm:$0xff] }
 0x86a   :  { %v11719_v1 = vpop.f32.mrf.mxu1 }
 0x86b   :  { %23924 = vst [vmem:[#allocation93_spill] sm:$0xff] %v22879_v63  ;;  %v22882_v24 = vadd.f32 %v11719_v1, %v23925_v43  ;;  %v22900_v1 = vpop.f32.mrf.mxu0 }
 0x86c   :  { %v17347_v7 = vpop.f32.mrf.mxu1 }
 0x86d   :  { %v22887_v37 = vadd.f32 %v17347_v7, %v22614_v2 }
 0x86e   :  { %v11729_v0 = vpop.f32.mrf.mxu1 }
 0x86f   :  { %23926 = vst [vmem:[#allocation56_spill] sm:$0xff] %v22887_v37  ;;  %v22890_v53 = vadd.f32 %v11729_v0, %v22618_v39  ;;  %v22908_v0 = vpop.f32.mrf.mxu0 }
 0x870   :  { %v17350_v6 = vpop.f32.mrf.mxu1 }
 0x871   :  { %v22895_v3 = vadd.f32 %v17350_v6, %v23927_v25 }
 0x872   :  { %v11739_v52 = vpop.f32.mrf.mxu1 }
 0x873   :  { %23928 = vst [vmem:[#allocation91_spill] sm:$0xff] %v22895_v3  ;;  %v22898_v43 = vadd.f32 %v11739_v52, %v22626_v11  ;;  %v22916_v52 = vpop.f32.mrf.mxu0 }
 0x874   :  { %v17353_v63 = vpop.f32.mrf.mxu1 }
 0x875   :  { %23929 = vst [vmem:[#allocation55_spill] sm:$0xff] %v22898_v43  ;;  %v22903_v2 = vadd.f32 %v17353_v63, %v22630_v36  ;;  %v12475_v36 = vadd.f32 %v22709_v12, %v22649_v23 }
 0x876   :  { %v11749_v7 = vpop.f32.mrf.mxu1 }
 0x877   :  { %23930 = vst [vmem:[#allocation57_spill] sm:$0xff] %v22903_v2  ;;  %v22906_v39 = vadd.f32 %v11749_v7, %v22634_v57  ;;  %v22920_v57 = vpop.f32.mrf.mxu0 }
 0x878   :  { %v17356_v37 = vpop.f32.mrf.mxu1 }
 0x879   :  { %23931 = vst [vmem:[#allocation58_spill] sm:$0xff] %v22906_v39  ;;  %v22911_v6 = vadd.f32 %v17356_v37, %v22638_v47  ;;  %v12476_v39 = vadd.f32 %v22699_v9, %v22645_v45 }
 0x87a   :  { %v11759_v25 = vpop.f32.mrf.mxu1 }
 0x87b   :  { %23932 = vst [vmem:[#allocation92_spill] sm:$0xff] %v22911_v6  ;;  %v22914_v11 = vadd.f32 %v11759_v25, %v22642_v14  ;;  %v22924_v6 = vpop.f32.mrf.mxu0  ;;  %v12477_v25 = vadd.f32 %v22729_v32, %v22657_v40 }
 0x87c   :  { %v17459_v3 = vpop.f32.mrf.mxu1 }
 0x87d   :  { %23933 = vst [vmem:[#allocation63_spill] sm:$0xff] %v22914_v11  ;;  %v13183_v37 = vadd.f32 %v17459_v3, %v12476_v39  ;;  %v22928_v12 = vpop.f32.mrf.mxu0  ;;  %v12479_v39 = vadd.f32 %v22749_v46, %v22665_v42 }
 0x87e   :  { %v12863_v63 = vpop.f32.mrf.mxu1 }
 0x87f   :  { %v13182_v2 = vadd.f32 %v12863_v63, %v12475_v36  ;;  %v12478_v63 = vadd.f32 %v22719_v50, %v22653_v55 }
 0x880   :  { %v17462_v7 = vpop.f32.mrf.mxu1 }
 0x881   :  { %13246 = vxpose.xlu1.b32.start [1/16] (narrow) %v13182_v2, 8  ;;  %v13185_v9 = vadd.f32 %v17462_v7, %v12478_v63  ;;  %v22932_v2 = vpop.f32.mrf.mxu0  ;;  %v12481_v63 = vadd.f32 %v22769_v21, %v22673_v62  ;;  %v12491_v62 = vadd.f32 %v22852_v22, %v22717_v56  ;;  %v12485_v22 = vadd.f32 %v22804_v58, %v22689_v17 }
 0x882   :  { %v12873_v47 = vpop.f32.mrf.mxu1 }
 0x883   :  { %v13184_v23 = vadd.f32 %v12873_v47, %v12477_v25  ;;  %v12480_v25 = vadd.f32 %v22739_v16, %v22661_v26 }
 0x884   :  { %v17465_v14 = vpop.f32.mrf.mxu1 }
 0x885   :  { %13247 = vxpose.xlu1.b32.cont [2/16] (narrow) %v13183_v37, 8  ;;  %v22936_v37 = vpop.f32.mrf.mxu0  ;;  %v13187_v50 = vadd.f32 %v17465_v14, %v12480_v25  ;;  %v12483_v25 = vadd.f32 %v22788_v5, %v22681_v51 }
 0x886   :  { %v12883_v11 = vpop.f32.mrf.mxu1 }
 0x887   :  { %v13186_v32 = vadd.f32 %v12883_v11, %v12479_v39  ;;  %v12482_v39 = vadd.f32 %v22759_v8, %v22669_v54  ;;  %v12484_v54 = vadd.f32 %v22779_v60, %v22677_v49  ;;  %v12492_v8 = vadd.f32 %v22844_v19, %v22713_v61 }
 0x888   :  { %v17468_v36 = vpop.f32.mrf.mxu1 }
 0x889   :  { %13248 = vxpose.xlu1.b32.cont [3/16] (narrow) %v13184_v23, 8  ;;  %v22940_v23 = vpop.f32.mrf.mxu0  ;;  %v13189_v16 = vadd.f32 %v17468_v36, %v12482_v39 }
 0x88a   :  { %v12893_v45 = vpop.f32.mrf.mxu1 }
 0x88b   :  { %v13188_v46 = vadd.f32 %v12893_v45, %v12481_v63 }
 0x88c   :  { %v17471_v3 = vpop.f32.mrf.mxu1 }
 0x88d   :  { %13249 = vxpose.xlu1.b32.cont [4/16] (narrow) %v13185_v9, 8  ;;  %v22944_v9 = vpop.f32.mrf.mxu0  ;;  %v13191_v51 = vadd.f32 %v17471_v3, %v12484_v54  ;;  %v12486_v3 = vadd.f32 %v22796_v59, %v22685_v15 }
 0x88e   :  { %v12903_v40 = vpop.f32.mrf.mxu1 }
 0x88f   :  { %v22950_v14 = vpop.f32.mrf.mxu0  ;;  %v13190_v45 = vadd.f32 %v12903_v40, %v12483_v25  ;;  %v12493_v40 = vadd.f32 %v22868_v44, %v22727_v27 }
 0x890   :  { %v17474_v47 = vpop.f32.mrf.mxu1 }
 0x891   :  { %13250 = vxpose.xlu1.b32.cont [5/16] (narrow) %v13186_v32, 8  ;;  %v22956_v63 = vpop.f32.mrf.mxu0  ;;  %v13193_v58 = vadd.f32 %v17474_v47, %v12486_v3  ;;  %v23938_v47 = vld [vmem:[#allocation44_spill] sm:$0xff] }
 0x892   :  { %v12913_v55 = vpop.f32.mrf.mxu1 }
 0x893   :  { %v13192_v60 = vadd.f32 %v12913_v55, %v12485_v22 }
 0x894   :  { %v17477_v7 = vpop.f32.mrf.mxu1 }
 0x895   :  { %13251 = vxpose.xlu1.b32.cont [6/16] (narrow) %v13187_v50, 8 }
 0x896   :  { %v12923_v42 = vpop.f32.mrf.mxu1 }
 0x898   :  { %v22946_v11 = vpop.f32.mrf.mxu1 }
 0x899   :  { %13252 = vxpose.xlu1.b32.cont [7/16] (narrow) %v13188_v46, 8  ;;  %v22962_v46 = vpop.f32.mrf.mxu0 }
 0x89a   :  { %v12933_v26 = vpop.f32.mrf.mxu1 }
 0x89b   :  { %v22968_v61 = vpop.f32.mrf.mxu0 }
 0x89c   :  { %v17483_v32 = vpop.f32.mrf.mxu1 }
 0x89d   :  { %13253 = vxpose.xlu1.b32.cont [8/16] (narrow) %v13189_v16, 8  ;;  %v13199_v5 = vadd.f32 %v17483_v32, %v12492_v8  ;;  %v23934_v16 = vld [vmem:[#allocation15_spill] sm:$0xff]  ;;  %v22974_v27 = vpop.f32.mrf.mxu0 }
 0x89e   :  { %v12943_v21 = vpop.f32.mrf.mxu1  ;;  %v12494_v32 = vadd.f32 %v22860_v38, %v23934_v16  ;;  %v23937_v8 = vld [vmem:[#allocation11_spill] sm:$0xff]  ;;  %v23941_v16 = vld [vmem:[#allocation52_spill] sm:$0xff] }
 0x89f   :  { %v13198_v50 = vadd.f32 %v12943_v21, %v12491_v62  ;;  %v23935_v62 = vld [vmem:[#allocation12_spill] sm:$0xff]  ;;  %v23936_v21 = vld [vmem:[#allocation49_spill] sm:$0xff]  ;;  %v22980_v38 = vpop.f32.mrf.mxu0 }
 0x8a0   :  { %v17486_v43 = vpop.f32.mrf.mxu1  ;;  %v12487_v55 = vadd.f32 %v22820_v48, %v23935_v62 }
 0x8a1   :  { %13254 = vxpose.xlu1.b32.cont [9/16] (narrow) %v13190_v45, 8  ;;  %13278 = vxpose.xlu0.b32.start [1/16] (narrow) %v13198_v50, 8  ;;  %v13201_v25 = vadd.f32 %v17486_v43, %v12494_v32  ;;  %v12495_v45 = vadd.f32 %v22884_v33, %v23936_v21  ;;  %v12488_v43 = vadd.f32 %v22812_v4, %v23937_v8  ;;  %v22986_v33 = vpop.f32.mrf.mxu0 }
 0x8a2   :  { %v12953_v36 = vpop.f32.mrf.mxu1  ;;  %v13194_v59 = vadd.f32 %v12923_v42, %v12487_v55  ;;  %v23939_v42 = vld [vmem:[#allocation16_spill] sm:$0xff]  ;;  %v12498_v32 = vadd.f32 %v22892_v20, %v23941_v16 }
 0x8a3   :  { %v13200_v39 = vadd.f32 %v12953_v36, %v12493_v40  ;;  %v12496_v36 = vadd.f32 %v22876_v31, %v23938_v47  ;;  %v12489_v40 = vadd.f32 %v22836_v35, %v23939_v42  ;;  %v23943_v47 = vld [vmem:[#allocation13_spill] sm:$0xff]  ;;  %v23945_v42 = vld [vmem:[#allocation19_spill] sm:$0xff] }
 0x8a4   :  { %v17489_v56 = vpop.f32.mrf.mxu1 }
 0x8a5   :  { %13255 = vxpose.xlu1.b32.cont [10/16] (narrow) %v13191_v51, 8  ;;  %13279 = vxpose.xlu0.b32.cont [2/16] (narrow) %v13199_v5, 8  ;;  %v13195_v51 = vadd.f32 %v17477_v7, %v12488_v43  ;;  %v13203_v5 = vadd.f32 %v17489_v56, %v12496_v36  ;;  %v23940_v7 = vld [vmem:[#allocation42_spill] sm:$0xff]  ;;  %v12510_v36 = vadd.f32 %v22956_v63, %v22799_v10 }
 0x8a6   :  { %v12963_v49 = vpop.f32.mrf.mxu1  ;;  %v12490_v56 = vadd.f32 %v22828_v34, %v23940_v7  ;;  %v23947_v7 = vld [vmem:[#allocation45_spill] sm:$0xff] }
 0x8a7   :  { %v13202_v50 = vadd.f32 %v12963_v49, %v12495_v45  ;;  %v12497_v49 = vadd.f32 %v22900_v1, %v22747_v41  ;;  %v23942_v45 = vld [vmem:[#allocation77_spill] sm:$0xff] }
 0x8a8   :  { %v17492_v19 = vpop.f32.mrf.mxu1  ;;  %v13197_v41 = vadd.f32 %v22946_v11, %v12490_v56  ;;  %v12500_v11 = vadd.f32 %v22908_v0, %v23942_v45  ;;  %v12512_v56 = vadd.f32 %v22968_v61, %v23947_v7 }
 0x8a9   :  { %13256 = vxpose.xlu1.b32.cont [11/16] (narrow) %v13192_v60, 8  ;;  %13280 = vxpose.xlu0.b32.cont [3/16] (narrow) %v13200_v39, 8  ;;  %v13196_v60 = vadd.f32 %v12933_v26, %v12489_v40  ;;  %v22994_v39 = vpop.f32.mrf.mxu0  ;;  %v13205_v1 = vadd.f32 %v17492_v19, %v12498_v32  ;;  %v12508_v19 = vadd.f32 %v22944_v9, %v22791_v28 }
 0x8aa   :  { %v12973_v17 = vpop.f32.mrf.mxu1  ;;  %v12511_v40 = vadd.f32 %v22974_v27, %v23945_v42 }
 0x8ab   :  { %v13204_v31 = vadd.f32 %v12973_v17, %v12497_v49  ;;  %v12499_v17 = vadd.f32 %v22916_v52, %v22757_v13 }
 0x8ac   :  { %v17495_v44 = vpop.f32.mrf.mxu1 }
 0x8ad   :  { %13257 = vxpose.xlu1.b32.cont [12/16] (narrow) %v13193_v58, 8  ;;  %13281 = vxpose.xlu0.b32.cont [4/16] (narrow) %v13201_v25, 8  ;;  %v23005_v58 = vpop.f32.mrf.mxu0  ;;  %v12507_v25 = vadd.f32 %v22950_v14, %v22794_v30  ;;  %v13207_v52 = vadd.f32 %v17495_v44, %v12500_v11  ;;  %v12502_v44 = vadd.f32 %v22920_v57, %v23943_v47  ;;  %v23955_v47 = vld [vmem:[#allocation23_spill] sm:$0xff] }
 0x8ae   :  { %v12983_v15 = vpop.f32.mrf.mxu1 }
 0x8af   :  { %v13206_v20 = vadd.f32 %v12983_v15, %v12499_v17  ;;  %v23011_v55 = vpop.f32.mrf.mxu0  ;;  %v12501_v15 = vadd.f32 %v22924_v6, %v22767_v29 }
 0x8b0   :  { %v17498_v54 = vpop.f32.mrf.mxu1 }
 0x8b1   :  { %13258 = vxpose.xlu1.b32.cont [13/16] (narrow) %v13194_v59, 8  ;;  %13282 = vxpose.xlu0.b32.cont [5/16] (narrow) %v13202_v50, 8  ;;  %v23017_v30 = vpop.f32.mrf.mxu0  ;;  %v12509_v50 = vadd.f32 %v22962_v46, %v22802_v18  ;;  %v13209_v6 = vadd.f32 %v17498_v54, %v12502_v44 }
 0x8b2   :  { %v12993_v48 = vpop.f32.mrf.mxu1 }
 0x8b3   :  { %v13208_v8 = vadd.f32 %v12993_v48, %v12501_v15  ;;  %v23023_v28 = vpop.f32.mrf.mxu0 }
 0x8b4   :  { %v22988_v22 = vpop.f32.mrf.mxu1 }
 0x8b5   :  { %13259 = vxpose.xlu1.b32.cont [14/16] (narrow) %v13195_v51, 8  ;;  %13283 = vxpose.xlu0.b32.cont [6/16] (narrow) %v13203_v5, 8  ;;  %v23029_v18 = vpop.f32.mrf.mxu0  ;;  %v23944_v5 = vld [vmem:[#allocation18_spill] sm:$0xff] }
 0x8b6   :  { %v13003_v4 = vpop.f32.mrf.mxu1  ;;  %v12503_v48 = vadd.f32 %v22932_v2, %v23944_v5 }
 0x8b7   :  { %v23035_v10 = vpop.f32.mrf.mxu0 }
 0x8b8   :  { %v22996_v3 = vpop.f32.mrf.mxu1  ;;  %v13210_v49 = vadd.f32 %v13003_v4, %v12503_v48  ;;  %v23948_v4 = vld [vmem:[#allocation43_spill] sm:$0xff] }
 0x8b9   :  { %13260 = vxpose.xlu1.b32.cont [15/16] (narrow) %v13196_v60, 8  ;;  %13284 = vxpose.xlu0.b32.cont [7/16] (narrow) %v13204_v31, 8  ;;  %v23946_v31 = vld [vmem:[#allocation17_spill] sm:$0xff]  ;;  %v23042_v32 = vpop.f32.mrf.mxu0 }
 0x8ba   :  { %v23002_v35 = vpop.f32.mrf.mxu1  ;;  %v12504_v54 = vadd.f32 %v22928_v12, %v23946_v31 }
 0x8bc   :  { %v17507_v26 = vpop.f32.mrf.mxu1  ;;  %v13211_v16 = vadd.f32 %v22988_v22, %v12504_v54  ;;  %v23950_v22 = vld [vmem:[#allocation51_spill] sm:$0xff] }
 0x8bd   :  { %13261 = vxpose.xlu1.b32.end [16/16] (narrow) %v13197_v41, 8  ;;  %13285 = vxpose.xlu0.b32.cont [8/16] (narrow) %v13205_v1, 8  ;;  %v13215_v59 = vadd.f32 %v17507_v26, %v12508_v19  ;;  %v12505_v1 = vadd.f32 %v22940_v23, %v23948_v4  ;;  %v23949_v26 = vld [vmem:[#allocation46_spill] sm:$0xff] }
 0x8be   :  { %v13023_v34 = vpop.f32.mrf.mxu1  ;;  %v12513_v17 = vadd.f32 %v22986_v33, %v23949_v26 }
 0x8bf   :  { %v13214_v62 = vadd.f32 %v13023_v34, %v12507_v25  ;;  %v13212_v61 = vadd.f32 %v23002_v35, %v12505_v1  ;;  %v17433_v34 = vpop.f32.mrf.mxu0 }
 0x8c0   :  { %v17510_v21 = vpop.f32.mrf.mxu1 }
 0x8c1   :  { %13286 = vxpose.xlu0.b32.cont [9/16] (narrow) %v13206_v20, 8  ;;  %13310 = vxpose.xlu1.b32.start [1/16] (narrow) %v13214_v62, 8  ;;  %v13217_v51 = vadd.f32 %v17510_v21, %v12510_v36  ;;  %v12506_v62 = vadd.f32 %v22936_v37, %v23950_v22  ;;  %v23951_v21 = vld [vmem:[#allocation83_spill] sm:$0xff]  ;;  %v12396_v19 = vpop.f32.mrf.mxu0 }
 0x8c2   :  { %v13033_v13 = vpop.f32.mrf.mxu1  ;;  %v12514_v45 = vadd.f32 %v22980_v38, %v23951_v21  ;;  %v23964_v21 = vld [vmem:[#allocation87_spill] sm:$0xff] }
 0x8c3   :  { %v13216_v43 = vadd.f32 %v13033_v13, %v12509_v50  ;;  %v13213_v33 = vadd.f32 %v22996_v3, %v12506_v62  ;;  %v12524_v3 = vadd.f32 %v17433_v34, %v23955_v47  ;;  %v23968_v47 = vld [vmem:[#allocation55_spill] sm:$0xff] }
 0x8c4   :  { %v17513_v14 = vpop.f32.mrf.mxu1 }
 0x8c5   :  { %13287 = vxpose.xlu0.b32.cont [10/16] (narrow) %v13207_v52, 8  ;;  %13311 = vxpose.xlu1.b32.cont [2/16] (narrow) %v13215_v59, 8  ;;  %v13219_v27 = vadd.f32 %v17513_v14, %v12512_v56  ;;  %v23952_v52 = vld [vmem:[#allocation22_spill] sm:$0xff] }
 0x8c6   :  { %v13043_v0 = vpop.f32.mrf.mxu1  ;;  %v12515_v35 = vadd.f32 %v23005_v58, %v23952_v52  ;;  %v23953_v59 = vld [vmem:[#allocation86_spill] sm:$0xff] }
 0x8c7   :  { %v13218_v60 = vadd.f32 %v13043_v0, %v12511_v40  ;;  %v12523_v14 = vadd.f32 %v12396_v19, %v23953_v59  ;;  %v17436_v0 = vpop.f32.mrf.mxu0 }
 0x8c8   :  { %v17516_v9 = vpop.f32.mrf.mxu1 }
 0x8c9   :  { %13288 = vxpose.xlu0.b32.cont [11/16] (narrow) %v13208_v8, 8  ;;  %13312 = vxpose.xlu1.b32.cont [3/16] (narrow) %v13216_v43, 8  ;;  %v13221_v11 = vadd.f32 %v17516_v9, %v12514_v45  ;;  %v23954_v8 = vld [vmem:[#allocation20_spill] sm:$0xff]  ;;  %v12406_v36 = vpop.f32.mrf.mxu0  ;;  %v12521_v45 = vadd.f32 %v23042_v32, %v23964_v21 }
 0x8ca   :  { %v13053_v29 = vpop.f32.mrf.mxu1  ;;  %v12516_v43 = vadd.f32 %v22994_v39, %v23954_v8  ;;  %v23958_v39 = vld [vmem:[#allocation53_spill] sm:$0xff] }
 0x8cb   :  { %v13220_v25 = vadd.f32 %v13053_v29, %v12513_v17  ;;  %v23956_v29 = vld [vmem:[#allocation21_spill] sm:$0xff]  ;;  %v17439_v40 = vpop.f32.mrf.mxu0 }
 0x8cc   :  { %v17519_v46 = vpop.f32.mrf.mxu1 }
 0x8cd   :  { %13289 = vxpose.xlu0.b32.cont [12/16] (narrow) %v13209_v6, 8  ;;  %13313 = vxpose.xlu1.b32.cont [4/16] (narrow) %v13217_v51, 8  ;;  %v13223_v9 = vadd.f32 %v17519_v46, %v12516_v43  ;;  %v12517_v6 = vadd.f32 %v23017_v30, %v23956_v29  ;;  %v23957_v51 = vld [vmem:[#allocation90_spill] sm:$0xff]  ;;  %v12416_v7 = vpop.f32.mrf.mxu0  ;;  %v23960_v30 = vld [vmem:[#allocation24_spill] sm:$0xff] }
 0x8ce   :  { %v13063_v57 = vpop.f32.mrf.mxu1  ;;  %v12525_v5 = vadd.f32 %v12406_v36, %v23957_v51  ;;  %v23969_v36 = vld [vmem:[#allocation91_spill] sm:$0xff]  ;;  %v23970_v51 = vld [vmem:[#allocation58_spill] sm:$0xff] }
 0x8cf   :  { %v13222_v37 = vadd.f32 %v13063_v57, %v12515_v35  ;;  %v17442_v26 = vpop.f32.mrf.mxu0  ;;  %v23966_v35 = vld [vmem:[#allocation93_spill] sm:$0xff] }
 0x8d0   :  { %v17522_v63 = vpop.f32.mrf.mxu1  ;;  %v12530_v59 = vadd.f32 %v17442_v26, %v23966_v35 }
 0x8d1   :  { %13290 = vxpose.xlu0.b32.cont [13/16] (narrow) %v13210_v49, 8  ;;  %13314 = vxpose.xlu1.b32.cont [5/16] (narrow) %v13218_v60, 8  ;;  %v12518_v49 = vadd.f32 %v23011_v55, %v23958_v39  ;;  %v23959_v60 = vld [vmem:[#allocation25_spill] sm:$0xff]  ;;  %v12426_v62 = vpop.f32.mrf.mxu0 }
 0x8d2   :  { %v13073_v2 = vpop.f32.mrf.mxu1  ;;  %v12526_v31 = vadd.f32 %v17436_v0, %v23959_v60  ;;  %v23962_v55 = vld [vmem:[#allocation85_spill] sm:$0xff]  ;;  %v23967_v0 = vld [vmem:[#allocation56_spill] sm:$0xff] }
 0x8d3   :  { %v13224_v48 = vadd.f32 %v13073_v2, %v12517_v6  ;;  %v13225_v46 = vadd.f32 %v17522_v63, %v12518_v49  ;;  %v17445_v19 = vpop.f32.mrf.mxu0 }
 0x8d4   :  { %v23044_v41 = vpop.f32.mrf.mxu1 }
 0x8d5   :  { %13291 = vxpose.xlu0.b32.cont [14/16] (narrow) %v13211_v16, 8  ;;  %13315 = vxpose.xlu1.b32.cont [6/16] (narrow) %v13219_v27, 8  ;;  %v12519_v16 = vadd.f32 %v23029_v18, %v23960_v30  ;;  %v23961_v27 = vld [vmem:[#allocation26_spill] sm:$0xff] }
 0x8d6   :  { %v13083_v12 = vpop.f32.mrf.mxu1  ;;  %v12527_v4 = vadd.f32 %v12416_v7, %v23961_v27 }
 0x8d7   :  { %v13226_v2 = vadd.f32 %v13083_v12, %v12519_v16  ;;  %v12529_v12 = vadd.f32 %v12426_v62, %v22882_v24 }
 0x8d8   :  { %v23051_v20 = vpop.f32.mrf.mxu1 }
 0x8d9   :  { %13292 = vxpose.xlu0.b32.cont [15/16] (narrow) %v13212_v61, 8  ;;  %13316 = vxpose.xlu1.b32.cont [7/16] (narrow) %v13220_v25, 8  ;;  %v12520_v61 = vadd.f32 %v23023_v28, %v23962_v55  ;;  %v23963_v25 = vld [vmem:[#allocation88_spill] sm:$0xff] }
 0x8da   :  { %v13093_v23 = vpop.f32.mrf.mxu1  ;;  %v12528_v34 = vadd.f32 %v17439_v40, %v23963_v25  ;;  %v13410_v25 = vld [vmem:[%s23107_s6] sm:$0xff] }
 0x8db   :  { %v13227_v63 = vadd.f32 %v23044_v41, %v12520_v61  ;;  %v13400_v61 = vld [vmem:[%s23106_s5] sm:$0xff]  ;;  %s17594_s5 = smov [#allocation4]  }
 0x8dc   :  { %v17531_v13 = vpop.f32.mrf.mxu1  ;;  %s13434_s6 = sshll.u32 %s17594_s5, 4  ;;  %s13435_s6 = int_to_ptr.vmem [resolvable:$true] %s13434_s6 }
 0x8dd   :  { %13293 = vxpose.xlu0.b32.end [16/16] (narrow) %v13213_v33, 8  ;;  %13317 = vxpose.xlu1.b32.cont [8/16] (narrow) %v13221_v11, 8  ;;  %v13231_v44 = vadd.f32 %v17531_v13, %v12524_v3  ;;  %v13228_v33 = vadd.f32 %v13093_v23, %v12521_v45  ;;  %v23965_v13 = vld [vmem:[#allocation84_spill] sm:$0xff]  ;;  %s17570_s29 = scalar_lea.vmem %s13435_s6, 512  ;;  %p17575_p1 = scmp.lt.s32.totalorder %s13435_s6, %s13435_s6 }
 0x8de   :  { %v13103_v15 = vpop.f32.mrf.mxu1  ;;  %v12522_v52 = vadd.f32 %v23035_v10, %v23965_v13  ;;  %p17571_p0 = scmp.ne.s32.totalorder %s13435_s6, %s17570_s29  ;;  %p17576_p2 = scmp.lt.s32.totalorder %s17570_s29, %s17570_s29 }
 0x8df   :  { %v13230_v50 = vadd.f32 %v13103_v15, %v12523_v14  ;;  %v12436_v15 = vpop.f32.mrf.mxu0 }
 0x8e0   :  { %v17534_v38 = vpop.f32.mrf.mxu1  ;;  %v13229_v41 = vadd.f32 %v23051_v20, %v12522_v52  ;;  %v12531_v24 = vadd.f32 %v12436_v15, %v22890_v53  ;;  %p17577_p3 = por %p17576_p2, %p17575_p1 }
 0x8e1   :  { %13318 = vxpose.xlu1.b32.cont [9/16] (narrow) %v13222_v37, 8  ;;  %13342 = vxpose.xlu0.b32.start [1/16] (narrow) %v13230_v50, 8  ;;  %v13233_v54 = vadd.f32 %v17534_v38, %v12526_v31  ;;  %v17448_v37 = vpop.f32.mrf.mxu0  ;;  %v12532_v38 = vadd.f32 %v17445_v19, %v23967_v0 }
 0x8e2   :  { %v13113_v58 = vpop.f32.mrf.mxu1  ;;  %p17578_p4 = pnand %p17577_p3, %p17571_p0 }
 0x8e3   :  { %v13232_v42 = vadd.f32 %v13113_v58, %v12525_v5  ;;  %v12446_v8 = vpop.f32.mrf.mxu0  ;;  %v12534_v58 = vadd.f32 %v17448_v37, %v23969_v36 }
 0x8e4   :  { %v17537_v57 = vpop.f32.mrf.mxu1  ;;  %v12533_v3 = vadd.f32 %v12446_v8, %v23968_v47 }
 0x8e5   :  { %13319 = vxpose.xlu1.b32.cont [10/16] (narrow) %v13223_v9, 8  ;;  %13343 = vxpose.xlu0.b32.cont [2/16] (narrow) %v13231_v44, 8  ;;  %v13235_v22 = vadd.f32 %v17537_v57, %v12528_v34  ;;  %v17451_v9 = vpop.f32.mrf.mxu0  ;;  %v23971_v57 = vld [vmem:[#allocation57_spill] sm:$0xff] }
 0x8e6   :  { %v13123_v56 = vpop.f32.mrf.mxu1  ;;  %v12536_v39 = vadd.f32 %v17451_v9, %v23971_v57 }
 0x8e7   :  { %v13234_v1 = vadd.f32 %v13123_v56, %v12527_v4  ;;  %v12456_v29 = vpop.f32.mrf.mxu0  ;;  %v23973_v56 = vld [vmem:[#allocation92_spill] sm:$0xff] }
 0x8e8   :  { %v17540_v17 = vpop.f32.mrf.mxu1  ;;  %v12535_v5 = vadd.f32 %v12456_v29, %v23970_v51 }
 0x8e9   :  { %13320 = vxpose.xlu1.b32.cont [11/16] (narrow) %v13224_v48, 8  ;;  %13344 = vxpose.xlu0.b32.cont [3/16] (narrow) %v13232_v42, 8  ;;  %v13237_v14 = vadd.f32 %v17540_v17, %v12530_v59  ;;  %v17454_v48 = vpop.f32.mrf.mxu0 }
 0x8ea   :  { %v13133_v18 = vpop.f32.mrf.mxu1  ;;  %v12538_v30 = vadd.f32 %v17454_v48, %v23973_v56 }
 0x8eb   :  { %v13236_v11 = vadd.f32 %v13133_v18, %v12529_v12  ;;  %v12466_v49 = vpop.f32.mrf.mxu0 }
 0x8ec   :  { %v17543_v28 = vpop.f32.mrf.mxu1 }
 0x8ed   :  { %13321 = vxpose.xlu1.b32.cont [12/16] (narrow) %v13225_v46, 8  ;;  %13345 = vxpose.xlu0.b32.cont [4/16] (narrow) %v13233_v54, 8  ;;  %v13239_v10 = vadd.f32 %v17543_v28, %v12532_v38  ;;  %v23972_v46 = vld [vmem:[#allocation63_spill] sm:$0xff] }
 0x8ee   :  { %v13143_v32 = vpop.f32.mrf.mxu1  ;;  %v12537_v54 = vadd.f32 %v12466_v49, %v23972_v46 }
 0x8ef   :  { %v13238_v23 = vadd.f32 %v13143_v32, %v12531_v24 }
 0x8f0   :  { %v17546_v50 = vpop.f32.mrf.mxu1 }
 0x8f1   :  { %13322 = vxpose.xlu1.b32.cont [13/16] (narrow) %v13226_v2, 8  ;;  %13346 = vxpose.xlu0.b32.cont [5/16] (narrow) %v13234_v1, 8  ;;  %v13241_v53 = vadd.f32 %v17546_v50, %v12534_v58 }
 0x8f2   :  { %v13153_v43 = vpop.f32.mrf.mxu1 }
 0x8f3   :  { %v13240_v20 = vadd.f32 %v13153_v43, %v12533_v3 }
 0x8f4   :  { %v17549_v44 = vpop.f32.mrf.mxu1 }
 0x8f5   :  { %13323 = vxpose.xlu1.b32.cont [14/16] (narrow) %v13227_v63, 8  ;;  %13347 = vxpose.xlu0.b32.cont [6/16] (narrow) %v13235_v22, 8  ;;  %v13243_v60 = vadd.f32 %v17549_v44, %v12536_v39 }
 0x8f6   :  { %v13163_v6 = vpop.f32.mrf.mxu1 }
 0x8f7   :  { %v13242_v42 = vadd.f32 %v13163_v6, %v12535_v5 }
 0x8f8   :  { %v17552_v40 = vpop.f32.mrf.mxu1 }
 0x8f9   :  { %13324 = vxpose.xlu1.b32.cont [15/16] (narrow) %v13228_v33, 8  ;;  %13348 = vxpose.xlu0.b32.cont [7/16] (narrow) %v13236_v11, 8  ;;  %v13245_v16 = vadd.f32 %v17552_v40, %v12538_v30 }
 0x8fa   :  { %v13173_v31 = vpop.f32.mrf.mxu1 }
 0x8fb   :  { %v13244_v7 = vadd.f32 %v13173_v31, %v12537_v54 }
 0x8fd   :  { %13325 = vxpose.xlu1.b32.end [16/16] (narrow) %v13229_v41, 8  ;;  %13349 = vxpose.xlu0.b32.cont [8/16] (narrow) %v13237_v14, 8  ;;  %v13262_v27 = vpop.trf.xlu1 }
 0x901   :  { %13350 = vxpose.xlu0.b32.cont [9/16] (narrow) %v13238_v23, 8 }
 0x905   :  { %13351 = vxpose.xlu0.b32.cont [10/16] (narrow) %v13239_v10, 8 }
 0x909   :  { %13352 = vxpose.xlu0.b32.cont [11/16] (narrow) %v13240_v20, 8 }
 0x90d   :  { %13353 = vxpose.xlu0.b32.cont [12/16] (narrow) %v13241_v53, 8 }
 0x911   :  { %13354 = vxpose.xlu0.b32.cont [13/16] (narrow) %v13242_v42, 8 }
 0x915   :  { %13355 = vxpose.xlu0.b32.cont [14/16] (narrow) %v13243_v60, 8 }
 0x919   :  { %13356 = vxpose.xlu0.b32.cont [15/16] (narrow) %v13244_v7, 8 }
 0x91d   :  { %13357 = vxpose.xlu0.b32.end [16/16] (narrow) %v13245_v16, 8  ;;  %v13294_v4 = vpop.trf.xlu0 }
 0x91e   :  { %v13374_v2 = vadd.f32 %v13294_v4, %v13262_v27 }
 0x93d   :  { %v13326_v1 = vpop.trf.xlu1 }
 0x93e   :  { %v13375_v26 = vadd.f32 %v13374_v2, %v13326_v1 }
 0x95d   :  { %v13358_v17 = vpop.trf.xlu0 }
 0x95e   :  { %v13376_v55 = vadd.f32 %v13375_v26, %v13358_v17 }
 0x960   :  { %13377 = vadd.xlane.f32.xlu1 %v13376_v55 }
 0x971   :  { %13403 = vperm.xlu1 %17556, %v13400_v61  }
 0x975   :  { %13413 = vperm.xlu1 %17556, %v13410_v25  }
 0x9e9   :  { %v13378_v34 = vpop.xlane.xlu1 %13377 }
 0x9ea   :  { %v13379_v63 = vmul.f32 0.001953125, %v13378_v34 }
 0x9ec   :  { %v13380_v22 = vsub.f32 %v13262_v27, %v13379_v63  ;;  %v13381_v62 = vsub.f32 %v13294_v4, %v13379_v63  ;;  %v13382_v18 = vsub.f32 %v13326_v1, %v13379_v63  ;;  %v13383_v21 = vsub.f32 %v13358_v17, %v13379_v63 }
 0x9ed   :  { %v13404_v41 = vpop.permute.xlu1 %13403 }
 0x9ee   :  { %v13384_v45 = vmul.f32 %v13380_v22, %v13380_v22  ;;  %v13385_v12 = vmul.f32 %v13381_v62, %v13381_v62  ;;  %v13386_v33 = vmul.f32 %v13382_v18, %v13382_v18  ;;  %v13387_v19 = vmul.f32 %v13383_v21, %v13383_v21 }
 0x9f0   :  { %v13388_v11 = vadd.f32 %v13385_v12, %v13384_v45 }
 0x9f1   :  { %v13414_v10 = vpop.permute.xlu1 %13413 }
 0x9f2   :  { %v13389_v28 = vadd.f32 %v13388_v11, %v13386_v33 }
 0x9f4   :  { %v13390_v13 = vadd.f32 %v13389_v28, %v13387_v19 }
 0x9f6   :  { %13391 = vadd.xlane.f32.xlu0 %v13390_v13 }
 0xa7f   :  { %v13392_v52 = vpop.xlane.xlu0 %13391 }
 0xa80   :  { %v13393_v35 = vmul.f32 0.001953125, %v13392_v52 }
 0xa82   :  { %v13394_v59 = vadd.f32 1e-05, %v13393_v35 }
 0xa84   :  { %17560 = vrsqrt.f32 %v13394_v59 }
 0xa91   :  { %v17561_v14 = vpop.eup %17560 }
 0xa92   :  { %v13396_v15 = vmul.f32 %v17561_v14, %v13380_v22  ;;  %v13397_v32 = vmul.f32 %v17561_v14, %v13381_v62  ;;  %v13398_v24 = vmul.f32 %v17561_v14, %v13382_v18  ;;  %v13399_v23 = vmul.f32 %v17561_v14, %v13383_v21 }
 0xa94   :  { %v13406_v37 = vmul.f32 %v13404_v41, %v13396_v15  ;;  %v13407_v50 = vmul.f32 %v13404_v41, %v13397_v32  ;;  %v13408_v0 = vmul.f32 %v13404_v41, %v13398_v24  ;;  %v13409_v38 = vmul.f32 %v13404_v41, %v13399_v23 }
 0xa96   :  { %v13416_v8 = vadd.f32 %v13414_v10, %v13406_v37  ;;  %v13417_v43 = vadd.f32 %v13414_v10, %v13407_v50  ;;  %v13418_v47 = vadd.f32 %v13414_v10, %v13408_v0  ;;  %v13419_v3 = vadd.f32 %v13414_v10, %v13409_v38 }
 0xa98   :  { %17562 = vtanh.f32 %v13416_v8 }
 0xa99   :  { %17564 = vtanh.f32 %v13417_v43 }
 0xa9a   :  { %17566 = vtanh.f32 %v13418_v47 }
 0xa9b   :  { %17568 = vtanh.f32 %v13419_v3 }
 0xaa5   :  { %v17563_v20 = vpop.eup %17562 }
 0xaa6   :  { %v17565_v9 = vpop.eup %17564  ;;  %13424 = vst [vmem:[#allocation4] sm:$0xff] %v17563_v20 }
 0xaa7   :  { %v17567_v44 = vpop.eup %17566  ;;  %13425 = vst [vmem:[#allocation4 + $0x8] sm:$0xff] %v17565_v9 }
 0xaa8   :  { %v17569_v36 = vpop.eup %17568  ;;  %13426 = vst [vmem:[#allocation4 + $0x10] sm:$0xff] %v17567_v44 }
 0xaa9   :  { %13427 = vst [vmem:[#allocation4 + $0x18] sm:$0xff] %v17569_v36 }
 0xaaa   :  { %17581 = shalt.err (!%p17578_p4)
}
 0xaab   :  { %13437 = dma.vmem_to_hbm [thread:$0]  %s13435_s6, 512, %s23108_s7, [#allocation5]  }
 0xaac   :  { %17590 = dma.done.wait [#allocation5], 512  }
 0xaad   :  { %17591 = vsyncadd [#allocation5], 4294966784 }
 0xaae   :  { %13441 = vsyncpa [#allocation5], 1 }

</bundles_post_ra>
